<compile_context>
chip_gen: v5e
topology: v5e:2x2
jax: 0.10.0
libtpu: 0.0.40
codegen_flags: <defaults>
</compile_context>

<pallas_src>
import functools

import jax
import jax.numpy as jnp
from jax.experimental import pallas as pl
from jax.experimental.pallas import tpu as pltpu


# ----------------------------- Pallas kernels ------------------------------

def _mm_relu_kernel(x_ref, w_ref, o_ref):
    # (tile_rows, K) @ (K, N) on the MXU with fused ReLU.
    o_ref[...] = jnp.maximum(
        jnp.dot(x_ref[...], w_ref[...], preferred_element_type=jnp.float32), 0.0)


def _bmm_relu_kernel(x_ref, w_ref, o_ref):
    # One ensemble member per grid step: (1, M, K) @ (1, K, N) + ReLU.
    o_ref[0] = jnp.maximum(
        jnp.dot(x_ref[0], w_ref[0], preferred_element_type=jnp.float32), 0.0)


def _fc_ens_kernel(feat_ref, w1_ref, b1_ref, w2_ref, b2_ref, out_ref, *,
                   inv_tau, inv_e, softmax):
    # Fused fc1 + ReLU + fc2 (+ softmax(q/tau)) for net e; accumulated into the
    # ensemble-mean output which stays resident in VMEM across the E grid steps.
    e = pl.program_id(0)
    h = jnp.dot(feat_ref[0], w1_ref[0], preferred_element_type=jnp.float32) + b1_ref[0]
    h = jnp.maximum(h, 0.0)
    q = jnp.dot(h, w2_ref[0], preferred_element_type=jnp.float32) + b2_ref[0]
    if softmax:
        z = q * inv_tau
        z = z - jnp.max(z, axis=-1, keepdims=True)
        ez = jnp.exp(z)
        contrib = ez / jnp.sum(ez, axis=-1, keepdims=True)
    else:
        contrib = q

    @pl.when(e == 0)
    def _():
        out_ref[...] = jnp.zeros_like(out_ref)

    out_ref[...] += contrib * inv_e


def _fc_single_kernel(feat_ref, w1_ref, b1_ref, w2_ref, b2_ref, q_ref, h_ref):
    # Single-net fc1 + ReLU + fc2; also emits the penultimate features.
    h = jnp.maximum(
        jnp.dot(feat_ref[...], w1_ref[...], preferred_element_type=jnp.float32)
        + b1_ref[...], 0.0)
    h_ref[...] = h
    q_ref[...] = (jnp.dot(h, w2_ref[...], preferred_element_type=jnp.float32)
                  + b2_ref[...])


_VMEM = pl.BlockSpec(memory_space=pltpu.MemorySpace.VMEM)


# --------------------------- pallas_call wrappers ----------------------------

def pallas_matmul_relu_tiled(x, w, tile_rows):
    """(M, K) @ (K, N) + ReLU, tiled over M rows (grid axis marked 'parallel')."""
    M, K = x.shape
    N = w.shape[1]
    assert M % tile_rows == 0
    return pl.pallas_call(
        _mm_relu_kernel,
        out_shape=jax.ShapeDtypeStruct((M, N), jnp.float32),
        grid=(M // tile_rows,),
        in_specs=[pl.BlockSpec((tile_rows, K), lambda i: (i, 0)),
                  pl.BlockSpec((K, N), lambda i: (0, 0))],
        out_specs=pl.BlockSpec((tile_rows, N), lambda i: (i, 0)),
        compiler_params=pltpu.CompilerParams(
            dimension_semantics=("parallel",)),
    )(x, w)


def pallas_bmm_relu(x, w):
    """Batched (E, M, K) @ (E, K, N) + ReLU; grid over the ensemble axis."""
    E, M, K = x.shape
    N = w.shape[-1]
    return pl.pallas_call(
        _bmm_relu_kernel,
        out_shape=jax.ShapeDtypeStruct((E, M, N), jnp.float32),
        grid=(E,),
        in_specs=[pl.BlockSpec((1, M, K), lambda e: (e, 0, 0)),
                  pl.BlockSpec((1, K, N), lambda e: (e, 0, 0))],
        out_specs=pl.BlockSpec((1, M, N), lambda e: (e, 0, 0)),
        compiler_params=pltpu.CompilerParams(
            dimension_semantics=("parallel",)),
    )(x, w)


def pallas_fc_ensemble(feat, w1, b1, w2, b2, *, tau, softmax):
    """Fused fc1+fc2 (+softmax(q/tau)) with mean over nets: (E,B,K) -> (B,A)."""
    E, B, K = feat.shape
    H = w1.shape[-1]
    A = w2.shape[-1]
    kern = functools.partial(_fc_ens_kernel, inv_tau=1.0 / tau, inv_e=1.0 / E,
                             softmax=softmax)
    return pl.pallas_call(
        kern,
        out_shape=jax.ShapeDtypeStruct((B, A), jnp.float32),
        grid=(E,),
        in_specs=[pl.BlockSpec((1, B, K), lambda e: (e, 0, 0)),
                  pl.BlockSpec((1, K, H), lambda e: (e, 0, 0)),
                  pl.BlockSpec((1, 1, H), lambda e: (e, 0, 0)),
                  pl.BlockSpec((1, H, A), lambda e: (e, 0, 0)),
                  pl.BlockSpec((1, 1, A), lambda e: (e, 0, 0))],
        out_specs=pl.BlockSpec((B, A), lambda e: (0, 0)),   # VMEM accumulator
        compiler_params=pltpu.CompilerParams(
            dimension_semantics=("arbitrary",),             # reduction over E
            vmem_limit_bytes=32 * 1024 * 1024),
    )(feat, w1, b1, w2, b2)


def pallas_fc_single(feat, w1, b1, w2, b2):
    """Single-net fc1+fc2; returns (q (B,A), features (B,512))."""
    B = feat.shape[0]
    H = w1.shape[1]
    A = w2.shape[1]
    return pl.pallas_call(
        _fc_single_kernel,
        out_shape=(jax.ShapeDtypeStruct((B, A), jnp.float32),
                   jax.ShapeDtypeStruct((B, H), jnp.float32)),
        in_specs=[_VMEM, _VMEM, _VMEM, _VMEM, _VMEM],
        out_specs=(_VMEM, _VMEM),
    )(feat, w1, b1, w2, b2)


# --------------------------- plain-JAX glue (im2col) -------------------------

def _im2col_nhwc(x, k, stride):
    """Square-kernel VALID im2col on NHWC; feature order = (kh, kw, c)."""
    B, H, W, C = x.shape
    Ho = (H - k) // stride + 1
    Wo = (W - k) // stride + 1
    cols = []
    for i in range(k):
        for j in range(k):
            cols.append(x[:, i:i + stride * (Ho - 1) + 1:stride,
                          j:j + stride * (Wo - 1) + 1:stride, :])
    patches = jnp.stack(cols, axis=3)                 # (B, Ho, Wo, k*k, C)
    return patches.reshape(B, Ho, Wo, k * k * C), Ho, Wo


def _conv_trunk(x, c1w, c2w, c3w):
    """x: (B,4,84,84) NCHW (0..255 floats) -> per-net NHWC-flattened features
    (E, B, 3136).  c1w already contains the 1/255 input scale."""
    E = c2w.shape[0]
    B = x.shape[0]
    c1_out = c1w.shape[1] // E
    xn = x.transpose(0, 2, 3, 1).astype(jnp.float32)            # NCHW -> NHWC once
    p1, H1, W1 = _im2col_nhwc(xn, 8, 4)                         # shared by all nets
    h1 = pallas_matmul_relu_tiled(p1.reshape(B * H1 * W1, -1), c1w,
                                  tile_rows=H1 * W1)            # (B*400, E*32)
    h1 = h1.reshape(B, H1, W1, E, c1_out).transpose(3, 0, 1, 2, 4)
    p2, H2, W2 = _im2col_nhwc(h1.reshape(E * B, H1, W1, c1_out), 4, 2)
    h2 = pallas_bmm_relu(p2.reshape(E, B * H2 * W2, -1), c2w)   # (E, B*81, 64)
    p3, H3, W3 = _im2col_nhwc(h2.reshape(E * B, H2, W2, c2w.shape[-1]), 3, 1)
    h3 = pallas_bmm_relu(p3.reshape(E, B * H3 * W3, -1), c3w)   # (E, B*49, 64)
    return h3.reshape(E, B, H3 * W3 * c3w.shape[-1])            # NHWC flatten


def ens_dqn_v2_forward(x, ep, tau=0.1, ens_num=None, last_layer=False,
                       q_value=False):
    """Mirrors ENS_DQN_V2.forward on prepared (stacked) ensemble params."""
    E = ep['conv2_w'].shape[0]
    if ens_num is None:
        feat = _conv_trunk(x, ep['conv1_w'], ep['conv2_w'], ep['conv3_w'])
        return pallas_fc_ensemble(feat, ep['fc1_w'], ep['fc1_b'],
                                  ep['fc2_w'], ep['fc2_b'], tau=tau, softmax=True)
    elif q_value:
        feat = _conv_trunk(x, ep['conv1_w'], ep['conv2_w'], ep['conv3_w'])
        return pallas_fc_ensemble(feat, ep['fc1_w'], ep['fc1_b'],
                                  ep['fc2_w'], ep['fc2_b'], tau=tau, softmax=False)
    else:
        # Single ensemble member: slice that net's (static) weight blocks only.
        n = ens_num
        c1_out = ep['conv1_w'].shape[1] // E
        feat = _conv_trunk(x,
                           ep['conv1_w'][:, n * c1_out:(n + 1) * c1_out],
                           ep['conv2_w'][n:n + 1], ep['conv3_w'][n:n + 1])
        q, h = pallas_fc_single(feat[0], ep['fc1_w'][n], ep['fc1_b'][n],
                                ep['fc2_w'][n], ep['fc2_b'][n])
        return (q, h) if last_layer else q


# ------------------------------- parameters ---------------------------------

def _kaiming(key, shape, fan_in):
    return jax.random.normal(key, shape, jnp.float32) * jnp.sqrt(2.0 / fan_in)


def init_dqn_params(key, n_actions):
    ks = jax.random.split(key, 5)
    return {
        'conv1_w': _kaiming(ks[0], (32, 4, 8, 8), 4 * 8 * 8),
        'conv2_w': _kaiming(ks[1], (64, 32, 4, 4), 32 * 4 * 4),
        'conv3_w': _kaiming(ks[2], (64, 64, 3, 3), 64 * 3 * 3),
        'fc1_w': _kaiming(ks[3], (512, 64 * 7 * 7), 64 * 7 * 7),   # torch (out, in)
        'fc1_b': jnp.zeros((512,), jnp.float32),
        'fc2_w': _kaiming(ks[4], (n_actions, 512), 512),
        'fc2_b': jnp.zeros((n_actions,), jnp.float32),
    }


def init_ensemble_params(key, n_actions, num_networks):
    return [init_dqn_params(k, n_actions) for k in jax.random.split(key, num_networks)]


def prepare_ensemble_params(params_list):
    """One-time (outside jit) restructuring of torch-layout per-net params into
    stacked, matmul-ready arrays.  Folds x/255 into conv1 and the NHWC flatten
    order into fc1_w so the jitted forward does no weight transposes."""
    def conv_to_mat(w):                       # (O, C, KH, KW) -> (KH*KW*C, O)
        return w.transpose(2, 3, 1, 0).reshape(-1, w.shape[0])

    conv1_w = jnp.concatenate([conv_to_mat(p['conv1_w']) for p in params_list],
                              axis=1) * (1.0 / 255.0)           # (256, E*32)
    conv2_w = jnp.stack([conv_to_mat(p['conv2_w']) for p in params_list])  # (E,512,64)
    conv3_w = jnp.stack([conv_to_mat(p['conv3_w']) for p in params_list])  # (E,576,64)
    # torch flatten is (c, h, w); our features are NHWC-flattened (h, w, c).
    fc1_w = jnp.stack([p['fc1_w'].reshape(512, 64, 7, 7)
                       .transpose(2, 3, 1, 0).reshape(64 * 7 * 7, 512)
                       for p in params_list])                   # (E, 3136, 512)
    fc1_b = jnp.stack([p['fc1_b'].reshape(1, -1) for p in params_list])    # (E,1,512)
    fc2_w = jnp.stack([p['fc2_w'].T for p in params_list])      # (E, 512, A)
    fc2_b = jnp.stack([p['fc2_b'].reshape(1, -1) for p in params_list])    # (E,1,A)
    return dict(conv1_w=conv1_w, conv2_w=conv2_w, conv3_w=conv3_w,
                fc1_w=fc1_w, fc1_b=fc1_b, fc2_w=fc2_w, fc2_b=fc2_b)


# ----------------------------- pure-JAX reference ---------------------------

def _dqn_reference(x, p):
    P = jax.lax.Precision.HIGHEST
    dn = ('NCHW', 'OIHW', 'NCHW')
    h = x.astype(jnp.float32) / 255.0
    h = jax.nn.relu(jax.lax.conv_general_dilated(h, p['conv1_w'], (4, 4), 'VALID',
                                                 dimension_numbers=dn, precision=P))
    h = jax.nn.relu(jax.lax.conv_general_dilated(h, p['conv2_w'], (2, 2), 'VALID',
                                                 dimension_numbers=dn, precision=P))
    h = jax.nn.relu(jax.lax.conv_general_dilated(h, p['conv3_w'], (1, 1), 'VALID',
                                                 dimension_numbers=dn, precision=P))
    feat = h.reshape(h.shape[0], -1)
    feat = jax.nn.relu(jnp.dot(feat, p['fc1_w'].T, precision=P) + p['fc1_b'])
    return jnp.dot(feat, p['fc2_w'].T, precision=P) + p['fc2_b']


def _ens_reference(x, params_list, tau=0.1):
    probs = [jax.nn.softmax(_dqn_reference(x, p) / tau, axis=1) for p in params_list]
    return sum(probs) / len(params_list)


# ----------------------------------- main ------------------------------------

if __name__ == "__main__":
    B, n_actions, num_networks = 2, 4, 5
    key = jax.random.PRNGKey(0)
    kx, kp = jax.random.split(key)

    # Atari-style frames: 4 stacked 84x84 channels, values in [0, 255).
    x = jax.random.uniform(kx, (B, 4, 84, 84), jnp.float32, 0.0, 255.0)
    raw_params = init_ensemble_params(kp, n_actions, num_networks)
    ep = prepare_ensemble_params(raw_params)       # one-time, outside the jit

    # Default path: averaged softmax(q / tau) policy.
    fwd = jax.jit(lambda xx, pp: ens_dqn_v2_forward(xx, pp, tau=0.1))
    out = jax.block_until_ready(fwd(x, ep))
    assert out.shape == (B, n_actions), out.shape
    assert bool(jnp.all(jnp.abs(jnp.sum(out, axis=1) - 1.0) < 1e-3))
    ref = _ens_reference(x, raw_params, tau=0.1)
    assert bool(jnp.allclose(out, ref, rtol=1e-3, atol=5e-3)), (out, ref)

    # Mean-q path (ens_num set + q_value=True in the original module).
    fwd_q = jax.jit(lambda xx, pp: ens_dqn_v2_forward(xx, pp, ens_num=0, q_value=True))
    out_q = jax.block_until_ready(fwd_q(x, ep))
    ref_q = sum(_dqn_reference(x, p) for p in raw_params) / num_networks
    assert out_q.shape == (B, n_actions), out_q.shape
    assert bool(jnp.allclose(out_q, ref_q, rtol=5e-3, atol=5e-3)), (out_q, ref_q)

    # Single-net path with last_layer=True.
    fwd_s = jax.jit(lambda xx, pp: ens_dqn_v2_forward(xx, pp, ens_num=1, last_layer=True))
    q_s, feat_s = jax.block_until_ready(fwd_s(x, ep))
    assert q_s.shape == (B, n_actions) and feat_s.shape == (B, 512)
    assert bool(jnp.allclose(q_s, _dqn_reference(x, raw_params[1]),
                             rtol=5e-3, atol=5e-3))

    print("KERNEL_OK")
</pallas_src>

<mosaic_0001>
module attributes {stable_mosaic.version = 11 : i64} {
  func.func @_mm_relu_kernel(%arg0: i32, %arg1: memref<400x256xf32, #tpu.memory_space<vmem>>, %arg2: memref<256x160xf32, #tpu.memory_space<vmem>>, %arg3: memref<400x160xf32, #tpu.memory_space<vmem>>) attributes {dimension_semantics = [#tpu.dimension_semantics<parallel>], iteration_bounds = array<i64: 2>, scalar_prefetch = 0 : i64, scratch_operands = 0 : i64, tpu.core_type = #tpu.core_type<tc>, window_params = [{transform_indices = @transform_0, window_bounds = array<i64: 400, 256>}, {pipeline_mode = #tpu.pipeline_mode<synchronous>, transform_indices = @transform_1, window_bounds = array<i64: 256, 160>}, {transform_indices = @transform_2, window_bounds = array<i64: 400, 160>}]} {
    %c0 = arith.constant 0 : index
    %c0_0 = arith.constant 0 : index
    %0 = vector.load %arg1[%c0, %c0_0] : memref<400x256xf32, #tpu.memory_space<vmem>>, vector<400x256xf32>
    %c0_1 = arith.constant 0 : index
    %c0_2 = arith.constant 0 : index
    %1 = vector.load %arg2[%c0_1, %c0_2] : memref<256x160xf32, #tpu.memory_space<vmem>>, vector<256x160xf32>
    %cst = arith.constant dense<0.000000e+00> : vector<400x160xf32>
    %2 = tpu.matmul %0, %1, %cst {dimension_numbers = #tpu.dot_dimension_numbers<[1], [0], [0], [1], [0, 0, 1, 1], [], []>} : vector<400x256xf32>, vector<256x160xf32>, vector<400x160xf32> -> vector<400x160xf32>
    %cst_3 = arith.constant 0.000000e+00 : f32
    %3 = vector.broadcast %cst_3 : f32 to vector<400x160xf32>
    %4 = arith.maximumf %2, %3 : vector<400x160xf32>
    %c0_4 = arith.constant 0 : index
    %c0_5 = arith.constant 0 : index
    %5 = vector.load %arg3[%c0_4, %c0_5] : memref<400x160xf32, #tpu.memory_space<vmem>>, vector<400x160xf32>
    tpu.vector_store %arg3[%c0_4, %c0_5], %4 {strides = array<i32>} : memref<400x160xf32, #tpu.memory_space<vmem>>, vector<400x160xf32>,
    return
  }
  func.func @transform_0(%arg0: i32) -> (i32, i32) {
    %c0_i32 = arith.constant 0 : i32
    %c0_i32_0 = arith.constant 0 : i32
    return %arg0, %c0_i32 : i32, i32
  }
  func.func @transform_1(%arg0: i32) -> (i32, i32) {
    %c0_i32 = arith.constant 0 : i32
    %c0_i32_0 = arith.constant 0 : i32
    %c0_i32_1 = arith.constant 0 : i32
    return %c0_i32, %c0_i32_0 : i32, i32
  }
  func.func @transform_2(%arg0: i32) -> (i32, i32) {
    %c0_i32 = arith.constant 0 : i32
    %c0_i32_0 = arith.constant 0 : i32
    return %arg0, %c0_i32 : i32, i32
  }
}

module attributes {stable_mosaic.version = 11 : i64} {
  func.func @_bmm_relu_kernel(%arg0: i32, %arg1: memref<1x162x512xf32, #tpu.memory_space<vmem>>, %arg2: memref<1x512x64xf32, #tpu.memory_space<vmem>>, %arg3: memref<1x162x64xf32, #tpu.memory_space<vmem>>) attributes {dimension_semantics = [#tpu.dimension_semantics<parallel>], iteration_bounds = array<i64: 5>, scalar_prefetch = 0 : i64, scratch_operands = 0 : i64, tpu.core_type = #tpu.core_type<tc>, window_params = [{transform_indices = @transform_0, window_bounds = array<i64: 1, 162, 512>}, {transform_indices = @transform_1, window_bounds = array<i64: 1, 512, 64>}, {transform_indices = @transform_2, window_bounds = array<i64: 1, 162, 64>}]} {
    %c0 = arith.constant 0 : index
    %c0_0 = arith.constant 0 : index
    %c0_1 = arith.constant 0 : index
    %0 = vector.load %arg1[%c0, %c0_0, %c0_1] : memref<1x162x512xf32, #tpu.memory_space<vmem>>, vector<1x162x512xf32>
    %1 = vector.shape_cast %0 : vector<1x162x512xf32> to vector<162x512xf32>
    %c0_2 = arith.constant 0 : index
    %c0_3 = arith.constant 0 : index
    %c0_4 = arith.constant 0 : index
    %2 = vector.load %arg2[%c0_2, %c0_3, %c0_4] : memref<1x512x64xf32, #tpu.memory_space<vmem>>, vector<1x512x64xf32>
    %3 = vector.shape_cast %2 : vector<1x512x64xf32> to vector<512x64xf32>
    %cst = arith.constant dense<0.000000e+00> : vector<162x64xf32>
    %4 = tpu.matmul %1, %3, %cst {dimension_numbers = #tpu.dot_dimension_numbers<[1], [0], [0], [1], [0, 0, 1, 1], [], []>} : vector<162x512xf32>, vector<512x64xf32>, vector<162x64xf32> -> vector<162x64xf32>
    %cst_5 = arith.constant 0.000000e+00 : f32
    %5 = vector.broadcast %cst_5 : f32 to vector<162x64xf32>
    %6 = arith.maximumf %4, %5 : vector<162x64xf32>
    %c0_6 = arith.constant 0 : index
    %c0_7 = arith.constant 0 : index
    %c0_8 = arith.constant 0 : index
    %7 = vector.load %arg3[%c0_6, %c0_7, %c0_8] : memref<1x162x64xf32, #tpu.memory_space<vmem>>, vector<1x162x64xf32>
    %8 = vector.shape_cast %7 : vector<1x162x64xf32> to vector<162x64xf32>
    %9 = vector.shape_cast %6 : vector<162x64xf32> to vector<1x162x64xf32>
    tpu.vector_store %arg3[%c0_6, %c0_7, %c0_8], %9 {strides = array<i32>} : memref<1x162x64xf32, #tpu.memory_space<vmem>>, vector<1x162x64xf32>,
    return
  }
  func.func @transform_0(%arg0: i32) -> (i32, i32, i32) {
    %c0_i32 = arith.constant 0 : i32
    %c0_i32_0 = arith.constant 0 : i32
    %c0_i32_1 = arith.constant 0 : i32
    return %arg0, %c0_i32, %c0_i32_0 : i32, i32, i32
  }
  func.func @transform_1(%arg0: i32) -> (i32, i32, i32) {
    %c0_i32 = arith.constant 0 : i32
    %c0_i32_0 = arith.constant 0 : i32
    %c0_i32_1 = arith.constant 0 : i32
    return %arg0, %c0_i32, %c0_i32_0 : i32, i32, i32
  }
  func.func @transform_2(%arg0: i32) -> (i32, i32, i32) {
    %c0_i32 = arith.constant 0 : i32
    %c0_i32_0 = arith.constant 0 : i32
    %c0_i32_1 = arith.constant 0 : i32
    return %arg0, %c0_i32, %c0_i32_0 : i32, i32, i32
  }
}

module attributes {stable_mosaic.version = 11 : i64} {
  func.func @_bmm_relu_kernel(%arg0: i32, %arg1: memref<1x98x576xf32, #tpu.memory_space<vmem>>, %arg2: memref<1x576x64xf32, #tpu.memory_space<vmem>>, %arg3: memref<1x98x64xf32, #tpu.memory_space<vmem>>) attributes {dimension_semantics = [#tpu.dimension_semantics<parallel>], iteration_bounds = array<i64: 5>, scalar_prefetch = 0 : i64, scratch_operands = 0 : i64, tpu.core_type = #tpu.core_type<tc>, window_params = [{transform_indices = @transform_0, window_bounds = array<i64: 1, 98, 576>}, {transform_indices = @transform_1, window_bounds = array<i64: 1, 576, 64>}, {transform_indices = @transform_2, window_bounds = array<i64: 1, 98, 64>}]} {
    %c0 = arith.constant 0 : index
    %c0_0 = arith.constant 0 : index
    %c0_1 = arith.constant 0 : index
    %0 = vector.load %arg1[%c0, %c0_0, %c0_1] : memref<1x98x576xf32, #tpu.memory_space<vmem>>, vector<1x98x576xf32>
    %1 = vector.shape_cast %0 : vector<1x98x576xf32> to vector<98x576xf32>
    %c0_2 = arith.constant 0 : index
    %c0_3 = arith.constant 0 : index
    %c0_4 = arith.constant 0 : index
    %2 = vector.load %arg2[%c0_2, %c0_3, %c0_4] : memref<1x576x64xf32, #tpu.memory_space<vmem>>, vector<1x576x64xf32>
    %3 = vector.shape_cast %2 : vector<1x576x64xf32> to vector<576x64xf32>
    %cst = arith.constant dense<0.000000e+00> : vector<98x64xf32>
    %4 = tpu.matmul %1, %3, %cst {dimension_numbers = #tpu.dot_dimension_numbers<[1], [0], [0], [1], [0, 0, 1, 1], [], []>} : vector<98x576xf32>, vector<576x64xf32>, vector<98x64xf32> -> vector<98x64xf32>
    %cst_5 = arith.constant 0.000000e+00 : f32
    %5 = vector.broadcast %cst_5 : f32 to vector<98x64xf32>
    %6 = arith.maximumf %4, %5 : vector<98x64xf32>
    %c0_6 = arith.constant 0 : index
    %c0_7 = arith.constant 0 : index
    %c0_8 = arith.constant 0 : index
    %7 = vector.load %arg3[%c0_6, %c0_7, %c0_8] : memref<1x98x64xf32, #tpu.memory_space<vmem>>, vector<1x98x64xf32>
    %8 = vector.shape_cast %7 : vector<1x98x64xf32> to vector<98x64xf32>
    %9 = vector.shape_cast %6 : vector<98x64xf32> to vector<1x98x64xf32>
    tpu.vector_store %arg3[%c0_6, %c0_7, %c0_8], %9 {strides = array<i32>} : memref<1x98x64xf32, #tpu.memory_space<vmem>>, vector<1x98x64xf32>,
    return
  }
  func.func @transform_0(%arg0: i32) -> (i32, i32, i32) {
    %c0_i32 = arith.constant 0 : i32
    %c0_i32_0 = arith.constant 0 : i32
    %c0_i32_1 = arith.constant 0 : i32
    return %arg0, %c0_i32, %c0_i32_0 : i32, i32, i32
  }
  func.func @transform_1(%arg0: i32) -> (i32, i32, i32) {
    %c0_i32 = arith.constant 0 : i32
    %c0_i32_0 = arith.constant 0 : i32
    %c0_i32_1 = arith.constant 0 : i32
    return %arg0, %c0_i32, %c0_i32_0 : i32, i32, i32
  }
  func.func @transform_2(%arg0: i32) -> (i32, i32, i32) {
    %c0_i32 = arith.constant 0 : i32
    %c0_i32_0 = arith.constant 0 : i32
    %c0_i32_1 = arith.constant 0 : i32
    return %arg0, %c0_i32, %c0_i32_0 : i32, i32, i32
  }
}

module attributes {stable_mosaic.version = 11 : i64} {
  func.func @_fc_ens_kernel(%arg0: i32, %arg1: memref<1x2x3136xf32, #tpu.memory_space<vmem>>, %arg2: memref<1x3136x512xf32, #tpu.memory_space<vmem>>, %arg3: memref<1x1x512xf32, #tpu.memory_space<vmem>>, %arg4: memref<1x512x4xf32, #tpu.memory_space<vmem>>, %arg5: memref<1x1x4xf32, #tpu.memory_space<vmem>>, %arg6: memref<2x4xf32, #tpu.memory_space<vmem>>) attributes {dimension_semantics = [#tpu.dimension_semantics<arbitrary>], iteration_bounds = array<i64: 5>, scalar_prefetch = 0 : i64, scratch_operands = 0 : i64, tpu.core_type = #tpu.core_type<tc>, window_params = [{transform_indices = @transform_0, window_bounds = array<i64: 1, 2, 3136>}, {transform_indices = @transform_1, window_bounds = array<i64: 1, 3136, 512>}, {transform_indices = @transform_2, window_bounds = array<i64: 1, 1, 512>}, {transform_indices = @transform_3, window_bounds = array<i64: 1, 512, 4>}, {transform_indices = @transform_4, window_bounds = array<i64: 1, 1, 4>}, {pipeline_mode = #tpu.pipeline_mode<synchronous>, transform_indices = @transform_5, window_bounds = array<i64: 2, 4>}]} {
    %c0 = arith.constant 0 : index
    %c0_0 = arith.constant 0 : index
    %c0_1 = arith.constant 0 : index
    %0 = vector.load %arg1[%c0, %c0_0, %c0_1] : memref<1x2x3136xf32, #tpu.memory_space<vmem>>, vector<1x2x3136xf32>
    %1 = vector.shape_cast %0 : vector<1x2x3136xf32> to vector<2x3136xf32>
    %c0_2 = arith.constant 0 : index
    %c0_3 = arith.constant 0 : index
    %c0_4 = arith.constant 0 : index
    %2 = vector.load %arg2[%c0_2, %c0_3, %c0_4] : memref<1x3136x512xf32, #tpu.memory_space<vmem>>, vector<1x3136x512xf32>
    %3 = vector.shape_cast %2 : vector<1x3136x512xf32> to vector<3136x512xf32>
    %cst = arith.constant dense<0.000000e+00> : vector<2x512xf32>
    %4 = tpu.matmul %1, %3, %cst {dimension_numbers = #tpu.dot_dimension_numbers<[1], [0], [0], [1], [0, 0, 1, 1], [], []>} : vector<2x3136xf32>, vector<3136x512xf32>, vector<2x512xf32> -> vector<2x512xf32>
    %c0_5 = arith.constant 0 : index
    %c0_6 = arith.constant 0 : index
    %c0_7 = arith.constant 0 : index
    %5 = vector.load %arg3[%c0_5, %c0_6, %c0_7] : memref<1x1x512xf32, #tpu.memory_space<vmem>>, vector<1x1x512xf32>
    %6 = vector.shape_cast %5 : vector<1x1x512xf32> to vector<1x512xf32>
    %7 = vector.broadcast %6 : vector<1x512xf32> to vector<2x512xf32>
    %8 = arith.addf %4, %7 : vector<2x512xf32>
    %cst_8 = arith.constant 0.000000e+00 : f32
    %9 = vector.broadcast %cst_8 : f32 to vector<2x512xf32>
    %10 = arith.maximumf %8, %9 : vector<2x512xf32>
    %c0_9 = arith.constant 0 : index
    %c0_10 = arith.constant 0 : index
    %c0_11 = arith.constant 0 : index
    %11 = vector.load %arg4[%c0_9, %c0_10, %c0_11] : memref<1x512x4xf32, #tpu.memory_space<vmem>>, vector<1x512x4xf32>
    %12 = vector.shape_cast %11 : vector<1x512x4xf32> to vector<512x4xf32>
    %cst_12 = arith.constant dense<0.000000e+00> : vector<2x4xf32>
    %13 = tpu.matmul %10, %12, %cst_12 {dimension_numbers = #tpu.dot_dimension_numbers<[1], [0], [0], [1], [0, 0, 1, 1], [], []>} : vector<2x512xf32>, vector<512x4xf32>, vector<2x4xf32> -> vector<2x4xf32>
    %c0_13 = arith.constant 0 : index
    %c0_14 = arith.constant 0 : index
    %c0_15 = arith.constant 0 : index
    %14 = vector.load %arg5[%c0_13, %c0_14, %c0_15] : memref<1x1x4xf32, #tpu.memory_space<vmem>>, vector<1x1x4xf32>
    %15 = vector.shape_cast %14 : vector<1x1x4xf32> to vector<1x4xf32>
    %16 = vector.broadcast %15 : vector<1x4xf32> to vector<2x4xf32>
    %17 = arith.addf %13, %16 : vector<2x4xf32>
    %cst_16 = arith.constant 1.000000e+01 : f32
    %18 = vector.broadcast %cst_16 : f32 to vector<2x4xf32>
    %19 = arith.mulf %17, %18 : vector<2x4xf32>
    %cst_17 = arith.constant dense<0xFF800000> : vector<2xf32>
    %20 = vector.multi_reduction <maximumf>, %19, %cst_17 [1] : vector<2x4xf32> to vector<2xf32>
    %21 = vector.shape_cast %20 : vector<2xf32> to vector<2x1xf32>
    %22 = vector.broadcast %21 : vector<2x1xf32> to vector<2x4xf32>
    %23 = arith.subf %19, %22 : vector<2x4xf32>
    %24 = math.exp %23 : vector<2x4xf32>
    %cst_18 = arith.constant dense<0.000000e+00> : vector<2xf32>
    %25 = vector.multi_reduction <add>, %24, %cst_18 [1] : vector<2x4xf32> to vector<2xf32>
    %26 = vector.shape_cast %25 : vector<2xf32> to vector<2x1xf32>
    %27 = vector.broadcast %26 : vector<2x1xf32> to vector<2x4xf32>
    %28 = arith.divf %24, %27 : vector<2x4xf32>
    %c0_i32 = arith.constant 0 : i32
    %29 = arith.cmpi eq, %arg0, %c0_i32 : i32
    %30 = arith.extui %29 : i1 to i32
    %c0_i32_19 = arith.constant 0 : i32
    %31 = arith.cmpi ne, %30, %c0_i32_19 : i32
    scf.if %31 {
      %cst_25 = arith.constant 0.000000e+00 : f32
      %37 = vector.broadcast %cst_25 : f32 to vector<2x4xf32>
      %c0_26 = arith.constant 0 : index
      %c0_27 = arith.constant 0 : index
      %38 = vector.load %arg6[%c0_26, %c0_27] : memref<2x4xf32, #tpu.memory_space<vmem>>, vector<2x4xf32>
      tpu.vector_store %arg6[%c0_26, %c0_27], %37 {strides = array<i32>} : memref<2x4xf32, #tpu.memory_space<vmem>>, vector<2x4xf32>,
    } else {
    }
    %c0_20 = arith.constant 0 : index
    %c0_21 = arith.constant 0 : index
    %32 = vector.load %arg6[%c0_20, %c0_21] : memref<2x4xf32, #tpu.memory_space<vmem>>, vector<2x4xf32>
    %cst_22 = arith.constant 2.000000e-01 : f32
    %33 = vector.broadcast %cst_22 : f32 to vector<2x4xf32>
    %34 = arith.mulf %28, %33 : vector<2x4xf32>
    %35 = arith.addf %32, %34 : vector<2x4xf32>
    %c0_23 = arith.constant 0 : index
    %c0_24 = arith.constant 0 : index
    %36 = vector.load %arg6[%c0_23, %c0_24] : memref<2x4xf32, #tpu.memory_space<vmem>>, vector<2x4xf32>
    tpu.vector_store %arg6[%c0_23, %c0_24], %35 {strides = array<i32>} : memref<2x4xf32, #tpu.memory_space<vmem>>, vector<2x4xf32>,
    return
  }
  func.func @transform_0(%arg0: i32) -> (i32, i32, i32) {
    %c0_i32 = arith.constant 0 : i32
    %c0_i32_0 = arith.constant 0 : i32
    %c0_i32_1 = arith.constant 0 : i32
    return %arg0, %c0_i32, %c0_i32_0 : i32, i32, i32
  }
  func.func @transform_1(%arg0: i32) -> (i32, i32, i32) {
    %c0_i32 = arith.constant 0 : i32
    %c0_i32_0 = arith.constant 0 : i32
    %c0_i32_1 = arith.constant 0 : i32
    return %arg0, %c0_i32, %c0_i32_0 : i32, i32, i32
  }
  func.func @transform_2(%arg0: i32) -> (i32, i32, i32) {
    %c0_i32 = arith.constant 0 : i32
    %c0_i32_0 = arith.constant 0 : i32
    %c0_i32_1 = arith.constant 0 : i32
    return %arg0, %c0_i32, %c0_i32_0 : i32, i32, i32
  }
  func.func @transform_3(%arg0: i32) -> (i32, i32, i32) {
    %c0_i32 = arith.constant 0 : i32
    %c0_i32_0 = arith.constant 0 : i32
    %c0_i32_1 = arith.constant 0 : i32
    return %arg0, %c0_i32, %c0_i32_0 : i32, i32, i32
  }
  func.func @transform_4(%arg0: i32) -> (i32, i32, i32) {
    %c0_i32 = arith.constant 0 : i32
    %c0_i32_0 = arith.constant 0 : i32
    %c0_i32_1 = arith.constant 0 : i32
    return %arg0, %c0_i32, %c0_i32_0 : i32, i32, i32
  }
  func.func @transform_5(%arg0: i32) -> (i32, i32) {
    %c0_i32 = arith.constant 0 : i32
    %c0_i32_0 = arith.constant 0 : i32
    %c0_i32_1 = arith.constant 0 : i32
    return %c0_i32, %c0_i32_0 : i32, i32
  }
}

</mosaic_0001>

<bundles_post_ra>
// kernel: _lambda_.4
= control target key start
LH: loop header
LB: loop body
LE: loop exit
PB: predicated region body
PF: predicated region fallthrough
CT: control target
= control target key end

     0   :  { %s1287_s9 = smov 0   ;;  %s1765_s0 = inlined_call_operand.vmem [shape: f32[800,256], index: 0, kind: input, shape index: {}]   ;;  %s1766_s1 = inlined_call_operand.vmem [shape: f32[256,160], index: 1, kind: input, shape index: {}]   ;;  %s1767_s2 = inlined_call_operand.vmem [shape: f32[800,160], index: 2, kind: output, shape index: {}]  }
   0x1 LB: > { %s1243_s10 = sadd.s32 4294967295, %s1270_s9   ;;  %p1247_p0 = scmp.ge.s32.totalorder %s1270_s9, 1  ;;  %s1270_s9 = sphi %s1287_s9, %s12_s9  }
   0x2   : > { %p114_p1 = scmp.lt.s32.totalorder %s1270_s9, 3 }
   0x4   : > { %p115_p2 = pnand %p1247_p0, %p114_p1 }
   0x5   : > { %s1375_s11 = smul.u32 (!%p115_p2), 50, %s1243_s10 }
   0x6   : > { %118 = sbr.rel (%p115_p2) target bundleno = 573 (0x23d), region = 28 }
   0x7   : > { %p139_p3 = scmp.lt.s32.totalorder (!%p115_p2), %s1375_s11, 99 }
   0xb   : > { %v283_v0 = vld [vmem:[%s1766_s1 + $0xf8] sm:$0xff]  ;;  %v281_v2 = vld [vmem:[%s1766_s1 + $0xe8] sm:$0xff]  ;;  %v282_v6 = vld [vmem:[%s1766_s1 + $0xf0] sm:$0xff]  ;;  %s1769_s11 = smov (!%p139_p3, %s1375_s11), 99  ;;  %vm1085_vm0 = vcmask 261120  }
   0xc   : > { %v315_v1 = vld [vmem:[%s1766_s1 + $0x1f8] sm:$0xff]  ;;  %650 = vmatpush.msra.mxu2 %v283_v0  ;;  %v313_v3 = vld [vmem:[%s1766_s1 + $0x1e8] sm:$0xff]  ;;  %v314_v7 = vld [vmem:[%s1766_s1 + $0x1f0] sm:$0xff]  ;;  %316 = vmatpush.msra.mxu0 %v282_v6  ;;  %s1254_s5 = sshll.u32 %s1769_s11, 4 }
   0xd   : > { %817 = vmatpush.msra.mxu3 %v315_v1  ;;  %v279_v4 = vld [vmem:[%s1766_s1 + $0xd8] sm:$0xff]  ;;  %v280_v8 = vld [vmem:[%s1766_s1 + $0xe0] sm:$0xff]  ;;  %483 = vmatpush.msra.mxu1 %v314_v7  ;;  %v277_v10 = vld [vmem:[%s1766_s1 + $0xc8] sm:$0xff]  ;;  %s1479_s22 = scalar_lea.vmem %s1765_s0, %s1254_s5  ;;  %s1544_s17 = scalar_lea.vmem %s1767_s2, %s1254_s5 }
   0xe   : > { %v311_v5 = vld [vmem:[%s1766_s1 + $0x1d8] sm:$0xff]  ;;  %651 = vmatpush.msra.mxu2 %v281_v2  ;;  %v312_v9 = vld [vmem:[%s1766_s1 + $0x1e0] sm:$0xff]  ;;  %v309_v11 = vld [vmem:[%s1766_s1 + $0x1c8] sm:$0xff]  ;;  %317 = vmatpush.msra.mxu0 %v280_v8 }
   0xf   : > { %818 = vmatpush.msra.mxu3 %v313_v3  ;;  %v278_v12 = vld [vmem:[%s1766_s1 + $0xd0] sm:$0xff]  ;;  %484 = vmatpush.msra.mxu1 %v312_v9  ;;  %v275_v14 = vld [vmem:[%s1766_s1 + $0xb8] sm:$0xff]  ;;  %v276_v16 = vld [vmem:[%s1766_s1 + $0xc0] sm:$0xff] }
  0x10   : > { %652 = vmatpush.msra.mxu2 %v279_v4  ;;  %v310_v13 = vld [vmem:[%s1766_s1 + $0x1d0] sm:$0xff]  ;;  %v307_v15 = vld [vmem:[%s1766_s1 + $0x1b8] sm:$0xff]  ;;  %v308_v17 = vld [vmem:[%s1766_s1 + $0x1c0] sm:$0xff]  ;;  %318 = vmatpush.msra.mxu0 %v278_v12 }
  0x11   : > { %819 = vmatpush.msra.mxu3 %v311_v5  ;;  %485 = vmatpush.msra.mxu1 %v310_v13  ;;  %v273_v18 = vld [vmem:[%s1766_s1 + $0xa8] sm:$0xff]  ;;  %v274_v20 = vld [vmem:[%s1766_s1 + $0xb0] sm:$0xff]  ;;  %v271_v22 = vld [vmem:[%s1766_s1 + $0x98] sm:$0xff] }
  0x12   : > { %653 = vmatpush.msra.mxu2 %v277_v10  ;;  %v305_v19 = vld [vmem:[%s1766_s1 + $0x1a8] sm:$0xff]  ;;  %v306_v21 = vld [vmem:[%s1766_s1 + $0x1b0] sm:$0xff]  ;;  %319 = vmatpush.msra.mxu0 %v276_v16  ;;  %v303_v23 = vld [vmem:[%s1766_s1 + $0x198] sm:$0xff] }
  0x13   : > { %820 = vmatpush.msra.mxu3 %v309_v11  ;;  %486 = vmatpush.msra.mxu1 %v308_v17  ;;  %v272_v24 = vld [vmem:[%s1766_s1 + $0xa0] sm:$0xff]  ;;  %v269_v26 = vld [vmem:[%s1766_s1 + $0x88] sm:$0xff]  ;;  %v270_v28 = vld [vmem:[%s1766_s1 + $0x90] sm:$0xff] }
  0x14   : > { %654 = vmatpush.msra.mxu2 %v275_v14  ;;  %v304_v25 = vld [vmem:[%s1766_s1 + $0x1a0] sm:$0xff]  ;;  %320 = vmatpush.msra.mxu0 %v274_v20  ;;  %v301_v27 = vld [vmem:[%s1766_s1 + $0x188] sm:$0xff]  ;;  %v302_v29 = vld [vmem:[%s1766_s1 + $0x190] sm:$0xff] }
  0x15   : > { %821 = vmatpush.msra.mxu3 %v307_v15  ;;  %487 = vmatpush.msra.mxu1 %v306_v21  ;;  %v267_v30 = vld [vmem:[%s1766_s1 + $0x78] sm:$0xff]  ;;  %v268_v32 = vld [vmem:[%s1766_s1 + $0x80] sm:$0xff]  ;;  %v265_v34 = vld [vmem:[%s1766_s1 + $0x68] sm:$0xff] }
  0x16   : > { %655 = vmatpush.msra.mxu2 %v273_v18  ;;  %321 = vmatpush.msra.mxu0 %v272_v24  ;;  %v299_v31 = vld [vmem:[%s1766_s1 + $0x178] sm:$0xff]  ;;  %v300_v33 = vld [vmem:[%s1766_s1 + $0x180] sm:$0xff]  ;;  %v297_v35 = vld [vmem:[%s1766_s1 + $0x168] sm:$0xff] }
  0x17   : > { %822 = vmatpush.msra.mxu3 %v305_v19  ;;  %488 = vmatpush.msra.mxu1 %v304_v25  ;;  %v266_v36 = vld [vmem:[%s1766_s1 + $0x70] sm:$0xff]  ;;  %v263_v38 = vld [vmem:[%s1766_s1 + $0x58] sm:$0xff]  ;;  %v264_v40 = vld [vmem:[%s1766_s1 + $0x60] sm:$0xff] }
  0x18   : > { %656 = vmatpush.msra.mxu2 %v271_v22  ;;  %322 = vmatpush.msra.mxu0 %v270_v28  ;;  %v298_v37 = vld [vmem:[%s1766_s1 + $0x170] sm:$0xff]  ;;  %v295_v39 = vld [vmem:[%s1766_s1 + $0x158] sm:$0xff]  ;;  %v296_v41 = vld [vmem:[%s1766_s1 + $0x160] sm:$0xff] }
  0x19   : > { %823 = vmatpush.msra.mxu3 %v303_v23  ;;  %489 = vmatpush.msra.mxu1 %v302_v29  ;;  %v261_v42 = vld [vmem:[%s1766_s1 + $0x48] sm:$0xff]  ;;  %v262_v44 = vld [vmem:[%s1766_s1 + $0x50] sm:$0xff]  ;;  %v259_v46 = vld [vmem:[%s1766_s1 + $0x38] sm:$0xff] }
  0x1a   : > { %657 = vmatpush.msra.mxu2 %v269_v26  ;;  %323 = vmatpush.msra.mxu0 %v268_v32  ;;  %v293_v43 = vld [vmem:[%s1766_s1 + $0x148] sm:$0xff]  ;;  %v294_v45 = vld [vmem:[%s1766_s1 + $0x150] sm:$0xff]  ;;  %v291_v47 = vld [vmem:[%s1766_s1 + $0x138] sm:$0xff] }
  0x1b   : > { %824 = vmatpush.msra.mxu3 %v301_v27  ;;  %490 = vmatpush.msra.mxu1 %v300_v33  ;;  %v260_v48 = vld [vmem:[%s1766_s1 + $0x40] sm:$0xff]  ;;  %v257_v50 = vld [vmem:[%s1766_s1 + $0x28] sm:$0xff]  ;;  %v258_v52 = vld [vmem:[%s1766_s1 + $0x30] sm:$0xff] }
  0x1c   : > { %658 = vmatpush.msra.mxu2 %v267_v30  ;;  %324 = vmatpush.msra.mxu0 %v266_v36  ;;  %v292_v49 = vld [vmem:[%s1766_s1 + $0x140] sm:$0xff]  ;;  %v289_v51 = vld [vmem:[%s1766_s1 + $0x128] sm:$0xff]  ;;  %v290_v53 = vld [vmem:[%s1766_s1 + $0x130] sm:$0xff] }
  0x1d   : > { %825 = vmatpush.msra.mxu3 %v299_v31  ;;  %491 = vmatpush.msra.mxu1 %v298_v37  ;;  %v255_v54 = vld [vmem:[%s1766_s1 + $0x18] sm:$0xff]  ;;  %v256_v56 = vld [vmem:[%s1766_s1 + $0x20] sm:$0xff]  ;;  %v253_v58 = vld [vmem:[%s1766_s1 + $0x8] sm:$0xff] }
  0x1e   : > { %659 = vmatpush.msra.mxu2 %v265_v34  ;;  %325 = vmatpush.msra.mxu0 %v264_v40  ;;  %v287_v55 = vld [vmem:[%s1766_s1 + $0x118] sm:$0xff]  ;;  %v288_v57 = vld [vmem:[%s1766_s1 + $0x120] sm:$0xff]  ;;  %v285_v59 = vld [vmem:[%s1766_s1 + $0x108] sm:$0xff] }
  0x1f   : > { %826 = vmatpush.msra.mxu3 %v297_v35  ;;  %492 = vmatpush.msra.mxu1 %v296_v41  ;;  %v152_v60 = vld [vmem:[%s1479_s22] sm:$0xff]  ;;  %v153_v61 = vld [vmem:[%s1479_s22 + $0x8] sm:$0xff]  ;;  %v254_v62 = vld [vmem:[%s1766_s1 + $0x10] sm:$0xff] }
  0x20   : > { %660 = vmatpush.msra.mxu2 %v263_v38  ;;  %326 = vmatpush.msra.mxu0 %v262_v44  ;;  %v286_v63 = vld [vmem:[%s1766_s1 + $0x110] sm:$0xff]  ;;  %v252_v0 = vld [vmem:[%s1766_s1] sm:$0xff]  ;;  %v155_v3 = vld [vmem:[%s1479_s22 + $0x18] sm:$0xff] }
  0x21   : > { %827 = vmatpush.msra.mxu3 %v295_v39  ;;  %493 = vmatpush.msra.mxu1 %v294_v45  ;;  %v284_v1 = vld [vmem:[%s1766_s1 + $0x100] sm:$0xff]  ;;  %v154_v2 = vld [vmem:[%s1479_s22 + $0x10] sm:$0xff]  ;;  %v157_v5 = vld [vmem:[%s1479_s22 + $0x28] sm:$0xff] }
  0x22   : > { %661 = vmatpush.msra.mxu2 %v261_v42  ;;  %327 = vmatpush.msra.mxu0 %v260_v48  ;;  %v156_v4 = vld [vmem:[%s1479_s22 + $0x20] sm:$0xff]  ;;  %v158_v6 = vld [vmem:[%s1479_s22 + $0x30] sm:$0xff]  ;;  %v159_v7 = vld [vmem:[%s1479_s22 + $0x38] sm:$0xff] }
  0x23   : > { %828 = vmatpush.msra.mxu3 %v293_v43  ;;  %494 = vmatpush.msra.mxu1 %v292_v49  ;;  %v160_v8 = vld [vmem:[%s1479_s22 + $0x40] sm:$0xff]  ;;  %v161_v9 = vld [vmem:[%s1479_s22 + $0x48] sm:$0xff]  ;;  %v162_v10 = vld [vmem:[%s1479_s22 + $0x50] sm:$0xff] }
  0x24   : > { %662 = vmatpush.msra.mxu2 %v259_v46  ;;  %328 = vmatpush.msra.mxu0 %v258_v52  ;;  %v163_v11 = vld [vmem:[%s1479_s22 + $0x58] sm:$0xff]  ;;  %v164_v12 = vld [vmem:[%s1479_s22 + $0x60] sm:$0xff]  ;;  %v165_v13 = vld [vmem:[%s1479_s22 + $0x68] sm:$0xff] }
  0x25   : > { %829 = vmatpush.msra.mxu3 %v291_v47  ;;  %495 = vmatpush.msra.mxu1 %v290_v53  ;;  %v166_v14 = vld [vmem:[%s1479_s22 + $0x70] sm:$0xff]  ;;  %v167_v15 = vld [vmem:[%s1479_s22 + $0x78] sm:$0xff]  ;;  %v168_v16 = vld [vmem:[%s1479_s22 + $0x80] sm:$0xff] }
  0x26   : > { %663 = vmatpush.msra.mxu2 %v257_v50  ;;  %329 = vmatpush.msra.mxu0 %v256_v56  ;;  %v169_v17 = vld [vmem:[%s1479_s22 + $0x88] sm:$0xff]  ;;  %v170_v18 = vld [vmem:[%s1479_s22 + $0x90] sm:$0xff]  ;;  %v171_v19 = vld [vmem:[%s1479_s22 + $0x98] sm:$0xff] }
  0x27   : > { %830 = vmatpush.msra.mxu3 %v289_v51  ;;  %496 = vmatpush.msra.mxu1 %v288_v57  ;;  %v172_v20 = vld [vmem:[%s1479_s22 + $0xa0] sm:$0xff]  ;;  %v173_v21 = vld [vmem:[%s1479_s22 + $0xa8] sm:$0xff]  ;;  %v174_v22 = vld [vmem:[%s1479_s22 + $0xb0] sm:$0xff] }
  0x28   : > { %664 = vmatpush.msra.mxu2 %v255_v54  ;;  %330 = vmatpush.msra.mxu0 %v254_v62  ;;  %v175_v23 = vld [vmem:[%s1479_s22 + $0xb8] sm:$0xff]  ;;  %v176_v24 = vld [vmem:[%s1479_s22 + $0xc0] sm:$0xff]  ;;  %v177_v25 = vld [vmem:[%s1479_s22 + $0xc8] sm:$0xff] }
  0x29   : > { %831 = vmatpush.msra.mxu3 %v287_v55  ;;  %497 = vmatpush.msra.mxu1 %v286_v63  ;;  %v178_v26 = vld [vmem:[%s1479_s22 + $0xd0] sm:$0xff]  ;;  %v179_v27 = vld [vmem:[%s1479_s22 + $0xd8] sm:$0xff]  ;;  %v180_v28 = vld [vmem:[%s1479_s22 + $0xe0] sm:$0xff] }
  0x2a   : > { %665 = vmatpush.msra.mxu2 %v253_v58  ;;  %331 = vmatpush.msra.mxu0 %v252_v0  ;;  %v181_v29 = vld [vmem:[%s1479_s22 + $0xe8] sm:$0xff]  ;;  %v182_v30 = vld [vmem:[%s1479_s22 + $0xf0] sm:$0xff]  ;;  %v183_v31 = vld [vmem:[%s1479_s22 + $0xf8] sm:$0xff] }
  0x2b   : > { %832 = vmatpush.msra.mxu3 %v285_v59  ;;  %666 = vmatmul.f32.vlgmr.msra.gmra.mxu2 %v152_v60  ;;  %v184_v32 = vld [vmem:[%s1479_s22 + $0x100] sm:$0xff]  ;;  %v185_v33 = vld [vmem:[%s1479_s22 + $0x108] sm:$0xff]  ;;  %v186_v41 = vld [vmem:[%s1479_s22 + $0x110] sm:$0xff] }
  0x2c   : > { %833 = vmatmul.f32.vlgmr.msra.gmra.mxu3 %v153_v61  ;;  %498 = vmatpush.msra.mxu1 %v284_v1  ;;  %v187_v42 = vld [vmem:[%s1479_s22 + $0x118] sm:$0xff]  ;;  %v188_v51 = vld [vmem:[%s1479_s22 + $0x120] sm:$0xff]  ;;  %v189_v52 = vld [vmem:[%s1479_s22 + $0x128] sm:$0xff] }
  0x2d   : > { %332 = vmatmul.f32.vlgmr.msra.gmra.mxu0 %v152_v60  ;;  %499 = vmatmul.f32.vlgmr.msra.gmra.mxu1 %v153_v61  ;;  %v190_v61 = vld [vmem:[%s1479_s22 + $0x130] sm:$0xff]  ;;  %v191_v62 = vld [vmem:[%s1479_s22 + $0x138] sm:$0xff] }
  0x33   : > { %669 = vmatmul.f32.gmra.mxu2 %v154_v2 }
  0x34   : > { %836 = vmatmul.f32.gmra.mxu3 %v155_v3 }
  0x35   : > { %335 = vmatmul.f32.gmra.mxu0 %v154_v2  ;;  %502 = vmatmul.f32.gmra.mxu1 %v155_v3 }
  0x3b   : > { %672 = vmatmul.f32.gmra.mxu2 %v156_v4 }
  0x3c   : > { %839 = vmatmul.f32.gmra.mxu3 %v157_v5 }
  0x3d   : > { %338 = vmatmul.f32.gmra.mxu0 %v156_v4  ;;  %505 = vmatmul.f32.gmra.mxu1 %v157_v5 }
  0x43   : > { %675 = vmatmul.f32.gmra.mxu2 %v158_v6 }
  0x44   : > { %842 = vmatmul.f32.gmra.mxu3 %v159_v7 }
  0x45   : > { %341 = vmatmul.f32.gmra.mxu0 %v158_v6  ;;  %508 = vmatmul.f32.gmra.mxu1 %v159_v7  ;;  %v192_v7 = vld [vmem:[%s1479_s22 + $0x140] sm:$0xff] }
  0x4b   : > { %678 = vmatmul.f32.gmra.mxu2 %v160_v8 }
  0x4c   : > { %845 = vmatmul.f32.gmra.mxu3 %v161_v9 }
  0x4d   : > { %344 = vmatmul.f32.gmra.mxu0 %v160_v8  ;;  %511 = vmatmul.f32.gmra.mxu1 %v161_v9  ;;  %v193_v8 = vld [vmem:[%s1479_s22 + $0x148] sm:$0xff] }
  0x53   : > { %681 = vmatmul.f32.gmra.mxu2 %v162_v10 }
  0x54   : > { %848 = vmatmul.f32.gmra.mxu3 %v163_v11 }
  0x55   : > { %347 = vmatmul.f32.gmra.mxu0 %v162_v10  ;;  %514 = vmatmul.f32.gmra.mxu1 %v163_v11 }
  0x5b   : > { %684 = vmatmul.f32.gmra.mxu2 %v164_v12 }
  0x5c   : > { %851 = vmatmul.f32.gmra.mxu3 %v165_v13 }
  0x5d   : > { %350 = vmatmul.f32.gmra.mxu0 %v164_v12  ;;  %517 = vmatmul.f32.gmra.mxu1 %v165_v13 }
  0x63   : > { %687 = vmatmul.f32.gmra.mxu2 %v166_v14 }
  0x64   : > { %854 = vmatmul.f32.gmra.mxu3 %v167_v15 }
  0x65   : > { %353 = vmatmul.f32.gmra.mxu0 %v166_v14  ;;  %520 = vmatmul.f32.gmra.mxu1 %v167_v15 }
  0x6b   : > { %690 = vmatmul.f32.gmra.mxu2 %v168_v16 }
  0x6c   : > { %857 = vmatmul.f32.gmra.mxu3 %v169_v17 }
  0x6d   : > { %356 = vmatmul.f32.gmra.mxu0 %v168_v16  ;;  %523 = vmatmul.f32.gmra.mxu1 %v169_v17  ;;  %v194_v17 = vld [vmem:[%s1479_s22 + $0x150] sm:$0xff] }
  0x73   : > { %693 = vmatmul.f32.gmra.mxu2 %v170_v18 }
  0x74   : > { %860 = vmatmul.f32.gmra.mxu3 %v171_v19 }
  0x75   : > { %359 = vmatmul.f32.gmra.mxu0 %v170_v18  ;;  %526 = vmatmul.f32.gmra.mxu1 %v171_v19  ;;  %v195_v18 = vld [vmem:[%s1479_s22 + $0x158] sm:$0xff] }
  0x7b   : > { %696 = vmatmul.f32.gmra.mxu2 %v172_v20 }
  0x7c   : > { %863 = vmatmul.f32.gmra.mxu3 %v173_v21 }
  0x7d   : > { %362 = vmatmul.f32.gmra.mxu0 %v172_v20  ;;  %529 = vmatmul.f32.gmra.mxu1 %v173_v21 }
  0x83   : > { %699 = vmatmul.f32.gmra.mxu2 %v174_v22 }
  0x84   : > { %866 = vmatmul.f32.gmra.mxu3 %v175_v23 }
  0x85   : > { %365 = vmatmul.f32.gmra.mxu0 %v174_v22  ;;  %532 = vmatmul.f32.gmra.mxu1 %v175_v23 }
  0x8b   : > { %702 = vmatmul.f32.gmra.mxu2 %v176_v24 }
  0x8c   : > { %869 = vmatmul.f32.gmra.mxu3 %v177_v25 }
  0x8d   : > { %368 = vmatmul.f32.gmra.mxu0 %v176_v24  ;;  %535 = vmatmul.f32.gmra.mxu1 %v177_v25 }
  0x93   : > { %705 = vmatmul.f32.gmra.mxu2 %v178_v26 }
  0x94   : > { %872 = vmatmul.f32.gmra.mxu3 %v179_v27 }
  0x95   : > { %371 = vmatmul.f32.gmra.mxu0 %v178_v26  ;;  %538 = vmatmul.f32.gmra.mxu1 %v179_v27  ;;  %v196_v27 = vld [vmem:[%s1479_s22 + $0x160] sm:$0xff] }
  0x9b   : > { %708 = vmatmul.f32.gmra.mxu2 %v180_v28 }
  0x9c   : > { %875 = vmatmul.f32.gmra.mxu3 %v181_v29 }
  0x9d   : > { %374 = vmatmul.f32.gmra.mxu0 %v180_v28  ;;  %541 = vmatmul.f32.gmra.mxu1 %v181_v29  ;;  %v197_v28 = vld [vmem:[%s1479_s22 + $0x168] sm:$0xff] }
  0xa3   : > { %711 = vmatmul.f32.gmra.mxu2 %v182_v30 }
  0xa4   : > { %878 = vmatmul.f32.gmra.mxu3 %v183_v31 }
  0xa5   : > { %377 = vmatmul.f32.gmra.mxu0 %v182_v30  ;;  %544 = vmatmul.f32.gmra.mxu1 %v183_v31 }
  0xaa   : > { %v333_v34 = vpop.f32.mrf.mxu0  ;;  %v500_v35 = vpop.f32.mrf.mxu1 }
  0xab   : > { %714 = vmatmul.f32.gmra.mxu2 %v184_v32  ;;  %v501_v36 = vadd.f32 %v500_v35, %v333_v34 }
  0xac   : > { %881 = vmatmul.f32.gmra.mxu3 %v185_v33 }
  0xad   : > { %v984_v39 = vmax.f32 %v501_v36, 0.0  ;;  %380 = vmatmul.f32.gmra.mxu0 %v184_v32  ;;  %547 = vmatmul.f32.gmra.mxu1 %v185_v33 }
  0xae   : > { %v667_v37 = vpop.f32.mrf.mxu2 }
  0xaf   : > { %v834_v38 = vpop.f32.mrf.mxu3  ;;  %1084 = vst [vmem:[%s1544_s17] sm:$0xff] %v984_v39 }
  0xb0   : > { %v835_v40 = vadd.f32 %v834_v38, %v667_v37  ;;  %v198_v37 = vld [vmem:[%s1479_s22 + $0x170] sm:$0xff]  ;;  %v199_v38 = vld [vmem:[%s1479_s22 + $0x178] sm:$0xff] }
  0xb2   : > { %v985_v43 = vmax.f32 %v835_v40, 0.0  ;;  %v336_v44 = vpop.f32.mrf.mxu0  ;;  %v503_v45 = vpop.f32.mrf.mxu1 }
  0xb3   : > { %717 = vmatmul.f32.gmra.mxu2 %v186_v41  ;;  %v504_v46 = vadd.f32 %v503_v45, %v336_v44 }
  0xb4   : > { %1086 = vst.msk [vmem:[%s1544_s17 + $0x8] sm:$0xff] %vm1085_vm0, %v985_v43  ;;  %884 = vmatmul.f32.gmra.mxu3 %v187_v42 }
  0xb5   : > { %v986_v49 = vmax.f32 %v504_v46, 0.0  ;;  %383 = vmatmul.f32.gmra.mxu0 %v186_v41  ;;  %550 = vmatmul.f32.gmra.mxu1 %v187_v42 }
  0xb6   : > { %v670_v47 = vpop.f32.mrf.mxu2 }
  0xb7   : > { %v837_v48 = vpop.f32.mrf.mxu3  ;;  %1087 = vst [vmem:[%s1544_s17 + $0x10] sm:$0xff] %v986_v49 }
  0xb8   : > { %v838_v50 = vadd.f32 %v837_v48, %v670_v47  ;;  %v200_v47 = vld [vmem:[%s1479_s22 + $0x180] sm:$0xff]  ;;  %v201_v48 = vld [vmem:[%s1479_s22 + $0x188] sm:$0xff] }
  0xba   : > { %v987_v53 = vmax.f32 %v838_v50, 0.0  ;;  %v339_v54 = vpop.f32.mrf.mxu0  ;;  %v506_v55 = vpop.f32.mrf.mxu1 }
  0xbb   : > { %720 = vmatmul.f32.gmra.mxu2 %v188_v51  ;;  %v507_v56 = vadd.f32 %v506_v55, %v339_v54 }
  0xbc   : > { %1088 = vst.msk [vmem:[%s1544_s17 + $0x18] sm:$0xff] %vm1085_vm0, %v987_v53  ;;  %887 = vmatmul.f32.gmra.mxu3 %v189_v52 }
  0xbd   : > { %v988_v59 = vmax.f32 %v507_v56, 0.0  ;;  %386 = vmatmul.f32.gmra.mxu0 %v188_v51  ;;  %553 = vmatmul.f32.gmra.mxu1 %v189_v52 }
  0xbe   : > { %v673_v57 = vpop.f32.mrf.mxu2 }
  0xbf   : > { %v840_v58 = vpop.f32.mrf.mxu3  ;;  %1089 = vst [vmem:[%s1544_s17 + $0x20] sm:$0xff] %v988_v59 }
  0xc0   : > { %v841_v60 = vadd.f32 %v840_v58, %v673_v57  ;;  %v202_v57 = vld [vmem:[%s1479_s22 + $0x190] sm:$0xff]  ;;  %v203_v58 = vld [vmem:[%s1479_s22 + $0x198] sm:$0xff] }
  0xc2   : > { %v989_v63 = vmax.f32 %v841_v60, 0.0  ;;  %v342_v0 = vpop.f32.mrf.mxu0  ;;  %v509_v1 = vpop.f32.mrf.mxu1 }
  0xc3   : > { %723 = vmatmul.f32.gmra.mxu2 %v190_v61  ;;  %v510_v2 = vadd.f32 %v509_v1, %v342_v0 }
  0xc4   : > { %1090 = vst.msk [vmem:[%s1544_s17 + $0x28] sm:$0xff] %vm1085_vm0, %v989_v63  ;;  %890 = vmatmul.f32.gmra.mxu3 %v191_v62 }
  0xc5   : > { %v990_v5 = vmax.f32 %v510_v2, 0.0  ;;  %389 = vmatmul.f32.gmra.mxu0 %v190_v61  ;;  %556 = vmatmul.f32.gmra.mxu1 %v191_v62 }
  0xc6   : > { %v676_v3 = vpop.f32.mrf.mxu2 }
  0xc7   : > { %v843_v4 = vpop.f32.mrf.mxu3  ;;  %1091 = vst [vmem:[%s1544_s17 + $0x30] sm:$0xff] %v990_v5 }
  0xc8   : > { %v844_v6 = vadd.f32 %v843_v4, %v676_v3  ;;  %v204_v3 = vld [vmem:[%s1479_s22 + $0x1a0] sm:$0xff]  ;;  %v205_v4 = vld [vmem:[%s1479_s22 + $0x1a8] sm:$0xff] }
  0xca   : > { %v991_v9 = vmax.f32 %v844_v6, 0.0  ;;  %v345_v10 = vpop.f32.mrf.mxu0  ;;  %v512_v11 = vpop.f32.mrf.mxu1 }
  0xcb   : > { %726 = vmatmul.f32.gmra.mxu2 %v192_v7  ;;  %v513_v12 = vadd.f32 %v512_v11, %v345_v10 }
  0xcc   : > { %1092 = vst.msk [vmem:[%s1544_s17 + $0x38] sm:$0xff] %vm1085_vm0, %v991_v9  ;;  %893 = vmatmul.f32.gmra.mxu3 %v193_v8 }
  0xcd   : > { %v992_v15 = vmax.f32 %v513_v12, 0.0  ;;  %392 = vmatmul.f32.gmra.mxu0 %v192_v7  ;;  %559 = vmatmul.f32.gmra.mxu1 %v193_v8 }
  0xce   : > { %v679_v13 = vpop.f32.mrf.mxu2 }
  0xcf   : > { %v846_v14 = vpop.f32.mrf.mxu3  ;;  %1093 = vst [vmem:[%s1544_s17 + $0x40] sm:$0xff] %v992_v15 }
  0xd0   : > { %v847_v16 = vadd.f32 %v846_v14, %v679_v13  ;;  %v206_v13 = vld [vmem:[%s1479_s22 + $0x1b0] sm:$0xff]  ;;  %v207_v14 = vld [vmem:[%s1479_s22 + $0x1b8] sm:$0xff] }
  0xd2   : > { %v993_v19 = vmax.f32 %v847_v16, 0.0  ;;  %v348_v20 = vpop.f32.mrf.mxu0  ;;  %v515_v21 = vpop.f32.mrf.mxu1 }
  0xd3   : > { %729 = vmatmul.f32.gmra.mxu2 %v194_v17  ;;  %v516_v22 = vadd.f32 %v515_v21, %v348_v20 }
  0xd4   : > { %1094 = vst.msk [vmem:[%s1544_s17 + $0x48] sm:$0xff] %vm1085_vm0, %v993_v19  ;;  %896 = vmatmul.f32.gmra.mxu3 %v195_v18 }
  0xd5   : > { %v994_v25 = vmax.f32 %v516_v22, 0.0  ;;  %395 = vmatmul.f32.gmra.mxu0 %v194_v17  ;;  %562 = vmatmul.f32.gmra.mxu1 %v195_v18 }
  0xd6   : > { %v682_v23 = vpop.f32.mrf.mxu2 }
  0xd7   : > { %v849_v24 = vpop.f32.mrf.mxu3  ;;  %1095 = vst [vmem:[%s1544_s17 + $0x50] sm:$0xff] %v994_v25 }
  0xd8   : > { %v850_v26 = vadd.f32 %v849_v24, %v682_v23  ;;  %v208_v23 = vld [vmem:[%s1479_s22 + $0x1c0] sm:$0xff]  ;;  %v209_v24 = vld [vmem:[%s1479_s22 + $0x1c8] sm:$0xff] }
  0xda   : > { %v995_v29 = vmax.f32 %v850_v26, 0.0  ;;  %v351_v30 = vpop.f32.mrf.mxu0  ;;  %v518_v31 = vpop.f32.mrf.mxu1 }
  0xdb   : > { %732 = vmatmul.f32.gmra.mxu2 %v196_v27  ;;  %v519_v32 = vadd.f32 %v518_v31, %v351_v30 }
  0xdc   : > { %1096 = vst.msk [vmem:[%s1544_s17 + $0x58] sm:$0xff] %vm1085_vm0, %v995_v29  ;;  %899 = vmatmul.f32.gmra.mxu3 %v197_v28 }
  0xdd   : > { %v996_v35 = vmax.f32 %v519_v32, 0.0  ;;  %398 = vmatmul.f32.gmra.mxu0 %v196_v27  ;;  %565 = vmatmul.f32.gmra.mxu1 %v197_v28 }
  0xde   : > { %v685_v33 = vpop.f32.mrf.mxu2 }
  0xdf   : > { %v852_v34 = vpop.f32.mrf.mxu3  ;;  %1097 = vst [vmem:[%s1544_s17 + $0x60] sm:$0xff] %v996_v35 }
  0xe0   : > { %v853_v36 = vadd.f32 %v852_v34, %v685_v33  ;;  %v210_v33 = vld [vmem:[%s1479_s22 + $0x1d0] sm:$0xff]  ;;  %v211_v34 = vld [vmem:[%s1479_s22 + $0x1d8] sm:$0xff] }
  0xe2   : > { %v997_v39 = vmax.f32 %v853_v36, 0.0  ;;  %v354_v40 = vpop.f32.mrf.mxu0  ;;  %v521_v41 = vpop.f32.mrf.mxu1 }
  0xe3   : > { %735 = vmatmul.f32.gmra.mxu2 %v198_v37  ;;  %v522_v42 = vadd.f32 %v521_v41, %v354_v40 }
  0xe4   : > { %1098 = vst.msk [vmem:[%s1544_s17 + $0x68] sm:$0xff] %vm1085_vm0, %v997_v39  ;;  %902 = vmatmul.f32.gmra.mxu3 %v199_v38 }
  0xe5   : > { %v998_v45 = vmax.f32 %v522_v42, 0.0  ;;  %401 = vmatmul.f32.gmra.mxu0 %v198_v37  ;;  %568 = vmatmul.f32.gmra.mxu1 %v199_v38 }
  0xe6   : > { %v688_v43 = vpop.f32.mrf.mxu2 }
  0xe7   : > { %v855_v44 = vpop.f32.mrf.mxu3  ;;  %1099 = vst [vmem:[%s1544_s17 + $0x70] sm:$0xff] %v998_v45 }
  0xe8   : > { %v856_v46 = vadd.f32 %v855_v44, %v688_v43  ;;  %v212_v43 = vld [vmem:[%s1479_s22 + $0x1e0] sm:$0xff]  ;;  %v213_v44 = vld [vmem:[%s1479_s22 + $0x1e8] sm:$0xff] }
  0xea   : > { %v999_v49 = vmax.f32 %v856_v46, 0.0  ;;  %v357_v50 = vpop.f32.mrf.mxu0  ;;  %v524_v51 = vpop.f32.mrf.mxu1 }
  0xeb   : > { %738 = vmatmul.f32.gmra.mxu2 %v200_v47  ;;  %v525_v52 = vadd.f32 %v524_v51, %v357_v50 }
  0xec   : > { %1100 = vst.msk [vmem:[%s1544_s17 + $0x78] sm:$0xff] %vm1085_vm0, %v999_v49  ;;  %905 = vmatmul.f32.gmra.mxu3 %v201_v48 }
  0xed   : > { %v1000_v55 = vmax.f32 %v525_v52, 0.0  ;;  %404 = vmatmul.f32.gmra.mxu0 %v200_v47  ;;  %571 = vmatmul.f32.gmra.mxu1 %v201_v48 }
  0xee   : > { %v691_v53 = vpop.f32.mrf.mxu2 }
  0xef   : > { %v858_v54 = vpop.f32.mrf.mxu3  ;;  %1101 = vst [vmem:[%s1544_s17 + $0x80] sm:$0xff] %v1000_v55 }
  0xf0   : > { %v859_v56 = vadd.f32 %v858_v54, %v691_v53  ;;  %v214_v53 = vld [vmem:[%s1479_s22 + $0x1f0] sm:$0xff]  ;;  %v215_v54 = vld [vmem:[%s1479_s22 + $0x1f8] sm:$0xff] }
  0xf2   : > { %v1001_v59 = vmax.f32 %v859_v56, 0.0  ;;  %v360_v60 = vpop.f32.mrf.mxu0  ;;  %v527_v61 = vpop.f32.mrf.mxu1 }
  0xf3   : > { %741 = vmatmul.f32.gmra.mxu2 %v202_v57  ;;  %v528_v62 = vadd.f32 %v527_v61, %v360_v60 }
  0xf4   : > { %1102 = vst.msk [vmem:[%s1544_s17 + $0x88] sm:$0xff] %vm1085_vm0, %v1001_v59  ;;  %908 = vmatmul.f32.gmra.mxu3 %v203_v58 }
  0xf5   : > { %v1002_v1 = vmax.f32 %v528_v62, 0.0  ;;  %407 = vmatmul.f32.gmra.mxu0 %v202_v57  ;;  %574 = vmatmul.f32.gmra.mxu1 %v203_v58 }
  0xf6   : > { %v694_v63 = vpop.f32.mrf.mxu2 }
  0xf7   : > { %v861_v0 = vpop.f32.mrf.mxu3  ;;  %1103 = vst [vmem:[%s1544_s17 + $0x90] sm:$0xff] %v1002_v1 }
  0xf8   : > { %v862_v2 = vadd.f32 %v861_v0, %v694_v63  ;;  %v216_v63 = vld [vmem:[%s1479_s22 + $0x200] sm:$0xff]  ;;  %v217_v0 = vld [vmem:[%s1479_s22 + $0x208] sm:$0xff] }
  0xfa   : > { %v1003_v5 = vmax.f32 %v862_v2, 0.0  ;;  %v363_v6 = vpop.f32.mrf.mxu0  ;;  %v530_v7 = vpop.f32.mrf.mxu1 }
  0xfb   : > { %744 = vmatmul.f32.gmra.mxu2 %v204_v3  ;;  %v531_v8 = vadd.f32 %v530_v7, %v363_v6 }
  0xfc   : > { %1104 = vst.msk [vmem:[%s1544_s17 + $0x98] sm:$0xff] %vm1085_vm0, %v1003_v5  ;;  %911 = vmatmul.f32.gmra.mxu3 %v205_v4 }
  0xfd   : > { %v1004_v11 = vmax.f32 %v531_v8, 0.0  ;;  %410 = vmatmul.f32.gmra.mxu0 %v204_v3  ;;  %577 = vmatmul.f32.gmra.mxu1 %v205_v4 }
  0xfe   : > { %v697_v9 = vpop.f32.mrf.mxu2 }
  0xff   : > { %v864_v10 = vpop.f32.mrf.mxu3  ;;  %1105 = vst [vmem:[%s1544_s17 + $0xa0] sm:$0xff] %v1004_v11 }
 0x100   : > { %v865_v12 = vadd.f32 %v864_v10, %v697_v9  ;;  %v218_v9 = vld [vmem:[%s1479_s22 + $0x210] sm:$0xff]  ;;  %v219_v10 = vld [vmem:[%s1479_s22 + $0x218] sm:$0xff] }
 0x102   : > { %v1005_v15 = vmax.f32 %v865_v12, 0.0  ;;  %v366_v16 = vpop.f32.mrf.mxu0  ;;  %v533_v17 = vpop.f32.mrf.mxu1 }
 0x103   : > { %747 = vmatmul.f32.gmra.mxu2 %v206_v13  ;;  %v534_v18 = vadd.f32 %v533_v17, %v366_v16 }
 0x104   : > { %1106 = vst.msk [vmem:[%s1544_s17 + $0xa8] sm:$0xff] %vm1085_vm0, %v1005_v15  ;;  %914 = vmatmul.f32.gmra.mxu3 %v207_v14 }
 0x105   : > { %v1006_v21 = vmax.f32 %v534_v18, 0.0  ;;  %413 = vmatmul.f32.gmra.mxu0 %v206_v13  ;;  %580 = vmatmul.f32.gmra.mxu1 %v207_v14 }
 0x106   : > { %v700_v19 = vpop.f32.mrf.mxu2 }
 0x107   : > { %v867_v20 = vpop.f32.mrf.mxu3  ;;  %1107 = vst [vmem:[%s1544_s17 + $0xb0] sm:$0xff] %v1006_v21 }
 0x108   : > { %v868_v22 = vadd.f32 %v867_v20, %v700_v19  ;;  %v220_v19 = vld [vmem:[%s1479_s22 + $0x220] sm:$0xff]  ;;  %v221_v20 = vld [vmem:[%s1479_s22 + $0x228] sm:$0xff] }
 0x10a   : > { %v1007_v25 = vmax.f32 %v868_v22, 0.0  ;;  %v369_v26 = vpop.f32.mrf.mxu0  ;;  %v536_v27 = vpop.f32.mrf.mxu1 }
 0x10b   : > { %750 = vmatmul.f32.gmra.mxu2 %v208_v23  ;;  %v537_v28 = vadd.f32 %v536_v27, %v369_v26 }
 0x10c   : > { %1108 = vst.msk [vmem:[%s1544_s17 + $0xb8] sm:$0xff] %vm1085_vm0, %v1007_v25  ;;  %917 = vmatmul.f32.gmra.mxu3 %v209_v24 }
 0x10d   : > { %v1008_v31 = vmax.f32 %v537_v28, 0.0  ;;  %416 = vmatmul.f32.gmra.mxu0 %v208_v23  ;;  %583 = vmatmul.f32.gmra.mxu1 %v209_v24 }
 0x10e   : > { %v703_v29 = vpop.f32.mrf.mxu2 }
 0x10f   : > { %v870_v30 = vpop.f32.mrf.mxu3  ;;  %1109 = vst [vmem:[%s1544_s17 + $0xc0] sm:$0xff] %v1008_v31 }
 0x110   : > { %v871_v32 = vadd.f32 %v870_v30, %v703_v29  ;;  %v222_v29 = vld [vmem:[%s1479_s22 + $0x230] sm:$0xff]  ;;  %v223_v30 = vld [vmem:[%s1479_s22 + $0x238] sm:$0xff] }
 0x112   : > { %v1009_v35 = vmax.f32 %v871_v32, 0.0  ;;  %v372_v36 = vpop.f32.mrf.mxu0  ;;  %v539_v37 = vpop.f32.mrf.mxu1 }
 0x113   : > { %753 = vmatmul.f32.gmra.mxu2 %v210_v33  ;;  %v540_v38 = vadd.f32 %v539_v37, %v372_v36 }
 0x114   : > { %1110 = vst.msk [vmem:[%s1544_s17 + $0xc8] sm:$0xff] %vm1085_vm0, %v1009_v35  ;;  %920 = vmatmul.f32.gmra.mxu3 %v211_v34 }
 0x115   : > { %v1010_v41 = vmax.f32 %v540_v38, 0.0  ;;  %419 = vmatmul.f32.gmra.mxu0 %v210_v33  ;;  %586 = vmatmul.f32.gmra.mxu1 %v211_v34 }
 0x116   : > { %v706_v39 = vpop.f32.mrf.mxu2 }
 0x117   : > { %v873_v40 = vpop.f32.mrf.mxu3  ;;  %1111 = vst [vmem:[%s1544_s17 + $0xd0] sm:$0xff] %v1010_v41 }
 0x118   : > { %v874_v42 = vadd.f32 %v873_v40, %v706_v39  ;;  %v224_v39 = vld [vmem:[%s1479_s22 + $0x240] sm:$0xff]  ;;  %v225_v40 = vld [vmem:[%s1479_s22 + $0x248] sm:$0xff] }
 0x11a   : > { %v1011_v45 = vmax.f32 %v874_v42, 0.0  ;;  %v375_v46 = vpop.f32.mrf.mxu0  ;;  %v542_v47 = vpop.f32.mrf.mxu1 }
 0x11b   : > { %756 = vmatmul.f32.gmra.mxu2 %v212_v43  ;;  %v543_v48 = vadd.f32 %v542_v47, %v375_v46 }
 0x11c   : > { %1112 = vst.msk [vmem:[%s1544_s17 + $0xd8] sm:$0xff] %vm1085_vm0, %v1011_v45  ;;  %923 = vmatmul.f32.gmra.mxu3 %v213_v44 }
 0x11d   : > { %v1012_v51 = vmax.f32 %v543_v48, 0.0  ;;  %422 = vmatmul.f32.gmra.mxu0 %v212_v43  ;;  %589 = vmatmul.f32.gmra.mxu1 %v213_v44 }
 0x11e   : > { %v709_v49 = vpop.f32.mrf.mxu2 }
 0x11f   : > { %v876_v50 = vpop.f32.mrf.mxu3  ;;  %1113 = vst [vmem:[%s1544_s17 + $0xe0] sm:$0xff] %v1012_v51 }
 0x120   : > { %v877_v52 = vadd.f32 %v876_v50, %v709_v49  ;;  %v226_v49 = vld [vmem:[%s1479_s22 + $0x250] sm:$0xff]  ;;  %v227_v50 = vld [vmem:[%s1479_s22 + $0x258] sm:$0xff] }
 0x122   : > { %v1013_v55 = vmax.f32 %v877_v52, 0.0  ;;  %v378_v56 = vpop.f32.mrf.mxu0  ;;  %v545_v57 = vpop.f32.mrf.mxu1 }
 0x123   : > { %759 = vmatmul.f32.gmra.mxu2 %v214_v53  ;;  %v546_v58 = vadd.f32 %v545_v57, %v378_v56 }
 0x124   : > { %1114 = vst.msk [vmem:[%s1544_s17 + $0xe8] sm:$0xff] %vm1085_vm0, %v1013_v55  ;;  %926 = vmatmul.f32.gmra.mxu3 %v215_v54 }
 0x125   : > { %v1014_v61 = vmax.f32 %v546_v58, 0.0  ;;  %425 = vmatmul.f32.gmra.mxu0 %v214_v53  ;;  %592 = vmatmul.f32.gmra.mxu1 %v215_v54 }
 0x126   : > { %v712_v59 = vpop.f32.mrf.mxu2 }
 0x127   : > { %v879_v60 = vpop.f32.mrf.mxu3  ;;  %1115 = vst [vmem:[%s1544_s17 + $0xf0] sm:$0xff] %v1014_v61 }
 0x128   : > { %v880_v62 = vadd.f32 %v879_v60, %v712_v59  ;;  %v228_v59 = vld [vmem:[%s1479_s22 + $0x260] sm:$0xff]  ;;  %v229_v60 = vld [vmem:[%s1479_s22 + $0x268] sm:$0xff] }
 0x12a   : > { %v1015_v1 = vmax.f32 %v880_v62, 0.0  ;;  %v381_v2 = vpop.f32.mrf.mxu0  ;;  %v548_v3 = vpop.f32.mrf.mxu1 }
 0x12b   : > { %762 = vmatmul.f32.gmra.mxu2 %v216_v63  ;;  %v549_v4 = vadd.f32 %v548_v3, %v381_v2 }
 0x12c   : > { %1116 = vst.msk [vmem:[%s1544_s17 + $0xf8] sm:$0xff] %vm1085_vm0, %v1015_v1  ;;  %929 = vmatmul.f32.gmra.mxu3 %v217_v0 }
 0x12d   : > { %v1016_v7 = vmax.f32 %v549_v4, 0.0  ;;  %428 = vmatmul.f32.gmra.mxu0 %v216_v63  ;;  %595 = vmatmul.f32.gmra.mxu1 %v217_v0 }
 0x12e   : > { %v715_v5 = vpop.f32.mrf.mxu2 }
 0x12f   : > { %v882_v6 = vpop.f32.mrf.mxu3  ;;  %1117 = vst [vmem:[%s1544_s17 + $0x100] sm:$0xff] %v1016_v7 }
 0x130   : > { %v883_v8 = vadd.f32 %v882_v6, %v715_v5  ;;  %v230_v5 = vld [vmem:[%s1479_s22 + $0x270] sm:$0xff]  ;;  %v231_v6 = vld [vmem:[%s1479_s22 + $0x278] sm:$0xff] }
 0x132   : > { %v1017_v11 = vmax.f32 %v883_v8, 0.0  ;;  %v384_v12 = vpop.f32.mrf.mxu0  ;;  %v551_v13 = vpop.f32.mrf.mxu1 }
 0x133   : > { %765 = vmatmul.f32.gmra.mxu2 %v218_v9  ;;  %v552_v14 = vadd.f32 %v551_v13, %v384_v12 }
 0x134   : > { %1118 = vst.msk [vmem:[%s1544_s17 + $0x108] sm:$0xff] %vm1085_vm0, %v1017_v11  ;;  %932 = vmatmul.f32.gmra.mxu3 %v219_v10 }
 0x135   : > { %v1018_v17 = vmax.f32 %v552_v14, 0.0  ;;  %431 = vmatmul.f32.gmra.mxu0 %v218_v9  ;;  %598 = vmatmul.f32.gmra.mxu1 %v219_v10 }
 0x136   : > { %v718_v15 = vpop.f32.mrf.mxu2 }
 0x137   : > { %v885_v16 = vpop.f32.mrf.mxu3  ;;  %1119 = vst [vmem:[%s1544_s17 + $0x110] sm:$0xff] %v1018_v17 }
 0x138   : > { %v886_v18 = vadd.f32 %v885_v16, %v718_v15  ;;  %v232_v15 = vld [vmem:[%s1479_s22 + $0x280] sm:$0xff]  ;;  %v233_v16 = vld [vmem:[%s1479_s22 + $0x288] sm:$0xff] }
 0x13a   : > { %v1019_v21 = vmax.f32 %v886_v18, 0.0  ;;  %v387_v22 = vpop.f32.mrf.mxu0  ;;  %v554_v23 = vpop.f32.mrf.mxu1 }
 0x13b   : > { %768 = vmatmul.f32.gmra.mxu2 %v220_v19  ;;  %v555_v24 = vadd.f32 %v554_v23, %v387_v22 }
 0x13c   : > { %1120 = vst.msk [vmem:[%s1544_s17 + $0x118] sm:$0xff] %vm1085_vm0, %v1019_v21  ;;  %935 = vmatmul.f32.gmra.mxu3 %v221_v20 }
 0x13d   : > { %v1020_v27 = vmax.f32 %v555_v24, 0.0  ;;  %434 = vmatmul.f32.gmra.mxu0 %v220_v19  ;;  %601 = vmatmul.f32.gmra.mxu1 %v221_v20 }
 0x13e   : > { %v721_v25 = vpop.f32.mrf.mxu2 }
 0x13f   : > { %v888_v26 = vpop.f32.mrf.mxu3  ;;  %1121 = vst [vmem:[%s1544_s17 + $0x120] sm:$0xff] %v1020_v27 }
 0x140   : > { %v889_v28 = vadd.f32 %v888_v26, %v721_v25  ;;  %v234_v25 = vld [vmem:[%s1479_s22 + $0x290] sm:$0xff]  ;;  %v235_v26 = vld [vmem:[%s1479_s22 + $0x298] sm:$0xff] }
 0x142   : > { %v1021_v31 = vmax.f32 %v889_v28, 0.0  ;;  %v390_v32 = vpop.f32.mrf.mxu0  ;;  %v557_v33 = vpop.f32.mrf.mxu1 }
 0x143   : > { %771 = vmatmul.f32.gmra.mxu2 %v222_v29  ;;  %v558_v34 = vadd.f32 %v557_v33, %v390_v32 }
 0x144   : > { %1122 = vst.msk [vmem:[%s1544_s17 + $0x128] sm:$0xff] %vm1085_vm0, %v1021_v31  ;;  %938 = vmatmul.f32.gmra.mxu3 %v223_v30 }
 0x145   : > { %v1022_v37 = vmax.f32 %v558_v34, 0.0  ;;  %437 = vmatmul.f32.gmra.mxu0 %v222_v29  ;;  %604 = vmatmul.f32.gmra.mxu1 %v223_v30 }
 0x146   : > { %v724_v35 = vpop.f32.mrf.mxu2 }
 0x147   : > { %v891_v36 = vpop.f32.mrf.mxu3  ;;  %1123 = vst [vmem:[%s1544_s17 + $0x130] sm:$0xff] %v1022_v37 }
 0x148   : > { %v892_v38 = vadd.f32 %v891_v36, %v724_v35  ;;  %v236_v35 = vld [vmem:[%s1479_s22 + $0x2a0] sm:$0xff]  ;;  %v237_v36 = vld [vmem:[%s1479_s22 + $0x2a8] sm:$0xff] }
 0x14a   : > { %v1023_v41 = vmax.f32 %v892_v38, 0.0  ;;  %v393_v42 = vpop.f32.mrf.mxu0  ;;  %v560_v43 = vpop.f32.mrf.mxu1 }
 0x14b   : > { %774 = vmatmul.f32.gmra.mxu2 %v224_v39  ;;  %v561_v44 = vadd.f32 %v560_v43, %v393_v42 }
 0x14c   : > { %1124 = vst.msk [vmem:[%s1544_s17 + $0x138] sm:$0xff] %vm1085_vm0, %v1023_v41  ;;  %941 = vmatmul.f32.gmra.mxu3 %v225_v40 }
 0x14d   : > { %v1024_v47 = vmax.f32 %v561_v44, 0.0  ;;  %440 = vmatmul.f32.gmra.mxu0 %v224_v39  ;;  %607 = vmatmul.f32.gmra.mxu1 %v225_v40 }
 0x14e   : > { %v727_v45 = vpop.f32.mrf.mxu2 }
 0x14f   : > { %v894_v46 = vpop.f32.mrf.mxu3  ;;  %1125 = vst [vmem:[%s1544_s17 + $0x140] sm:$0xff] %v1024_v47 }
 0x150   : > { %v895_v48 = vadd.f32 %v894_v46, %v727_v45  ;;  %v238_v45 = vld [vmem:[%s1479_s22 + $0x2b0] sm:$0xff]  ;;  %v239_v46 = vld [vmem:[%s1479_s22 + $0x2b8] sm:$0xff] }
 0x152   : > { %v1025_v51 = vmax.f32 %v895_v48, 0.0  ;;  %v396_v52 = vpop.f32.mrf.mxu0  ;;  %v563_v53 = vpop.f32.mrf.mxu1 }
 0x153   : > { %777 = vmatmul.f32.gmra.mxu2 %v226_v49  ;;  %v564_v54 = vadd.f32 %v563_v53, %v396_v52 }
 0x154   : > { %1126 = vst.msk [vmem:[%s1544_s17 + $0x148] sm:$0xff] %vm1085_vm0, %v1025_v51  ;;  %944 = vmatmul.f32.gmra.mxu3 %v227_v50 }
 0x155   : > { %v1026_v57 = vmax.f32 %v564_v54, 0.0  ;;  %443 = vmatmul.f32.gmra.mxu0 %v226_v49  ;;  %610 = vmatmul.f32.gmra.mxu1 %v227_v50 }
 0x156   : > { %v730_v55 = vpop.f32.mrf.mxu2 }
 0x157   : > { %v897_v56 = vpop.f32.mrf.mxu3  ;;  %1127 = vst [vmem:[%s1544_s17 + $0x150] sm:$0xff] %v1026_v57 }
 0x158   : > { %v898_v58 = vadd.f32 %v897_v56, %v730_v55  ;;  %v240_v55 = vld [vmem:[%s1479_s22 + $0x2c0] sm:$0xff]  ;;  %v241_v56 = vld [vmem:[%s1479_s22 + $0x2c8] sm:$0xff] }
 0x15a   : > { %v1027_v61 = vmax.f32 %v898_v58, 0.0  ;;  %v399_v62 = vpop.f32.mrf.mxu0  ;;  %v566_v63 = vpop.f32.mrf.mxu1 }
 0x15b   : > { %780 = vmatmul.f32.gmra.mxu2 %v228_v59  ;;  %v567_v0 = vadd.f32 %v566_v63, %v399_v62 }
 0x15c   : > { %1128 = vst.msk [vmem:[%s1544_s17 + $0x158] sm:$0xff] %vm1085_vm0, %v1027_v61  ;;  %947 = vmatmul.f32.gmra.mxu3 %v229_v60 }
 0x15d   : > { %v1028_v3 = vmax.f32 %v567_v0, 0.0  ;;  %446 = vmatmul.f32.gmra.mxu0 %v228_v59  ;;  %613 = vmatmul.f32.gmra.mxu1 %v229_v60 }
 0x15e   : > { %v733_v1 = vpop.f32.mrf.mxu2 }
 0x15f   : > { %v900_v2 = vpop.f32.mrf.mxu3  ;;  %1129 = vst [vmem:[%s1544_s17 + $0x160] sm:$0xff] %v1028_v3 }
 0x160   : > { %v901_v4 = vadd.f32 %v900_v2, %v733_v1  ;;  %v242_v1 = vld [vmem:[%s1479_s22 + $0x2d0] sm:$0xff]  ;;  %v243_v2 = vld [vmem:[%s1479_s22 + $0x2d8] sm:$0xff] }
 0x162   : > { %v1029_v7 = vmax.f32 %v901_v4, 0.0  ;;  %v402_v8 = vpop.f32.mrf.mxu0  ;;  %v569_v9 = vpop.f32.mrf.mxu1 }
 0x163   : > { %783 = vmatmul.f32.gmra.mxu2 %v230_v5  ;;  %v570_v10 = vadd.f32 %v569_v9, %v402_v8 }
 0x164   : > { %1130 = vst.msk [vmem:[%s1544_s17 + $0x168] sm:$0xff] %vm1085_vm0, %v1029_v7  ;;  %950 = vmatmul.f32.gmra.mxu3 %v231_v6 }
 0x165   : > { %v1030_v13 = vmax.f32 %v570_v10, 0.0  ;;  %449 = vmatmul.f32.gmra.mxu0 %v230_v5  ;;  %616 = vmatmul.f32.gmra.mxu1 %v231_v6 }
 0x166   : > { %v736_v11 = vpop.f32.mrf.mxu2 }
 0x167   : > { %v903_v12 = vpop.f32.mrf.mxu3  ;;  %1131 = vst [vmem:[%s1544_s17 + $0x170] sm:$0xff] %v1030_v13 }
 0x168   : > { %v904_v14 = vadd.f32 %v903_v12, %v736_v11  ;;  %v244_v11 = vld [vmem:[%s1479_s22 + $0x2e0] sm:$0xff]  ;;  %v245_v12 = vld [vmem:[%s1479_s22 + $0x2e8] sm:$0xff] }
 0x16a   : > { %v1031_v17 = vmax.f32 %v904_v14, 0.0  ;;  %v405_v18 = vpop.f32.mrf.mxu0  ;;  %v572_v19 = vpop.f32.mrf.mxu1 }
 0x16b   : > { %786 = vmatmul.f32.gmra.mxu2 %v232_v15  ;;  %v573_v20 = vadd.f32 %v572_v19, %v405_v18 }
 0x16c   : > { %1132 = vst.msk [vmem:[%s1544_s17 + $0x178] sm:$0xff] %vm1085_vm0, %v1031_v17  ;;  %953 = vmatmul.f32.gmra.mxu3 %v233_v16 }
 0x16d   : > { %v1032_v23 = vmax.f32 %v573_v20, 0.0  ;;  %452 = vmatmul.f32.gmra.mxu0 %v232_v15  ;;  %619 = vmatmul.f32.gmra.mxu1 %v233_v16 }
 0x16e   : > { %v739_v21 = vpop.f32.mrf.mxu2 }
 0x16f   : > { %v906_v22 = vpop.f32.mrf.mxu3  ;;  %1133 = vst [vmem:[%s1544_s17 + $0x180] sm:$0xff] %v1032_v23 }
 0x170   : > { %v907_v24 = vadd.f32 %v906_v22, %v739_v21  ;;  %v246_v21 = vld [vmem:[%s1479_s22 + $0x2f0] sm:$0xff]  ;;  %v247_v22 = vld [vmem:[%s1479_s22 + $0x2f8] sm:$0xff] }
 0x172   : > { %v1033_v27 = vmax.f32 %v907_v24, 0.0  ;;  %v408_v28 = vpop.f32.mrf.mxu0  ;;  %v575_v29 = vpop.f32.mrf.mxu1 }
 0x173   : > { %789 = vmatmul.f32.gmra.mxu2 %v234_v25  ;;  %v576_v30 = vadd.f32 %v575_v29, %v408_v28 }
 0x174   : > { %1134 = vst.msk [vmem:[%s1544_s17 + $0x188] sm:$0xff] %vm1085_vm0, %v1033_v27  ;;  %956 = vmatmul.f32.gmra.mxu3 %v235_v26 }
 0x175   : > { %v1034_v33 = vmax.f32 %v576_v30, 0.0  ;;  %455 = vmatmul.f32.gmra.mxu0 %v234_v25  ;;  %622 = vmatmul.f32.gmra.mxu1 %v235_v26 }
 0x176   : > { %v742_v31 = vpop.f32.mrf.mxu2 }
 0x177   : > { %v909_v32 = vpop.f32.mrf.mxu3  ;;  %1135 = vst [vmem:[%s1544_s17 + $0x190] sm:$0xff] %v1034_v33 }
 0x178   : > { %v910_v34 = vadd.f32 %v909_v32, %v742_v31  ;;  %v248_v31 = vld [vmem:[%s1479_s22 + $0x300] sm:$0xff]  ;;  %v249_v32 = vld [vmem:[%s1479_s22 + $0x308] sm:$0xff] }
 0x17a   : > { %v1035_v37 = vmax.f32 %v910_v34, 0.0  ;;  %v411_v38 = vpop.f32.mrf.mxu0  ;;  %v578_v39 = vpop.f32.mrf.mxu1 }
 0x17b   : > { %792 = vmatmul.f32.gmra.mxu2 %v236_v35  ;;  %v579_v40 = vadd.f32 %v578_v39, %v411_v38 }
 0x17c   : > { %1136 = vst.msk [vmem:[%s1544_s17 + $0x198] sm:$0xff] %vm1085_vm0, %v1035_v37  ;;  %959 = vmatmul.f32.gmra.mxu3 %v237_v36 }
 0x17d   : > { %v1036_v43 = vmax.f32 %v579_v40, 0.0  ;;  %458 = vmatmul.f32.gmra.mxu0 %v236_v35  ;;  %625 = vmatmul.f32.gmra.mxu1 %v237_v36 }
 0x17e   : > { %v745_v41 = vpop.f32.mrf.mxu2 }
 0x17f   : > { %v912_v42 = vpop.f32.mrf.mxu3  ;;  %1137 = vst [vmem:[%s1544_s17 + $0x1a0] sm:$0xff] %v1036_v43 }
 0x180   : > { %v913_v44 = vadd.f32 %v912_v42, %v745_v41  ;;  %v250_v41 = vld [vmem:[%s1479_s22 + $0x310] sm:$0xff]  ;;  %v251_v42 = vld [vmem:[%s1479_s22 + $0x318] sm:$0xff] }
 0x182   : > { %v1037_v47 = vmax.f32 %v913_v44, 0.0  ;;  %v414_v48 = vpop.f32.mrf.mxu0  ;;  %v581_v49 = vpop.f32.mrf.mxu1 }
 0x183   : > { %795 = vmatmul.f32.gmra.mxu2 %v238_v45  ;;  %v582_v50 = vadd.f32 %v581_v49, %v414_v48 }
 0x184   : > { %1138 = vst.msk [vmem:[%s1544_s17 + $0x1a8] sm:$0xff] %vm1085_vm0, %v1037_v47  ;;  %962 = vmatmul.f32.gmra.mxu3 %v239_v46 }
 0x185   : > { %v1038_v53 = vmax.f32 %v582_v50, 0.0  ;;  %461 = vmatmul.f32.gmra.mxu0 %v238_v45  ;;  %628 = vmatmul.f32.gmra.mxu1 %v239_v46 }
 0x186   : > { %v748_v51 = vpop.f32.mrf.mxu2 }
 0x187   : > { %v915_v52 = vpop.f32.mrf.mxu3  ;;  %1139 = vst [vmem:[%s1544_s17 + $0x1b0] sm:$0xff] %v1038_v53 }
 0x188   : > { %v916_v54 = vadd.f32 %v915_v52, %v748_v51 }
 0x18a   : > { %v1039_v57 = vmax.f32 %v916_v54, 0.0  ;;  %v417_v58 = vpop.f32.mrf.mxu0  ;;  %v584_v59 = vpop.f32.mrf.mxu1 }
 0x18b   : > { %798 = vmatmul.f32.gmra.mxu2 %v240_v55  ;;  %v585_v60 = vadd.f32 %v584_v59, %v417_v58 }
 0x18c   : > { %1140 = vst.msk [vmem:[%s1544_s17 + $0x1b8] sm:$0xff] %vm1085_vm0, %v1039_v57  ;;  %965 = vmatmul.f32.gmra.mxu3 %v241_v56 }
 0x18d   : > { %v1040_v63 = vmax.f32 %v585_v60, 0.0  ;;  %464 = vmatmul.f32.gmra.mxu0 %v240_v55  ;;  %631 = vmatmul.f32.gmra.mxu1 %v241_v56 }
 0x18e   : > { %v751_v61 = vpop.f32.mrf.mxu2 }
 0x18f   : > { %v918_v62 = vpop.f32.mrf.mxu3  ;;  %1141 = vst [vmem:[%s1544_s17 + $0x1c0] sm:$0xff] %v1040_v63 }
 0x190   : > { %v919_v0 = vadd.f32 %v918_v62, %v751_v61 }
 0x192   : > { %v1041_v3 = vmax.f32 %v919_v0, 0.0  ;;  %v420_v4 = vpop.f32.mrf.mxu0  ;;  %v587_v5 = vpop.f32.mrf.mxu1 }
 0x193   : > { %801 = vmatmul.f32.gmra.mxu2 %v242_v1  ;;  %v588_v6 = vadd.f32 %v587_v5, %v420_v4 }
 0x194   : > { %1142 = vst.msk [vmem:[%s1544_s17 + $0x1c8] sm:$0xff] %vm1085_vm0, %v1041_v3  ;;  %968 = vmatmul.f32.gmra.mxu3 %v243_v2 }
 0x195   : > { %v1042_v9 = vmax.f32 %v588_v6, 0.0  ;;  %467 = vmatmul.f32.gmra.mxu0 %v242_v1  ;;  %634 = vmatmul.f32.gmra.mxu1 %v243_v2 }
 0x196   : > { %v754_v7 = vpop.f32.mrf.mxu2 }
 0x197   : > { %v921_v8 = vpop.f32.mrf.mxu3  ;;  %1143 = vst [vmem:[%s1544_s17 + $0x1d0] sm:$0xff] %v1042_v9 }
 0x198   : > { %v922_v10 = vadd.f32 %v921_v8, %v754_v7 }
 0x19a   : > { %v1043_v13 = vmax.f32 %v922_v10, 0.0  ;;  %v423_v14 = vpop.f32.mrf.mxu0  ;;  %v590_v15 = vpop.f32.mrf.mxu1 }
 0x19b   : > { %804 = vmatmul.f32.gmra.mxu2 %v244_v11  ;;  %v591_v16 = vadd.f32 %v590_v15, %v423_v14 }
 0x19c   : > { %1144 = vst.msk [vmem:[%s1544_s17 + $0x1d8] sm:$0xff] %vm1085_vm0, %v1043_v13  ;;  %971 = vmatmul.f32.gmra.mxu3 %v245_v12 }
 0x19d   : > { %v1044_v19 = vmax.f32 %v591_v16, 0.0  ;;  %470 = vmatmul.f32.gmra.mxu0 %v244_v11  ;;  %637 = vmatmul.f32.gmra.mxu1 %v245_v12 }
 0x19e   : > { %v757_v17 = vpop.f32.mrf.mxu2 }
 0x19f   : > { %v924_v18 = vpop.f32.mrf.mxu3  ;;  %1145 = vst [vmem:[%s1544_s17 + $0x1e0] sm:$0xff] %v1044_v19 }
 0x1a0   : > { %v925_v20 = vadd.f32 %v924_v18, %v757_v17 }
 0x1a2   : > { %v1045_v23 = vmax.f32 %v925_v20, 0.0  ;;  %v426_v24 = vpop.f32.mrf.mxu0  ;;  %v593_v25 = vpop.f32.mrf.mxu1 }
 0x1a3   : > { %807 = vmatmul.f32.gmra.mxu2 %v246_v21  ;;  %v594_v26 = vadd.f32 %v593_v25, %v426_v24 }
 0x1a4   : > { %1146 = vst.msk [vmem:[%s1544_s17 + $0x1e8] sm:$0xff] %vm1085_vm0, %v1045_v23  ;;  %974 = vmatmul.f32.gmra.mxu3 %v247_v22 }
 0x1a5   : > { %v1046_v29 = vmax.f32 %v594_v26, 0.0  ;;  %473 = vmatmul.f32.gmra.mxu0 %v246_v21  ;;  %640 = vmatmul.f32.gmra.mxu1 %v247_v22 }
 0x1a6   : > { %v760_v27 = vpop.f32.mrf.mxu2 }
 0x1a7   : > { %v927_v28 = vpop.f32.mrf.mxu3  ;;  %1147 = vst [vmem:[%s1544_s17 + $0x1f0] sm:$0xff] %v1046_v29 }
 0x1a8   : > { %v928_v30 = vadd.f32 %v927_v28, %v760_v27 }
 0x1aa   : > { %v1047_v33 = vmax.f32 %v928_v30, 0.0  ;;  %v429_v34 = vpop.f32.mrf.mxu0  ;;  %v596_v35 = vpop.f32.mrf.mxu1 }
 0x1ab   : > { %810 = vmatmul.f32.gmra.mxu2 %v248_v31  ;;  %v597_v36 = vadd.f32 %v596_v35, %v429_v34 }
 0x1ac   : > { %1148 = vst.msk [vmem:[%s1544_s17 + $0x1f8] sm:$0xff] %vm1085_vm0, %v1047_v33  ;;  %977 = vmatmul.f32.gmra.mxu3 %v249_v32 }
 0x1ad   : > { %v1048_v39 = vmax.f32 %v597_v36, 0.0  ;;  %476 = vmatmul.f32.gmra.mxu0 %v248_v31  ;;  %643 = vmatmul.f32.gmra.mxu1 %v249_v32 }
 0x1ae   : > { %v763_v37 = vpop.f32.mrf.mxu2 }
 0x1af   : > { %v930_v38 = vpop.f32.mrf.mxu3  ;;  %1149 = vst [vmem:[%s1544_s17 + $0x200] sm:$0xff] %v1048_v39 }
 0x1b0   : > { %v931_v40 = vadd.f32 %v930_v38, %v763_v37 }
 0x1b2   : > { %v1049_v43 = vmax.f32 %v931_v40, 0.0  ;;  %v432_v44 = vpop.f32.mrf.mxu0  ;;  %v599_v45 = vpop.f32.mrf.mxu1 }
 0x1b3   : > { %813 = vmatmul.f32.gmra.mxu2 %v250_v41  ;;  %v600_v46 = vadd.f32 %v599_v45, %v432_v44 }
 0x1b4   : > { %1150 = vst.msk [vmem:[%s1544_s17 + $0x208] sm:$0xff] %vm1085_vm0, %v1049_v43  ;;  %980 = vmatmul.f32.gmra.mxu3 %v251_v42 }
 0x1b5   : > { %v1050_v49 = vmax.f32 %v600_v46, 0.0  ;;  %479 = vmatmul.f32.gmra.mxu0 %v250_v41  ;;  %646 = vmatmul.f32.gmra.mxu1 %v251_v42 }
 0x1b6   : > { %v766_v47 = vpop.f32.mrf.mxu2 }
 0x1b7   : > { %v933_v48 = vpop.f32.mrf.mxu3  ;;  %1151 = vst [vmem:[%s1544_s17 + $0x210] sm:$0xff] %v1050_v49 }
 0x1b8   : > { %v934_v50 = vadd.f32 %v933_v48, %v766_v47 }
 0x1ba   : > { %v1051_v51 = vmax.f32 %v934_v50, 0.0  ;;  %v435_v52 = vpop.f32.mrf.mxu0  ;;  %v602_v53 = vpop.f32.mrf.mxu1 }
 0x1bb   : > { %v603_v54 = vadd.f32 %v602_v53, %v435_v52 }
 0x1bc   : > { %1152 = vst.msk [vmem:[%s1544_s17 + $0x218] sm:$0xff] %vm1085_vm0, %v1051_v51 }
 0x1bd   : > { %v1052_v57 = vmax.f32 %v603_v54, 0.0 }
 0x1be   : > { %v769_v55 = vpop.f32.mrf.mxu2 }
 0x1bf   : > { %v936_v56 = vpop.f32.mrf.mxu3  ;;  %1153 = vst [vmem:[%s1544_s17 + $0x220] sm:$0xff] %v1052_v57 }
 0x1c0   : > { %v937_v58 = vadd.f32 %v936_v56, %v769_v55 }
 0x1c2   : > { %v1053_v59 = vmax.f32 %v937_v58, 0.0  ;;  %v438_v60 = vpop.f32.mrf.mxu0  ;;  %v605_v61 = vpop.f32.mrf.mxu1 }
 0x1c3   : > { %v606_v62 = vadd.f32 %v605_v61, %v438_v60 }
 0x1c4   : > { %1154 = vst.msk [vmem:[%s1544_s17 + $0x228] sm:$0xff] %vm1085_vm0, %v1053_v59 }
 0x1c5   : > { %v1054_v1 = vmax.f32 %v606_v62, 0.0 }
 0x1c6   : > { %v772_v63 = vpop.f32.mrf.mxu2 }
 0x1c7   : > { %v939_v0 = vpop.f32.mrf.mxu3  ;;  %1155 = vst [vmem:[%s1544_s17 + $0x230] sm:$0xff] %v1054_v1 }
 0x1c8   : > { %v940_v2 = vadd.f32 %v939_v0, %v772_v63 }
 0x1ca   : > { %v1055_v3 = vmax.f32 %v940_v2, 0.0  ;;  %v441_v4 = vpop.f32.mrf.mxu0  ;;  %v608_v5 = vpop.f32.mrf.mxu1 }
 0x1cb   : > { %v609_v6 = vadd.f32 %v608_v5, %v441_v4 }
 0x1cc   : > { %1156 = vst.msk [vmem:[%s1544_s17 + $0x238] sm:$0xff] %vm1085_vm0, %v1055_v3 }
 0x1cd   : > { %v1056_v9 = vmax.f32 %v609_v6, 0.0 }
 0x1ce   : > { %v775_v7 = vpop.f32.mrf.mxu2 }
 0x1cf   : > { %v942_v8 = vpop.f32.mrf.mxu3  ;;  %1157 = vst [vmem:[%s1544_s17 + $0x240] sm:$0xff] %v1056_v9 }
 0x1d0   : > { %v943_v10 = vadd.f32 %v942_v8, %v775_v7 }
 0x1d2   : > { %v1057_v11 = vmax.f32 %v943_v10, 0.0  ;;  %v444_v12 = vpop.f32.mrf.mxu0  ;;  %v611_v13 = vpop.f32.mrf.mxu1 }
 0x1d3   : > { %v612_v14 = vadd.f32 %v611_v13, %v444_v12 }
 0x1d4   : > { %1158 = vst.msk [vmem:[%s1544_s17 + $0x248] sm:$0xff] %vm1085_vm0, %v1057_v11 }
 0x1d5   : > { %v1058_v17 = vmax.f32 %v612_v14, 0.0 }
 0x1d6   : > { %v778_v15 = vpop.f32.mrf.mxu2 }
 0x1d7   : > { %v945_v16 = vpop.f32.mrf.mxu3  ;;  %1159 = vst [vmem:[%s1544_s17 + $0x250] sm:$0xff] %v1058_v17 }
 0x1d8   : > { %v946_v18 = vadd.f32 %v945_v16, %v778_v15 }
 0x1da   : > { %v1059_v19 = vmax.f32 %v946_v18, 0.0  ;;  %v447_v20 = vpop.f32.mrf.mxu0  ;;  %v614_v21 = vpop.f32.mrf.mxu1 }
 0x1db   : > { %v615_v22 = vadd.f32 %v614_v21, %v447_v20 }
 0x1dc   : > { %1160 = vst.msk [vmem:[%s1544_s17 + $0x258] sm:$0xff] %vm1085_vm0, %v1059_v19 }
 0x1dd   : > { %v1060_v25 = vmax.f32 %v615_v22, 0.0 }
 0x1de   : > { %v781_v23 = vpop.f32.mrf.mxu2 }
 0x1df   : > { %v948_v24 = vpop.f32.mrf.mxu3  ;;  %1161 = vst [vmem:[%s1544_s17 + $0x260] sm:$0xff] %v1060_v25 }
 0x1e0   : > { %v949_v26 = vadd.f32 %v948_v24, %v781_v23 }
 0x1e2   : > { %v1061_v27 = vmax.f32 %v949_v26, 0.0  ;;  %v450_v28 = vpop.f32.mrf.mxu0  ;;  %v617_v29 = vpop.f32.mrf.mxu1 }
 0x1e3   : > { %v618_v30 = vadd.f32 %v617_v29, %v450_v28 }
 0x1e4   : > { %1162 = vst.msk [vmem:[%s1544_s17 + $0x268] sm:$0xff] %vm1085_vm0, %v1061_v27 }
 0x1e5   : > { %v1062_v33 = vmax.f32 %v618_v30, 0.0 }
 0x1e6   : > { %v784_v31 = vpop.f32.mrf.mxu2 }
 0x1e7   : > { %v951_v32 = vpop.f32.mrf.mxu3  ;;  %1163 = vst [vmem:[%s1544_s17 + $0x270] sm:$0xff] %v1062_v33 }
 0x1e8   : > { %v952_v34 = vadd.f32 %v951_v32, %v784_v31 }
 0x1ea   : > { %v1063_v35 = vmax.f32 %v952_v34, 0.0  ;;  %v453_v36 = vpop.f32.mrf.mxu0  ;;  %v620_v37 = vpop.f32.mrf.mxu1 }
 0x1eb   : > { %v621_v38 = vadd.f32 %v620_v37, %v453_v36 }
 0x1ec   : > { %1164 = vst.msk [vmem:[%s1544_s17 + $0x278] sm:$0xff] %vm1085_vm0, %v1063_v35 }
 0x1ed   : > { %v1064_v41 = vmax.f32 %v621_v38, 0.0 }
 0x1ee   : > { %v787_v39 = vpop.f32.mrf.mxu2 }
 0x1ef   : > { %v954_v40 = vpop.f32.mrf.mxu3  ;;  %1165 = vst [vmem:[%s1544_s17 + $0x280] sm:$0xff] %v1064_v41 }
 0x1f0   : > { %v955_v42 = vadd.f32 %v954_v40, %v787_v39 }
 0x1f2   : > { %v1065_v43 = vmax.f32 %v955_v42, 0.0  ;;  %v456_v44 = vpop.f32.mrf.mxu0  ;;  %v623_v45 = vpop.f32.mrf.mxu1 }
 0x1f3   : > { %v624_v46 = vadd.f32 %v623_v45, %v456_v44 }
 0x1f4   : > { %1166 = vst.msk [vmem:[%s1544_s17 + $0x288] sm:$0xff] %vm1085_vm0, %v1065_v43 }
 0x1f5   : > { %v1066_v49 = vmax.f32 %v624_v46, 0.0 }
 0x1f6   : > { %v790_v47 = vpop.f32.mrf.mxu2 }
 0x1f7   : > { %v957_v48 = vpop.f32.mrf.mxu3  ;;  %1167 = vst [vmem:[%s1544_s17 + $0x290] sm:$0xff] %v1066_v49 }
 0x1f8   : > { %v958_v50 = vadd.f32 %v957_v48, %v790_v47 }
 0x1fa   : > { %v1067_v51 = vmax.f32 %v958_v50, 0.0  ;;  %v459_v52 = vpop.f32.mrf.mxu0  ;;  %v626_v53 = vpop.f32.mrf.mxu1 }
 0x1fb   : > { %v627_v54 = vadd.f32 %v626_v53, %v459_v52 }
 0x1fc   : > { %1168 = vst.msk [vmem:[%s1544_s17 + $0x298] sm:$0xff] %vm1085_vm0, %v1067_v51 }
 0x1fd   : > { %v1068_v57 = vmax.f32 %v627_v54, 0.0 }
 0x1fe   : > { %v793_v55 = vpop.f32.mrf.mxu2 }
 0x1ff   : > { %v960_v56 = vpop.f32.mrf.mxu3  ;;  %1169 = vst [vmem:[%s1544_s17 + $0x2a0] sm:$0xff] %v1068_v57 }
 0x200   : > { %v961_v58 = vadd.f32 %v960_v56, %v793_v55 }
 0x202   : > { %v1069_v59 = vmax.f32 %v961_v58, 0.0  ;;  %v462_v60 = vpop.f32.mrf.mxu0  ;;  %v629_v61 = vpop.f32.mrf.mxu1 }
 0x203   : > { %v630_v62 = vadd.f32 %v629_v61, %v462_v60 }
 0x204   : > { %1170 = vst.msk [vmem:[%s1544_s17 + $0x2a8] sm:$0xff] %vm1085_vm0, %v1069_v59 }
 0x205   : > { %v1070_v1 = vmax.f32 %v630_v62, 0.0 }
 0x206   : > { %v796_v63 = vpop.f32.mrf.mxu2 }
 0x207   : > { %v963_v0 = vpop.f32.mrf.mxu3  ;;  %1171 = vst [vmem:[%s1544_s17 + $0x2b0] sm:$0xff] %v1070_v1 }
 0x208   : > { %v964_v2 = vadd.f32 %v963_v0, %v796_v63 }
 0x20a   : > { %v1071_v3 = vmax.f32 %v964_v2, 0.0  ;;  %v465_v4 = vpop.f32.mrf.mxu0  ;;  %v632_v5 = vpop.f32.mrf.mxu1 }
 0x20b   : > { %v633_v6 = vadd.f32 %v632_v5, %v465_v4 }
 0x20c   : > { %1172 = vst.msk [vmem:[%s1544_s17 + $0x2b8] sm:$0xff] %vm1085_vm0, %v1071_v3 }
 0x20d   : > { %v1072_v9 = vmax.f32 %v633_v6, 0.0 }
 0x20e   : > { %v799_v7 = vpop.f32.mrf.mxu2 }
 0x20f   : > { %v966_v8 = vpop.f32.mrf.mxu3  ;;  %1173 = vst [vmem:[%s1544_s17 + $0x2c0] sm:$0xff] %v1072_v9 }
 0x210   : > { %v967_v10 = vadd.f32 %v966_v8, %v799_v7 }
 0x212   : > { %v1073_v11 = vmax.f32 %v967_v10, 0.0  ;;  %v468_v12 = vpop.f32.mrf.mxu0  ;;  %v635_v13 = vpop.f32.mrf.mxu1 }
 0x213   : > { %v636_v14 = vadd.f32 %v635_v13, %v468_v12 }
 0x214   : > { %1174 = vst.msk [vmem:[%s1544_s17 + $0x2c8] sm:$0xff] %vm1085_vm0, %v1073_v11 }
 0x215   : > { %v1074_v17 = vmax.f32 %v636_v14, 0.0 }
 0x216   : > { %v802_v15 = vpop.f32.mrf.mxu2 }
 0x217   : > { %v969_v16 = vpop.f32.mrf.mxu3  ;;  %1175 = vst [vmem:[%s1544_s17 + $0x2d0] sm:$0xff] %v1074_v17 }
 0x218   : > { %v970_v18 = vadd.f32 %v969_v16, %v802_v15 }
 0x21a   : > { %v1075_v19 = vmax.f32 %v970_v18, 0.0  ;;  %v471_v20 = vpop.f32.mrf.mxu0  ;;  %v638_v21 = vpop.f32.mrf.mxu1 }
 0x21b   : > { %v639_v22 = vadd.f32 %v638_v21, %v471_v20 }
 0x21c   : > { %1176 = vst.msk [vmem:[%s1544_s17 + $0x2d8] sm:$0xff] %vm1085_vm0, %v1075_v19 }
 0x21d   : > { %v1076_v25 = vmax.f32 %v639_v22, 0.0 }
 0x21e   : > { %v805_v23 = vpop.f32.mrf.mxu2 }
 0x21f   : > { %v972_v24 = vpop.f32.mrf.mxu3  ;;  %1177 = vst [vmem:[%s1544_s17 + $0x2e0] sm:$0xff] %v1076_v25 }
 0x220   : > { %v973_v26 = vadd.f32 %v972_v24, %v805_v23 }
 0x222   : > { %v1077_v27 = vmax.f32 %v973_v26, 0.0  ;;  %v474_v28 = vpop.f32.mrf.mxu0  ;;  %v641_v29 = vpop.f32.mrf.mxu1 }
 0x223   : > { %v642_v30 = vadd.f32 %v641_v29, %v474_v28 }
 0x224   : > { %1178 = vst.msk [vmem:[%s1544_s17 + $0x2e8] sm:$0xff] %vm1085_vm0, %v1077_v27 }
 0x225   : > { %v1078_v33 = vmax.f32 %v642_v30, 0.0 }
 0x226   : > { %v808_v31 = vpop.f32.mrf.mxu2 }
 0x227   : > { %v975_v32 = vpop.f32.mrf.mxu3  ;;  %1179 = vst [vmem:[%s1544_s17 + $0x2f0] sm:$0xff] %v1078_v33 }
 0x228   : > { %v976_v34 = vadd.f32 %v975_v32, %v808_v31 }
 0x22a   : > { %v1079_v35 = vmax.f32 %v976_v34, 0.0  ;;  %v477_v36 = vpop.f32.mrf.mxu0  ;;  %v644_v37 = vpop.f32.mrf.mxu1 }
 0x22b   : > { %v645_v38 = vadd.f32 %v644_v37, %v477_v36 }
 0x22c   : > { %1180 = vst.msk [vmem:[%s1544_s17 + $0x2f8] sm:$0xff] %vm1085_vm0, %v1079_v35 }
 0x22d   : > { %v1080_v41 = vmax.f32 %v645_v38, 0.0 }
 0x22e   : > { %v811_v39 = vpop.f32.mrf.mxu2 }
 0x22f   : > { %v978_v40 = vpop.f32.mrf.mxu3  ;;  %1181 = vst [vmem:[%s1544_s17 + $0x300] sm:$0xff] %v1080_v41 }
 0x230   : > { %v979_v42 = vadd.f32 %v978_v40, %v811_v39 }
 0x232   : > { %v1081_v43 = vmax.f32 %v979_v42, 0.0  ;;  %v480_v44 = vpop.f32.mrf.mxu0  ;;  %v647_v45 = vpop.f32.mrf.mxu1 }
 0x233   : > { %v648_v46 = vadd.f32 %v647_v45, %v480_v44 }
 0x234   : > { %1182 = vst.msk [vmem:[%s1544_s17 + $0x308] sm:$0xff] %vm1085_vm0, %v1081_v43 }
 0x235   : > { %v1082_v49 = vmax.f32 %v648_v46, 0.0 }
 0x236   : > { %v814_v47 = vpop.f32.mrf.mxu2 }
 0x237   : > { %v981_v48 = vpop.f32.mrf.mxu3  ;;  %1183 = vst [vmem:[%s1544_s17 + $0x310] sm:$0xff] %v1082_v49 }
 0x238   : > { %v982_v50 = vadd.f32 %v981_v48, %v814_v47 }
 0x23a   : > { %v1083_v51 = vmax.f32 %v982_v50, 0.0 }
 0x23c   : > { %1184 = vst.msk [vmem:[%s1544_s17 + $0x318] sm:$0xff] %vm1085_vm0, %v1083_v51 }
 0x23d PF: > { %s12_s9 = sadd.s32 1, %s1270_s9  }
 0x23e   : > { %p9_p4 = scmp.ge.s32.totalorder %s12_s9, 4  }
 0x240   :  { %11 = sbr.rel (!%p9_p4) target bundleno = 1 (0x1), region = 58 }

// kernel: _lambda_.5
= control target key start
LH: loop header
LB: loop body
LE: loop exit
PB: predicated region body
PF: predicated region fallthrough
CT: control target
= control target key end

     0   :  { %s788_s9 = smov 0   ;;  %s1008_s0 = inlined_call_operand.vmem [shape: f32[5,162,512], index: 0, kind: input, shape index: {}]   ;;  %s1009_s1 = inlined_call_operand.vmem [shape: f32[5,512,64], index: 1, kind: input, shape index: {}]   ;;  %s1010_s2 = inlined_call_operand.vmem [shape: f32[5,162,64], index: 2, kind: output, shape index: {}]  }
   0x1 LB: > { %s743_s10 = sadd.s32 4294967295, %s771_s9   ;;  %p747_p0 = scmp.ge.s32.totalorder %s771_s9, 1  ;;  %s771_s9 = sphi %s788_s9, %s12_s9  }
   0x2   : > { %p122_p1 = scmp.lt.s32.totalorder %s771_s9, 6 }
   0x4   : > { %p123_p2 = pnand %p747_p0, %p122_p1 }
   0x5   : > { %p149_p3 = scmp.lt.s32.totalorder (!%p123_p2), %s743_s10, 4 }
   0x6   : > { %126 = sbr.rel (%p123_p2) target bundleno = 346 (0x15a), region = 28 }
   0xb   : > { %s1012_s10 = smov (!%p149_p3, %s743_s10), 4  ;;  %vm653_vm0 = vcmask 523264   ;;  %vm674_vm1 = vcmask 517120  }
   0xc   : > { %s754_s11 = sshll.u32 %s1012_s10, 9  ;;  %s755_s15 = smul.u32 672, %s1012_s10 }
   0xd   : > { %s802_s14 = scalar_lea.vmem %s1009_s1, %s754_s11  ;;  %s756_s19 = smul.u32 168, %s1012_s10 }
   0xe   : > { %v295_v0 = vld [vmem:[%s802_s14 + $0x178] sm:$0xff]  ;;  %v294_v1 = vld [vmem:[%s802_s14 + $0x170] sm:$0xff]  ;;  %v293_v5 = vld [vmem:[%s802_s14 + $0x168] sm:$0xff]  ;;  %s864_s18 = scalar_lea.vmem %s1008_s0, %s755_s15 }
   0xf   : > { %v311_v2 = vld [vmem:[%s802_s14 + $0x1f8] sm:$0xff]  ;;  %472 = vmatpush.msra.mxu2 %v295_v0  ;;  %v310_v6 = vld [vmem:[%s802_s14 + $0x1f0] sm:$0xff]  ;;  %v309_v9 = vld [vmem:[%s802_s14 + $0x1e8] sm:$0xff]  ;;  %s948_s22 = scalar_lea.vmem %s1010_s2, %s756_s19 }
  0x10   : > { %552 = vmatpush.msra.mxu3 %v311_v2  ;;  %v263_v3 = vld [vmem:[%s802_s14 + $0x78] sm:$0xff]  ;;  %v262_v7 = vld [vmem:[%s802_s14 + $0x70] sm:$0xff]  ;;  %v261_v10 = vld [vmem:[%s802_s14 + $0x68] sm:$0xff] }
  0x11   : > { %v279_v4 = vld [vmem:[%s802_s14 + $0xf8] sm:$0xff]  ;;  %312 = vmatpush.msra.mxu0 %v263_v3  ;;  %v278_v8 = vld [vmem:[%s802_s14 + $0xf0] sm:$0xff]  ;;  %473 = vmatpush.msra.mxu2 %v294_v1  ;;  %v292_v11 = vld [vmem:[%s802_s14 + $0x160] sm:$0xff] }
  0x12   : > { %392 = vmatpush.msra.mxu1 %v279_v4  ;;  %553 = vmatpush.msra.mxu3 %v310_v6  ;;  %v277_v12 = vld [vmem:[%s802_s14 + $0xe8] sm:$0xff]  ;;  %v308_v13 = vld [vmem:[%s802_s14 + $0x1e0] sm:$0xff]  ;;  %v291_v16 = vld [vmem:[%s802_s14 + $0x158] sm:$0xff] }
  0x13   : > { %313 = vmatpush.msra.mxu0 %v262_v7  ;;  %474 = vmatpush.msra.mxu2 %v293_v5  ;;  %v260_v14 = vld [vmem:[%s802_s14 + $0x60] sm:$0xff]  ;;  %v307_v17 = vld [vmem:[%s802_s14 + $0x1d8] sm:$0xff]  ;;  %v290_v20 = vld [vmem:[%s802_s14 + $0x150] sm:$0xff] }
  0x14   : > { %393 = vmatpush.msra.mxu1 %v278_v8  ;;  %554 = vmatpush.msra.mxu3 %v309_v9  ;;  %v276_v15 = vld [vmem:[%s802_s14 + $0xe0] sm:$0xff]  ;;  %v259_v18 = vld [vmem:[%s802_s14 + $0x58] sm:$0xff]  ;;  %v306_v21 = vld [vmem:[%s802_s14 + $0x1d0] sm:$0xff] }
  0x15   : > { %314 = vmatpush.msra.mxu0 %v261_v10  ;;  %475 = vmatpush.msra.mxu2 %v292_v11  ;;  %v275_v19 = vld [vmem:[%s802_s14 + $0xd8] sm:$0xff]  ;;  %v258_v22 = vld [vmem:[%s802_s14 + $0x50] sm:$0xff]  ;;  %v289_v24 = vld [vmem:[%s802_s14 + $0x148] sm:$0xff] }
  0x16   : > { %394 = vmatpush.msra.mxu1 %v277_v12  ;;  %555 = vmatpush.msra.mxu3 %v308_v13  ;;  %v274_v23 = vld [vmem:[%s802_s14 + $0xd0] sm:$0xff]  ;;  %v305_v25 = vld [vmem:[%s802_s14 + $0x1c8] sm:$0xff]  ;;  %v288_v28 = vld [vmem:[%s802_s14 + $0x140] sm:$0xff] }
  0x17   : > { %315 = vmatpush.msra.mxu0 %v260_v14  ;;  %476 = vmatpush.msra.mxu2 %v291_v16  ;;  %v257_v26 = vld [vmem:[%s802_s14 + $0x48] sm:$0xff]  ;;  %v304_v29 = vld [vmem:[%s802_s14 + $0x1c0] sm:$0xff]  ;;  %v287_v32 = vld [vmem:[%s802_s14 + $0x138] sm:$0xff] }
  0x18   : > { %395 = vmatpush.msra.mxu1 %v276_v15  ;;  %556 = vmatpush.msra.mxu3 %v307_v17  ;;  %v273_v27 = vld [vmem:[%s802_s14 + $0xc8] sm:$0xff]  ;;  %v256_v30 = vld [vmem:[%s802_s14 + $0x40] sm:$0xff]  ;;  %v303_v33 = vld [vmem:[%s802_s14 + $0x1b8] sm:$0xff] }
  0x19   : > { %316 = vmatpush.msra.mxu0 %v259_v18  ;;  %477 = vmatpush.msra.mxu2 %v290_v20  ;;  %v272_v31 = vld [vmem:[%s802_s14 + $0xc0] sm:$0xff]  ;;  %v255_v34 = vld [vmem:[%s802_s14 + $0x38] sm:$0xff]  ;;  %v286_v36 = vld [vmem:[%s802_s14 + $0x130] sm:$0xff] }
  0x1a   : > { %396 = vmatpush.msra.mxu1 %v275_v19  ;;  %557 = vmatpush.msra.mxu3 %v306_v21  ;;  %v271_v35 = vld [vmem:[%s802_s14 + $0xb8] sm:$0xff]  ;;  %v302_v37 = vld [vmem:[%s802_s14 + $0x1b0] sm:$0xff]  ;;  %v285_v40 = vld [vmem:[%s802_s14 + $0x128] sm:$0xff] }
  0x1b   : > { %317 = vmatpush.msra.mxu0 %v258_v22  ;;  %478 = vmatpush.msra.mxu2 %v289_v24  ;;  %v254_v38 = vld [vmem:[%s802_s14 + $0x30] sm:$0xff]  ;;  %v301_v41 = vld [vmem:[%s802_s14 + $0x1a8] sm:$0xff]  ;;  %v284_v44 = vld [vmem:[%s802_s14 + $0x120] sm:$0xff] }
  0x1c   : > { %397 = vmatpush.msra.mxu1 %v274_v23  ;;  %558 = vmatpush.msra.mxu3 %v305_v25  ;;  %v270_v39 = vld [vmem:[%s802_s14 + $0xb0] sm:$0xff]  ;;  %v253_v42 = vld [vmem:[%s802_s14 + $0x28] sm:$0xff]  ;;  %v300_v45 = vld [vmem:[%s802_s14 + $0x1a0] sm:$0xff] }
  0x1d   : > { %318 = vmatpush.msra.mxu0 %v257_v26  ;;  %479 = vmatpush.msra.mxu2 %v288_v28  ;;  %v269_v43 = vld [vmem:[%s802_s14 + $0xa8] sm:$0xff]  ;;  %v252_v46 = vld [vmem:[%s802_s14 + $0x20] sm:$0xff]  ;;  %v283_v48 = vld [vmem:[%s802_s14 + $0x118] sm:$0xff] }
  0x1e   : > { %398 = vmatpush.msra.mxu1 %v273_v27  ;;  %559 = vmatpush.msra.mxu3 %v304_v29  ;;  %v268_v47 = vld [vmem:[%s802_s14 + $0xa0] sm:$0xff]  ;;  %v299_v49 = vld [vmem:[%s802_s14 + $0x198] sm:$0xff]  ;;  %v282_v52 = vld [vmem:[%s802_s14 + $0x110] sm:$0xff] }
  0x1f   : > { %319 = vmatpush.msra.mxu0 %v256_v30  ;;  %480 = vmatpush.msra.mxu2 %v287_v32  ;;  %v251_v50 = vld [vmem:[%s802_s14 + $0x18] sm:$0xff]  ;;  %v298_v53 = vld [vmem:[%s802_s14 + $0x190] sm:$0xff]  ;;  %v281_v56 = vld [vmem:[%s802_s14 + $0x108] sm:$0xff] }
  0x20   : > { %399 = vmatpush.msra.mxu1 %v272_v31  ;;  %560 = vmatpush.msra.mxu3 %v303_v33  ;;  %v267_v51 = vld [vmem:[%s802_s14 + $0x98] sm:$0xff]  ;;  %v250_v54 = vld [vmem:[%s802_s14 + $0x10] sm:$0xff]  ;;  %v297_v57 = vld [vmem:[%s802_s14 + $0x188] sm:$0xff] }
  0x21   : > { %320 = vmatpush.msra.mxu0 %v255_v34  ;;  %481 = vmatpush.msra.mxu2 %v286_v36  ;;  %v266_v55 = vld [vmem:[%s802_s14 + $0x90] sm:$0xff]  ;;  %v249_v58 = vld [vmem:[%s802_s14 + $0x8] sm:$0xff]  ;;  %v280_v60 = vld [vmem:[%s802_s14 + $0x100] sm:$0xff] }
  0x22   : > { %400 = vmatpush.msra.mxu1 %v271_v35  ;;  %561 = vmatpush.msra.mxu3 %v302_v37  ;;  %v265_v59 = vld [vmem:[%s802_s14 + $0x88] sm:$0xff]  ;;  %v296_v61 = vld [vmem:[%s802_s14 + $0x180] sm:$0xff]  ;;  %v166_v62 = vld [vmem:[%s864_s18 + $0x10] sm:$0xff] }
  0x23   : > { %321 = vmatpush.msra.mxu0 %v254_v38  ;;  %482 = vmatpush.msra.mxu2 %v285_v40  ;;  %v167_v63 = vld [vmem:[%s864_s18 + $0x18] sm:$0xff]  ;;  %v248_v0 = vld [vmem:[%s802_s14] sm:$0xff]  ;;  %v165_v3 = vld [vmem:[%s864_s18 + $0x8] sm:$0xff] }
  0x24   : > { %401 = vmatpush.msra.mxu1 %v270_v39  ;;  %562 = vmatpush.msra.mxu3 %v301_v41  ;;  %v264_v1 = vld [vmem:[%s802_s14 + $0x80] sm:$0xff]  ;;  %v170_v4 = vld [vmem:[%s864_s18 + $0x30] sm:$0xff]  ;;  %v171_v5 = vld [vmem:[%s864_s18 + $0x38] sm:$0xff] }
  0x25   : > { %322 = vmatpush.msra.mxu0 %v253_v42  ;;  %483 = vmatpush.msra.mxu2 %v284_v44  ;;  %v164_v2 = vld [vmem:[%s864_s18] sm:$0xff]  ;;  %v169_v7 = vld [vmem:[%s864_s18 + $0x28] sm:$0xff]  ;;  %v174_v8 = vld [vmem:[%s864_s18 + $0x50] sm:$0xff] }
  0x26   : > { %402 = vmatpush.msra.mxu1 %v269_v43  ;;  %563 = vmatpush.msra.mxu3 %v300_v45  ;;  %v168_v6 = vld [vmem:[%s864_s18 + $0x20] sm:$0xff]  ;;  %v175_v9 = vld [vmem:[%s864_s18 + $0x58] sm:$0xff]  ;;  %v173_v11 = vld [vmem:[%s864_s18 + $0x48] sm:$0xff] }
  0x27   : > { %323 = vmatpush.msra.mxu0 %v252_v46  ;;  %484 = vmatpush.msra.mxu2 %v283_v48  ;;  %v172_v10 = vld [vmem:[%s864_s18 + $0x40] sm:$0xff]  ;;  %v178_v12 = vld [vmem:[%s864_s18 + $0x70] sm:$0xff]  ;;  %v179_v13 = vld [vmem:[%s864_s18 + $0x78] sm:$0xff] }
  0x28   : > { %403 = vmatpush.msra.mxu1 %v268_v47  ;;  %564 = vmatpush.msra.mxu3 %v299_v49  ;;  %v176_v14 = vld [vmem:[%s864_s18 + $0x60] sm:$0xff]  ;;  %v177_v15 = vld [vmem:[%s864_s18 + $0x68] sm:$0xff]  ;;  %v182_v16 = vld [vmem:[%s864_s18 + $0x90] sm:$0xff] }
  0x29   : > { %324 = vmatpush.msra.mxu0 %v251_v50  ;;  %485 = vmatpush.msra.mxu2 %v282_v52  ;;  %v183_v17 = vld [vmem:[%s864_s18 + $0x98] sm:$0xff]  ;;  %v180_v18 = vld [vmem:[%s864_s18 + $0x80] sm:$0xff]  ;;  %v181_v19 = vld [vmem:[%s864_s18 + $0x88] sm:$0xff] }
  0x2a   : > { %404 = vmatpush.msra.mxu1 %v267_v51  ;;  %565 = vmatpush.msra.mxu3 %v298_v53  ;;  %v186_v20 = vld [vmem:[%s864_s18 + $0xb0] sm:$0xff]  ;;  %v187_v21 = vld [vmem:[%s864_s18 + $0xb8] sm:$0xff]  ;;  %v184_v22 = vld [vmem:[%s864_s18 + $0xa0] sm:$0xff] }
  0x2b   : > { %325 = vmatpush.msra.mxu0 %v250_v54  ;;  %486 = vmatpush.msra.mxu2 %v281_v56  ;;  %v185_v23 = vld [vmem:[%s864_s18 + $0xa8] sm:$0xff]  ;;  %v190_v24 = vld [vmem:[%s864_s18 + $0xd0] sm:$0xff]  ;;  %v191_v25 = vld [vmem:[%s864_s18 + $0xd8] sm:$0xff] }
  0x2c   : > { %405 = vmatpush.msra.mxu1 %v266_v55  ;;  %566 = vmatpush.msra.mxu3 %v297_v57  ;;  %v188_v26 = vld [vmem:[%s864_s18 + $0xc0] sm:$0xff]  ;;  %v189_v27 = vld [vmem:[%s864_s18 + $0xc8] sm:$0xff]  ;;  %v194_v28 = vld [vmem:[%s864_s18 + $0xf0] sm:$0xff] }
  0x2d   : > { %326 = vmatpush.msra.mxu0 %v249_v58  ;;  %487 = vmatpush.msra.mxu2 %v280_v60  ;;  %v195_v29 = vld [vmem:[%s864_s18 + $0xf8] sm:$0xff]  ;;  %v192_v30 = vld [vmem:[%s864_s18 + $0xe0] sm:$0xff]  ;;  %v193_v31 = vld [vmem:[%s864_s18 + $0xe8] sm:$0xff] }
  0x2e   : > { %406 = vmatpush.msra.mxu1 %v265_v59  ;;  %567 = vmatpush.msra.mxu3 %v296_v61  ;;  %v198_v32 = vld [vmem:[%s864_s18 + $0x110] sm:$0xff]  ;;  %v199_v33 = vld [vmem:[%s864_s18 + $0x118] sm:$0xff]  ;;  %v196_v34 = vld [vmem:[%s864_s18 + $0x100] sm:$0xff] }
  0x2f   : > { %488 = vmatmul.f32.vlgmr.msra.gmra.mxu2 %v166_v62  ;;  %568 = vmatmul.f32.vlgmr.msra.gmra.mxu3 %v167_v63  ;;  %v197_v35 = vld [vmem:[%s864_s18 + $0x108] sm:$0xff]  ;;  %v202_v36 = vld [vmem:[%s864_s18 + $0x130] sm:$0xff]  ;;  %v203_v37 = vld [vmem:[%s864_s18 + $0x138] sm:$0xff] }
  0x30   : > { %327 = vmatpush.msra.mxu0 %v248_v0  ;;  %407 = vmatpush.msra.mxu1 %v264_v1  ;;  %v200_v38 = vld [vmem:[%s864_s18 + $0x120] sm:$0xff]  ;;  %v201_v39 = vld [vmem:[%s864_s18 + $0x128] sm:$0xff]  ;;  %v206_v40 = vld [vmem:[%s864_s18 + $0x150] sm:$0xff] }
  0x31   : > { %328 = vmatmul.f32.vlgmr.msra.gmra.mxu0 %v164_v2  ;;  %408 = vmatmul.f32.vlgmr.msra.gmra.mxu1 %v165_v3  ;;  %v207_v41 = vld [vmem:[%s864_s18 + $0x158] sm:$0xff]  ;;  %v204_v42 = vld [vmem:[%s864_s18 + $0x140] sm:$0xff]  ;;  %v205_v43 = vld [vmem:[%s864_s18 + $0x148] sm:$0xff] }
  0x32   : > { %v210_v44 = vld [vmem:[%s864_s18 + $0x170] sm:$0xff]  ;;  %v211_v45 = vld [vmem:[%s864_s18 + $0x178] sm:$0xff]  ;;  %v208_v46 = vld [vmem:[%s864_s18 + $0x160] sm:$0xff] }
  0x33   : > { %v209_v47 = vld [vmem:[%s864_s18 + $0x168] sm:$0xff]  ;;  %v214_v48 = vld [vmem:[%s864_s18 + $0x190] sm:$0xff]  ;;  %v215_v49 = vld [vmem:[%s864_s18 + $0x198] sm:$0xff] }
  0x34   : > { %v212_v50 = vld [vmem:[%s864_s18 + $0x180] sm:$0xff]  ;;  %v213_v51 = vld [vmem:[%s864_s18 + $0x188] sm:$0xff]  ;;  %v218_v52 = vld [vmem:[%s864_s18 + $0x1b0] sm:$0xff] }
  0x35   : > { %v219_v53 = vld [vmem:[%s864_s18 + $0x1b8] sm:$0xff]  ;;  %v216_v54 = vld [vmem:[%s864_s18 + $0x1a0] sm:$0xff]  ;;  %v217_v55 = vld [vmem:[%s864_s18 + $0x1a8] sm:$0xff] }
  0x36   : > { %v222_v56 = vld [vmem:[%s864_s18 + $0x1d0] sm:$0xff]  ;;  %v223_v57 = vld [vmem:[%s864_s18 + $0x1d8] sm:$0xff]  ;;  %v220_v58 = vld [vmem:[%s864_s18 + $0x1c0] sm:$0xff] }
  0x37   : > { %491 = vmatmul.f32.gmra.mxu2 %v170_v4  ;;  %571 = vmatmul.f32.gmra.mxu3 %v171_v5  ;;  %v221_v59 = vld [vmem:[%s864_s18 + $0x1c8] sm:$0xff]  ;;  %v226_v60 = vld [vmem:[%s864_s18 + $0x1f0] sm:$0xff]  ;;  %v227_v61 = vld [vmem:[%s864_s18 + $0x1f8] sm:$0xff] }
  0x38   : > { %v224_v62 = vld [vmem:[%s864_s18 + $0x1e0] sm:$0xff]  ;;  %v225_v63 = vld [vmem:[%s864_s18 + $0x1e8] sm:$0xff]  ;;  %v230_v0 = vld [vmem:[%s864_s18 + $0x210] sm:$0xff] }
  0x39   : > { %331 = vmatmul.f32.gmra.mxu0 %v168_v6  ;;  %411 = vmatmul.f32.gmra.mxu1 %v169_v7  ;;  %v231_v1 = vld [vmem:[%s864_s18 + $0x218] sm:$0xff]  ;;  %v228_v4 = vld [vmem:[%s864_s18 + $0x200] sm:$0xff]  ;;  %v229_v5 = vld [vmem:[%s864_s18 + $0x208] sm:$0xff] }
  0x3f   : > { %494 = vmatmul.f32.gmra.mxu2 %v174_v8  ;;  %574 = vmatmul.f32.gmra.mxu3 %v175_v9 }
  0x41   : > { %334 = vmatmul.f32.gmra.mxu0 %v172_v10  ;;  %414 = vmatmul.f32.gmra.mxu1 %v173_v11  ;;  %v234_v10 = vld [vmem:[%s864_s18 + $0x230] sm:$0xff]  ;;  %v235_v11 = vld [vmem:[%s864_s18 + $0x238] sm:$0xff] }
  0x47   : > { %497 = vmatmul.f32.gmra.mxu2 %v178_v12  ;;  %577 = vmatmul.f32.gmra.mxu3 %v179_v13 }
  0x49   : > { %337 = vmatmul.f32.gmra.mxu0 %v176_v14  ;;  %417 = vmatmul.f32.gmra.mxu1 %v177_v15  ;;  %v232_v15 = vld [vmem:[%s864_s18 + $0x220] sm:$0xff] }
  0x4f   : > { %500 = vmatmul.f32.gmra.mxu2 %v182_v16  ;;  %580 = vmatmul.f32.gmra.mxu3 %v183_v17  ;;  %v233_v16 = vld [vmem:[%s864_s18 + $0x228] sm:$0xff] }
  0x51   : > { %340 = vmatmul.f32.gmra.mxu0 %v180_v18  ;;  %420 = vmatmul.f32.gmra.mxu1 %v181_v19 }
  0x57   : > { %503 = vmatmul.f32.gmra.mxu2 %v186_v20  ;;  %583 = vmatmul.f32.gmra.mxu3 %v187_v21 }
  0x59   : > { %343 = vmatmul.f32.gmra.mxu0 %v184_v22  ;;  %423 = vmatmul.f32.gmra.mxu1 %v185_v23  ;;  %v238_v22 = vld [vmem:[%s864_s18 + $0x250] sm:$0xff]  ;;  %v239_v23 = vld [vmem:[%s864_s18 + $0x258] sm:$0xff] }
  0x5f   : > { %506 = vmatmul.f32.gmra.mxu2 %v190_v24  ;;  %586 = vmatmul.f32.gmra.mxu3 %v191_v25 }
  0x61   : > { %346 = vmatmul.f32.gmra.mxu0 %v188_v26  ;;  %426 = vmatmul.f32.gmra.mxu1 %v189_v27  ;;  %v236_v27 = vld [vmem:[%s864_s18 + $0x240] sm:$0xff] }
  0x67   : > { %509 = vmatmul.f32.gmra.mxu2 %v194_v28  ;;  %589 = vmatmul.f32.gmra.mxu3 %v195_v29  ;;  %v237_v28 = vld [vmem:[%s864_s18 + $0x248] sm:$0xff] }
  0x69   : > { %349 = vmatmul.f32.gmra.mxu0 %v192_v30  ;;  %429 = vmatmul.f32.gmra.mxu1 %v193_v31 }
  0x6f   : > { %512 = vmatmul.f32.gmra.mxu2 %v198_v32  ;;  %592 = vmatmul.f32.gmra.mxu3 %v199_v33 }
  0x71   : > { %352 = vmatmul.f32.gmra.mxu0 %v196_v34  ;;  %432 = vmatmul.f32.gmra.mxu1 %v197_v35  ;;  %v242_v34 = vld [vmem:[%s864_s18 + $0x270] sm:$0xff]  ;;  %v243_v35 = vld [vmem:[%s864_s18 + $0x278] sm:$0xff] }
  0x77   : > { %515 = vmatmul.f32.gmra.mxu2 %v202_v36  ;;  %595 = vmatmul.f32.gmra.mxu3 %v203_v37 }
  0x79   : > { %355 = vmatmul.f32.gmra.mxu0 %v200_v38  ;;  %435 = vmatmul.f32.gmra.mxu1 %v201_v39  ;;  %v240_v39 = vld [vmem:[%s864_s18 + $0x260] sm:$0xff] }
  0x7f   : > { %518 = vmatmul.f32.gmra.mxu2 %v206_v40  ;;  %598 = vmatmul.f32.gmra.mxu3 %v207_v41  ;;  %v241_v40 = vld [vmem:[%s864_s18 + $0x268] sm:$0xff] }
  0x81   : > { %358 = vmatmul.f32.gmra.mxu0 %v204_v42  ;;  %438 = vmatmul.f32.gmra.mxu1 %v205_v43 }
  0x87   : > { %521 = vmatmul.f32.gmra.mxu2 %v210_v44  ;;  %601 = vmatmul.f32.gmra.mxu3 %v211_v45 }
  0x89   : > { %361 = vmatmul.f32.gmra.mxu0 %v208_v46  ;;  %441 = vmatmul.f32.gmra.mxu1 %v209_v47  ;;  %v246_v46 = vld [vmem:[%s864_s18 + $0x290] sm:$0x3]  ;;  %v247_v47 = vld [vmem:[%s864_s18 + $0x298] sm:$0x3] }
  0x8f   : > { %524 = vmatmul.f32.gmra.mxu2 %v214_v48  ;;  %604 = vmatmul.f32.gmra.mxu3 %v215_v49 }
  0x91   : > { %364 = vmatmul.f32.gmra.mxu0 %v212_v50  ;;  %444 = vmatmul.f32.gmra.mxu1 %v213_v51  ;;  %v244_v51 = vld [vmem:[%s864_s18 + $0x280] sm:$0x3] }
  0x97   : > { %527 = vmatmul.f32.gmra.mxu2 %v218_v52  ;;  %607 = vmatmul.f32.gmra.mxu3 %v219_v53  ;;  %v245_v52 = vld [vmem:[%s864_s18 + $0x288] sm:$0x3] }
  0x99   : > { %367 = vmatmul.f32.gmra.mxu0 %v216_v54  ;;  %447 = vmatmul.f32.gmra.mxu1 %v217_v55 }
  0x9f   : > { %530 = vmatmul.f32.gmra.mxu2 %v222_v56  ;;  %610 = vmatmul.f32.gmra.mxu3 %v223_v57 }
  0xa1   : > { %370 = vmatmul.f32.gmra.mxu0 %v220_v58  ;;  %450 = vmatmul.f32.gmra.mxu1 %v221_v59 }
  0xa7   : > { %533 = vmatmul.f32.gmra.mxu2 %v226_v60  ;;  %613 = vmatmul.f32.gmra.mxu3 %v227_v61 }
  0xa9   : > { %373 = vmatmul.f32.gmra.mxu0 %v224_v62  ;;  %453 = vmatmul.f32.gmra.mxu1 %v225_v63 }
  0xae   : > { %v329_v2 = vpop.f32.mrf.mxu0  ;;  %v409_v3 = vpop.f32.mrf.mxu1 }
  0xaf   : > { %536 = vmatmul.f32.gmra.mxu2 %v230_v0  ;;  %v410_v6 = vadd.f32 %v409_v3, %v329_v2  ;;  %616 = vmatmul.f32.gmra.mxu3 %v231_v1 }
  0xb1   : > { %376 = vmatmul.f32.gmra.mxu0 %v228_v4  ;;  %456 = vmatmul.f32.gmra.mxu1 %v229_v5 }
  0xb2   : > { %v489_v7 = vpop.f32.mrf.mxu2  ;;  %v569_v8 = vpop.f32.mrf.mxu3 }
  0xb3   : > { %v490_v9 = vadd.f32 %v489_v7, %v410_v6 }
  0xb5   : > { %v570_v12 = vadd.f32 %v569_v8, %v490_v9 }
  0xb6   : > { %v332_v13 = vpop.f32.mrf.mxu0  ;;  %v412_v14 = vpop.f32.mrf.mxu1 }
  0xb7   : > { %v632_v17 = vmax.f32 %v570_v12, 0.0  ;;  %539 = vmatmul.f32.gmra.mxu2 %v234_v10  ;;  %v413_v18 = vadd.f32 %v412_v14, %v332_v13  ;;  %619 = vmatmul.f32.gmra.mxu3 %v235_v11 }
  0xb9   : > { %654 = vst.msk [vmem:[%s948_s22] sm:$0xff] %vm653_vm0, %v632_v17  ;;  %379 = vmatmul.f32.gmra.mxu0 %v232_v15  ;;  %459 = vmatmul.f32.gmra.mxu1 %v233_v16 }
  0xba   : > { %v492_v19 = vpop.f32.mrf.mxu2  ;;  %v572_v20 = vpop.f32.mrf.mxu3 }
  0xbb   : > { %v493_v21 = vadd.f32 %v492_v19, %v413_v18 }
  0xbd   : > { %v573_v24 = vadd.f32 %v572_v20, %v493_v21 }
  0xbe   : > { %v335_v25 = vpop.f32.mrf.mxu0  ;;  %v415_v26 = vpop.f32.mrf.mxu1 }
  0xbf   : > { %v633_v29 = vmax.f32 %v573_v24, 0.0  ;;  %542 = vmatmul.f32.gmra.mxu2 %v238_v22  ;;  %v416_v30 = vadd.f32 %v415_v26, %v335_v25  ;;  %622 = vmatmul.f32.gmra.mxu3 %v239_v23 }
  0xc1   : > { %655 = vst.msk [vmem:[%s948_s22 + $0x8] sm:$0xff] %vm653_vm0, %v633_v29  ;;  %382 = vmatmul.f32.gmra.mxu0 %v236_v27  ;;  %462 = vmatmul.f32.gmra.mxu1 %v237_v28 }
  0xc2   : > { %v495_v31 = vpop.f32.mrf.mxu2  ;;  %v575_v32 = vpop.f32.mrf.mxu3 }
  0xc3   : > { %v496_v33 = vadd.f32 %v495_v31, %v416_v30 }
  0xc5   : > { %v576_v36 = vadd.f32 %v575_v32, %v496_v33 }
  0xc6   : > { %v338_v37 = vpop.f32.mrf.mxu0  ;;  %v418_v38 = vpop.f32.mrf.mxu1 }
  0xc7   : > { %v634_v41 = vmax.f32 %v576_v36, 0.0  ;;  %545 = vmatmul.f32.gmra.mxu2 %v242_v34  ;;  %v419_v42 = vadd.f32 %v418_v38, %v338_v37  ;;  %625 = vmatmul.f32.gmra.mxu3 %v243_v35 }
  0xc9   : > { %656 = vst.msk [vmem:[%s948_s22 + $0x10] sm:$0xff] %vm653_vm0, %v634_v41  ;;  %385 = vmatmul.f32.gmra.mxu0 %v240_v39  ;;  %465 = vmatmul.f32.gmra.mxu1 %v241_v40 }
  0xca   : > { %v498_v43 = vpop.f32.mrf.mxu2  ;;  %v578_v44 = vpop.f32.mrf.mxu3 }
  0xcb   : > { %v499_v45 = vadd.f32 %v498_v43, %v419_v42 }
  0xcd   : > { %v579_v48 = vadd.f32 %v578_v44, %v499_v45 }
  0xce   : > { %v341_v49 = vpop.f32.mrf.mxu0  ;;  %v421_v50 = vpop.f32.mrf.mxu1 }
  0xcf   : > { %v635_v53 = vmax.f32 %v579_v48, 0.0  ;;  %548 = vmatmul.f32.gmra.mxu2 %v246_v46  ;;  %v422_v54 = vadd.f32 %v421_v50, %v341_v49  ;;  %628 = vmatmul.f32.gmra.mxu3 %v247_v47 }
  0xd1   : > { %657 = vst.msk [vmem:[%s948_s22 + $0x18] sm:$0xff] %vm653_vm0, %v635_v53  ;;  %388 = vmatmul.f32.gmra.mxu0 %v244_v51  ;;  %468 = vmatmul.f32.gmra.mxu1 %v245_v52 }
  0xd2   : > { %v501_v55 = vpop.f32.mrf.mxu2  ;;  %v581_v56 = vpop.f32.mrf.mxu3 }
  0xd3   : > { %v502_v57 = vadd.f32 %v501_v55, %v422_v54 }
  0xd5   : > { %v582_v58 = vadd.f32 %v581_v56, %v502_v57 }
  0xd6   : > { %v344_v59 = vpop.f32.mrf.mxu0  ;;  %v424_v60 = vpop.f32.mrf.mxu1 }
  0xd7   : > { %v636_v61 = vmax.f32 %v582_v58, 0.0  ;;  %v425_v62 = vadd.f32 %v424_v60, %v344_v59 }
  0xd9   : > { %658 = vst.msk [vmem:[%s948_s22 + $0x20] sm:$0xff] %vm653_vm0, %v636_v61 }
  0xda   : > { %v504_v63 = vpop.f32.mrf.mxu2  ;;  %v584_v0 = vpop.f32.mrf.mxu3 }
  0xdb   : > { %v505_v1 = vadd.f32 %v504_v63, %v425_v62 }
  0xdd   : > { %v585_v2 = vadd.f32 %v584_v0, %v505_v1 }
  0xde   : > { %v347_v3 = vpop.f32.mrf.mxu0  ;;  %v427_v4 = vpop.f32.mrf.mxu1 }
  0xdf   : > { %v637_v5 = vmax.f32 %v585_v2, 0.0  ;;  %v428_v6 = vadd.f32 %v427_v4, %v347_v3 }
  0xe1   : > { %659 = vst.msk [vmem:[%s948_s22 + $0x28] sm:$0xff] %vm653_vm0, %v637_v5 }
  0xe2   : > { %v507_v7 = vpop.f32.mrf.mxu2  ;;  %v587_v8 = vpop.f32.mrf.mxu3 }
  0xe3   : > { %v508_v9 = vadd.f32 %v507_v7, %v428_v6 }
  0xe5   : > { %v588_v10 = vadd.f32 %v587_v8, %v508_v9 }
  0xe6   : > { %v350_v11 = vpop.f32.mrf.mxu0  ;;  %v430_v12 = vpop.f32.mrf.mxu1 }
  0xe7   : > { %v638_v13 = vmax.f32 %v588_v10, 0.0  ;;  %v431_v14 = vadd.f32 %v430_v12, %v350_v11 }
  0xe9   : > { %660 = vst.msk [vmem:[%s948_s22 + $0x30] sm:$0xff] %vm653_vm0, %v638_v13 }
  0xea   : > { %v510_v15 = vpop.f32.mrf.mxu2  ;;  %v590_v16 = vpop.f32.mrf.mxu3 }
  0xeb   : > { %v511_v17 = vadd.f32 %v510_v15, %v431_v14 }
  0xed   : > { %v591_v18 = vadd.f32 %v590_v16, %v511_v17 }
  0xee   : > { %v353_v19 = vpop.f32.mrf.mxu0  ;;  %v433_v20 = vpop.f32.mrf.mxu1 }
  0xef   : > { %v639_v21 = vmax.f32 %v591_v18, 0.0  ;;  %v434_v22 = vadd.f32 %v433_v20, %v353_v19 }
  0xf1   : > { %661 = vst.msk [vmem:[%s948_s22 + $0x38] sm:$0xff] %vm653_vm0, %v639_v21 }
  0xf2   : > { %v513_v23 = vpop.f32.mrf.mxu2  ;;  %v593_v24 = vpop.f32.mrf.mxu3 }
  0xf3   : > { %v514_v25 = vadd.f32 %v513_v23, %v434_v22 }
  0xf5   : > { %v594_v26 = vadd.f32 %v593_v24, %v514_v25 }
  0xf6   : > { %v356_v27 = vpop.f32.mrf.mxu0  ;;  %v436_v28 = vpop.f32.mrf.mxu1 }
  0xf7   : > { %v640_v29 = vmax.f32 %v594_v26, 0.0  ;;  %v437_v30 = vadd.f32 %v436_v28, %v356_v27 }
  0xf9   : > { %662 = vst.msk [vmem:[%s948_s22 + $0x40] sm:$0xff] %vm653_vm0, %v640_v29 }
  0xfa   : > { %v516_v31 = vpop.f32.mrf.mxu2  ;;  %v596_v32 = vpop.f32.mrf.mxu3 }
  0xfb   : > { %v517_v33 = vadd.f32 %v516_v31, %v437_v30 }
  0xfd   : > { %v597_v34 = vadd.f32 %v596_v32, %v517_v33 }
  0xfe   : > { %v359_v35 = vpop.f32.mrf.mxu0  ;;  %v439_v36 = vpop.f32.mrf.mxu1 }
  0xff   : > { %v641_v37 = vmax.f32 %v597_v34, 0.0  ;;  %v440_v38 = vadd.f32 %v439_v36, %v359_v35 }
 0x101   : > { %663 = vst.msk [vmem:[%s948_s22 + $0x48] sm:$0xff] %vm653_vm0, %v641_v37 }
 0x102   : > { %v519_v39 = vpop.f32.mrf.mxu2  ;;  %v599_v40 = vpop.f32.mrf.mxu3 }
 0x103   : > { %v520_v41 = vadd.f32 %v519_v39, %v440_v38 }
 0x105   : > { %v600_v42 = vadd.f32 %v599_v40, %v520_v41 }
 0x106   : > { %v362_v43 = vpop.f32.mrf.mxu0  ;;  %v442_v44 = vpop.f32.mrf.mxu1 }
 0x107   : > { %v642_v45 = vmax.f32 %v600_v42, 0.0  ;;  %v443_v46 = vadd.f32 %v442_v44, %v362_v43 }
 0x109   : > { %664 = vst.msk [vmem:[%s948_s22 + $0x50] sm:$0xff] %vm653_vm0, %v642_v45 }
 0x10a   : > { %v522_v47 = vpop.f32.mrf.mxu2  ;;  %v602_v48 = vpop.f32.mrf.mxu3 }
 0x10b   : > { %v523_v49 = vadd.f32 %v522_v47, %v443_v46 }
 0x10d   : > { %v603_v50 = vadd.f32 %v602_v48, %v523_v49 }
 0x10e   : > { %v365_v51 = vpop.f32.mrf.mxu0  ;;  %v445_v52 = vpop.f32.mrf.mxu1 }
 0x10f   : > { %v643_v53 = vmax.f32 %v603_v50, 0.0  ;;  %v446_v54 = vadd.f32 %v445_v52, %v365_v51 }
 0x111   : > { %665 = vst.msk [vmem:[%s948_s22 + $0x58] sm:$0xff] %vm653_vm0, %v643_v53 }
 0x112   : > { %v525_v55 = vpop.f32.mrf.mxu2  ;;  %v605_v56 = vpop.f32.mrf.mxu3 }
 0x113   : > { %v526_v57 = vadd.f32 %v525_v55, %v446_v54 }
 0x115   : > { %v606_v58 = vadd.f32 %v605_v56, %v526_v57 }
 0x116   : > { %v368_v59 = vpop.f32.mrf.mxu0  ;;  %v448_v60 = vpop.f32.mrf.mxu1 }
 0x117   : > { %v644_v61 = vmax.f32 %v606_v58, 0.0  ;;  %v449_v62 = vadd.f32 %v448_v60, %v368_v59 }
 0x119   : > { %666 = vst.msk [vmem:[%s948_s22 + $0x60] sm:$0xff] %vm653_vm0, %v644_v61 }
 0x11a   : > { %v528_v63 = vpop.f32.mrf.mxu2  ;;  %v608_v0 = vpop.f32.mrf.mxu3 }
 0x11b   : > { %v529_v1 = vadd.f32 %v528_v63, %v449_v62 }
 0x11d   : > { %v609_v2 = vadd.f32 %v608_v0, %v529_v1 }
 0x11e   : > { %v371_v3 = vpop.f32.mrf.mxu0  ;;  %v451_v4 = vpop.f32.mrf.mxu1 }
 0x11f   : > { %v645_v5 = vmax.f32 %v609_v2, 0.0  ;;  %v452_v6 = vadd.f32 %v451_v4, %v371_v3 }
 0x121   : > { %667 = vst.msk [vmem:[%s948_s22 + $0x68] sm:$0xff] %vm653_vm0, %v645_v5 }
 0x122   : > { %v531_v7 = vpop.f32.mrf.mxu2  ;;  %v611_v8 = vpop.f32.mrf.mxu3 }
 0x123   : > { %v532_v9 = vadd.f32 %v531_v7, %v452_v6 }
 0x125   : > { %v612_v10 = vadd.f32 %v611_v8, %v532_v9 }
 0x126   : > { %v374_v11 = vpop.f32.mrf.mxu0  ;;  %v454_v12 = vpop.f32.mrf.mxu1 }
 0x127   : > { %v646_v13 = vmax.f32 %v612_v10, 0.0  ;;  %v455_v14 = vadd.f32 %v454_v12, %v374_v11 }
 0x129   : > { %668 = vst.msk [vmem:[%s948_s22 + $0x70] sm:$0xff] %vm653_vm0, %v646_v13 }
 0x12a   : > { %v534_v15 = vpop.f32.mrf.mxu2  ;;  %v614_v16 = vpop.f32.mrf.mxu3 }
 0x12b   : > { %v535_v17 = vadd.f32 %v534_v15, %v455_v14 }
 0x12d   : > { %v615_v18 = vadd.f32 %v614_v16, %v535_v17 }
 0x12e   : > { %v377_v19 = vpop.f32.mrf.mxu0  ;;  %v457_v20 = vpop.f32.mrf.mxu1 }
 0x12f   : > { %v647_v21 = vmax.f32 %v615_v18, 0.0  ;;  %v458_v22 = vadd.f32 %v457_v20, %v377_v19 }
 0x131   : > { %669 = vst.msk [vmem:[%s948_s22 + $0x78] sm:$0xff] %vm653_vm0, %v647_v21 }
 0x132   : > { %v537_v23 = vpop.f32.mrf.mxu2  ;;  %v617_v24 = vpop.f32.mrf.mxu3 }
 0x133   : > { %v538_v25 = vadd.f32 %v537_v23, %v458_v22 }
 0x135   : > { %v618_v26 = vadd.f32 %v617_v24, %v538_v25 }
 0x136   : > { %v380_v27 = vpop.f32.mrf.mxu0  ;;  %v460_v28 = vpop.f32.mrf.mxu1 }
 0x137   : > { %v648_v29 = vmax.f32 %v618_v26, 0.0  ;;  %v461_v30 = vadd.f32 %v460_v28, %v380_v27 }
 0x139   : > { %670 = vst.msk [vmem:[%s948_s22 + $0x80] sm:$0xff] %vm653_vm0, %v648_v29 }
 0x13a   : > { %v540_v31 = vpop.f32.mrf.mxu2  ;;  %v620_v32 = vpop.f32.mrf.mxu3 }
 0x13b   : > { %v541_v33 = vadd.f32 %v540_v31, %v461_v30 }
 0x13d   : > { %v621_v34 = vadd.f32 %v620_v32, %v541_v33 }
 0x13e   : > { %v383_v35 = vpop.f32.mrf.mxu0  ;;  %v463_v36 = vpop.f32.mrf.mxu1 }
 0x13f   : > { %v649_v37 = vmax.f32 %v621_v34, 0.0  ;;  %v464_v38 = vadd.f32 %v463_v36, %v383_v35 }
 0x141   : > { %671 = vst.msk [vmem:[%s948_s22 + $0x88] sm:$0xff] %vm653_vm0, %v649_v37 }
 0x142   : > { %v543_v39 = vpop.f32.mrf.mxu2  ;;  %v623_v40 = vpop.f32.mrf.mxu3 }
 0x143   : > { %v544_v41 = vadd.f32 %v543_v39, %v464_v38 }
 0x145   : > { %v624_v42 = vadd.f32 %v623_v40, %v544_v41 }
 0x146   : > { %v386_v43 = vpop.f32.mrf.mxu0  ;;  %v466_v44 = vpop.f32.mrf.mxu1 }
 0x147   : > { %v650_v45 = vmax.f32 %v624_v42, 0.0  ;;  %v467_v46 = vadd.f32 %v466_v44, %v386_v43 }
 0x149   : > { %672 = vst.msk [vmem:[%s948_s22 + $0x90] sm:$0xff] %vm653_vm0, %v650_v45 }
 0x14a   : > { %v546_v47 = vpop.f32.mrf.mxu2  ;;  %v626_v48 = vpop.f32.mrf.mxu3 }
 0x14b   : > { %v547_v49 = vadd.f32 %v546_v47, %v467_v46 }
 0x14d   : > { %v627_v50 = vadd.f32 %v626_v48, %v547_v49 }
 0x14e   : > { %v389_v51 = vpop.f32.mrf.mxu0  ;;  %v469_v52 = vpop.f32.mrf.mxu1 }
 0x14f   : > { %v651_v53 = vmax.f32 %v627_v50, 0.0  ;;  %v470_v54 = vadd.f32 %v469_v52, %v389_v51 }
 0x151   : > { %673 = vst.msk [vmem:[%s948_s22 + $0x98] sm:$0xff] %vm653_vm0, %v651_v53 }
 0x152   : > { %v549_v55 = vpop.f32.mrf.mxu2  ;;  %v629_v56 = vpop.f32.mrf.mxu3 }
 0x153   : > { %v550_v57 = vadd.f32 %v549_v55, %v470_v54 }
 0x155   : > { %v630_v58 = vadd.f32 %v629_v56, %v550_v57 }
 0x157   : > { %v652_v59 = vmax.f32 %v630_v58, 0.0 }
 0x159   : > { %675 = vst.msk [vmem:[%s948_s22 + $0xa0] sm:$0x3] %vm674_vm1, %v652_v59 }
 0x15a PF: > { %s12_s9 = sadd.s32 1, %s771_s9  }
 0x15b   : > { %p9_p4 = scmp.ge.s32.totalorder %s12_s9, 7  }
 0x15d   :  { %11 = sbr.rel (!%p9_p4) target bundleno = 1 (0x1), region = 61 }

// kernel: _lambda_.6
= control target key start
LH: loop header
LB: loop body
LE: loop exit
PB: predicated region body
PF: predicated region fallthrough
CT: control target
= control target key end

     0   :  { %s820_s9 = smov 0   ;;  %s1053_s0 = inlined_call_operand.vmem [shape: f32[5,98,576], index: 0, kind: input, shape index: {}]   ;;  %s1054_s1 = inlined_call_operand.vmem [shape: f32[5,576,64], index: 1, kind: input, shape index: {}]   ;;  %s1055_s2 = inlined_call_operand.vmem [shape: f32[5,98,64], index: 2, kind: output, shape index: {}]  }
   0x1 LB: > { %s715_s10 = sadd.s32 4294967295, %s803_s9   ;;  %p719_p0 = scmp.ge.s32.totalorder %s803_s9, 1  ;;  %s803_s9 = sphi %s820_s9, %s12_s9  }
   0x2   : > { %p122_p1 = scmp.lt.s32.totalorder %s803_s9, 6 }
   0x4   : > { %p123_p2 = pnand %p719_p0, %p122_p1 }
   0x5   : > { %p149_p3 = scmp.lt.s32.totalorder (!%p123_p2), %s715_s10, 4 }
   0x6   : > { %126 = sbr.rel (%p123_p2) target bundleno = 318 (0x13e), region = 28 }
   0xb   : > { %s1057_s10 = smov (!%p149_p3, %s715_s10), 4  ;;  %vm301_vm0 = vcmask 523264   ;;  %vm646_vm1 = vcmask 517120  }
   0xc   : > { %s787_s11 = smul.u32 576, %s1057_s10 }
   0xd   : > { %s786_s15 = smul.u32 520, %s1057_s10 }
   0xe   : > { %s834_s14 = scalar_lea.vmem %s1054_s1, %s787_s11  ;;  %s788_s19 = smul.u32 104, %s1057_s10 }
   0xf   : > { %v244_v0 = vld [vmem:[%s834_s14 + $0x78] sm:$0xff]  ;;  %v243_v1 = vld [vmem:[%s834_s14 + $0x70] sm:$0xff]  ;;  %v242_v2 = vld [vmem:[%s834_s14 + $0x68] sm:$0xff]  ;;  %s855_s18 = scalar_lea.vmem %s1053_s0, %s786_s15 }
  0x10   : > { %738 = vmatpush.msra.mxu1 %v244_v0  ;;  %739 = vmatpush.msra.mxu2 %v244_v0  ;;  %v241_v3 = vld [vmem:[%s834_s14 + $0x60] sm:$0xff]  ;;  %v240_v4 = vld [vmem:[%s834_s14 + $0x58] sm:$0xff]  ;;  %v239_v5 = vld [vmem:[%s834_s14 + $0x50] sm:$0xff]  ;;  %s1014_s22 = scalar_lea.vmem %s1055_s2, %s788_s19 }
  0x11   : > { %740 = vmatpush.msra.mxu3 %v244_v0  ;;  %341 = vmatpush.msra.mxu0 %v244_v0  ;;  %v238_v6 = vld [vmem:[%s834_s14 + $0x48] sm:$0xff]  ;;  %v237_v7 = vld [vmem:[%s834_s14 + $0x40] sm:$0xff]  ;;  %v236_v8 = vld [vmem:[%s834_s14 + $0x38] sm:$0xff] }
  0x12   : > { %741 = vmatpush.msra.mxu1 %v243_v1  ;;  %742 = vmatpush.msra.mxu2 %v243_v1  ;;  %v235_v9 = vld [vmem:[%s834_s14 + $0x30] sm:$0xff]  ;;  %v234_v10 = vld [vmem:[%s834_s14 + $0x28] sm:$0xff]  ;;  %v233_v11 = vld [vmem:[%s834_s14 + $0x20] sm:$0xff] }
  0x13   : > { %743 = vmatpush.msra.mxu3 %v243_v1  ;;  %342 = vmatpush.msra.mxu0 %v243_v1  ;;  %v232_v12 = vld [vmem:[%s834_s14 + $0x18] sm:$0xff]  ;;  %v231_v13 = vld [vmem:[%s834_s14 + $0x10] sm:$0xff]  ;;  %v230_v14 = vld [vmem:[%s834_s14 + $0x8] sm:$0xff] }
  0x14   : > { %744 = vmatpush.msra.mxu1 %v242_v2  ;;  %745 = vmatpush.msra.mxu2 %v242_v2  ;;  %v229_v15 = vld [vmem:[%s834_s14] sm:$0xff]  ;;  %v276_v18 = vld [vmem:[%s834_s14 + $0x178] sm:$0xff]  ;;  %v275_v20 = vld [vmem:[%s834_s14 + $0x170] sm:$0xff] }
  0x15   : > { %746 = vmatpush.msra.mxu3 %v242_v2  ;;  %343 = vmatpush.msra.mxu0 %v242_v2  ;;  %v184_v16 = vld [vmem:[%s855_s18 + $0xa0] sm:$0xff]  ;;  %v260_v19 = vld [vmem:[%s834_s14 + $0xf8] sm:$0xff]  ;;  %v259_v21 = vld [vmem:[%s834_s14 + $0xf0] sm:$0xff] }
  0x16   : > { %747 = vmatpush.msra.mxu1 %v241_v3  ;;  %748 = vmatpush.msra.mxu2 %v241_v3  ;;  %v204_v17 = vld [vmem:[%s855_s18 + $0x140] sm:$0xff]  ;;  %v292_v22 = vld [vmem:[%s834_s14 + $0x1f8] sm:$0xff]  ;;  %v274_v24 = vld [vmem:[%s834_s14 + $0x168] sm:$0xff] }
  0x17   : > { %749 = vmatpush.msra.mxu3 %v241_v3  ;;  %344 = vmatpush.msra.mxu0 %v241_v3  ;;  %v164_v23 = vld [vmem:[%s855_s18] sm:$0xff]  ;;  %v258_v25 = vld [vmem:[%s834_s14 + $0xe8] sm:$0xff]  ;;  %v291_v26 = vld [vmem:[%s834_s14 + $0x1f0] sm:$0xff] }
  0x18   : > { %750 = vmatpush.msra.mxu1 %v240_v4  ;;  %751 = vmatpush.msra.mxu2 %v240_v4  ;;  %v300_v27 = vld [vmem:[%s834_s14 + $0x238] sm:$0xff]  ;;  %v273_v28 = vld [vmem:[%s834_s14 + $0x160] sm:$0xff]  ;;  %v290_v30 = vld [vmem:[%s834_s14 + $0x1e8] sm:$0xff] }
  0x19   : > { %752 = vmatpush.msra.mxu3 %v240_v4  ;;  %345 = vmatpush.msra.mxu0 %v240_v4  ;;  %v257_v29 = vld [vmem:[%s834_s14 + $0xe0] sm:$0xff]  ;;  %v189_v31 = vld [vmem:[%s855_s18 + $0xc8] sm:$0xff]  ;;  %v256_v33 = vld [vmem:[%s834_s14 + $0xd8] sm:$0xff] }
  0x1a   : > { %753 = vmatpush.msra.mxu1 %v239_v5  ;;  %754 = vmatpush.msra.mxu2 %v239_v5  ;;  %v209_v32 = vld [vmem:[%s855_s18 + $0x168] sm:$0xff]  ;;  %v272_v34 = vld [vmem:[%s834_s14 + $0x158] sm:$0xff]  ;;  %v289_v35 = vld [vmem:[%s834_s14 + $0x1e0] sm:$0xff] }
  0x1b   : > { %755 = vmatpush.msra.mxu3 %v239_v5  ;;  %346 = vmatpush.msra.mxu0 %v239_v5  ;;  %v255_v36 = vld [vmem:[%s834_s14 + $0xd0] sm:$0xff]  ;;  %v288_v39 = vld [vmem:[%s834_s14 + $0x1d8] sm:$0xff]  ;;  %v254_v40 = vld [vmem:[%s834_s14 + $0xc8] sm:$0xff] }
  0x1c   : > { %756 = vmatpush.msra.mxu1 %v238_v6  ;;  %757 = vmatpush.msra.mxu2 %v238_v6  ;;  %v299_v37 = vld [vmem:[%s834_s14 + $0x230] sm:$0xff]  ;;  %v169_v41 = vld [vmem:[%s855_s18 + $0x28] sm:$0xff]  ;;  %v253_v44 = vld [vmem:[%s834_s14 + $0xc0] sm:$0xff] }
  0x1d   : > { %758 = vmatpush.msra.mxu3 %v238_v6  ;;  %347 = vmatpush.msra.mxu0 %v238_v6  ;;  %v271_v38 = vld [vmem:[%s834_s14 + $0x150] sm:$0xff]  ;;  %v270_v42 = vld [vmem:[%s834_s14 + $0x148] sm:$0xff]  ;;  %v269_v46 = vld [vmem:[%s834_s14 + $0x140] sm:$0xff] }
  0x1e   : > { %759 = vmatpush.msra.mxu1 %v237_v7  ;;  %760 = vmatpush.msra.mxu2 %v237_v7  ;;  %v287_v43 = vld [vmem:[%s834_s14 + $0x1d0] sm:$0xff]  ;;  %v298_v45 = vld [vmem:[%s834_s14 + $0x228] sm:$0xff]  ;;  %v268_v50 = vld [vmem:[%s834_s14 + $0x138] sm:$0xff] }
  0x1f   : > { %761 = vmatpush.msra.mxu3 %v237_v7  ;;  %348 = vmatpush.msra.mxu0 %v237_v7  ;;  %v286_v47 = vld [vmem:[%s834_s14 + $0x1c8] sm:$0xff]  ;;  %v194_v48 = vld [vmem:[%s855_s18 + $0xf0] sm:$0xff]  ;;  %v252_v51 = vld [vmem:[%s834_s14 + $0xb8] sm:$0xff] }
  0x20   : > { %762 = vmatpush.msra.mxu1 %v236_v8  ;;  %763 = vmatpush.msra.mxu2 %v236_v8  ;;  %v214_v49 = vld [vmem:[%s855_s18 + $0x190] sm:$0xff]  ;;  %v285_v52 = vld [vmem:[%s834_s14 + $0x1c0] sm:$0xff]  ;;  %v284_v56 = vld [vmem:[%s834_s14 + $0x1b8] sm:$0xff] }
  0x21   : > { %764 = vmatpush.msra.mxu3 %v236_v8  ;;  %349 = vmatpush.msra.mxu0 %v236_v8  ;;  %v297_v53 = vld [vmem:[%s834_s14 + $0x220] sm:$0xff]  ;;  %v267_v54 = vld [vmem:[%s834_s14 + $0x130] sm:$0xff]  ;;  %v266_v58 = vld [vmem:[%s834_s14 + $0x128] sm:$0xff] }
  0x22   : > { %765 = vmatpush.msra.mxu1 %v235_v9  ;;  %766 = vmatpush.msra.mxu2 %v235_v9  ;;  %v251_v55 = vld [vmem:[%s834_s14 + $0xb0] sm:$0xff]  ;;  %v250_v59 = vld [vmem:[%s834_s14 + $0xa8] sm:$0xff]  ;;  %v296_v61 = vld [vmem:[%s834_s14 + $0x218] sm:$0xff] }
  0x23   : > { %767 = vmatpush.msra.mxu3 %v235_v9  ;;  %350 = vmatpush.msra.mxu0 %v235_v9  ;;  %v174_v57 = vld [vmem:[%s855_s18 + $0x50] sm:$0xff]  ;;  %v265_v62 = vld [vmem:[%s834_s14 + $0x120] sm:$0xff]  ;;  %v282_v0 = vld [vmem:[%s834_s14 + $0x1a8] sm:$0xff] }
  0x24   : > { %768 = vmatpush.msra.mxu1 %v234_v10  ;;  %769 = vmatpush.msra.mxu2 %v234_v10  ;;  %v283_v60 = vld [vmem:[%s834_s14 + $0x1b0] sm:$0xff]  ;;  %v249_v63 = vld [vmem:[%s834_s14 + $0xa0] sm:$0xff]  ;;  %v199_v1 = vld [vmem:[%s855_s18 + $0x118] sm:$0xff] }
  0x25   : > { %770 = vmatpush.msra.mxu3 %v234_v10  ;;  %351 = vmatpush.msra.mxu0 %v234_v10  ;;  %v219_v2 = vld [vmem:[%s855_s18 + $0x1b8] sm:$0xff]  ;;  %v281_v5 = vld [vmem:[%s834_s14 + $0x1a0] sm:$0xff]  ;;  %v247_v7 = vld [vmem:[%s834_s14 + $0x90] sm:$0xff] }
  0x26   : > { %771 = vmatpush.msra.mxu1 %v233_v11  ;;  %772 = vmatpush.msra.mxu2 %v233_v11  ;;  %v248_v3 = vld [vmem:[%s834_s14 + $0x98] sm:$0xff]  ;;  %v224_v6 = vld [vmem:[%s855_s18 + $0x1e0] sm:$0x3]  ;;  %v263_v8 = vld [vmem:[%s834_s14 + $0x110] sm:$0xff] }
  0x27   : > { %773 = vmatpush.msra.mxu3 %v233_v11  ;;  %352 = vmatpush.msra.mxu0 %v233_v11  ;;  %v264_v4 = vld [vmem:[%s834_s14 + $0x118] sm:$0xff]  ;;  %v246_v10 = vld [vmem:[%s834_s14 + $0x88] sm:$0xff]  ;;  %v295_v11 = vld [vmem:[%s834_s14 + $0x210] sm:$0xff] }
  0x28   : > { %774 = vmatpush.msra.mxu1 %v232_v12  ;;  %775 = vmatpush.msra.mxu2 %v232_v12  ;;  %v280_v9 = vld [vmem:[%s834_s14 + $0x198] sm:$0xff] }
  0x29   : > { %776 = vmatpush.msra.mxu3 %v232_v12  ;;  %353 = vmatpush.msra.mxu0 %v232_v12  ;;  %v262_v12 = vld [vmem:[%s834_s14 + $0x108] sm:$0xff] }
  0x2a   : > { %777 = vmatpush.msra.mxu1 %v231_v13  ;;  %778 = vmatpush.msra.mxu2 %v231_v13 }
  0x2b   : > { %779 = vmatpush.msra.mxu3 %v231_v13  ;;  %354 = vmatpush.msra.mxu0 %v231_v13  ;;  %v279_v13 = vld [vmem:[%s834_s14 + $0x190] sm:$0xff] }
  0x2c   : > { %780 = vmatpush.msra.mxu1 %v230_v14  ;;  %781 = vmatpush.msra.mxu2 %v230_v14 }
  0x2d   : > { %782 = vmatpush.msra.mxu3 %v230_v14  ;;  %355 = vmatpush.msra.mxu0 %v230_v14  ;;  %v245_v14 = vld [vmem:[%s834_s14 + $0x80] sm:$0xff] }
  0x2e   : > { %783 = vmatpush.msra.mxu1 %v229_v15  ;;  %784 = vmatpush.msra.mxu2 %v229_v15 }
  0x2f   : > { %369 = vmatmul.f32.vlgmr.msra.gmra.mxu1 %v184_v16  ;;  %381 = vmatmul.f32.vlgmr.msra.gmra.mxu2 %v204_v17  ;;  %v261_v16 = vld [vmem:[%s834_s14 + $0x100] sm:$0xff]  ;;  %v278_v17 = vld [vmem:[%s834_s14 + $0x188] sm:$0xff] }
  0x30   : > { %453 = vmatpush.msrb.mxu2 %v276_v18  ;;  %397 = vmatpush.msrb.mxu1 %v260_v19  ;;  %v165_v18 = vld [vmem:[%s855_s18 + $0x8] sm:$0xff]  ;;  %v166_v19 = vld [vmem:[%s855_s18 + $0x10] sm:$0xff] }
  0x31   : > { %785 = vmatpush.msra.mxu3 %v229_v15  ;;  %356 = vmatpush.msra.mxu0 %v229_v15  ;;  %v179_v15 = vld [vmem:[%s855_s18 + $0x78] sm:$0xff] }
  0x32   : > { %454 = vmatpush.msrb.mxu2 %v275_v20  ;;  %398 = vmatpush.msrb.mxu1 %v259_v21  ;;  %v277_v20 = vld [vmem:[%s834_s14 + $0x180] sm:$0xff]  ;;  %v294_v21 = vld [vmem:[%s834_s14 + $0x208] sm:$0xff] }
  0x33   : > { %509 = vmatpush.msrb.mxu3 %v292_v22  ;;  %357 = vmatmul.f32.vlgmr.msra.gmra.mxu0 %v164_v23  ;;  %v167_v22 = vld [vmem:[%s855_s18 + $0x18] sm:$0xff]  ;;  %v293_v23 = vld [vmem:[%s834_s14 + $0x200] sm:$0xff] }
  0x34   : > { %455 = vmatpush.msrb.mxu2 %v274_v24  ;;  %399 = vmatpush.msrb.mxu1 %v258_v25  ;;  %v168_v24 = vld [vmem:[%s855_s18 + $0x20] sm:$0xff]  ;;  %v170_v25 = vld [vmem:[%s855_s18 + $0x30] sm:$0xff] }
  0x35   : > { %510 = vmatpush.msrb.mxu3 %v291_v26  ;;  %573 = vmatpush.msrb.mxu0 %v300_v27  ;;  %v171_v26 = vld [vmem:[%s855_s18 + $0x38] sm:$0xff]  ;;  %v172_v27 = vld [vmem:[%s855_s18 + $0x40] sm:$0xff] }
  0x36   : > { %456 = vmatpush.msrb.mxu2 %v273_v28  ;;  %400 = vmatpush.msrb.mxu1 %v257_v29  ;;  %v173_v28 = vld [vmem:[%s855_s18 + $0x48] sm:$0xff]  ;;  %v175_v29 = vld [vmem:[%s855_s18 + $0x58] sm:$0xff] }
  0x37   : > { %511 = vmatpush.msrb.mxu3 %v290_v30  ;;  %372 = vmatmul.f32.gmra.mxu1 %v189_v31  ;;  %v176_v30 = vld [vmem:[%s855_s18 + $0x60] sm:$0xff]  ;;  %v177_v31 = vld [vmem:[%s855_s18 + $0x68] sm:$0xff] }
  0x38   : > { %384 = vmatmul.f32.gmra.mxu2 %v209_v32  ;;  %401 = vmatpush.msrb.mxu1 %v256_v33  ;;  %v178_v32 = vld [vmem:[%s855_s18 + $0x70] sm:$0xff]  ;;  %v180_v33 = vld [vmem:[%s855_s18 + $0x80] sm:$0xff] }
  0x39   : > { %457 = vmatpush.msrb.mxu2 %v272_v34  ;;  %512 = vmatpush.msrb.mxu3 %v289_v35  ;;  %v181_v34 = vld [vmem:[%s855_s18 + $0x88] sm:$0xff]  ;;  %v182_v35 = vld [vmem:[%s855_s18 + $0x90] sm:$0xff] }
  0x3a   : > { %402 = vmatpush.msrb.mxu1 %v255_v36  ;;  %574 = vmatpush.msrb.mxu0 %v299_v37  ;;  %v183_v36 = vld [vmem:[%s855_s18 + $0x98] sm:$0xff]  ;;  %v185_v37 = vld [vmem:[%s855_s18 + $0xa8] sm:$0xff] }
  0x3b   : > { %458 = vmatpush.msrb.mxu2 %v271_v38  ;;  %513 = vmatpush.msrb.mxu3 %v288_v39  ;;  %v186_v38 = vld [vmem:[%s855_s18 + $0xb0] sm:$0xff]  ;;  %v187_v39 = vld [vmem:[%s855_s18 + $0xb8] sm:$0xff] }
  0x3c   : > { %403 = vmatpush.msrb.mxu1 %v254_v40  ;;  %360 = vmatmul.f32.gmra.mxu0 %v169_v41  ;;  %v188_v40 = vld [vmem:[%s855_s18 + $0xc0] sm:$0xff]  ;;  %v190_v41 = vld [vmem:[%s855_s18 + $0xd0] sm:$0xff] }
  0x3d   : > { %459 = vmatpush.msrb.mxu2 %v270_v42  ;;  %514 = vmatpush.msrb.mxu3 %v287_v43  ;;  %v191_v42 = vld [vmem:[%s855_s18 + $0xd8] sm:$0xff]  ;;  %v192_v43 = vld [vmem:[%s855_s18 + $0xe0] sm:$0xff] }
  0x3e   : > { %404 = vmatpush.msrb.mxu1 %v253_v44  ;;  %575 = vmatpush.msrb.mxu0 %v298_v45  ;;  %v193_v44 = vld [vmem:[%s855_s18 + $0xe8] sm:$0xff]  ;;  %v195_v45 = vld [vmem:[%s855_s18 + $0xf8] sm:$0xff] }
  0x3f   : > { %460 = vmatpush.msrb.mxu2 %v269_v46  ;;  %515 = vmatpush.msrb.mxu3 %v286_v47  ;;  %v196_v46 = vld [vmem:[%s855_s18 + $0x100] sm:$0xff]  ;;  %v197_v47 = vld [vmem:[%s855_s18 + $0x108] sm:$0xff] }
  0x40   : > { %375 = vmatmul.f32.gmra.mxu1 %v194_v48  ;;  %387 = vmatmul.f32.gmra.mxu2 %v214_v49  ;;  %v198_v48 = vld [vmem:[%s855_s18 + $0x110] sm:$0xff]  ;;  %v200_v49 = vld [vmem:[%s855_s18 + $0x120] sm:$0xff] }
  0x41   : > { %461 = vmatpush.msrb.mxu2 %v268_v50  ;;  %405 = vmatpush.msrb.mxu1 %v252_v51  ;;  %v201_v50 = vld [vmem:[%s855_s18 + $0x128] sm:$0xff]  ;;  %v202_v51 = vld [vmem:[%s855_s18 + $0x130] sm:$0xff] }
  0x42   : > { %516 = vmatpush.msrb.mxu3 %v285_v52  ;;  %576 = vmatpush.msrb.mxu0 %v297_v53  ;;  %v203_v52 = vld [vmem:[%s855_s18 + $0x138] sm:$0xff]  ;;  %v205_v53 = vld [vmem:[%s855_s18 + $0x148] sm:$0xff] }
  0x43   : > { %462 = vmatpush.msrb.mxu2 %v267_v54  ;;  %406 = vmatpush.msrb.mxu1 %v251_v55  ;;  %v206_v54 = vld [vmem:[%s855_s18 + $0x150] sm:$0xff]  ;;  %v207_v55 = vld [vmem:[%s855_s18 + $0x158] sm:$0xff] }
  0x44   : > { %517 = vmatpush.msrb.mxu3 %v284_v56  ;;  %363 = vmatmul.f32.gmra.mxu0 %v174_v57  ;;  %v208_v56 = vld [vmem:[%s855_s18 + $0x160] sm:$0xff]  ;;  %v210_v57 = vld [vmem:[%s855_s18 + $0x170] sm:$0xff] }
  0x45   : > { %463 = vmatpush.msrb.mxu2 %v266_v58  ;;  %407 = vmatpush.msrb.mxu1 %v250_v59  ;;  %v211_v58 = vld [vmem:[%s855_s18 + $0x178] sm:$0xff]  ;;  %v212_v59 = vld [vmem:[%s855_s18 + $0x180] sm:$0xff] }
  0x46   : > { %518 = vmatpush.msrb.mxu3 %v283_v60  ;;  %577 = vmatpush.msrb.mxu0 %v296_v61  ;;  %v213_v60 = vld [vmem:[%s855_s18 + $0x188] sm:$0xff]  ;;  %v215_v61 = vld [vmem:[%s855_s18 + $0x198] sm:$0xff] }
  0x47   : > { %464 = vmatpush.msrb.mxu2 %v265_v62  ;;  %408 = vmatpush.msrb.mxu1 %v249_v63  ;;  %v216_v62 = vld [vmem:[%s855_s18 + $0x1a0] sm:$0xff]  ;;  %v217_v63 = vld [vmem:[%s855_s18 + $0x1a8] sm:$0xff] }
  0x48   : > { %519 = vmatpush.msrb.mxu3 %v282_v0  ;;  %378 = vmatmul.f32.gmra.mxu1 %v199_v1  ;;  %v218_v0 = vld [vmem:[%s855_s18 + $0x1b0] sm:$0xff]  ;;  %v220_v1 = vld [vmem:[%s855_s18 + $0x1c0] sm:$0xff] }
  0x49   : > { %390 = vmatmul.f32.gmra.mxu2 %v219_v2  ;;  %409 = vmatpush.msrb.mxu1 %v248_v3  ;;  %v221_v2 = vld [vmem:[%s855_s18 + $0x1c8] sm:$0xff]  ;;  %v222_v3 = vld [vmem:[%s855_s18 + $0x1d0] sm:$0xff] }
  0x4a   : > { %465 = vmatpush.msrb.mxu2 %v264_v4  ;;  %520 = vmatpush.msrb.mxu3 %v281_v5  ;;  %v223_v5 = vld [vmem:[%s855_s18 + $0x1d8] sm:$0xff] }
  0x4b   : > { %393 = vmatmul.f32.vlgmr.msra.gmra.mxu3 %v224_v6  ;;  %410 = vmatpush.msrb.mxu1 %v247_v7  ;;  %v225_v6 = vld [vmem:[%s855_s18 + $0x1e8] sm:$0x3]  ;;  %v226_v7 = vld [vmem:[%s855_s18 + $0x1f0] sm:$0x3] }
  0x4c   : > { %466 = vmatpush.msrb.mxu2 %v263_v8  ;;  %521 = vmatpush.msrb.mxu3 %v280_v9  ;;  %v227_v8 = vld [vmem:[%s855_s18 + $0x1f8] sm:$0x3] }
  0x4d   : > { %411 = vmatpush.msrb.mxu1 %v246_v10  ;;  %578 = vmatpush.msrb.mxu0 %v295_v11 }
  0x4e   : > { %467 = vmatpush.msrb.mxu2 %v262_v12  ;;  %522 = vmatpush.msrb.mxu3 %v279_v13  ;;  %v228_v12 = vld [vmem:[%s855_s18 + $0x200] sm:$0x3] }
  0x4f   : > { %412 = vmatpush.msrb.mxu1 %v245_v14  ;;  %366 = vmatmul.f32.gmra.mxu0 %v179_v15 }
  0x50   : > { %468 = vmatpush.msrb.mxu2 %v261_v16  ;;  %523 = vmatpush.msrb.mxu3 %v278_v17 }
  0x51   : > { %413 = vmatmul.f32.vlgmr.msrb.gmra.mxu1 %v165_v18  ;;  %469 = vmatmul.f32.vlgmr.msrb.gmra.mxu2 %v166_v19 }
  0x52   : > { %524 = vmatpush.msrb.mxu3 %v277_v20  ;;  %579 = vmatpush.msrb.mxu0 %v294_v21 }
  0x53   : > { %525 = vmatmul.f32.vlgmr.msrb.gmra.mxu3 %v167_v22 }
  0x54   : > { %580 = vmatpush.msrb.mxu0 %v293_v23 }
  0x57   : > { %723 = vmatmul.msk.f32.vlgmr.msrb.gmra.mxu0 %vm301_vm0, %v168_v24 }
  0x59   : > { %416 = vmatmul.f32.gmra.mxu1 %v170_v25  ;;  %472 = vmatmul.f32.gmra.mxu2 %v171_v26 }
  0x5b   : > { %528 = vmatmul.f32.gmra.mxu3 %v172_v27 }
  0x5f   : > { %724 = vmatmul.msk.f32.gmra.mxu0 %vm301_vm0, %v173_v28 }
  0x61   : > { %419 = vmatmul.f32.gmra.mxu1 %v175_v29  ;;  %475 = vmatmul.f32.gmra.mxu2 %v176_v30 }
  0x63   : > { %531 = vmatmul.f32.gmra.mxu3 %v177_v31 }
  0x67   : > { %725 = vmatmul.msk.f32.gmra.mxu0 %vm301_vm0, %v178_v32 }
  0x69   : > { %422 = vmatmul.f32.gmra.mxu1 %v180_v33  ;;  %478 = vmatmul.f32.gmra.mxu2 %v181_v34 }
  0x6b   : > { %534 = vmatmul.f32.gmra.mxu3 %v182_v35 }
  0x6f   : > { %726 = vmatmul.msk.f32.gmra.mxu0 %vm301_vm0, %v183_v36 }
  0x71   : > { %425 = vmatmul.f32.gmra.mxu1 %v185_v37  ;;  %481 = vmatmul.f32.gmra.mxu2 %v186_v38 }
  0x73   : > { %537 = vmatmul.f32.gmra.mxu3 %v187_v39 }
  0x77   : > { %727 = vmatmul.msk.f32.gmra.mxu0 %vm301_vm0, %v188_v40 }
  0x79   : > { %428 = vmatmul.f32.gmra.mxu1 %v190_v41  ;;  %484 = vmatmul.f32.gmra.mxu2 %v191_v42 }
  0x7b   : > { %540 = vmatmul.f32.gmra.mxu3 %v192_v43 }
  0x7f   : > { %728 = vmatmul.msk.f32.gmra.mxu0 %vm301_vm0, %v193_v44 }
  0x81   : > { %431 = vmatmul.f32.gmra.mxu1 %v195_v45  ;;  %487 = vmatmul.f32.gmra.mxu2 %v196_v46 }
  0x83   : > { %543 = vmatmul.f32.gmra.mxu3 %v197_v47 }
  0x87   : > { %729 = vmatmul.msk.f32.gmra.mxu0 %vm301_vm0, %v198_v48 }
  0x89   : > { %434 = vmatmul.f32.gmra.mxu1 %v200_v49  ;;  %490 = vmatmul.f32.gmra.mxu2 %v201_v50 }
  0x8b   : > { %546 = vmatmul.f32.gmra.mxu3 %v202_v51 }
  0x8f   : > { %730 = vmatmul.msk.f32.gmra.mxu0 %vm301_vm0, %v203_v52 }
  0x91   : > { %437 = vmatmul.f32.gmra.mxu1 %v205_v53  ;;  %493 = vmatmul.f32.gmra.mxu2 %v206_v54 }
  0x93   : > { %549 = vmatmul.f32.gmra.mxu3 %v207_v55 }
  0x97   : > { %731 = vmatmul.msk.f32.gmra.mxu0 %vm301_vm0, %v208_v56 }
  0x99   : > { %440 = vmatmul.f32.gmra.mxu1 %v210_v57  ;;  %496 = vmatmul.f32.gmra.mxu2 %v211_v58 }
  0x9b   : > { %552 = vmatmul.f32.gmra.mxu3 %v212_v59 }
  0x9f   : > { %732 = vmatmul.msk.f32.gmra.mxu0 %vm301_vm0, %v213_v60 }
  0xa1   : > { %443 = vmatmul.f32.gmra.mxu1 %v215_v61  ;;  %499 = vmatmul.f32.gmra.mxu2 %v216_v62 }
  0xa3   : > { %555 = vmatmul.f32.gmra.mxu3 %v217_v63 }
  0xa7   : > { %733 = vmatmul.msk.f32.gmra.mxu0 %vm301_vm0, %v218_v0 }
  0xa9   : > { %446 = vmatmul.f32.gmra.mxu1 %v220_v1  ;;  %502 = vmatmul.f32.gmra.mxu2 %v221_v2 }
  0xab   : > { %558 = vmatmul.f32.gmra.mxu3 %v222_v3 }
  0xac   : > { %v985_v4 = vpop.f32.mrf.mxu1 }
  0xaf   : > { %734 = vmatmul.msk.f32.gmra.mxu0 %vm301_vm0, %v223_v5 }
  0xb0   : > { %v358_v9 = vpop.f32.mrf.mxu0 }
  0xb1   : > { %449 = vmatmul.f32.gmra.mxu1 %v225_v6  ;;  %505 = vmatmul.f32.gmra.mxu2 %v226_v7 }
  0xb2   : > { %v992_v10 = vpop.f32.mrf.mxu2 }
  0xb3   : > { %561 = vmatmul.f32.gmra.mxu3 %v227_v8 }
  0xb4   : > { %v994_v11 = vpop.f32.mrf.mxu1 }
  0xb7   : > { %735 = vmatmul.msk.f32.gmra.mxu0 %vm301_vm0, %v228_v12 }
  0xb9   : > { %v361_v13 = vpop.f32.mrf.mxu0 }
  0xbb   : > { %v998_v14 = vpop.f32.mrf.mxu2 }
  0xbd   : > { %v1000_v15 = vpop.f32.mrf.mxu1 }
  0xc1   : > { %v364_v16 = vpop.f32.mrf.mxu0 }
  0xc3   : > { %v1002_v17 = vpop.f32.mrf.mxu2 }
  0xc5   : > { %v1004_v18 = vpop.f32.mrf.mxu1 }
  0xcc   : > { %v1006_v19 = vpop.f32.mrf.mxu2  ;;  %v367_v20 = vpop.f32.mrf.mxu0 }
  0xce   : > { %v1008_v21 = vpop.f32.mrf.mxu3  ;;  %v414_v22 = vpop.f32.mrf.mxu1 }
  0xcf   : > { %v415_v23 = vadd.f32 %v414_v22, %v358_v9 }
  0xd4   : > { %v470_v24 = vpop.f32.mrf.mxu2  ;;  %v582_v25 = vpop.f32.mrf.mxu0 }
  0xd5   : > { %v471_v26 = vadd.f32 %v470_v24, %v415_v23 }
  0xd6   : > { %v417_v27 = vpop.f32.mrf.mxu1  ;;  %v526_v28 = vpop.f32.mrf.mxu3 }
  0xd7   : > { %v527_v29 = vadd.f32 %v526_v28, %v471_v26  ;;  %v418_v31 = vadd.f32 %v417_v27, %v361_v13 }
  0xd9   : > { %v583_v30 = vadd.f32 %v582_v25, %v527_v29 }
  0xdb   : > { %v621_v32 = vmax.f32 %v583_v30, 0.0 }
  0xdc   : > { %v473_v33 = vpop.f32.mrf.mxu2  ;;  %v585_v34 = vpop.f32.mrf.mxu0 }
  0xdd   : > { %634 = vst.msk [vmem:[%s1014_s22] sm:$0xff] %vm301_vm0, %v621_v32  ;;  %v474_v35 = vadd.f32 %v473_v33, %v418_v31 }
  0xde   : > { %v420_v36 = vpop.f32.mrf.mxu1  ;;  %v529_v37 = vpop.f32.mrf.mxu3 }
  0xdf   : > { %v530_v38 = vadd.f32 %v529_v37, %v474_v35  ;;  %v421_v40 = vadd.f32 %v420_v36, %v364_v16 }
  0xe1   : > { %v586_v39 = vadd.f32 %v585_v34, %v530_v38 }
  0xe3   : > { %v622_v41 = vmax.f32 %v586_v39, 0.0 }
  0xe4   : > { %v476_v42 = vpop.f32.mrf.mxu2  ;;  %v588_v43 = vpop.f32.mrf.mxu0 }
  0xe5   : > { %635 = vst.msk [vmem:[%s1014_s22 + $0x8] sm:$0xff] %vm301_vm0, %v622_v41  ;;  %v477_v44 = vadd.f32 %v476_v42, %v421_v40 }
  0xe6   : > { %v423_v45 = vpop.f32.mrf.mxu1  ;;  %v532_v46 = vpop.f32.mrf.mxu3 }
  0xe7   : > { %v533_v47 = vadd.f32 %v532_v46, %v477_v44  ;;  %v424_v49 = vadd.f32 %v423_v45, %v367_v20 }
  0xe9   : > { %v589_v48 = vadd.f32 %v588_v43, %v533_v47 }
  0xeb   : > { %v623_v50 = vmax.f32 %v589_v48, 0.0 }
  0xec   : > { %v479_v51 = vpop.f32.mrf.mxu2  ;;  %v591_v52 = vpop.f32.mrf.mxu0 }
  0xed   : > { %636 = vst.msk [vmem:[%s1014_s22 + $0x10] sm:$0xff] %vm301_vm0, %v623_v50  ;;  %v480_v53 = vadd.f32 %v479_v51, %v424_v49 }
  0xee   : > { %v426_v54 = vpop.f32.mrf.mxu1  ;;  %v535_v55 = vpop.f32.mrf.mxu3 }
  0xef   : > { %v536_v56 = vadd.f32 %v535_v55, %v480_v53  ;;  %v427_v58 = vadd.f32 %v426_v54, %v985_v4 }
  0xf1   : > { %v592_v57 = vadd.f32 %v591_v52, %v536_v56 }
  0xf3   : > { %v624_v59 = vmax.f32 %v592_v57, 0.0 }
  0xf4   : > { %v482_v60 = vpop.f32.mrf.mxu2  ;;  %v594_v61 = vpop.f32.mrf.mxu0 }
  0xf5   : > { %637 = vst.msk [vmem:[%s1014_s22 + $0x18] sm:$0xff] %vm301_vm0, %v624_v59  ;;  %v483_v62 = vadd.f32 %v482_v60, %v427_v58 }
  0xf6   : > { %v429_v63 = vpop.f32.mrf.mxu1  ;;  %v538_v0 = vpop.f32.mrf.mxu3 }
  0xf7   : > { %v539_v1 = vadd.f32 %v538_v0, %v483_v62  ;;  %v430_v3 = vadd.f32 %v429_v63, %v994_v11 }
  0xf9   : > { %v595_v2 = vadd.f32 %v594_v61, %v539_v1 }
  0xfb   : > { %v625_v5 = vmax.f32 %v595_v2, 0.0 }
  0xfc   : > { %v485_v6 = vpop.f32.mrf.mxu2  ;;  %v597_v7 = vpop.f32.mrf.mxu0 }
  0xfd   : > { %638 = vst.msk [vmem:[%s1014_s22 + $0x20] sm:$0xff] %vm301_vm0, %v625_v5  ;;  %v486_v8 = vadd.f32 %v485_v6, %v430_v3 }
  0xfe   : > { %v432_v4 = vpop.f32.mrf.mxu1  ;;  %v541_v9 = vpop.f32.mrf.mxu3 }
  0xff   : > { %v542_v12 = vadd.f32 %v541_v9, %v486_v8  ;;  %v433_v16 = vadd.f32 %v432_v4, %v1000_v15 }
 0x101   : > { %v598_v13 = vadd.f32 %v597_v7, %v542_v12 }
 0x103   : > { %v626_v20 = vmax.f32 %v598_v13, 0.0 }
 0x104   : > { %v488_v22 = vpop.f32.mrf.mxu2  ;;  %v600_v23 = vpop.f32.mrf.mxu0 }
 0x105   : > { %639 = vst.msk [vmem:[%s1014_s22 + $0x28] sm:$0xff] %vm301_vm0, %v626_v20  ;;  %v489_v24 = vadd.f32 %v488_v22, %v433_v16 }
 0x106   : > { %v435_v11 = vpop.f32.mrf.mxu1  ;;  %v544_v25 = vpop.f32.mrf.mxu3 }
 0x107   : > { %v545_v26 = vadd.f32 %v544_v25, %v489_v24  ;;  %v436_v28 = vadd.f32 %v435_v11, %v1004_v18 }
 0x109   : > { %v601_v27 = vadd.f32 %v600_v23, %v545_v26 }
 0x10b   : > { %v627_v29 = vmax.f32 %v601_v27, 0.0 }
 0x10c   : > { %v491_v30 = vpop.f32.mrf.mxu2  ;;  %v603_v31 = vpop.f32.mrf.mxu0 }
 0x10d   : > { %640 = vst.msk [vmem:[%s1014_s22 + $0x30] sm:$0xff] %vm301_vm0, %v627_v29  ;;  %v492_v32 = vadd.f32 %v491_v30, %v436_v28 }
 0x10e   : > { %v438_v15 = vpop.f32.mrf.mxu1  ;;  %v547_v33 = vpop.f32.mrf.mxu3 }
 0x10f   : > { %v548_v34 = vadd.f32 %v547_v33, %v492_v32  ;;  %v439_v36 = vadd.f32 %v438_v15, %v992_v10 }
 0x111   : > { %v604_v35 = vadd.f32 %v603_v31, %v548_v34 }
 0x113   : > { %v628_v37 = vmax.f32 %v604_v35, 0.0 }
 0x114   : > { %v494_v38 = vpop.f32.mrf.mxu2  ;;  %v606_v39 = vpop.f32.mrf.mxu0 }
 0x115   : > { %641 = vst.msk [vmem:[%s1014_s22 + $0x38] sm:$0xff] %vm301_vm0, %v628_v37  ;;  %v495_v40 = vadd.f32 %v494_v38, %v439_v36 }
 0x116   : > { %v441_v18 = vpop.f32.mrf.mxu1  ;;  %v550_v41 = vpop.f32.mrf.mxu3 }
 0x117   : > { %v551_v42 = vadd.f32 %v550_v41, %v495_v40  ;;  %v442_v44 = vadd.f32 %v441_v18, %v998_v14 }
 0x119   : > { %v607_v43 = vadd.f32 %v606_v39, %v551_v42 }
 0x11b   : > { %v629_v45 = vmax.f32 %v607_v43, 0.0 }
 0x11c   : > { %v497_v46 = vpop.f32.mrf.mxu2  ;;  %v609_v47 = vpop.f32.mrf.mxu0 }
 0x11d   : > { %642 = vst.msk [vmem:[%s1014_s22 + $0x40] sm:$0xff] %vm301_vm0, %v629_v45  ;;  %v498_v48 = vadd.f32 %v497_v46, %v442_v44 }
 0x11e   : > { %v444_v10 = vpop.f32.mrf.mxu1  ;;  %v553_v49 = vpop.f32.mrf.mxu3 }
 0x11f   : > { %v554_v50 = vadd.f32 %v553_v49, %v498_v48  ;;  %v445_v52 = vadd.f32 %v444_v10, %v1002_v17 }
 0x121   : > { %v610_v51 = vadd.f32 %v609_v47, %v554_v50 }
 0x123   : > { %v630_v53 = vmax.f32 %v610_v51, 0.0 }
 0x124   : > { %v500_v54 = vpop.f32.mrf.mxu2  ;;  %v612_v55 = vpop.f32.mrf.mxu0 }
 0x125   : > { %643 = vst.msk [vmem:[%s1014_s22 + $0x48] sm:$0xff] %vm301_vm0, %v630_v53  ;;  %v501_v56 = vadd.f32 %v500_v54, %v445_v52 }
 0x126   : > { %v447_v14 = vpop.f32.mrf.mxu1  ;;  %v556_v57 = vpop.f32.mrf.mxu3 }
 0x127   : > { %v557_v58 = vadd.f32 %v556_v57, %v501_v56  ;;  %v448_v60 = vadd.f32 %v447_v14, %v1006_v19 }
 0x129   : > { %v613_v59 = vadd.f32 %v612_v55, %v557_v58 }
 0x12b   : > { %v631_v61 = vmax.f32 %v613_v59, 0.0 }
 0x12c   : > { %v503_v62 = vpop.f32.mrf.mxu2  ;;  %v615_v63 = vpop.f32.mrf.mxu0 }
 0x12d   : > { %644 = vst.msk [vmem:[%s1014_s22 + $0x50] sm:$0xff] %vm301_vm0, %v631_v61  ;;  %v504_v0 = vadd.f32 %v503_v62, %v448_v60 }
 0x12e   : > { %v559_v17 = vpop.f32.mrf.mxu3  ;;  %v450_v2 = vpop.f32.mrf.mxu1 }
 0x12f   : > { %v560_v1 = vadd.f32 %v559_v17, %v504_v0  ;;  %v451_v5 = vadd.f32 %v450_v2, %v1008_v21 }
 0x131   : > { %v616_v3 = vadd.f32 %v615_v63, %v560_v1 }
 0x133   : > { %v632_v6 = vmax.f32 %v616_v3, 0.0 }
 0x134   : > { %v506_v7 = vpop.f32.mrf.mxu2  ;;  %v618_v19 = vpop.f32.mrf.mxu0 }
 0x135   : > { %645 = vst.msk [vmem:[%s1014_s22 + $0x58] sm:$0xff] %vm301_vm0, %v632_v6  ;;  %v507_v8 = vadd.f32 %v506_v7, %v451_v5 }
 0x136   : > { %v562_v4 = vpop.f32.mrf.mxu3 }
 0x137   : > { %v563_v9 = vadd.f32 %v562_v4, %v507_v8 }
 0x139   : > { %v619_v12 = vadd.f32 %v618_v19, %v563_v9 }
 0x13b   : > { %v633_v13 = vmax.f32 %v619_v12, 0.0 }
 0x13d   : > { %647 = vst.msk [vmem:[%s1014_s22 + $0x60] sm:$0x3] %vm646_vm1, %v633_v13 }
 0x13e PF: > { %s12_s9 = sadd.s32 1, %s803_s9  }
 0x13f   : > { %p9_p4 = scmp.ge.s32.totalorder %s12_s9, 7  }
 0x141   :  { %11 = sbr.rel (!%p9_p4) target bundleno = 1 (0x1), region = 61 }

// kernel: _lambda_.7
= control target key start
LH: loop header
LB: loop body
LE: loop exit
PB: predicated region body
PF: predicated region fallthrough
CT: control target
= control target key end

     0   :  { %10 = vsyncpa [#allocation3], 0  ;;  %s4344_s18 = smov 0   ;;  %s6260_s0 = inlined_call_operand.vmem [shape: f32[5,2,3136], index: 0, kind: input, shape index: {}]   ;;  %s6261_s1 = inlined_call_operand.vmem [shape: f32[5,3136,512], index: 1, kind: input, shape index: {}]   ;;  %s6262_s2 = inlined_call_operand.vmem [shape: f32[5,1,512], index: 2, kind: input, shape index: {}]   ;;  %s6263_s3 = inlined_call_operand.vmem [shape: f32[5,512,4], index: 3, kind: input, shape index: {}]   ;;  %s6264_s4 = inlined_call_operand.vmem [shape: f32[5,1,4], index: 4, kind: input, shape index: {}]   ;;  %s6265_s5 = inlined_call_operand.hbm [shape: f32[2,4], index: 5, kind: output, shape index: {}]  }
   0x1 LB: > { %s4350_s19 = sadd.s32 4294967295, %s4310_s18   ;;  %p4217_p0 = scmp.ge.s32.totalorder %s4310_s18, 1  ;;  %s4310_s18 = sphi %s4344_s18, %s16_s18  }
   0x2   : > { %p220_p1 = scmp.lt.s32.totalorder %s4310_s18, 6 }
   0x4   : > { %p221_p2 = pnand %p4217_p0, %p220_p1 }
   0x5   : > { %p260_p3 = scmp.lt.s32.totalorder (!%p221_p2), %s4350_s19, 4  ;;  %p4227_p4 = scmp.ne.s32.totalorder (!%p221_p2), %s4350_s19, 0 }
   0x6   : > { %224 = sbr.rel (%p221_p2) target bundleno = 2038 (0x7f6), region = 40 }
   0xb   : > { %s4356_s20 = scalar_select %p260_p3, %s4350_s19, 4  ;;  %vm1931_vm0 = vcmask 523264   ;;  %vm4087_vm1 = vcmask 25600  }
   0xd   : > { %s4234_s21 = smul.u32 12544, %s4356_s20  ;;  %s4220_s29 = sshll.u32 %s4356_s20, 2 }
   0xe   : > { %s4233_s25 = smul.u32 50, %s4356_s20  ;;  %s4801_s7 = scalar_lea.vmem %s6262_s2, %s4220_s29 }
   0xf   : > { %s4362_s24 = scalar_lea.vmem %s6261_s1, %s4234_s21  ;;  %s4232_s8 = sshll.u32 %s4356_s20, 9 }
  0x10   : > { %v349_v0 = vld [vmem:[%s4362_s24 + $0x1e0] sm:$0xff]  ;;  %s4452_s28 = scalar_lea.vmem %s6260_s0, %s4233_s25  ;;  %s6153_s11 = scalar_lea.vmem %s6263_s3, %s4232_s8 }
  0x11   : > { %v413_v1 = vld [vmem:[%s4362_s24 + $0x3e0] sm:$0xff]  ;;  %1934 = vmatpush.msra.mxu0 %v349_v0  ;;  %s281_s14 = scalar_lea.vmem %s6264_s4, %s4356_s20 }
  0x12   : > { %v477_v2 = vld [vmem:[%s4362_s24 + $0x5e0] sm:$0xff]  ;;  %1954 = vmatpush.msra.mxu1 %v413_v1 }
  0x13   : > { %v541_v3 = vld [vmem:[%s4362_s24 + $0x7e0] sm:$0xff]  ;;  %1974 = vmatpush.msra.mxu2 %v477_v2 }
  0x14   : > { %v345_v4 = vld [vmem:[%s4362_s24 + $0x1c0] sm:$0xff]  ;;  %1994 = vmatpush.msra.mxu3 %v541_v3 }
  0x15   : > { %v409_v5 = vld [vmem:[%s4362_s24 + $0x3c0] sm:$0xff]  ;;  %1935 = vmatpush.msra.mxu0 %v345_v4 }
  0x16   : > { %v473_v6 = vld [vmem:[%s4362_s24 + $0x5c0] sm:$0xff]  ;;  %1955 = vmatpush.msra.mxu1 %v409_v5 }
  0x17   : > { %v537_v7 = vld [vmem:[%s4362_s24 + $0x7c0] sm:$0xff]  ;;  %1975 = vmatpush.msra.mxu2 %v473_v6 }
  0x18   : > { %v341_v8 = vld [vmem:[%s4362_s24 + $0x1a0] sm:$0xff]  ;;  %1995 = vmatpush.msra.mxu3 %v537_v7 }
  0x19   : > { %v405_v9 = vld [vmem:[%s4362_s24 + $0x3a0] sm:$0xff]  ;;  %1936 = vmatpush.msra.mxu0 %v341_v8 }
  0x1a   : > { %v469_v10 = vld [vmem:[%s4362_s24 + $0x5a0] sm:$0xff]  ;;  %1956 = vmatpush.msra.mxu1 %v405_v9 }
  0x1b   : > { %v533_v11 = vld [vmem:[%s4362_s24 + $0x7a0] sm:$0xff]  ;;  %1976 = vmatpush.msra.mxu2 %v469_v10 }
  0x1c   : > { %v337_v12 = vld [vmem:[%s4362_s24 + $0x180] sm:$0xff]  ;;  %1996 = vmatpush.msra.mxu3 %v533_v11 }
  0x1d   : > { %v401_v13 = vld [vmem:[%s4362_s24 + $0x380] sm:$0xff]  ;;  %1937 = vmatpush.msra.mxu0 %v337_v12 }
  0x1e   : > { %v465_v14 = vld [vmem:[%s4362_s24 + $0x580] sm:$0xff]  ;;  %1957 = vmatpush.msra.mxu1 %v401_v13 }
  0x1f   : > { %v529_v15 = vld [vmem:[%s4362_s24 + $0x780] sm:$0xff]  ;;  %1977 = vmatpush.msra.mxu2 %v465_v14 }
  0x20   : > { %v333_v16 = vld [vmem:[%s4362_s24 + $0x160] sm:$0xff]  ;;  %1997 = vmatpush.msra.mxu3 %v529_v15 }
  0x21   : > { %v397_v17 = vld [vmem:[%s4362_s24 + $0x360] sm:$0xff]  ;;  %1938 = vmatpush.msra.mxu0 %v333_v16 }
  0x22   : > { %v461_v18 = vld [vmem:[%s4362_s24 + $0x560] sm:$0xff]  ;;  %1958 = vmatpush.msra.mxu1 %v397_v17 }
  0x23   : > { %v525_v19 = vld [vmem:[%s4362_s24 + $0x760] sm:$0xff]  ;;  %1978 = vmatpush.msra.mxu2 %v461_v18 }
  0x24   : > { %v329_v20 = vld [vmem:[%s4362_s24 + $0x140] sm:$0xff]  ;;  %1998 = vmatpush.msra.mxu3 %v525_v19 }
  0x25   : > { %v393_v21 = vld [vmem:[%s4362_s24 + $0x340] sm:$0xff]  ;;  %1939 = vmatpush.msra.mxu0 %v329_v20 }
  0x26   : > { %v457_v22 = vld [vmem:[%s4362_s24 + $0x540] sm:$0xff]  ;;  %1959 = vmatpush.msra.mxu1 %v393_v21 }
  0x27   : > { %v521_v23 = vld [vmem:[%s4362_s24 + $0x740] sm:$0xff]  ;;  %1979 = vmatpush.msra.mxu2 %v457_v22 }
  0x28   : > { %v325_v24 = vld [vmem:[%s4362_s24 + $0x120] sm:$0xff]  ;;  %1999 = vmatpush.msra.mxu3 %v521_v23 }
  0x29   : > { %v389_v25 = vld [vmem:[%s4362_s24 + $0x320] sm:$0xff]  ;;  %1940 = vmatpush.msra.mxu0 %v325_v24 }
  0x2a   : > { %v453_v26 = vld [vmem:[%s4362_s24 + $0x520] sm:$0xff]  ;;  %1960 = vmatpush.msra.mxu1 %v389_v25 }
  0x2b   : > { %v517_v27 = vld [vmem:[%s4362_s24 + $0x720] sm:$0xff]  ;;  %1980 = vmatpush.msra.mxu2 %v453_v26 }
  0x2c   : > { %v321_v28 = vld [vmem:[%s4362_s24 + $0x100] sm:$0xff]  ;;  %2000 = vmatpush.msra.mxu3 %v517_v27 }
  0x2d   : > { %v385_v29 = vld [vmem:[%s4362_s24 + $0x300] sm:$0xff]  ;;  %1941 = vmatpush.msra.mxu0 %v321_v28 }
  0x2e   : > { %v449_v30 = vld [vmem:[%s4362_s24 + $0x500] sm:$0xff]  ;;  %1961 = vmatpush.msra.mxu1 %v385_v29 }
  0x2f   : > { %v513_v31 = vld [vmem:[%s4362_s24 + $0x700] sm:$0xff]  ;;  %1981 = vmatpush.msra.mxu2 %v449_v30 }
  0x30   : > { %v317_v32 = vld [vmem:[%s4362_s24 + $0xe0] sm:$0xff]  ;;  %2001 = vmatpush.msra.mxu3 %v513_v31 }
  0x31   : > { %v381_v33 = vld [vmem:[%s4362_s24 + $0x2e0] sm:$0xff]  ;;  %1942 = vmatpush.msra.mxu0 %v317_v32 }
  0x32   : > { %v445_v34 = vld [vmem:[%s4362_s24 + $0x4e0] sm:$0xff]  ;;  %1962 = vmatpush.msra.mxu1 %v381_v33 }
  0x33   : > { %v509_v35 = vld [vmem:[%s4362_s24 + $0x6e0] sm:$0xff]  ;;  %1982 = vmatpush.msra.mxu2 %v445_v34 }
  0x34   : > { %v313_v36 = vld [vmem:[%s4362_s24 + $0xc0] sm:$0xff]  ;;  %2002 = vmatpush.msra.mxu3 %v509_v35 }
  0x35   : > { %v377_v37 = vld [vmem:[%s4362_s24 + $0x2c0] sm:$0xff]  ;;  %1943 = vmatpush.msra.mxu0 %v313_v36 }
  0x36   : > { %v441_v38 = vld [vmem:[%s4362_s24 + $0x4c0] sm:$0xff]  ;;  %1963 = vmatpush.msra.mxu1 %v377_v37 }
  0x37   : > { %v505_v39 = vld [vmem:[%s4362_s24 + $0x6c0] sm:$0xff]  ;;  %1983 = vmatpush.msra.mxu2 %v441_v38 }
  0x38   : > { %v309_v40 = vld [vmem:[%s4362_s24 + $0xa0] sm:$0xff]  ;;  %2003 = vmatpush.msra.mxu3 %v505_v39 }
  0x39   : > { %v373_v41 = vld [vmem:[%s4362_s24 + $0x2a0] sm:$0xff]  ;;  %1944 = vmatpush.msra.mxu0 %v309_v40 }
  0x3a   : > { %v437_v42 = vld [vmem:[%s4362_s24 + $0x4a0] sm:$0xff]  ;;  %1964 = vmatpush.msra.mxu1 %v373_v41 }
  0x3b   : > { %v501_v43 = vld [vmem:[%s4362_s24 + $0x6a0] sm:$0xff]  ;;  %1984 = vmatpush.msra.mxu2 %v437_v42 }
  0x3c   : > { %v305_v44 = vld [vmem:[%s4362_s24 + $0x80] sm:$0xff]  ;;  %2004 = vmatpush.msra.mxu3 %v501_v43 }
  0x3d   : > { %v369_v45 = vld [vmem:[%s4362_s24 + $0x280] sm:$0xff]  ;;  %1945 = vmatpush.msra.mxu0 %v305_v44 }
  0x3e   : > { %v433_v46 = vld [vmem:[%s4362_s24 + $0x480] sm:$0xff]  ;;  %1965 = vmatpush.msra.mxu1 %v369_v45  ;;  %v284_v45 = vld [vmem:[%s4452_s28 + $0x10] sm:$0xff] }
  0x3f   : > { %v497_v47 = vld [vmem:[%s4362_s24 + $0x680] sm:$0xff]  ;;  %1985 = vmatpush.msra.mxu2 %v433_v46  ;;  %v283_v46 = vld [vmem:[%s4452_s28 + $0x8] sm:$0xff] }
  0x40   : > { %v301_v48 = vld [vmem:[%s4362_s24 + $0x60] sm:$0xff]  ;;  %2005 = vmatpush.msra.mxu3 %v497_v47  ;;  %1876 = vst [vmem:[#allocation1 + $0x20] ss:$4 sm:$0xff] %v283_v46 }
  0x41   : > { %v365_v49 = vld [vmem:[%s4362_s24 + $0x260] sm:$0xff]  ;;  %1946 = vmatpush.msra.mxu0 %v301_v48 }
  0x42   : > { %v429_v50 = vld [vmem:[%s4362_s24 + $0x460] sm:$0xff]  ;;  %1966 = vmatpush.msra.mxu1 %v365_v49 }
  0x43   : > { %v493_v51 = vld [vmem:[%s4362_s24 + $0x660] sm:$0xff]  ;;  %1986 = vmatpush.msra.mxu2 %v429_v50 }
  0x44   : > { %v297_v52 = vld [vmem:[%s4362_s24 + $0x40] sm:$0xff]  ;;  %2006 = vmatpush.msra.mxu3 %v493_v51 }
  0x45   : > { %v361_v53 = vld [vmem:[%s4362_s24 + $0x240] sm:$0xff]  ;;  %1947 = vmatpush.msra.mxu0 %v297_v52 }
  0x46   : > { %v425_v54 = vld [vmem:[%s4362_s24 + $0x440] sm:$0xff]  ;;  %1967 = vmatpush.msra.mxu1 %v361_v53 }
  0x47   : > { %v489_v55 = vld [vmem:[%s4362_s24 + $0x640] sm:$0xff]  ;;  %1987 = vmatpush.msra.mxu2 %v425_v54 }
  0x48   : > { %v293_v56 = vld [vmem:[%s4362_s24 + $0x20] sm:$0xff]  ;;  %2007 = vmatpush.msra.mxu3 %v489_v55 }
  0x49   : > { %v357_v57 = vld [vmem:[%s4362_s24 + $0x220] sm:$0xff]  ;;  %1948 = vmatpush.msra.mxu0 %v293_v56 }
  0x4a   : > { %v421_v58 = vld [vmem:[%s4362_s24 + $0x420] sm:$0xff]  ;;  %1968 = vmatpush.msra.mxu1 %v357_v57 }
  0x4b   : > { %v485_v59 = vld [vmem:[%s4362_s24 + $0x620] sm:$0xff]  ;;  %1988 = vmatpush.msra.mxu2 %v421_v58 }
  0x4c   : > { %v289_v60 = vld [vmem:[%s4362_s24] sm:$0xff]  ;;  %2008 = vmatpush.msra.mxu3 %v485_v59 }
  0x4d   : > { %v353_v61 = vld [vmem:[%s4362_s24 + $0x200] sm:$0xff]  ;;  %1949 = vmatpush.msra.mxu0 %v289_v60 }
  0x4e   : > { %v417_v62 = vld [vmem:[%s4362_s24 + $0x400] sm:$0xff]  ;;  %1969 = vmatpush.msra.mxu1 %v353_v61 }
  0x4f   : > { %v481_v63 = vld [vmem:[%s4362_s24 + $0x600] sm:$0xff]  ;;  %1989 = vmatpush.msra.mxu2 %v417_v62 }
  0x50   : > { %v605_v0 = vld [vmem:[%s4362_s24 + $0x9e0] sm:$0xff]  ;;  %2009 = vmatpush.msra.mxu3 %v481_v63 }
  0x51   : > { %v669_v1 = vld [vmem:[%s4362_s24 + $0xbe0] sm:$0xff]  ;;  %2014 = vmatpush.msrb.mxu0 %v605_v0 }
  0x52   : > { %v733_v2 = vld [vmem:[%s4362_s24 + $0xde0] sm:$0xff]  ;;  %2034 = vmatpush.msrb.mxu1 %v669_v1 }
  0x53   : > { %v797_v3 = vld [vmem:[%s4362_s24 + $0xfe0] sm:$0xff]  ;;  %2054 = vmatpush.msrb.mxu2 %v733_v2 }
  0x54   : > { %v601_v4 = vld [vmem:[%s4362_s24 + $0x9c0] sm:$0xff]  ;;  %2074 = vmatpush.msrb.mxu3 %v797_v3 }
  0x55   : > { %v665_v5 = vld [vmem:[%s4362_s24 + $0xbc0] sm:$0xff]  ;;  %2015 = vmatpush.msrb.mxu0 %v601_v4 }
  0x56   : > { %v729_v6 = vld [vmem:[%s4362_s24 + $0xdc0] sm:$0xff]  ;;  %2035 = vmatpush.msrb.mxu1 %v665_v5 }
  0x57   : > { %v793_v7 = vld [vmem:[%s4362_s24 + $0xfc0] sm:$0xff]  ;;  %2055 = vmatpush.msrb.mxu2 %v729_v6 }
  0x58   : > { %v597_v8 = vld [vmem:[%s4362_s24 + $0x9a0] sm:$0xff]  ;;  %2075 = vmatpush.msrb.mxu3 %v793_v7  ;;  %v285_v7 = vld [vmem:[%s4452_s28 + $0x18] sm:$0xff] }
  0x59   : > { %v661_v9 = vld [vmem:[%s4362_s24 + $0xba0] sm:$0xff]  ;;  %2016 = vmatpush.msrb.mxu0 %v597_v8  ;;  %v4510_v8 = vld.sshfl [vmem:[#allocation1 + $0x30] sm:$0xff pattern:$0x73625140] }
  0x5a   : > { %v725_v10 = vld [vmem:[%s4362_s24 + $0xda0] sm:$0xff]  ;;  %2036 = vmatpush.msrb.mxu1 %v661_v9 }
  0x5b   : > { %v789_v11 = vld [vmem:[%s4362_s24 + $0xfa0] sm:$0xff]  ;;  %2056 = vmatpush.msrb.mxu2 %v725_v10  ;;  %v4514_v10 = vld.sshfl [vmem:[#allocation1 + $0x38] sm:$0xff pattern:$0x73625140] }
  0x5c   : > { %v593_v12 = vld [vmem:[%s4362_s24 + $0x980] sm:$0xff]  ;;  %2076 = vmatpush.msrb.mxu3 %v789_v11  ;;  %v4516_v11 = vld.sshfl [vmem:[#allocation1 + $0x28] sm:$0xff pattern:$0x73625140] }
  0x5d   : > { %v657_v13 = vld [vmem:[%s4362_s24 + $0xb80] sm:$0xff]  ;;  %2017 = vmatpush.msrb.mxu0 %v593_v12 }
  0x5e   : > { %v721_v14 = vld [vmem:[%s4362_s24 + $0xd80] sm:$0xff]  ;;  %2037 = vmatpush.msrb.mxu1 %v657_v13 }
  0x5f   : > { %v785_v15 = vld [vmem:[%s4362_s24 + $0xf80] sm:$0xff]  ;;  %2057 = vmatpush.msrb.mxu2 %v721_v14 }
  0x60   : > { %v589_v16 = vld [vmem:[%s4362_s24 + $0x960] sm:$0xff]  ;;  %2077 = vmatpush.msrb.mxu3 %v785_v15 }
  0x61   : > { %v653_v17 = vld [vmem:[%s4362_s24 + $0xb60] sm:$0xff]  ;;  %2018 = vmatpush.msrb.mxu0 %v589_v16 }
  0x62   : > { %v717_v18 = vld [vmem:[%s4362_s24 + $0xd60] sm:$0xff]  ;;  %2038 = vmatpush.msrb.mxu1 %v653_v17 }
  0x63   : > { %v781_v19 = vld [vmem:[%s4362_s24 + $0xf60] sm:$0xff]  ;;  %2058 = vmatpush.msrb.mxu2 %v717_v18 }
  0x64   : > { %v585_v20 = vld [vmem:[%s4362_s24 + $0x940] sm:$0xff]  ;;  %2078 = vmatpush.msrb.mxu3 %v781_v19 }
  0x65   : > { %v649_v21 = vld [vmem:[%s4362_s24 + $0xb40] sm:$0xff]  ;;  %2019 = vmatpush.msrb.mxu0 %v585_v20 }
  0x66   : > { %v713_v22 = vld [vmem:[%s4362_s24 + $0xd40] sm:$0xff]  ;;  %2039 = vmatpush.msrb.mxu1 %v649_v21 }
  0x67   : > { %v777_v23 = vld [vmem:[%s4362_s24 + $0xf40] sm:$0xff]  ;;  %2059 = vmatpush.msrb.mxu2 %v713_v22 }
  0x68   : > { %v581_v24 = vld [vmem:[%s4362_s24 + $0x920] sm:$0xff]  ;;  %2079 = vmatpush.msrb.mxu3 %v777_v23 }
  0x69   : > { %v645_v25 = vld [vmem:[%s4362_s24 + $0xb20] sm:$0xff]  ;;  %2020 = vmatpush.msrb.mxu0 %v581_v24 }
  0x6a   : > { %v282_v26 = vld [vmem:[%s4452_s28] sm:$0xff]  ;;  %2040 = vmatpush.msrb.mxu1 %v645_v25 }
  0x6b   : > { %v709_v27 = vld [vmem:[%s4362_s24 + $0xd20] sm:$0xff]  ;;  %1874 = vst [vmem:[#allocation1] ss:$4 sm:$0xff] %v282_v26 }
  0x6c   : > { %v773_v28 = vld [vmem:[%s4362_s24 + $0xf20] sm:$0xff]  ;;  %2060 = vmatpush.msrb.mxu2 %v709_v27 }
  0x6d   : > { %v577_v29 = vld [vmem:[%s4362_s24 + $0x900] sm:$0xff]  ;;  %2080 = vmatpush.msrb.mxu3 %v773_v28 }
  0x6e   : > { %v641_v30 = vld [vmem:[%s4362_s24 + $0xb00] sm:$0xff]  ;;  %2021 = vmatpush.msrb.mxu0 %v577_v29 }
  0x6f   : > { %v705_v31 = vld [vmem:[%s4362_s24 + $0xd00] sm:$0xff]  ;;  %2041 = vmatpush.msrb.mxu1 %v641_v30 }
  0x70   : > { %v769_v32 = vld [vmem:[%s4362_s24 + $0xf00] sm:$0xff]  ;;  %2061 = vmatpush.msrb.mxu2 %v705_v31 }
  0x71   : > { %v573_v33 = vld [vmem:[%s4362_s24 + $0x8e0] sm:$0xff]  ;;  %2081 = vmatpush.msrb.mxu3 %v769_v32 }
  0x72   : > { %v637_v34 = vld [vmem:[%s4362_s24 + $0xae0] sm:$0xff]  ;;  %2022 = vmatpush.msrb.mxu0 %v573_v33  ;;  %v4483_v48 = vld.sshfl [vmem:[#allocation1 + $0x8] sm:$0xff pattern:$0x73625140] }
  0x73   : > { %v701_v35 = vld [vmem:[%s4362_s24 + $0xce0] sm:$0xff]  ;;  %2042 = vmatpush.msrb.mxu1 %v637_v34  ;;  %v4485_v49 = vld.sshfl [vmem:[#allocation1 + $0x10] sm:$0xff pattern:$0x73625140] }
  0x74   : > { %v765_v36 = vld [vmem:[%s4362_s24 + $0xee0] sm:$0xff]  ;;  %2062 = vmatpush.msrb.mxu2 %v701_v35  ;;  %v4487_v50 = vld.sshfl [vmem:[#allocation1 + $0x18] sm:$0xff pattern:$0x73625140]  ;;  %1970 = vmatmul.f32.vlgmr.msra.gmra.mxu1 %v4483_v48 }
  0x75   : > { %v569_v37 = vld [vmem:[%s4362_s24 + $0x8c0] sm:$0xff]  ;;  %2082 = vmatpush.msrb.mxu3 %v765_v36  ;;  %1990 = vmatmul.f32.vlgmr.msra.gmra.mxu2 %v4485_v49 }
  0x76   : > { %v633_v38 = vld [vmem:[%s4362_s24 + $0xac0] sm:$0xff]  ;;  %2023 = vmatpush.msrb.mxu0 %v569_v37  ;;  %2010 = vmatmul.f32.vlgmr.msra.gmra.mxu3 %v4487_v50 }
  0x77   : > { %v697_v39 = vld [vmem:[%s4362_s24 + $0xcc0] sm:$0xff]  ;;  %2043 = vmatpush.msrb.mxu1 %v633_v38 }
  0x78   : > { %v761_v40 = vld [vmem:[%s4362_s24 + $0xec0] sm:$0xff]  ;;  %2063 = vmatpush.msrb.mxu2 %v697_v39 }
  0x79   : > { %v565_v41 = vld [vmem:[%s4362_s24 + $0x8a0] sm:$0xff]  ;;  %2083 = vmatpush.msrb.mxu3 %v761_v40 }
  0x7a   : > { %v629_v42 = vld [vmem:[%s4362_s24 + $0xaa0] sm:$0xff]  ;;  %2024 = vmatpush.msrb.mxu0 %v565_v41 }
  0x7b   : > { %v693_v43 = vld [vmem:[%s4362_s24 + $0xca0] sm:$0xff]  ;;  %2044 = vmatpush.msrb.mxu1 %v629_v42 }
  0x7c   : > { %v757_v44 = vld [vmem:[%s4362_s24 + $0xea0] sm:$0xff]  ;;  %2064 = vmatpush.msrb.mxu2 %v693_v43 }
  0x7d   : > { %v4481_v47 = vld.sshfl [vmem:[#allocation1] sm:$0xff pattern:$0x73625140]  ;;  %2084 = vmatpush.msrb.mxu3 %v757_v44 }
  0x7e   : > { %v561_v51 = vld [vmem:[%s4362_s24 + $0x880] sm:$0xff]  ;;  %1885 = vst [vmem:[#allocation1] ss:$4 sm:$0xff] %v284_v45  ;;  %1950 = vmatmul.f32.vlgmr.msra.gmra.mxu0 %v4481_v47 }
  0x7f   : > { %v625_v52 = vld [vmem:[%s4362_s24 + $0xa80] sm:$0xff]  ;;  %2025 = vmatpush.msrb.mxu0 %v561_v51 }
  0x80   : > { %v689_v53 = vld [vmem:[%s4362_s24 + $0xc80] sm:$0xff]  ;;  %2045 = vmatpush.msrb.mxu1 %v625_v52 }
  0x81   : > { %v753_v54 = vld [vmem:[%s4362_s24 + $0xe80] sm:$0xff]  ;;  %2065 = vmatpush.msrb.mxu2 %v689_v53 }
  0x82   : > { %v557_v55 = vld [vmem:[%s4362_s24 + $0x860] sm:$0xff]  ;;  %2085 = vmatpush.msrb.mxu3 %v753_v54 }
  0x83   : > { %v621_v56 = vld [vmem:[%s4362_s24 + $0xa60] sm:$0xff]  ;;  %2026 = vmatpush.msrb.mxu0 %v557_v55 }
  0x84   : > { %v685_v57 = vld [vmem:[%s4362_s24 + $0xc60] sm:$0xff]  ;;  %2046 = vmatpush.msrb.mxu1 %v621_v56 }
  0x85   : > { %v749_v58 = vld [vmem:[%s4362_s24 + $0xe60] sm:$0xff]  ;;  %2066 = vmatpush.msrb.mxu2 %v685_v57  ;;  %v4540_v29 = vld.sshfl [vmem:[#allocation1 + $0x10] sm:$0xff pattern:$0x73625140] }
  0x86   : > { %v553_v59 = vld [vmem:[%s4362_s24 + $0x840] sm:$0xff]  ;;  %2086 = vmatpush.msrb.mxu3 %v749_v58  ;;  %v4542_v30 = vld.sshfl [vmem:[#allocation1 + $0x8] sm:$0xff pattern:$0x73625140] }
  0x87   : > { %v617_v60 = vld [vmem:[%s4362_s24 + $0xa40] sm:$0xff]  ;;  %2027 = vmatpush.msrb.mxu0 %v553_v59  ;;  %v4546_v33 = vld.sshfl [vmem:[#allocation1 + $0x18] sm:$0xff pattern:$0x73625140] }
  0x88   : > { %v681_v61 = vld [vmem:[%s4362_s24 + $0xc40] sm:$0xff]  ;;  %2047 = vmatpush.msrb.mxu1 %v617_v60 }
  0x89   : > { %v745_v62 = vld [vmem:[%s4362_s24 + $0xe40] sm:$0xff]  ;;  %2067 = vmatpush.msrb.mxu2 %v681_v61 }
  0x8a   : > { %v549_v63 = vld [vmem:[%s4362_s24 + $0x820] sm:$0xff]  ;;  %2087 = vmatpush.msrb.mxu3 %v745_v62 }
  0x8b   : > { %v613_v0 = vld [vmem:[%s4362_s24 + $0xa20] sm:$0xff]  ;;  %2028 = vmatpush.msrb.mxu0 %v549_v63 }
  0x8c   : > { %v677_v1 = vld [vmem:[%s4362_s24 + $0xc20] sm:$0xff]  ;;  %2048 = vmatpush.msrb.mxu1 %v613_v0 }
  0x8d   : > { %v741_v2 = vld [vmem:[%s4362_s24 + $0xe20] sm:$0xff]  ;;  %2068 = vmatpush.msrb.mxu2 %v677_v1 }
  0x8e   : > { %v545_v3 = vld [vmem:[%s4362_s24 + $0x800] sm:$0xff]  ;;  %2088 = vmatpush.msrb.mxu3 %v741_v2 }
  0x8f   : > { %v609_v4 = vld [vmem:[%s4362_s24 + $0xa00] sm:$0xff]  ;;  %2029 = vmatpush.msrb.mxu0 %v545_v3 }
  0x90   : > { %v673_v5 = vld [vmem:[%s4362_s24 + $0xc00] sm:$0xff]  ;;  %2049 = vmatpush.msrb.mxu1 %v609_v4 }
  0x91   : > { %v737_v6 = vld [vmem:[%s4362_s24 + $0xe00] sm:$0xff]  ;;  %2069 = vmatpush.msrb.mxu2 %v673_v5  ;;  %2050 = vmatmul.f32.vlgmr.msrb.gmra.mxu1 %v4516_v11 }
  0x92   : > { %v4512_v9 = vld.sshfl [vmem:[#allocation1 + $0x20] sm:$0xff pattern:$0x73625140]  ;;  %2089 = vmatpush.msrb.mxu3 %v737_v6  ;;  %2070 = vmatmul.f32.vlgmr.msrb.gmra.mxu2 %v4510_v8 }
  0x93   : > { %1886 = vst [vmem:[#allocation1 + $0x20] ss:$4 sm:$0xff] %v285_v7  ;;  %v861_v12 = vld [vmem:[%s4362_s24 + $0x11e0] sm:$0xff]  ;;  %2030 = vmatmul.f32.vlgmr.msrb.gmra.mxu0 %v4512_v9  ;;  %2090 = vmatmul.f32.vlgmr.msrb.gmra.mxu3 %v4514_v10 }
  0x94   : > { %v925_v13 = vld [vmem:[%s4362_s24 + $0x13e0] sm:$0xff]  ;;  %2094 = vmatpush.msra.mxu0 %v861_v12 }
  0x95   : > { %v989_v14 = vld [vmem:[%s4362_s24 + $0x15e0] sm:$0xff]  ;;  %2114 = vmatpush.msra.mxu1 %v925_v13 }
  0x96   : > { %v1053_v15 = vld [vmem:[%s4362_s24 + $0x17e0] sm:$0xff]  ;;  %2134 = vmatpush.msra.mxu2 %v989_v14 }
  0x97   : > { %v857_v16 = vld [vmem:[%s4362_s24 + $0x11c0] sm:$0xff]  ;;  %2154 = vmatpush.msra.mxu3 %v1053_v15 }
  0x98   : > { %v921_v17 = vld [vmem:[%s4362_s24 + $0x13c0] sm:$0xff]  ;;  %2095 = vmatpush.msra.mxu0 %v857_v16 }
  0x99   : > { %v985_v18 = vld [vmem:[%s4362_s24 + $0x15c0] sm:$0xff]  ;;  %2115 = vmatpush.msra.mxu1 %v921_v17 }
  0x9a   : > { %v1049_v19 = vld [vmem:[%s4362_s24 + $0x17c0] sm:$0xff]  ;;  %2135 = vmatpush.msra.mxu2 %v985_v18 }
  0x9b   : > { %v853_v20 = vld [vmem:[%s4362_s24 + $0x11a0] sm:$0xff]  ;;  %2155 = vmatpush.msra.mxu3 %v1049_v19 }
  0x9c   : > { %v917_v21 = vld [vmem:[%s4362_s24 + $0x13a0] sm:$0xff]  ;;  %2096 = vmatpush.msra.mxu0 %v853_v20 }
  0x9d   : > { %v981_v22 = vld [vmem:[%s4362_s24 + $0x15a0] sm:$0xff]  ;;  %2116 = vmatpush.msra.mxu1 %v917_v21 }
  0x9e   : > { %v1045_v23 = vld [vmem:[%s4362_s24 + $0x17a0] sm:$0xff]  ;;  %2136 = vmatpush.msra.mxu2 %v981_v22 }
  0x9f   : > { %v849_v24 = vld [vmem:[%s4362_s24 + $0x1180] sm:$0xff]  ;;  %2156 = vmatpush.msra.mxu3 %v1045_v23 }
  0xa0   : > { %v913_v25 = vld [vmem:[%s4362_s24 + $0x1380] sm:$0xff]  ;;  %2097 = vmatpush.msra.mxu0 %v849_v24 }
  0xa1   : > { %v977_v26 = vld [vmem:[%s4362_s24 + $0x1580] sm:$0xff]  ;;  %2117 = vmatpush.msra.mxu1 %v913_v25 }
  0xa2   : > { %v1041_v27 = vld [vmem:[%s4362_s24 + $0x1780] sm:$0xff]  ;;  %2137 = vmatpush.msra.mxu2 %v977_v26 }
  0xa3   : > { %v4538_v28 = vld.sshfl [vmem:[#allocation1] sm:$0xff pattern:$0x73625140]  ;;  %2157 = vmatpush.msra.mxu3 %v1041_v27 }
  0xa4   : > { %v845_v31 = vld [vmem:[%s4362_s24 + $0x1160] sm:$0xff] }
  0xa5   : > { %v286_v32 = vld [vmem:[%s4452_s28 + $0x20] sm:$0xff]  ;;  %2098 = vmatpush.msra.mxu0 %v845_v31 }
  0xa6   : > { %v909_v34 = vld [vmem:[%s4362_s24 + $0x1360] sm:$0xff]  ;;  %1895 = vst [vmem:[#allocation1] ss:$4 sm:$0xff] %v286_v32 }
  0xa7   : > { %v973_v35 = vld [vmem:[%s4362_s24 + $0x1560] sm:$0xff]  ;;  %2118 = vmatpush.msra.mxu1 %v909_v34 }
  0xa8   : > { %v1037_v36 = vld [vmem:[%s4362_s24 + $0x1760] sm:$0xff]  ;;  %2138 = vmatpush.msra.mxu2 %v973_v35 }
  0xa9   : > { %v841_v37 = vld [vmem:[%s4362_s24 + $0x1140] sm:$0xff]  ;;  %2158 = vmatpush.msra.mxu3 %v1037_v36 }
  0xaa   : > { %v905_v38 = vld [vmem:[%s4362_s24 + $0x1340] sm:$0xff]  ;;  %2099 = vmatpush.msra.mxu0 %v841_v37 }
  0xab   : > { %v969_v39 = vld [vmem:[%s4362_s24 + $0x1540] sm:$0xff]  ;;  %2119 = vmatpush.msra.mxu1 %v905_v38 }
  0xac   : > { %v1033_v40 = vld [vmem:[%s4362_s24 + $0x1740] sm:$0xff]  ;;  %2139 = vmatpush.msra.mxu2 %v969_v39 }
  0xad   : > { %v837_v41 = vld [vmem:[%s4362_s24 + $0x1120] sm:$0xff]  ;;  %2159 = vmatpush.msra.mxu3 %v1033_v40 }
  0xae   : > { %v901_v42 = vld [vmem:[%s4362_s24 + $0x1320] sm:$0xff]  ;;  %2100 = vmatpush.msra.mxu0 %v837_v41 }
  0xaf   : > { %v965_v43 = vld [vmem:[%s4362_s24 + $0x1520] sm:$0xff]  ;;  %2120 = vmatpush.msra.mxu1 %v901_v42 }
  0xb0   : > { %v1029_v44 = vld [vmem:[%s4362_s24 + $0x1720] sm:$0xff]  ;;  %2140 = vmatpush.msra.mxu2 %v965_v43  ;;  %v4618_v43 = vld.sshfl [vmem:[#allocation1 + $0x30] sm:$0xff pattern:$0x73625140] }
  0xb1   : > { %v833_v45 = vld [vmem:[%s4362_s24 + $0x1100] sm:$0xff]  ;;  %2160 = vmatpush.msra.mxu3 %v1029_v44  ;;  %v4620_v44 = vld.sshfl [vmem:[#allocation1 + $0x28] sm:$0xff pattern:$0x73625140] }
  0xb2   : > { %v897_v46 = vld [vmem:[%s4362_s24 + $0x1300] sm:$0xff]  ;;  %2101 = vmatpush.msra.mxu0 %v833_v45 }
  0xb3   : > { %v961_v51 = vld [vmem:[%s4362_s24 + $0x1500] sm:$0xff]  ;;  %2121 = vmatpush.msra.mxu1 %v897_v46  ;;  %v287_v46 = vld [vmem:[%s4452_s28 + $0x28] sm:$0xff] }
  0xb4   : > { %v1025_v52 = vld [vmem:[%s4362_s24 + $0x1700] sm:$0xff]  ;;  %2141 = vmatpush.msra.mxu2 %v961_v51  ;;  %v4624_v51 = vld.sshfl [vmem:[#allocation1 + $0x38] sm:$0xff pattern:$0x73625140] }
  0xb5   : > { %v829_v53 = vld [vmem:[%s4362_s24 + $0x10e0] sm:$0xff]  ;;  %2161 = vmatpush.msra.mxu3 %v1025_v52 }
  0xb6   : > { %v893_v54 = vld [vmem:[%s4362_s24 + $0x12e0] sm:$0xff]  ;;  %2102 = vmatpush.msra.mxu0 %v829_v53 }
  0xb7   : > { %v957_v55 = vld [vmem:[%s4362_s24 + $0x14e0] sm:$0xff]  ;;  %2122 = vmatpush.msra.mxu1 %v893_v54 }
  0xb8   : > { %v1021_v56 = vld [vmem:[%s4362_s24 + $0x16e0] sm:$0xff]  ;;  %2142 = vmatpush.msra.mxu2 %v957_v55 }
  0xb9   : > { %v825_v57 = vld [vmem:[%s4362_s24 + $0x10c0] sm:$0xff]  ;;  %2162 = vmatpush.msra.mxu3 %v1021_v56 }
  0xba   : > { %v889_v58 = vld [vmem:[%s4362_s24 + $0x12c0] sm:$0xff]  ;;  %2103 = vmatpush.msra.mxu0 %v825_v57 }
  0xbb   : > { %v953_v59 = vld [vmem:[%s4362_s24 + $0x14c0] sm:$0xff]  ;;  %2123 = vmatpush.msra.mxu1 %v889_v58 }
  0xbc   : > { %v1017_v60 = vld [vmem:[%s4362_s24 + $0x16c0] sm:$0xff]  ;;  %2143 = vmatpush.msra.mxu2 %v953_v59 }
  0xbd   : > { %v821_v61 = vld [vmem:[%s4362_s24 + $0x10a0] sm:$0xff]  ;;  %2163 = vmatpush.msra.mxu3 %v1017_v60 }
  0xbe   : > { %v885_v62 = vld [vmem:[%s4362_s24 + $0x12a0] sm:$0xff]  ;;  %2104 = vmatpush.msra.mxu0 %v821_v61 }
  0xbf   : > { %v949_v63 = vld [vmem:[%s4362_s24 + $0x14a0] sm:$0xff]  ;;  %2124 = vmatpush.msra.mxu1 %v885_v62 }
  0xc0   : > { %v1013_v0 = vld [vmem:[%s4362_s24 + $0x16a0] sm:$0xff]  ;;  %2144 = vmatpush.msra.mxu2 %v949_v63 }
  0xc1   : > { %v817_v1 = vld [vmem:[%s4362_s24 + $0x1080] sm:$0xff]  ;;  %2164 = vmatpush.msra.mxu3 %v1013_v0 }
  0xc2   : > { %v881_v2 = vld [vmem:[%s4362_s24 + $0x1280] sm:$0xff]  ;;  %2105 = vmatpush.msra.mxu0 %v817_v1 }
  0xc3   : > { %v945_v3 = vld [vmem:[%s4362_s24 + $0x1480] sm:$0xff]  ;;  %2125 = vmatpush.msra.mxu1 %v881_v2 }
  0xc4   : > { %v1009_v4 = vld [vmem:[%s4362_s24 + $0x1680] sm:$0xff]  ;;  %2145 = vmatpush.msra.mxu2 %v945_v3 }
  0xc5   : > { %v813_v5 = vld [vmem:[%s4362_s24 + $0x1060] sm:$0xff]  ;;  %2165 = vmatpush.msra.mxu3 %v1009_v4 }
  0xc6   : > { %v877_v6 = vld [vmem:[%s4362_s24 + $0x1260] sm:$0xff]  ;;  %2106 = vmatpush.msra.mxu0 %v813_v5 }
  0xc7   : > { %v941_v7 = vld [vmem:[%s4362_s24 + $0x1460] sm:$0xff]  ;;  %2126 = vmatpush.msra.mxu1 %v877_v6 }
  0xc8   : > { %v1005_v12 = vld [vmem:[%s4362_s24 + $0x1660] sm:$0xff]  ;;  %2146 = vmatpush.msra.mxu2 %v941_v7 }
  0xc9   : > { %v809_v13 = vld [vmem:[%s4362_s24 + $0x1040] sm:$0xff]  ;;  %2166 = vmatpush.msra.mxu3 %v1005_v12 }
  0xca   : > { %v873_v14 = vld [vmem:[%s4362_s24 + $0x1240] sm:$0xff]  ;;  %2107 = vmatpush.msra.mxu0 %v809_v13 }
  0xcb   : > { %v937_v15 = vld [vmem:[%s4362_s24 + $0x1440] sm:$0xff]  ;;  %2127 = vmatpush.msra.mxu1 %v873_v14 }
  0xcc   : > { %v1001_v16 = vld [vmem:[%s4362_s24 + $0x1640] sm:$0xff]  ;;  %2147 = vmatpush.msra.mxu2 %v937_v15 }
  0xcd   : > { %v805_v17 = vld [vmem:[%s4362_s24 + $0x1020] sm:$0xff]  ;;  %2167 = vmatpush.msra.mxu3 %v1001_v16 }
  0xce   : > { %v869_v18 = vld [vmem:[%s4362_s24 + $0x1220] sm:$0xff]  ;;  %2108 = vmatpush.msra.mxu0 %v805_v17 }
  0xcf   : > { %v933_v19 = vld [vmem:[%s4362_s24 + $0x1420] sm:$0xff]  ;;  %2128 = vmatpush.msra.mxu1 %v869_v18 }
  0xd0   : > { %v997_v20 = vld [vmem:[%s4362_s24 + $0x1620] sm:$0xff]  ;;  %2148 = vmatpush.msra.mxu2 %v933_v19 }
  0xd1   : > { %v801_v21 = vld [vmem:[%s4362_s24 + $0x1000] sm:$0xff]  ;;  %2168 = vmatpush.msra.mxu3 %v997_v20 }
  0xd2   : > { %v865_v22 = vld [vmem:[%s4362_s24 + $0x1200] sm:$0xff]  ;;  %2109 = vmatpush.msra.mxu0 %v801_v21 }
  0xd3   : > { %v929_v23 = vld [vmem:[%s4362_s24 + $0x1400] sm:$0xff]  ;;  %2129 = vmatpush.msra.mxu1 %v865_v22  ;;  %2110 = vmatmul.f32.vlgmr.msra.gmra.mxu0 %v4538_v28 }
  0xd4   : > { %v993_v24 = vld [vmem:[%s4362_s24 + $0x1600] sm:$0xff]  ;;  %2149 = vmatpush.msra.mxu2 %v929_v23  ;;  %2130 = vmatmul.f32.vlgmr.msra.gmra.mxu1 %v4542_v30 }
  0xd5   : > { %v1117_v25 = vld [vmem:[%s4362_s24 + $0x19e0] sm:$0xff]  ;;  %2169 = vmatpush.msra.mxu3 %v993_v24  ;;  %2150 = vmatmul.f32.vlgmr.msra.gmra.mxu2 %v4540_v29 }
  0xd6   : > { %v1181_v26 = vld [vmem:[%s4362_s24 + $0x1be0] sm:$0xff]  ;;  %2174 = vmatpush.msrb.mxu0 %v1117_v25  ;;  %2170 = vmatmul.f32.vlgmr.msra.gmra.mxu3 %v4546_v33 }
  0xd7   : > { %v1245_v27 = vld [vmem:[%s4362_s24 + $0x1de0] sm:$0xff]  ;;  %2194 = vmatpush.msrb.mxu1 %v1181_v26 }
  0xd8   : > { %v1309_v31 = vld [vmem:[%s4362_s24 + $0x1fe0] sm:$0xff]  ;;  %2214 = vmatpush.msrb.mxu2 %v1245_v27 }
  0xd9   : > { %v1113_v32 = vld [vmem:[%s4362_s24 + $0x19c0] sm:$0xff]  ;;  %2234 = vmatpush.msrb.mxu3 %v1309_v31 }
  0xda   : > { %v1177_v34 = vld [vmem:[%s4362_s24 + $0x1bc0] sm:$0xff]  ;;  %2175 = vmatpush.msrb.mxu0 %v1113_v32 }
  0xdb   : > { %v1241_v35 = vld [vmem:[%s4362_s24 + $0x1dc0] sm:$0xff]  ;;  %2195 = vmatpush.msrb.mxu1 %v1177_v34 }
  0xdc   : > { %v1305_v36 = vld [vmem:[%s4362_s24 + $0x1fc0] sm:$0xff]  ;;  %2215 = vmatpush.msrb.mxu2 %v1241_v35 }
  0xdd   : > { %v1109_v37 = vld [vmem:[%s4362_s24 + $0x19a0] sm:$0xff]  ;;  %2235 = vmatpush.msrb.mxu3 %v1305_v36 }
  0xde   : > { %v1173_v38 = vld [vmem:[%s4362_s24 + $0x1ba0] sm:$0xff]  ;;  %2176 = vmatpush.msrb.mxu0 %v1109_v37 }
  0xdf   : > { %v1237_v39 = vld [vmem:[%s4362_s24 + $0x1da0] sm:$0xff]  ;;  %2196 = vmatpush.msrb.mxu1 %v1173_v38 }
  0xe0   : > { %v1301_v40 = vld [vmem:[%s4362_s24 + $0x1fa0] sm:$0xff]  ;;  %2216 = vmatpush.msrb.mxu2 %v1237_v39 }
  0xe1   : > { %v1105_v41 = vld [vmem:[%s4362_s24 + $0x1980] sm:$0xff]  ;;  %2236 = vmatpush.msrb.mxu3 %v1301_v40 }
  0xe2   : > { %v4616_v42 = vld.sshfl [vmem:[#allocation1 + $0x20] sm:$0xff pattern:$0x73625140]  ;;  %2177 = vmatpush.msrb.mxu0 %v1105_v41 }
  0xe3   : > { %v1169_v45 = vld [vmem:[%s4362_s24 + $0x1b80] sm:$0xff]  ;;  %1896 = vst [vmem:[#allocation1 + $0x20] ss:$4 sm:$0xff] %v287_v46 }
  0xe4   : > { %v1233_v52 = vld [vmem:[%s4362_s24 + $0x1d80] sm:$0xff]  ;;  %2197 = vmatpush.msrb.mxu1 %v1169_v45 }
  0xe5   : > { %v1297_v53 = vld [vmem:[%s4362_s24 + $0x1f80] sm:$0xff]  ;;  %2217 = vmatpush.msrb.mxu2 %v1233_v52 }
  0xe6   : > { %v1101_v54 = vld [vmem:[%s4362_s24 + $0x1960] sm:$0xff]  ;;  %2237 = vmatpush.msrb.mxu3 %v1297_v53 }
  0xe7   : > { %v1165_v55 = vld [vmem:[%s4362_s24 + $0x1b60] sm:$0xff]  ;;  %2178 = vmatpush.msrb.mxu0 %v1101_v54 }
  0xe8   : > { %v1229_v56 = vld [vmem:[%s4362_s24 + $0x1d60] sm:$0xff]  ;;  %2198 = vmatpush.msrb.mxu1 %v1165_v55 }
  0xe9   : > { %v1293_v57 = vld [vmem:[%s4362_s24 + $0x1f60] sm:$0xff]  ;;  %2218 = vmatpush.msrb.mxu2 %v1229_v56 }
  0xea   : > { %v1097_v58 = vld [vmem:[%s4362_s24 + $0x1940] sm:$0xff]  ;;  %2238 = vmatpush.msrb.mxu3 %v1293_v57 }
  0xeb   : > { %v1161_v59 = vld [vmem:[%s4362_s24 + $0x1b40] sm:$0xff]  ;;  %2179 = vmatpush.msrb.mxu0 %v1097_v58 }
  0xec   : > { %v1225_v60 = vld [vmem:[%s4362_s24 + $0x1d40] sm:$0xff]  ;;  %2199 = vmatpush.msrb.mxu1 %v1161_v59  ;;  %v288_v59 = vld [vmem:[%s4452_s28 + $0x30] sm:$0x3] }
  0xed   : > { %v1289_v61 = vld [vmem:[%s4362_s24 + $0x1f40] sm:$0xff]  ;;  %2219 = vmatpush.msrb.mxu2 %v1225_v60 }
  0xee   : > { %v1093_v62 = vld [vmem:[%s4362_s24 + $0x1920] sm:$0xff]  ;;  %2239 = vmatpush.msrb.mxu3 %v1289_v61 }
  0xef   : > { %v1157_v63 = vld [vmem:[%s4362_s24 + $0x1b20] sm:$0xff]  ;;  %2180 = vmatpush.msrb.mxu0 %v1093_v62 }
  0xf0   : > { %v1221_v0 = vld [vmem:[%s4362_s24 + $0x1d20] sm:$0xff]  ;;  %2200 = vmatpush.msrb.mxu1 %v1157_v63 }
  0xf1   : > { %v1285_v1 = vld [vmem:[%s4362_s24 + $0x1f20] sm:$0xff]  ;;  %2220 = vmatpush.msrb.mxu2 %v1221_v0 }
  0xf2   : > { %v1089_v2 = vld [vmem:[%s4362_s24 + $0x1900] sm:$0xff]  ;;  %2240 = vmatpush.msrb.mxu3 %v1285_v1 }
  0xf3   : > { %v1153_v3 = vld [vmem:[%s4362_s24 + $0x1b00] sm:$0xff]  ;;  %2181 = vmatpush.msrb.mxu0 %v1089_v2 }
  0xf4   : > { %v1217_v4 = vld [vmem:[%s4362_s24 + $0x1d00] sm:$0xff]  ;;  %2201 = vmatpush.msrb.mxu1 %v1153_v3 }
  0xf5   : > { %v1281_v5 = vld [vmem:[%s4362_s24 + $0x1f00] sm:$0xff]  ;;  %2221 = vmatpush.msrb.mxu2 %v1217_v4 }
  0xf6   : > { %v1085_v6 = vld [vmem:[%s4362_s24 + $0x18e0] sm:$0xff]  ;;  %2241 = vmatpush.msrb.mxu3 %v1281_v5 }
  0xf7   : > { %v1149_v7 = vld [vmem:[%s4362_s24 + $0x1ae0] sm:$0xff]  ;;  %2182 = vmatpush.msrb.mxu0 %v1085_v6  ;;  %v4697_v6 = vld.sshfl [vmem:[#allocation1 + $0x10] sm:$0xff pattern:$0x73625140] }
  0xf8   : > { %v1213_v12 = vld [vmem:[%s4362_s24 + $0x1ce0] sm:$0xff]  ;;  %2202 = vmatpush.msrb.mxu1 %v1149_v7  ;;  %v4699_v7 = vld.sshfl [vmem:[#allocation1 + $0x8] sm:$0xff pattern:$0x73625140] }
  0xf9   : > { %v1277_v13 = vld [vmem:[%s4362_s24 + $0x1ee0] sm:$0xff]  ;;  %2222 = vmatpush.msrb.mxu2 %v1213_v12  ;;  %v4701_v12 = vld.sshfl [vmem:[#allocation1 + $0x18] sm:$0xff pattern:$0x73625140] }
  0xfa   : > { %v1081_v14 = vld [vmem:[%s4362_s24 + $0x18c0] sm:$0xff]  ;;  %2242 = vmatpush.msrb.mxu3 %v1277_v13 }
  0xfb   : > { %v1145_v15 = vld [vmem:[%s4362_s24 + $0x1ac0] sm:$0xff]  ;;  %2183 = vmatpush.msrb.mxu0 %v1081_v14 }
  0xfc   : > { %v1209_v16 = vld [vmem:[%s4362_s24 + $0x1cc0] sm:$0xff]  ;;  %2203 = vmatpush.msrb.mxu1 %v1145_v15 }
  0xfd   : > { %v1273_v17 = vld [vmem:[%s4362_s24 + $0x1ec0] sm:$0xff]  ;;  %2223 = vmatpush.msrb.mxu2 %v1209_v16 }
  0xfe   : > { %v1077_v18 = vld [vmem:[%s4362_s24 + $0x18a0] sm:$0xff]  ;;  %2243 = vmatpush.msrb.mxu3 %v1273_v17 }
  0xff   : > { %v1141_v19 = vld [vmem:[%s4362_s24 + $0x1aa0] sm:$0xff]  ;;  %2184 = vmatpush.msrb.mxu0 %v1077_v18 }
 0x100   : > { %v1205_v20 = vld [vmem:[%s4362_s24 + $0x1ca0] sm:$0xff]  ;;  %2204 = vmatpush.msrb.mxu1 %v1141_v19 }
 0x101   : > { %v1269_v21 = vld [vmem:[%s4362_s24 + $0x1ea0] sm:$0xff]  ;;  %2224 = vmatpush.msrb.mxu2 %v1205_v20 }
 0x102   : > { %v1073_v22 = vld [vmem:[%s4362_s24 + $0x1880] sm:$0xff]  ;;  %2244 = vmatpush.msrb.mxu3 %v1269_v21 }
 0x103   : > { %v1137_v23 = vld [vmem:[%s4362_s24 + $0x1a80] sm:$0xff]  ;;  %2185 = vmatpush.msrb.mxu0 %v1073_v22 }
 0x104   : > { %v1201_v24 = vld [vmem:[%s4362_s24 + $0x1c80] sm:$0xff]  ;;  %2205 = vmatpush.msrb.mxu1 %v1137_v23 }
 0x105   : > { %v1265_v25 = vld [vmem:[%s4362_s24 + $0x1e80] sm:$0xff]  ;;  %2225 = vmatpush.msrb.mxu2 %v1201_v24 }
 0x106   : > { %v1069_v26 = vld [vmem:[%s4362_s24 + $0x1860] sm:$0xff]  ;;  %2245 = vmatpush.msrb.mxu3 %v1265_v25 }
 0x107   : > { %v1133_v27 = vld [vmem:[%s4362_s24 + $0x1a60] sm:$0xff]  ;;  %2186 = vmatpush.msrb.mxu0 %v1069_v26 }
 0x108   : > { %v1197_v31 = vld [vmem:[%s4362_s24 + $0x1c60] sm:$0xff]  ;;  %2206 = vmatpush.msrb.mxu1 %v1133_v27 }
 0x109   : > { %v1261_v32 = vld [vmem:[%s4362_s24 + $0x1e60] sm:$0xff]  ;;  %2226 = vmatpush.msrb.mxu2 %v1197_v31 }
 0x10a   : > { %v1065_v34 = vld [vmem:[%s4362_s24 + $0x1840] sm:$0xff]  ;;  %2246 = vmatpush.msrb.mxu3 %v1261_v32 }
 0x10b   : > { %v1129_v35 = vld [vmem:[%s4362_s24 + $0x1a40] sm:$0xff]  ;;  %2187 = vmatpush.msrb.mxu0 %v1065_v34 }
 0x10c   : > { %v1193_v36 = vld [vmem:[%s4362_s24 + $0x1c40] sm:$0xff]  ;;  %2207 = vmatpush.msrb.mxu1 %v1129_v35 }
 0x10d   : > { %v1257_v37 = vld [vmem:[%s4362_s24 + $0x1e40] sm:$0xff]  ;;  %2227 = vmatpush.msrb.mxu2 %v1193_v36 }
 0x10e   : > { %v1061_v38 = vld [vmem:[%s4362_s24 + $0x1820] sm:$0xff]  ;;  %2247 = vmatpush.msrb.mxu3 %v1257_v37 }
 0x10f   : > { %v1125_v39 = vld [vmem:[%s4362_s24 + $0x1a20] sm:$0xff]  ;;  %2188 = vmatpush.msrb.mxu0 %v1061_v38 }
 0x110   : > { %v1189_v40 = vld [vmem:[%s4362_s24 + $0x1c20] sm:$0xff]  ;;  %2208 = vmatpush.msrb.mxu1 %v1125_v39 }
 0x111   : > { %v1253_v41 = vld [vmem:[%s4362_s24 + $0x1e20] sm:$0xff]  ;;  %2228 = vmatpush.msrb.mxu2 %v1189_v40 }
 0x112   : > { %v1057_v45 = vld [vmem:[%s4362_s24 + $0x1800] sm:$0xff]  ;;  %2248 = vmatpush.msrb.mxu3 %v1253_v41 }
 0x113   : > { %v1121_v46 = vld [vmem:[%s4362_s24 + $0x1a00] sm:$0xff]  ;;  %2189 = vmatpush.msrb.mxu0 %v1057_v45 }
 0x114   : > { %v1185_v52 = vld [vmem:[%s4362_s24 + $0x1c00] sm:$0xff]  ;;  %2209 = vmatpush.msrb.mxu1 %v1121_v46  ;;  %2190 = vmatmul.f32.vlgmr.msrb.gmra.mxu0 %v4616_v42 }
 0x115   : > { %v1249_v53 = vld [vmem:[%s4362_s24 + $0x1e00] sm:$0xff]  ;;  %2229 = vmatpush.msrb.mxu2 %v1185_v52  ;;  %2210 = vmatmul.f32.vlgmr.msrb.gmra.mxu1 %v4620_v44 }
 0x116   : > { %v1373_v54 = vld [vmem:[%s4362_s24 + $0x21e0] sm:$0xff]  ;;  %2249 = vmatpush.msrb.mxu3 %v1249_v53  ;;  %2230 = vmatmul.f32.vlgmr.msrb.gmra.mxu2 %v4618_v43 }
 0x117   : > { %v1437_v55 = vld [vmem:[%s4362_s24 + $0x23e0] sm:$0xff]  ;;  %2254 = vmatpush.msra.mxu0 %v1373_v54  ;;  %2250 = vmatmul.f32.vlgmr.msrb.gmra.mxu3 %v4624_v51 }
 0x118   : > { %v1501_v56 = vld [vmem:[%s4362_s24 + $0x25e0] sm:$0xff]  ;;  %2274 = vmatpush.msra.mxu1 %v1437_v55 }
 0x119   : > { %v1565_v57 = vld [vmem:[%s4362_s24 + $0x27e0] sm:$0xff]  ;;  %2294 = vmatpush.msra.mxu2 %v1501_v56 }
 0x11a   : > { %v1369_v58 = vld [vmem:[%s4362_s24 + $0x21c0] sm:$0xff]  ;;  %2314 = vmatpush.msra.mxu3 %v1565_v57 }
 0x11b   : > { %v1433_v60 = vld [vmem:[%s4362_s24 + $0x23c0] sm:$0xff]  ;;  %2255 = vmatpush.msra.mxu0 %v1369_v58 }
 0x11c   : > { %v1497_v61 = vld [vmem:[%s4362_s24 + $0x25c0] sm:$0xff]  ;;  %2275 = vmatpush.msra.mxu1 %v1433_v60 }
 0x11d   : > { %v1561_v62 = vld [vmem:[%s4362_s24 + $0x27c0] sm:$0xff]  ;;  %2295 = vmatpush.msra.mxu2 %v1497_v61 }
 0x11e   : > { %v1365_v63 = vld [vmem:[%s4362_s24 + $0x21a0] sm:$0xff]  ;;  %2315 = vmatpush.msra.mxu3 %v1561_v62 }
 0x11f   : > { %v1429_v0 = vld [vmem:[%s4362_s24 + $0x23a0] sm:$0xff]  ;;  %2256 = vmatpush.msra.mxu0 %v1365_v63 }
 0x120   : > { %v1493_v1 = vld [vmem:[%s4362_s24 + $0x25a0] sm:$0xff]  ;;  %2276 = vmatpush.msra.mxu1 %v1429_v0 }
 0x121   : > { %v1557_v2 = vld [vmem:[%s4362_s24 + $0x27a0] sm:$0xff]  ;;  %2296 = vmatpush.msra.mxu2 %v1493_v1 }
 0x122   : > { %v1361_v3 = vld [vmem:[%s4362_s24 + $0x2180] sm:$0xff]  ;;  %2316 = vmatpush.msra.mxu3 %v1557_v2 }
 0x123   : > { %v1425_v4 = vld [vmem:[%s4362_s24 + $0x2380] sm:$0xff]  ;;  %2257 = vmatpush.msra.mxu0 %v1361_v3 }
 0x124   : > { %v4695_v5 = vld.sshfl [vmem:[#allocation1] sm:$0xff pattern:$0x73625140]  ;;  %2277 = vmatpush.msra.mxu1 %v1425_v4 }
 0x125   : > { %v1489_v13 = vld [vmem:[%s4362_s24 + $0x2580] sm:$0xff]  ;;  %1905 = vst [vmem:[#allocation1] ss:$4 sm:$0xff] %v288_v59 }
 0x126   : > { %v1553_v14 = vld [vmem:[%s4362_s24 + $0x2780] sm:$0xff]  ;;  %2297 = vmatpush.msra.mxu2 %v1489_v13 }
 0x127   : > { %v1357_v15 = vld [vmem:[%s4362_s24 + $0x2160] sm:$0xff]  ;;  %2317 = vmatpush.msra.mxu3 %v1553_v14 }
 0x128   : > { %v1421_v16 = vld [vmem:[%s4362_s24 + $0x2360] sm:$0xff]  ;;  %2258 = vmatpush.msra.mxu0 %v1357_v15 }
 0x129   : > { %v1485_v17 = vld [vmem:[%s4362_s24 + $0x2560] sm:$0xff]  ;;  %2278 = vmatpush.msra.mxu1 %v1421_v16 }
 0x12a   : > { %v1549_v18 = vld [vmem:[%s4362_s24 + $0x2760] sm:$0xff]  ;;  %2298 = vmatpush.msra.mxu2 %v1485_v17 }
 0x12b   : > { %v1353_v19 = vld [vmem:[%s4362_s24 + $0x2140] sm:$0xff]  ;;  %2318 = vmatpush.msra.mxu3 %v1549_v18 }
 0x12c   : > { %v1417_v20 = vld [vmem:[%s4362_s24 + $0x2340] sm:$0xff]  ;;  %2259 = vmatpush.msra.mxu0 %v1353_v19 }
 0x12d   : > { %v1481_v21 = vld [vmem:[%s4362_s24 + $0x2540] sm:$0xff]  ;;  %2279 = vmatpush.msra.mxu1 %v1417_v20 }
 0x12e   : > { %v1545_v22 = vld [vmem:[%s4362_s24 + $0x2740] sm:$0xff]  ;;  %2299 = vmatpush.msra.mxu2 %v1481_v21 }
 0x12f   : > { %v1349_v23 = vld [vmem:[%s4362_s24 + $0x2120] sm:$0xff]  ;;  %2319 = vmatpush.msra.mxu3 %v1545_v22 }
 0x130   : > { %v1413_v24 = vld [vmem:[%s4362_s24 + $0x2320] sm:$0xff]  ;;  %2260 = vmatpush.msra.mxu0 %v1349_v23 }
 0x131   : > { %v1477_v25 = vld [vmem:[%s4362_s24 + $0x2520] sm:$0xff]  ;;  %2280 = vmatpush.msra.mxu1 %v1413_v24 }
 0x132   : > { %v1541_v26 = vld [vmem:[%s4362_s24 + $0x2720] sm:$0xff]  ;;  %2300 = vmatpush.msra.mxu2 %v1477_v25 }
 0x133   : > { %v1345_v27 = vld [vmem:[%s4362_s24 + $0x2100] sm:$0xff]  ;;  %2320 = vmatpush.msra.mxu3 %v1541_v26 }
 0x134   : > { %v1409_v31 = vld [vmem:[%s4362_s24 + $0x2300] sm:$0xff]  ;;  %2261 = vmatpush.msra.mxu0 %v1345_v27 }
 0x135   : > { %v1473_v32 = vld [vmem:[%s4362_s24 + $0x2500] sm:$0xff]  ;;  %2281 = vmatpush.msra.mxu1 %v1409_v31 }
 0x136   : > { %v1537_v34 = vld [vmem:[%s4362_s24 + $0x2700] sm:$0xff]  ;;  %2301 = vmatpush.msra.mxu2 %v1473_v32 }
 0x137   : > { %v1341_v35 = vld [vmem:[%s4362_s24 + $0x20e0] sm:$0xff]  ;;  %2321 = vmatpush.msra.mxu3 %v1537_v34 }
 0x138   : > { %v1405_v36 = vld [vmem:[%s4362_s24 + $0x22e0] sm:$0xff]  ;;  %2262 = vmatpush.msra.mxu0 %v1341_v35 }
 0x139   : > { %v1469_v37 = vld [vmem:[%s4362_s24 + $0x24e0] sm:$0xff]  ;;  %2282 = vmatpush.msra.mxu1 %v1405_v36 }
 0x13a   : > { %v1533_v38 = vld [vmem:[%s4362_s24 + $0x26e0] sm:$0xff]  ;;  %2302 = vmatpush.msra.mxu2 %v1469_v37 }
 0x13b   : > { %v1337_v39 = vld [vmem:[%s4362_s24 + $0x20c0] sm:$0xff]  ;;  %2322 = vmatpush.msra.mxu3 %v1533_v38 }
 0x13c   : > { %v1401_v40 = vld [vmem:[%s4362_s24 + $0x22c0] sm:$0xff]  ;;  %2263 = vmatpush.msra.mxu0 %v1337_v39 }
 0x13d   : > { %v1465_v41 = vld [vmem:[%s4362_s24 + $0x24c0] sm:$0xff]  ;;  %2283 = vmatpush.msra.mxu1 %v1401_v40 }
 0x13e   : > { %v1529_v45 = vld [vmem:[%s4362_s24 + $0x26c0] sm:$0xff]  ;;  %2303 = vmatpush.msra.mxu2 %v1465_v41 }
 0x13f   : > { %v1333_v46 = vld [vmem:[%s4362_s24 + $0x20a0] sm:$0xff]  ;;  %2323 = vmatpush.msra.mxu3 %v1529_v45 }
 0x140   : > { %v1397_v52 = vld [vmem:[%s4362_s24 + $0x22a0] sm:$0xff]  ;;  %2264 = vmatpush.msra.mxu0 %v1333_v46 }
 0x141   : > { %v1461_v53 = vld [vmem:[%s4362_s24 + $0x24a0] sm:$0xff]  ;;  %2284 = vmatpush.msra.mxu1 %v1397_v52 }
 0x142   : > { %v1525_v54 = vld [vmem:[%s4362_s24 + $0x26a0] sm:$0xff]  ;;  %2304 = vmatpush.msra.mxu2 %v1461_v53 }
 0x143   : > { %v1329_v55 = vld [vmem:[%s4362_s24 + $0x2080] sm:$0xff]  ;;  %2324 = vmatpush.msra.mxu3 %v1525_v54 }
 0x144   : > { %v1393_v56 = vld [vmem:[%s4362_s24 + $0x2280] sm:$0xff]  ;;  %2265 = vmatpush.msra.mxu0 %v1329_v55 }
 0x145   : > { %v1457_v57 = vld [vmem:[%s4362_s24 + $0x2480] sm:$0xff]  ;;  %2285 = vmatpush.msra.mxu1 %v1393_v56 }
 0x146   : > { %v1521_v58 = vld [vmem:[%s4362_s24 + $0x2680] sm:$0xff]  ;;  %2305 = vmatpush.msra.mxu2 %v1457_v57 }
 0x147   : > { %v1325_v59 = vld [vmem:[%s4362_s24 + $0x2060] sm:$0xff]  ;;  %2325 = vmatpush.msra.mxu3 %v1521_v58 }
 0x148   : > { %v1389_v60 = vld [vmem:[%s4362_s24 + $0x2260] sm:$0xff]  ;;  %2266 = vmatpush.msra.mxu0 %v1325_v59 }
 0x149   : > { %v1453_v61 = vld [vmem:[%s4362_s24 + $0x2460] sm:$0xff]  ;;  %2286 = vmatpush.msra.mxu1 %v1389_v60 }
 0x14a   : > { %v1517_v62 = vld [vmem:[%s4362_s24 + $0x2660] sm:$0xff]  ;;  %2306 = vmatpush.msra.mxu2 %v1453_v61 }
 0x14b   : > { %v1321_v63 = vld [vmem:[%s4362_s24 + $0x2040] sm:$0xff]  ;;  %2326 = vmatpush.msra.mxu3 %v1517_v62 }
 0x14c   : > { %v1385_v0 = vld [vmem:[%s4362_s24 + $0x2240] sm:$0xff]  ;;  %2267 = vmatpush.msra.mxu0 %v1321_v63 }
 0x14d   : > { %v1449_v1 = vld [vmem:[%s4362_s24 + $0x2440] sm:$0xff]  ;;  %2287 = vmatpush.msra.mxu1 %v1385_v0 }
 0x14e   : > { %v1513_v2 = vld [vmem:[%s4362_s24 + $0x2640] sm:$0xff]  ;;  %2307 = vmatpush.msra.mxu2 %v1449_v1 }
 0x14f   : > { %v1317_v3 = vld [vmem:[%s4362_s24 + $0x2020] sm:$0xff]  ;;  %2327 = vmatpush.msra.mxu3 %v1513_v2 }
 0x150   : > { %v1381_v4 = vld [vmem:[%s4362_s24 + $0x2220] sm:$0xff]  ;;  %2268 = vmatpush.msra.mxu0 %v1317_v3 }
 0x151   : > { %v1445_v13 = vld [vmem:[%s4362_s24 + $0x2420] sm:$0xff]  ;;  %2288 = vmatpush.msra.mxu1 %v1381_v4 }
 0x152   : > { %v1509_v14 = vld [vmem:[%s4362_s24 + $0x2620] sm:$0xff]  ;;  %2308 = vmatpush.msra.mxu2 %v1445_v13 }
 0x153   : > { %v1313_v15 = vld [vmem:[%s4362_s24 + $0x2000] sm:$0xff]  ;;  %2328 = vmatpush.msra.mxu3 %v1509_v14 }
 0x154   : > { %v1377_v16 = vld [vmem:[%s4362_s24 + $0x2200] sm:$0xff]  ;;  %2269 = vmatpush.msra.mxu0 %v1313_v15 }
 0x155   : > { %v1441_v17 = vld [vmem:[%s4362_s24 + $0x2400] sm:$0xff]  ;;  %2289 = vmatpush.msra.mxu1 %v1377_v16  ;;  %2270 = vmatmul.f32.vlgmr.msra.gmra.mxu0 %v4695_v5 }
 0x156   : > { %v1505_v18 = vld [vmem:[%s4362_s24 + $0x2600] sm:$0xff]  ;;  %2309 = vmatpush.msra.mxu2 %v1441_v17  ;;  %2290 = vmatmul.f32.vlgmr.msra.gmra.mxu1 %v4699_v7 }
 0x157   : > { %v1629_v19 = vld [vmem:[%s4362_s24 + $0x29e0] sm:$0xff]  ;;  %2329 = vmatpush.msra.mxu3 %v1505_v18  ;;  %2310 = vmatmul.f32.vlgmr.msra.gmra.mxu2 %v4697_v6 }
 0x158   : > { %v1693_v20 = vld [vmem:[%s4362_s24 + $0x2be0] sm:$0xff]  ;;  %2334 = vmatpush.msrb.mxu0 %v1629_v19  ;;  %2330 = vmatmul.f32.vlgmr.msra.gmra.mxu3 %v4701_v12 }
 0x159   : > { %v1757_v21 = vld [vmem:[%s4362_s24 + $0x2de0] sm:$0xff]  ;;  %2354 = vmatpush.msrb.mxu1 %v1693_v20 }
 0x15a   : > { %v1821_v22 = vld [vmem:[%s4362_s24 + $0x2fe0] sm:$0xff]  ;;  %2374 = vmatpush.msrb.mxu2 %v1757_v21 }
 0x15b   : > { %v1625_v23 = vld [vmem:[%s4362_s24 + $0x29c0] sm:$0xff]  ;;  %2394 = vmatpush.msrb.mxu3 %v1821_v22 }
 0x15c   : > { %v1689_v24 = vld [vmem:[%s4362_s24 + $0x2bc0] sm:$0xff]  ;;  %2335 = vmatpush.msrb.mxu0 %v1625_v23 }
 0x15d   : > { %v1753_v25 = vld [vmem:[%s4362_s24 + $0x2dc0] sm:$0xff]  ;;  %2355 = vmatpush.msrb.mxu1 %v1689_v24 }
 0x15e   : > { %v1817_v26 = vld [vmem:[%s4362_s24 + $0x2fc0] sm:$0xff]  ;;  %2375 = vmatpush.msrb.mxu2 %v1753_v25 }
 0x15f   : > { %v1621_v27 = vld [vmem:[%s4362_s24 + $0x29a0] sm:$0xff]  ;;  %2395 = vmatpush.msrb.mxu3 %v1817_v26 }
 0x160   : > { %v1685_v31 = vld [vmem:[%s4362_s24 + $0x2ba0] sm:$0xff]  ;;  %2336 = vmatpush.msrb.mxu0 %v1621_v27 }
 0x161   : > { %v1749_v32 = vld [vmem:[%s4362_s24 + $0x2da0] sm:$0xff]  ;;  %2356 = vmatpush.msrb.mxu1 %v1685_v31 }
 0x162   : > { %v1813_v34 = vld [vmem:[%s4362_s24 + $0x2fa0] sm:$0xff]  ;;  %2376 = vmatpush.msrb.mxu2 %v1749_v32 }
 0x163   : > { %v1617_v35 = vld [vmem:[%s4362_s24 + $0x2980] sm:$0xff]  ;;  %2396 = vmatpush.msrb.mxu3 %v1813_v34 }
 0x164   : > { %v1681_v36 = vld [vmem:[%s4362_s24 + $0x2b80] sm:$0xff]  ;;  %2337 = vmatpush.msrb.mxu0 %v1617_v35  ;;  %v1951_v35 = vpop.f32.mrf.mxu0 }
 0x165   : > { %v1745_v37 = vld [vmem:[%s4362_s24 + $0x2d80] sm:$0xff]  ;;  %2357 = vmatpush.msrb.mxu1 %v1681_v36 }
 0x166   : > { %v1809_v38 = vld [vmem:[%s4362_s24 + $0x2f80] sm:$0xff]  ;;  %2377 = vmatpush.msrb.mxu2 %v1745_v37 }
 0x167   : > { %v1613_v39 = vld [vmem:[%s4362_s24 + $0x2960] sm:$0xff]  ;;  %2397 = vmatpush.msrb.mxu3 %v1809_v38 }
 0x168   : > { %v1677_v40 = vld [vmem:[%s4362_s24 + $0x2b60] sm:$0xff]  ;;  %2338 = vmatpush.msrb.mxu0 %v1613_v39 }
 0x169   : > { %v1741_v41 = vld [vmem:[%s4362_s24 + $0x2d60] sm:$0xff]  ;;  %2358 = vmatpush.msrb.mxu1 %v1677_v40 }
 0x16a   : > { %v1805_v45 = vld [vmem:[%s4362_s24 + $0x2f60] sm:$0xff]  ;;  %2378 = vmatpush.msrb.mxu2 %v1741_v41 }
 0x16b   : > { %v1609_v46 = vld [vmem:[%s4362_s24 + $0x2940] sm:$0xff]  ;;  %2398 = vmatpush.msrb.mxu3 %v1805_v45 }
 0x16c   : > { %v1673_v52 = vld [vmem:[%s4362_s24 + $0x2b40] sm:$0xff]  ;;  %2339 = vmatpush.msrb.mxu0 %v1609_v46 }
 0x16d   : > { %v1737_v53 = vld [vmem:[%s4362_s24 + $0x2d40] sm:$0xff]  ;;  %2359 = vmatpush.msrb.mxu1 %v1673_v52 }
 0x16e   : > { %v1801_v54 = vld [vmem:[%s4362_s24 + $0x2f40] sm:$0xff]  ;;  %2379 = vmatpush.msrb.mxu2 %v1737_v53  ;;  %v1971_v53 = vpop.f32.mrf.mxu1 }
 0x16f   : > { %v1605_v55 = vld [vmem:[%s4362_s24 + $0x2920] sm:$0xff]  ;;  %2399 = vmatpush.msrb.mxu3 %v1801_v54 }
 0x170   : > { %v1669_v56 = vld [vmem:[%s4362_s24 + $0x2b20] sm:$0xff]  ;;  %2340 = vmatpush.msrb.mxu0 %v1605_v55 }
 0x171   : > { %v1733_v57 = vld [vmem:[%s4362_s24 + $0x2d20] sm:$0xff]  ;;  %2360 = vmatpush.msrb.mxu1 %v1669_v56 }
 0x172   : > { %v1797_v58 = vld [vmem:[%s4362_s24 + $0x2f20] sm:$0xff]  ;;  %2380 = vmatpush.msrb.mxu2 %v1733_v57  ;;  %v1903_v57 = vld.sshfl [vmem:[#allocation1 + $0x30] sm:$0xff pattern:$0x73625140] }
 0x173   : > { %v1601_v59 = vld [vmem:[%s4362_s24 + $0x2900] sm:$0xff]  ;;  %2400 = vmatpush.msrb.mxu3 %v1797_v58 }
 0x174   : > { %v1665_v60 = vld [vmem:[%s4362_s24 + $0x2b00] sm:$0xff]  ;;  %2341 = vmatpush.msrb.mxu0 %v1601_v59  ;;  %v350_v59 = vld [vmem:[%s4362_s24 + $0x1e8] sm:$0xff] }
 0x175   : > { %v1729_v61 = vld [vmem:[%s4362_s24 + $0x2d00] sm:$0xff]  ;;  %2361 = vmatpush.msrb.mxu1 %v1665_v60 }
 0x176   : > { %v1793_v62 = vld [vmem:[%s4362_s24 + $0x2f00] sm:$0xff]  ;;  %2381 = vmatpush.msrb.mxu2 %v1729_v61  ;;  %v414_v61 = vld [vmem:[%s4362_s24 + $0x3e8] sm:$0xff] }
 0x177   : > { %v1597_v63 = vld [vmem:[%s4362_s24 + $0x28e0] sm:$0xff]  ;;  %2401 = vmatpush.msrb.mxu3 %v1793_v62  ;;  %v478_v62 = vld [vmem:[%s4362_s24 + $0x5e8] sm:$0xff] }
 0x178   : > { %v1661_v0 = vld [vmem:[%s4362_s24 + $0x2ae0] sm:$0xff]  ;;  %2342 = vmatpush.msrb.mxu0 %v1597_v63  ;;  %v1991_v63 = vpop.f32.mrf.mxu2 }
 0x179   : > { %v1725_v1 = vld [vmem:[%s4362_s24 + $0x2ce0] sm:$0xff]  ;;  %2362 = vmatpush.msrb.mxu1 %v1661_v0  ;;  %v1902_v0 = vld.sshfl [vmem:[#allocation1 + $0x28] sm:$0xff pattern:$0x73625140] }
 0x17a   : > { %v1789_v2 = vld [vmem:[%s4362_s24 + $0x2ee0] sm:$0xff]  ;;  %2382 = vmatpush.msrb.mxu2 %v1725_v1  ;;  %v1904_v1 = vld.sshfl [vmem:[#allocation1 + $0x38] sm:$0xff pattern:$0x73625140] }
 0x17b   : > { %v1593_v3 = vld [vmem:[%s4362_s24 + $0x28c0] sm:$0xff]  ;;  %2402 = vmatpush.msrb.mxu3 %v1789_v2 }
 0x17c   : > { %v1657_v4 = vld [vmem:[%s4362_s24 + $0x2ac0] sm:$0xff]  ;;  %2343 = vmatpush.msrb.mxu0 %v1593_v3  ;;  %v346_v3 = vld [vmem:[%s4362_s24 + $0x1c8] sm:$0xff] }
 0x17d   : > { %v1721_v13 = vld [vmem:[%s4362_s24 + $0x2cc0] sm:$0xff]  ;;  %2363 = vmatpush.msrb.mxu1 %v1657_v4  ;;  %v410_v4 = vld [vmem:[%s4362_s24 + $0x3c8] sm:$0xff] }
 0x17e   : > { %v1785_v14 = vld [vmem:[%s4362_s24 + $0x2ec0] sm:$0xff]  ;;  %2383 = vmatpush.msrb.mxu2 %v1721_v13  ;;  %v474_v13 = vld [vmem:[%s4362_s24 + $0x5c8] sm:$0xff] }
 0x17f   : > { %v1589_v15 = vld [vmem:[%s4362_s24 + $0x28a0] sm:$0xff]  ;;  %2403 = vmatpush.msrb.mxu3 %v1785_v14 }
 0x180   : > { %v1653_v16 = vld [vmem:[%s4362_s24 + $0x2aa0] sm:$0xff]  ;;  %2344 = vmatpush.msrb.mxu0 %v1589_v15 }
 0x181   : > { %v1717_v17 = vld [vmem:[%s4362_s24 + $0x2ca0] sm:$0xff]  ;;  %2364 = vmatpush.msrb.mxu1 %v1653_v16  ;;  %v342_v16 = vld [vmem:[%s4362_s24 + $0x1a8] sm:$0xff] }
 0x182   : > { %v1781_v18 = vld [vmem:[%s4362_s24 + $0x2ea0] sm:$0xff]  ;;  %2384 = vmatpush.msrb.mxu2 %v1717_v17  ;;  %v2011_v17 = vpop.f32.mrf.mxu3 }
 0x183   : > { %v1585_v19 = vld [vmem:[%s4362_s24 + $0x2880] sm:$0xff]  ;;  %2404 = vmatpush.msrb.mxu3 %v1781_v18  ;;  %v406_v18 = vld [vmem:[%s4362_s24 + $0x3a8] sm:$0xff] }
 0x184   : > { %v1649_v20 = vld [vmem:[%s4362_s24 + $0x2a80] sm:$0xff]  ;;  %2345 = vmatpush.msrb.mxu0 %v1585_v19  ;;  %v470_v19 = vld [vmem:[%s4362_s24 + $0x5a8] sm:$0xff] }
 0x185   : > { %v1857_v21 = vld [vmem:[%s4801_s7] sm:$0xf]  ;;  %2365 = vmatpush.msrb.mxu1 %v1649_v20 }
 0x186   : > { %v1713_v22 = vld [vmem:[%s4362_s24 + $0x2c80] sm:$0xff]  ;;  %v1859_v31 = vperm.slane %v1857_v21, 0  ;;  %v338_v21 = vld [vmem:[%s4362_s24 + $0x188] sm:$0xff] }
 0x187   : > { %v1777_v23 = vld [vmem:[%s4362_s24 + $0x2e80] sm:$0xff]  ;;  %2385 = vmatpush.msrb.mxu2 %v1713_v22  ;;  %v402_v22 = vld [vmem:[%s4362_s24 + $0x388] sm:$0xff] }
 0x188   : > { %v1581_v24 = vld [vmem:[%s4362_s24 + $0x2860] sm:$0xff]  ;;  %2405 = vmatpush.msrb.mxu3 %v1777_v23  ;;  %v1952_v45 = vadd.f32 %v1951_v35, %v1859_v31  ;;  %v466_v23 = vld [vmem:[%s4362_s24 + $0x588] sm:$0xff] }
 0x189   : > { %v1645_v25 = vld [vmem:[%s4362_s24 + $0x2a60] sm:$0xff]  ;;  %2346 = vmatpush.msrb.mxu0 %v1581_v24  ;;  %v398_v31 = vld [vmem:[%s4362_s24 + $0x368] sm:$0xff] }
 0x18a   : > { %v1709_v26 = vld [vmem:[%s4362_s24 + $0x2c60] sm:$0xff]  ;;  %2366 = vmatpush.msrb.mxu1 %v1645_v25  ;;  %v1972_v60 = vadd.f32 %v1971_v53, %v1952_v45  ;;  %v330_v35 = vld [vmem:[%s4362_s24 + $0x148] sm:$0xff] }
 0x18b   : > { %v1773_v27 = vld [vmem:[%s4362_s24 + $0x2e60] sm:$0xff]  ;;  %2386 = vmatpush.msrb.mxu2 %v1709_v26  ;;  %v334_v26 = vld [vmem:[%s4362_s24 + $0x168] sm:$0xff] }
 0x18c   : > { %v1577_v32 = vld [vmem:[%s4362_s24 + $0x2840] sm:$0xff]  ;;  %2406 = vmatpush.msrb.mxu3 %v1773_v27  ;;  %v1992_v14 = vadd.f32 %v1991_v63, %v1972_v60  ;;  %v2031_v27 = vpop.f32.mrf.mxu0  ;;  %v390_v45 = vld [vmem:[%s4362_s24 + $0x328] sm:$0xff] }
 0x18d   : > { %v1641_v34 = vld [vmem:[%s4362_s24 + $0x2a40] sm:$0xff]  ;;  %2347 = vmatpush.msrb.mxu0 %v1577_v32  ;;  %v462_v32 = vld [vmem:[%s4362_s24 + $0x568] sm:$0xff] }
 0x18e   : > { %v1705_v36 = vld [vmem:[%s4362_s24 + $0x2c40] sm:$0xff]  ;;  %2367 = vmatpush.msrb.mxu1 %v1641_v34  ;;  %v2012_v24 = vadd.f32 %v2011_v17, %v1992_v14  ;;  %v322_v53 = vld [vmem:[%s4362_s24 + $0x108] sm:$0xff] }
 0x18f   : > { %v1769_v37 = vld [vmem:[%s4362_s24 + $0x2e40] sm:$0xff]  ;;  %2387 = vmatpush.msrb.mxu2 %v1705_v36  ;;  %v394_v36 = vld [vmem:[%s4362_s24 + $0x348] sm:$0xff] }
 0x190   : > { %v1573_v38 = vld [vmem:[%s4362_s24 + $0x2820] sm:$0xff]  ;;  %2407 = vmatpush.msrb.mxu3 %v1769_v37  ;;  %v458_v37 = vld [vmem:[%s4362_s24 + $0x548] sm:$0xff] }
 0x191   : > { %v1637_v39 = vld [vmem:[%s4362_s24 + $0x2a20] sm:$0xff]  ;;  %2348 = vmatpush.msrb.mxu0 %v1573_v38  ;;  %v2032_v38 = vadd.f32 %v2031_v27, %v2012_v24  ;;  %v542_v60 = vld [vmem:[%s4362_s24 + $0x7e8] sm:$0xff] }
 0x192   : > { %v1701_v40 = vld [vmem:[%s4362_s24 + $0x2c20] sm:$0xff]  ;;  %2368 = vmatpush.msrb.mxu1 %v1637_v39  ;;  %v314_v63 = vld [vmem:[%s4362_s24 + $0xc8] sm:$0xff] }
 0x193   : > { %v1765_v41 = vld [vmem:[%s4362_s24 + $0x2e20] sm:$0xff]  ;;  %2388 = vmatpush.msrb.mxu2 %v1701_v40  ;;  %v326_v40 = vld [vmem:[%s4362_s24 + $0x128] sm:$0xff] }
 0x194   : > { %v1569_v46 = vld [vmem:[%s4362_s24 + $0x2800] sm:$0xff]  ;;  %2408 = vmatpush.msrb.mxu3 %v1765_v41  ;;  %v2051_v41 = vpop.f32.mrf.mxu1  ;;  %v534_v14 = vld [vmem:[%s4362_s24 + $0x7a8] sm:$0xff] }
 0x195   : > { %v1633_v52 = vld [vmem:[%s4362_s24 + $0x2a00] sm:$0xff]  ;;  %2349 = vmatpush.msrb.mxu0 %v1569_v46  ;;  %v454_v46 = vld [vmem:[%s4362_s24 + $0x528] sm:$0xff] }
 0x196   : > { %v1697_v54 = vld [vmem:[%s4362_s24 + $0x2c00] sm:$0xff]  ;;  %2369 = vmatpush.msrb.mxu1 %v1633_v52  ;;  %v306_v17 = vld [vmem:[%s4362_s24 + $0x88] sm:$0xff] }
 0x197   : > { %v1761_v55 = vld [vmem:[%s4362_s24 + $0x2e00] sm:$0xff]  ;;  %2389 = vmatpush.msrb.mxu2 %v1697_v54  ;;  %2370 = vmatmul.f32.vlgmr.msrb.gmra.mxu1 %v1902_v0  ;;  %v2052_v54 = vadd.f32 %v2051_v41, %v2032_v38  ;;  %v526_v24 = vld [vmem:[%s4362_s24 + $0x768] sm:$0xff] }
 0x198   : > { %v1901_v56 = vld.sshfl [vmem:[#allocation1 + $0x20] sm:$0xff pattern:$0x73625140]  ;;  %2409 = vmatpush.msrb.mxu3 %v1761_v55  ;;  %2390 = vmatmul.f32.vlgmr.msrb.gmra.mxu2 %v1903_v57  ;;  %v386_v55 = vld [vmem:[%s4362_s24 + $0x308] sm:$0xff]  ;;  %v2071_v57 = vpop.f32.mrf.mxu2 }
 0x199   : > { %v1853_v58 = vld [vmem:[%s4362_s24 + $0x30e0] sm:$0xff]  ;;  %2350 = vmatmul.f32.vlgmr.msrb.gmra.mxu0 %v1901_v56  ;;  %2434 = vmatpush.msra.mxu1 %v350_v59  ;;  %v450_v56 = vld [vmem:[%s4362_s24 + $0x508] sm:$0xff]  ;;  %v2072_v0 = vadd.f32 %v2071_v57, %v2052_v54 }
 0x19a   : > { %2422 = vmatpush.msra.mxu0 %v1853_v58  ;;  %v1849_v2 = vld [vmem:[%s4362_s24 + $0x30c0] sm:$0xff]  ;;  %2454 = vmatpush.msra.mxu2 %v414_v61  ;;  %v318_v59 = vld [vmem:[%s4362_s24 + $0xe8] sm:$0xff] }
 0x19b   : > { %2474 = vmatpush.msra.mxu3 %v478_v62  ;;  %v1845_v15 = vld [vmem:[%s4362_s24 + $0x30a0] sm:$0xff]  ;;  %2435 = vmatpush.msra.mxu1 %v346_v3  ;;  %v382_v61 = vld [vmem:[%s4362_s24 + $0x2e8] sm:$0xff]  ;;  %v2091_v3 = vpop.f32.mrf.mxu3 }
 0x19c   : > { %2410 = vmatmul.f32.vlgmr.msrb.gmra.mxu3 %v1904_v1  ;;  %2423 = vmatpush.msra.mxu0 %v1849_v2  ;;  %v1841_v20 = vld [vmem:[%s4362_s24 + $0x3080] sm:$0xff]  ;;  %v446_v62 = vld [vmem:[%s4362_s24 + $0x4e8] sm:$0xff] }
 0x19d   : > { %2455 = vmatpush.msra.mxu2 %v410_v4  ;;  %2475 = vmatpush.msra.mxu3 %v474_v13  ;;  %v1837_v25 = vld [vmem:[%s4362_s24 + $0x3060] sm:$0xff]  ;;  %v538_v1 = vld [vmem:[%s4362_s24 + $0x7c8] sm:$0xff] }
 0x19e   : > { %2424 = vmatpush.msra.mxu0 %v1845_v15  ;;  %2436 = vmatpush.msra.mxu1 %v342_v16  ;;  %v1833_v34 = vld [vmem:[%s4362_s24 + $0x3040] sm:$0xff]  ;;  %v378_v2 = vld [vmem:[%s4362_s24 + $0x2c8] sm:$0xff] }
 0x19f   : > { %2456 = vmatpush.msra.mxu2 %v406_v18  ;;  %2476 = vmatpush.msra.mxu3 %v470_v19  ;;  %v1829_v39 = vld [vmem:[%s4362_s24 + $0x3020] sm:$0xff]  ;;  %v442_v4 = vld [vmem:[%s4362_s24 + $0x4c8] sm:$0xff]  ;;  %v2092_v18 = vadd.f32 %v2091_v3, %v2072_v0 }
 0x1a0   : > { %2425 = vmatpush.msra.mxu0 %v1841_v20  ;;  %2437 = vmatpush.msra.mxu1 %v338_v21  ;;  %v1825_v52 = vld [vmem:[%s4362_s24 + $0x3000] sm:$0xff]  ;;  %v310_v13 = vld [vmem:[%s4362_s24 + $0xa8] sm:$0xff] }
 0x1a1   : > { %2457 = vmatpush.msra.mxu2 %v402_v22  ;;  %2477 = vmatpush.msra.mxu3 %v466_v23  ;;  %v1906_v58 = vld.sshfl [vmem:[#allocation1] sm:$0xff pattern:$0x73625140]  ;;  %v374_v15 = vld [vmem:[%s4362_s24 + $0x2a8] sm:$0xff]  ;;  %v2111_v23 = vpop.f32.mrf.mxu0 }
 0x1a2   : > { %2426 = vmatpush.msra.mxu0 %v1837_v25  ;;  %2438 = vmatpush.msra.mxu1 %v334_v26  ;;  %v438_v16 = vld [vmem:[%s4362_s24 + $0x4a8] sm:$0xff]  ;;  %v2112_v26 = vadd.f32 %v2111_v23, %v2092_v18 }
 0x1a3   : > { %2458 = vmatpush.msra.mxu2 %v398_v31  ;;  %2478 = vmatpush.msra.mxu3 %v462_v32  ;;  %v530_v19 = vld [vmem:[%s4362_s24 + $0x788] sm:$0xff] }
 0x1a4   : > { %2427 = vmatpush.msra.mxu0 %v1833_v34  ;;  %2439 = vmatpush.msra.mxu1 %v330_v35  ;;  %v370_v20 = vld [vmem:[%s4362_s24 + $0x288] sm:$0xff]  ;;  %v2131_v35 = vpop.f32.mrf.mxu1 }
 0x1a5   : > { %2459 = vmatpush.msra.mxu2 %v394_v36  ;;  %2479 = vmatpush.msra.mxu3 %v458_v37  ;;  %v434_v21 = vld [vmem:[%s4362_s24 + $0x488] sm:$0xff]  ;;  %v2132_v38 = vadd.f32 %v2131_v35, %v2112_v26 }
 0x1a6   : > { %2428 = vmatpush.msra.mxu0 %v1829_v39  ;;  %2440 = vmatpush.msra.mxu1 %v326_v40  ;;  %v302_v22 = vld [vmem:[%s4362_s24 + $0x68] sm:$0xff] }
 0x1a7   : > { %2460 = vmatpush.msra.mxu2 %v390_v45  ;;  %2480 = vmatpush.msra.mxu3 %v454_v46  ;;  %v366_v25 = vld [vmem:[%s4362_s24 + $0x268] sm:$0xff]  ;;  %v2151_v46 = vpop.f32.mrf.mxu2 }
 0x1a8   : > { %2429 = vmatpush.msra.mxu0 %v1825_v52  ;;  %2441 = vmatpush.msra.mxu1 %v322_v53  ;;  %v430_v27 = vld [vmem:[%s4362_s24 + $0x468] sm:$0xff]  ;;  %v2152_v54 = vadd.f32 %v2151_v46, %v2132_v38 }
 0x1a9   : > { %2461 = vmatpush.msra.mxu2 %v386_v55  ;;  %2481 = vmatpush.msra.mxu3 %v450_v56  ;;  %v298_v31 = vld [vmem:[%s4362_s24 + $0x48] sm:$0xff] }
 0x1aa   : > { %4223 = vmatmul.msk.f32.vlgmr.msra.gmra.mxu0 %vm1931_vm0, %v1906_v58  ;;  %2442 = vmatpush.msra.mxu1 %v318_v59  ;;  %v522_v32 = vld [vmem:[%s4362_s24 + $0x748] sm:$0xff]  ;;  %v2171_v59 = vpop.f32.mrf.mxu3 }
 0x1ab   : > { %2494 = vmatpush.msrb.mxu0 %v542_v60  ;;  %2462 = vmatpush.msra.mxu2 %v382_v61  ;;  %v362_v34 = vld [vmem:[%s4362_s24 + $0x248] sm:$0xff] }
 0x1ac   : > { %2482 = vmatpush.msra.mxu3 %v446_v62  ;;  %2443 = vmatpush.msra.mxu1 %v314_v63  ;;  %v426_v36 = vld [vmem:[%s4362_s24 + $0x448] sm:$0xff]  ;;  %v4898_v62 = vadd.f32 %v2171_v59, %v2152_v54 }
 0x1ad   : > { %2495 = vmatpush.msrb.mxu0 %v538_v1  ;;  %2463 = vmatpush.msra.mxu2 %v378_v2  ;;  %v294_v37 = vld [vmem:[%s4362_s24 + $0x28] sm:$0xff] }
 0x1ae   : > { %2483 = vmatpush.msra.mxu3 %v442_v4  ;;  %2444 = vmatpush.msra.mxu1 %v310_v13  ;;  %v518_v39 = vld [vmem:[%s4362_s24 + $0x728] sm:$0xff] }
 0x1af   : > { %2496 = vmatpush.msrb.mxu0 %v534_v14  ;;  %2464 = vmatpush.msra.mxu2 %v374_v15  ;;  %v358_v40 = vld [vmem:[%s4362_s24 + $0x228] sm:$0xff] }
 0x1b0   : > { %2484 = vmatpush.msra.mxu3 %v438_v16  ;;  %2445 = vmatpush.msra.mxu1 %v306_v17  ;;  %v422_v41 = vld [vmem:[%s4362_s24 + $0x428] sm:$0xff] }
 0x1b1   : > { %2497 = vmatpush.msrb.mxu0 %v530_v19  ;;  %2465 = vmatpush.msra.mxu2 %v370_v20  ;;  %v290_v45 = vld [vmem:[%s4362_s24 + $0x8] sm:$0xff] }
 0x1b2   : > { %2485 = vmatpush.msra.mxu3 %v434_v21  ;;  %2446 = vmatpush.msra.mxu1 %v302_v22  ;;  %v514_v52 = vld [vmem:[%s4362_s24 + $0x708] sm:$0xff] }
 0x1b3   : > { %2498 = vmatpush.msrb.mxu0 %v526_v24  ;;  %2466 = vmatpush.msra.mxu2 %v366_v25  ;;  %v354_v53 = vld [vmem:[%s4362_s24 + $0x208] sm:$0xff] }
 0x1b4   : > { %2486 = vmatpush.msra.mxu3 %v430_v27  ;;  %2447 = vmatpush.msra.mxu1 %v298_v31  ;;  %v418_v55 = vld [vmem:[%s4362_s24 + $0x408] sm:$0xff] }
 0x1b5   : > { %2499 = vmatpush.msrb.mxu0 %v522_v32  ;;  %2467 = vmatpush.msra.mxu2 %v362_v34  ;;  %v606_v56 = vld [vmem:[%s4362_s24 + $0x9e8] sm:$0xff] }
 0x1b6   : > { %2487 = vmatpush.msra.mxu3 %v426_v36  ;;  %2448 = vmatpush.msra.mxu1 %v294_v37  ;;  %v510_v57 = vld [vmem:[%s4362_s24 + $0x6e8] sm:$0xff] }
 0x1b7   : > { %2500 = vmatpush.msrb.mxu0 %v518_v39  ;;  %2468 = vmatpush.msra.mxu2 %v358_v40  ;;  %v670_v58 = vld [vmem:[%s4362_s24 + $0xbe8] sm:$0xff] }
 0x1b8   : > { %2488 = vmatpush.msra.mxu3 %v422_v41  ;;  %2449 = vmatpush.msra.mxu1 %v290_v45  ;;  %v734_v60 = vld [vmem:[%s4362_s24 + $0xde8] sm:$0xff] }
 0x1b9   : > { %2501 = vmatpush.msrb.mxu0 %v514_v52  ;;  %2469 = vmatpush.msra.mxu2 %v354_v53  ;;  %v602_v61 = vld [vmem:[%s4362_s24 + $0x9c8] sm:$0xff] }
 0x1ba   : > { %2489 = vmatpush.msra.mxu3 %v418_v55  ;;  %2514 = vmatpush.msrb.mxu1 %v606_v56  ;;  %v506_v63 = vld [vmem:[%s4362_s24 + $0x6c8] sm:$0xff] }
 0x1bb   : > { %v666_v0 = vld [vmem:[%s4362_s24 + $0xbc8] sm:$0xff]  ;;  %2502 = vmatpush.msrb.mxu0 %v510_v57  ;;  %2534 = vmatpush.msrb.mxu2 %v670_v58 }
 0x1bc   : > { %v730_v1 = vld [vmem:[%s4362_s24 + $0xdc8] sm:$0xff]  ;;  %2554 = vmatpush.msrb.mxu3 %v734_v60  ;;  %2515 = vmatpush.msrb.mxu1 %v602_v61 }
 0x1bd   : > { %v598_v2 = vld [vmem:[%s4362_s24 + $0x9a8] sm:$0xff]  ;;  %2503 = vmatpush.msrb.mxu0 %v506_v63  ;;  %2535 = vmatpush.msrb.mxu2 %v666_v0 }
 0x1be   : > { %v502_v3 = vld [vmem:[%s4362_s24 + $0x6a8] sm:$0xff]  ;;  %2555 = vmatpush.msrb.mxu3 %v730_v1  ;;  %2516 = vmatpush.msrb.mxu1 %v598_v2 }
 0x1bf   : > { %v662_v4 = vld [vmem:[%s4362_s24 + $0xba8] sm:$0xff]  ;;  %2504 = vmatpush.msrb.mxu0 %v502_v3  ;;  %2450 = vmatmul.f32.vlgmr.msra.gmra.mxu1 %v4481_v47 }
 0x1c0   : > { %v726_v13 = vld [vmem:[%s4362_s24 + $0xda8] sm:$0xff]  ;;  %2536 = vmatpush.msrb.mxu2 %v662_v4  ;;  %v2191_v4 = vpop.f32.mrf.mxu0  ;;  %2490 = vmatmul.f32.vlgmr.msra.gmra.mxu3 %v4485_v49 }
 0x1c1   : > { %v594_v14 = vld [vmem:[%s4362_s24 + $0x988] sm:$0xff]  ;;  %2556 = vmatpush.msrb.mxu3 %v726_v13  ;;  %2470 = vmatmul.f32.vlgmr.msra.gmra.mxu2 %v4483_v48 }
 0x1c2   : > { %v498_v15 = vld [vmem:[%s4362_s24 + $0x688] sm:$0xff]  ;;  %2517 = vmatpush.msrb.mxu1 %v594_v14 }
 0x1c3   : > { %v658_v16 = vld [vmem:[%s4362_s24 + $0xb88] sm:$0xff]  ;;  %2505 = vmatpush.msrb.mxu0 %v498_v15  ;;  %v2192_v15 = vadd.f32 %v2191_v4, %v4898_v62 }
 0x1c4   : > { %v722_v17 = vld [vmem:[%s4362_s24 + $0xd88] sm:$0xff]  ;;  %2537 = vmatpush.msrb.mxu2 %v658_v16 }
 0x1c5   : > { %v590_v18 = vld [vmem:[%s4362_s24 + $0x968] sm:$0xff]  ;;  %2557 = vmatpush.msrb.mxu3 %v722_v17 }
 0x1c6   : > { %v494_v19 = vld [vmem:[%s4362_s24 + $0x668] sm:$0xff]  ;;  %2518 = vmatpush.msrb.mxu1 %v590_v18 }
 0x1c7   : > { %v654_v20 = vld [vmem:[%s4362_s24 + $0xb68] sm:$0xff]  ;;  %2506 = vmatpush.msrb.mxu0 %v494_v19 }
 0x1c8   : > { %v718_v21 = vld [vmem:[%s4362_s24 + $0xd68] sm:$0xff]  ;;  %2538 = vmatpush.msrb.mxu2 %v654_v20  ;;  %v2211_v20 = vpop.f32.mrf.mxu1 }
 0x1c9   : > { %v586_v22 = vld [vmem:[%s4362_s24 + $0x948] sm:$0xff]  ;;  %2558 = vmatpush.msrb.mxu3 %v718_v21 }
 0x1ca   : > { %v490_v23 = vld [vmem:[%s4362_s24 + $0x648] sm:$0xff]  ;;  %2519 = vmatpush.msrb.mxu1 %v586_v22 }
 0x1cb   : > { %v650_v24 = vld [vmem:[%s4362_s24 + $0xb48] sm:$0xff]  ;;  %2507 = vmatpush.msrb.mxu0 %v490_v23  ;;  %v2212_v23 = vadd.f32 %v2211_v20, %v2192_v15 }
 0x1cc   : > { %v714_v25 = vld [vmem:[%s4362_s24 + $0xd48] sm:$0xff]  ;;  %2539 = vmatpush.msrb.mxu2 %v650_v24 }
 0x1cd   : > { %v582_v26 = vld [vmem:[%s4362_s24 + $0x928] sm:$0xff]  ;;  %2559 = vmatpush.msrb.mxu3 %v714_v25 }
 0x1ce   : > { %v486_v27 = vld [vmem:[%s4362_s24 + $0x628] sm:$0xff]  ;;  %2520 = vmatpush.msrb.mxu1 %v582_v26  ;;  %v2231_v26 = vpop.f32.mrf.mxu2 }
 0x1cf   : > { %v646_v31 = vld [vmem:[%s4362_s24 + $0xb28] sm:$0xff]  ;;  %2508 = vmatpush.msrb.mxu0 %v486_v27  ;;  %v2232_v27 = vadd.f32 %v2231_v26, %v2212_v23 }
 0x1d0   : > { %v710_v32 = vld [vmem:[%s4362_s24 + $0xd28] sm:$0xff]  ;;  %2540 = vmatpush.msrb.mxu2 %v646_v31 }
 0x1d1   : > { %v578_v34 = vld [vmem:[%s4362_s24 + $0x908] sm:$0xff]  ;;  %2560 = vmatpush.msrb.mxu3 %v710_v32 }
 0x1d2   : > { %v482_v35 = vld [vmem:[%s4362_s24 + $0x608] sm:$0xff]  ;;  %2521 = vmatpush.msrb.mxu1 %v578_v34 }
 0x1d3   : > { %v642_v36 = vld [vmem:[%s4362_s24 + $0xb08] sm:$0xff]  ;;  %2509 = vmatpush.msrb.mxu0 %v482_v35 }
 0x1d4   : > { %v706_v37 = vld [vmem:[%s4362_s24 + $0xd08] sm:$0xff]  ;;  %2541 = vmatpush.msrb.mxu2 %v642_v36  ;;  %v2251_v36 = vpop.f32.mrf.mxu3  ;;  %2510 = vmatmul.f32.vlgmr.msrb.gmra.mxu0 %v4487_v50 }
 0x1d5   : > { %v798_v38 = vld [vmem:[%s4362_s24 + $0xfe8] sm:$0xff]  ;;  %2561 = vmatpush.msrb.mxu3 %v706_v37 }
 0x1d6   : > { %v574_v39 = vld [vmem:[%s4362_s24 + $0x8e8] sm:$0xff]  ;;  %2574 = vmatpush.msra.mxu0 %v798_v38 }
 0x1d7   : > { %v638_v40 = vld [vmem:[%s4362_s24 + $0xae8] sm:$0xff]  ;;  %2522 = vmatpush.msrb.mxu1 %v574_v39  ;;  %v4969_v39 = vadd.f32 %v2251_v36, %v2232_v27 }
 0x1d8   : > { %v702_v41 = vld [vmem:[%s4362_s24 + $0xce8] sm:$0xff]  ;;  %2542 = vmatpush.msrb.mxu2 %v638_v40 }
 0x1d9   : > { %v794_v45 = vld [vmem:[%s4362_s24 + $0xfc8] sm:$0xff]  ;;  %2562 = vmatpush.msrb.mxu3 %v702_v41 }
 0x1da   : > { %v570_v46 = vld [vmem:[%s4362_s24 + $0x8c8] sm:$0xff]  ;;  %2575 = vmatpush.msra.mxu0 %v794_v45 }
 0x1db   : > { %v634_v52 = vld [vmem:[%s4362_s24 + $0xac8] sm:$0xff]  ;;  %2523 = vmatpush.msrb.mxu1 %v570_v46 }
 0x1dc   : > { %v698_v53 = vld [vmem:[%s4362_s24 + $0xcc8] sm:$0xff]  ;;  %2543 = vmatpush.msrb.mxu2 %v634_v52 }
 0x1dd   : > { %v790_v54 = vld [vmem:[%s4362_s24 + $0xfa8] sm:$0xff]  ;;  %2563 = vmatpush.msrb.mxu3 %v698_v53 }
 0x1de   : > { %v566_v55 = vld [vmem:[%s4362_s24 + $0x8a8] sm:$0xff]  ;;  %2576 = vmatpush.msra.mxu0 %v790_v54 }
 0x1df   : > { %v630_v56 = vld [vmem:[%s4362_s24 + $0xaa8] sm:$0xff]  ;;  %2524 = vmatpush.msrb.mxu1 %v566_v55 }
 0x1e0   : > { %v694_v57 = vld [vmem:[%s4362_s24 + $0xca8] sm:$0xff]  ;;  %2544 = vmatpush.msrb.mxu2 %v630_v56 }
 0x1e1   : > { %v786_v58 = vld [vmem:[%s4362_s24 + $0xf88] sm:$0xff]  ;;  %2564 = vmatpush.msrb.mxu3 %v694_v57 }
 0x1e2   : > { %v562_v59 = vld [vmem:[%s4362_s24 + $0x888] sm:$0xff]  ;;  %2577 = vmatpush.msra.mxu0 %v786_v58 }
 0x1e3   : > { %v626_v60 = vld [vmem:[%s4362_s24 + $0xa88] sm:$0xff]  ;;  %2525 = vmatpush.msrb.mxu1 %v562_v59 }
 0x1e4   : > { %v690_v61 = vld [vmem:[%s4362_s24 + $0xc88] sm:$0xff]  ;;  %2545 = vmatpush.msrb.mxu2 %v626_v60 }
 0x1e5   : > { %v782_v63 = vld [vmem:[%s4362_s24 + $0xf68] sm:$0xff]  ;;  %2565 = vmatpush.msrb.mxu3 %v690_v61 }
 0x1e6   : > { %v558_v0 = vld [vmem:[%s4362_s24 + $0x868] sm:$0xff]  ;;  %2578 = vmatpush.msra.mxu0 %v782_v63 }
 0x1e7   : > { %v622_v1 = vld [vmem:[%s4362_s24 + $0xa68] sm:$0xff]  ;;  %2526 = vmatpush.msrb.mxu1 %v558_v0 }
 0x1e8   : > { %v686_v2 = vld [vmem:[%s4362_s24 + $0xc68] sm:$0xff]  ;;  %2546 = vmatpush.msrb.mxu2 %v622_v1 }
 0x1e9   : > { %v778_v3 = vld [vmem:[%s4362_s24 + $0xf48] sm:$0xff]  ;;  %2566 = vmatpush.msrb.mxu3 %v686_v2 }
 0x1ea   : > { %v554_v13 = vld [vmem:[%s4362_s24 + $0x848] sm:$0xff]  ;;  %2579 = vmatpush.msra.mxu0 %v778_v3 }
 0x1eb   : > { %v618_v14 = vld [vmem:[%s4362_s24 + $0xa48] sm:$0xff]  ;;  %2527 = vmatpush.msrb.mxu1 %v554_v13 }
 0x1ec   : > { %v682_v16 = vld [vmem:[%s4362_s24 + $0xc48] sm:$0xff]  ;;  %2547 = vmatpush.msrb.mxu2 %v618_v14 }
 0x1ed   : > { %v774_v17 = vld [vmem:[%s4362_s24 + $0xf28] sm:$0xff]  ;;  %2567 = vmatpush.msrb.mxu3 %v682_v16 }
 0x1ee   : > { %v550_v18 = vld [vmem:[%s4362_s24 + $0x828] sm:$0xff]  ;;  %2580 = vmatpush.msra.mxu0 %v774_v17 }
 0x1ef   : > { %v614_v19 = vld [vmem:[%s4362_s24 + $0xa28] sm:$0xff]  ;;  %2528 = vmatpush.msrb.mxu1 %v550_v18 }
 0x1f0   : > { %v678_v21 = vld [vmem:[%s4362_s24 + $0xc28] sm:$0xff]  ;;  %2548 = vmatpush.msrb.mxu2 %v614_v19 }
 0x1f1   : > { %v770_v22 = vld [vmem:[%s4362_s24 + $0xf08] sm:$0xff]  ;;  %2568 = vmatpush.msrb.mxu3 %v678_v21 }
 0x1f2   : > { %v546_v62 = vld [vmem:[%s4362_s24 + $0x808] sm:$0xff]  ;;  %2581 = vmatpush.msra.mxu0 %v770_v22 }
 0x1f3   : > { %v610_v24 = vld [vmem:[%s4362_s24 + $0xa08] sm:$0xff]  ;;  %2529 = vmatpush.msrb.mxu1 %v546_v62 }
 0x1f4   : > { %v674_v25 = vld [vmem:[%s4362_s24 + $0xc08] sm:$0xff]  ;;  %2549 = vmatpush.msrb.mxu2 %v610_v24  ;;  %2530 = vmatmul.f32.vlgmr.msrb.gmra.mxu1 %v4512_v9 }
 0x1f5   : > { %v766_v31 = vld [vmem:[%s4362_s24 + $0xee8] sm:$0xff]  ;;  %2569 = vmatpush.msrb.mxu3 %v674_v25  ;;  %2550 = vmatmul.f32.vlgmr.msrb.gmra.mxu2 %v4516_v11 }
 0x1f6   : > { %v862_v32 = vld [vmem:[%s4362_s24 + $0x11e8] sm:$0xff]  ;;  %2582 = vmatpush.msra.mxu0 %v766_v31  ;;  %2570 = vmatmul.f32.vlgmr.msrb.gmra.mxu3 %v4510_v8 }
 0x1f7   : > { %v926_v34 = vld [vmem:[%s4362_s24 + $0x13e8] sm:$0xff]  ;;  %2594 = vmatpush.msra.mxu1 %v862_v32 }
 0x1f8   : > { %v990_v35 = vld [vmem:[%s4362_s24 + $0x15e8] sm:$0xff]  ;;  %2614 = vmatpush.msra.mxu2 %v926_v34 }
 0x1f9   : > { %v762_v37 = vld [vmem:[%s4362_s24 + $0xec8] sm:$0xff]  ;;  %2634 = vmatpush.msra.mxu3 %v990_v35 }
 0x1fa   : > { %v858_v38 = vld [vmem:[%s4362_s24 + $0x11c8] sm:$0xff]  ;;  %2583 = vmatpush.msra.mxu0 %v762_v37 }
 0x1fb   : > { %v922_v40 = vld [vmem:[%s4362_s24 + $0x13c8] sm:$0xff]  ;;  %2595 = vmatpush.msra.mxu1 %v858_v38 }
 0x1fc   : > { %v986_v41 = vld [vmem:[%s4362_s24 + $0x15c8] sm:$0xff]  ;;  %2615 = vmatpush.msra.mxu2 %v922_v40  ;;  %v2271_v40 = vpop.f32.mrf.mxu0 }
 0x1fd   : > { %v758_v45 = vld [vmem:[%s4362_s24 + $0xea8] sm:$0xff]  ;;  %2635 = vmatpush.msra.mxu3 %v986_v41 }
 0x1fe   : > { %v854_v46 = vld [vmem:[%s4362_s24 + $0x11a8] sm:$0xff]  ;;  %2584 = vmatpush.msra.mxu0 %v758_v45 }
 0x1ff   : > { %v918_v52 = vld [vmem:[%s4362_s24 + $0x13a8] sm:$0xff]  ;;  %2596 = vmatpush.msra.mxu1 %v854_v46  ;;  %v2272_v46 = vadd.f32 %v2271_v40, %v4969_v39 }
 0x200   : > { %v982_v53 = vld [vmem:[%s4362_s24 + $0x15a8] sm:$0xff]  ;;  %2616 = vmatpush.msra.mxu2 %v918_v52 }
 0x201   : > { %v754_v54 = vld [vmem:[%s4362_s24 + $0xe88] sm:$0xff]  ;;  %2636 = vmatpush.msra.mxu3 %v982_v53 }
 0x202   : > { %v850_v55 = vld [vmem:[%s4362_s24 + $0x1188] sm:$0xff]  ;;  %2585 = vmatpush.msra.mxu0 %v754_v54 }
 0x203   : > { %v914_v56 = vld [vmem:[%s4362_s24 + $0x1388] sm:$0xff]  ;;  %2597 = vmatpush.msra.mxu1 %v850_v55 }
 0x204   : > { %v978_v57 = vld [vmem:[%s4362_s24 + $0x1588] sm:$0xff]  ;;  %2617 = vmatpush.msra.mxu2 %v914_v56  ;;  %v2291_v56 = vpop.f32.mrf.mxu1 }
 0x205   : > { %v750_v58 = vld [vmem:[%s4362_s24 + $0xe68] sm:$0xff]  ;;  %2637 = vmatpush.msra.mxu3 %v978_v57  ;;  %v2292_v39 = vadd.f32 %v2291_v56, %v2272_v46 }
 0x206   : > { %v846_v59 = vld [vmem:[%s4362_s24 + $0x1168] sm:$0xff]  ;;  %2586 = vmatpush.msra.mxu0 %v750_v58 }
 0x207   : > { %v910_v60 = vld [vmem:[%s4362_s24 + $0x1368] sm:$0xff]  ;;  %2598 = vmatpush.msra.mxu1 %v846_v59 }
 0x208   : > { %v974_v61 = vld [vmem:[%s4362_s24 + $0x1568] sm:$0xff]  ;;  %2618 = vmatpush.msra.mxu2 %v910_v60 }
 0x209   : > { %v746_v63 = vld [vmem:[%s4362_s24 + $0xe48] sm:$0xff]  ;;  %2638 = vmatpush.msra.mxu3 %v974_v61 }
 0x20a   : > { %v842_v0 = vld [vmem:[%s4362_s24 + $0x1148] sm:$0xff]  ;;  %2587 = vmatpush.msra.mxu0 %v746_v63 }
 0x20b   : > { %v906_v1 = vld [vmem:[%s4362_s24 + $0x1348] sm:$0xff]  ;;  %2599 = vmatpush.msra.mxu1 %v842_v0  ;;  %v2311_v0 = vpop.f32.mrf.mxu2 }
 0x20c   : > { %v970_v2 = vld [vmem:[%s4362_s24 + $0x1548] sm:$0xff]  ;;  %2619 = vmatpush.msra.mxu2 %v906_v1 }
 0x20d   : > { %v742_v3 = vld [vmem:[%s4362_s24 + $0xe28] sm:$0xff]  ;;  %2639 = vmatpush.msra.mxu3 %v970_v2 }
 0x20e   : > { %v838_v4 = vld [vmem:[%s4362_s24 + $0x1128] sm:$0xff]  ;;  %2588 = vmatpush.msra.mxu0 %v742_v3  ;;  %v2312_v3 = vadd.f32 %v2311_v0, %v2292_v39 }
 0x20f   : > { %v902_v13 = vld [vmem:[%s4362_s24 + $0x1328] sm:$0xff]  ;;  %2600 = vmatpush.msra.mxu1 %v838_v4 }
 0x210   : > { %v966_v14 = vld [vmem:[%s4362_s24 + $0x1528] sm:$0xff]  ;;  %2620 = vmatpush.msra.mxu2 %v902_v13 }
 0x211   : > { %v738_v15 = vld [vmem:[%s4362_s24 + $0xe08] sm:$0xff]  ;;  %2640 = vmatpush.msra.mxu3 %v966_v14  ;;  %v2331_v14 = vpop.f32.mrf.mxu3 }
 0x212   : > { %v834_v16 = vld [vmem:[%s4362_s24 + $0x1108] sm:$0xff]  ;;  %2589 = vmatpush.msra.mxu0 %v738_v15 }
 0x213   : > { %v898_v17 = vld [vmem:[%s4362_s24 + $0x1308] sm:$0xff]  ;;  %2601 = vmatpush.msra.mxu1 %v834_v16  ;;  %2590 = vmatmul.f32.vlgmr.msra.gmra.mxu0 %v4514_v10 }
 0x214   : > { %v962_v18 = vld [vmem:[%s4362_s24 + $0x1508] sm:$0xff]  ;;  %2621 = vmatpush.msra.mxu2 %v898_v17  ;;  %v5038_v17 = vadd.f32 %v2331_v14, %v2312_v3 }
 0x215   : > { %v1054_v19 = vld [vmem:[%s4362_s24 + $0x17e8] sm:$0xff]  ;;  %2641 = vmatpush.msra.mxu3 %v962_v18 }
 0x216   : > { %v830_v20 = vld [vmem:[%s4362_s24 + $0x10e8] sm:$0xff]  ;;  %2654 = vmatpush.msrb.mxu0 %v1054_v19 }
 0x217   : > { %v894_v21 = vld [vmem:[%s4362_s24 + $0x12e8] sm:$0xff]  ;;  %2602 = vmatpush.msra.mxu1 %v830_v20 }
 0x218   : > { %v958_v22 = vld [vmem:[%s4362_s24 + $0x14e8] sm:$0xff]  ;;  %2622 = vmatpush.msra.mxu2 %v894_v21 }
 0x219   : > { %v1050_v23 = vld [vmem:[%s4362_s24 + $0x17c8] sm:$0xff]  ;;  %2642 = vmatpush.msra.mxu3 %v958_v22 }
 0x21a   : > { %v826_v62 = vld [vmem:[%s4362_s24 + $0x10c8] sm:$0xff]  ;;  %2655 = vmatpush.msrb.mxu0 %v1050_v23 }
 0x21b   : > { %v890_v24 = vld [vmem:[%s4362_s24 + $0x12c8] sm:$0xff]  ;;  %2603 = vmatpush.msra.mxu1 %v826_v62 }
 0x21c   : > { %v954_v25 = vld [vmem:[%s4362_s24 + $0x14c8] sm:$0xff]  ;;  %2623 = vmatpush.msra.mxu2 %v890_v24 }
 0x21d   : > { %v1046_v26 = vld [vmem:[%s4362_s24 + $0x17a8] sm:$0xff]  ;;  %2643 = vmatpush.msra.mxu3 %v954_v25 }
 0x21e   : > { %v822_v27 = vld [vmem:[%s4362_s24 + $0x10a8] sm:$0xff]  ;;  %2656 = vmatpush.msrb.mxu0 %v1046_v26 }
 0x21f   : > { %v886_v31 = vld [vmem:[%s4362_s24 + $0x12a8] sm:$0xff]  ;;  %2604 = vmatpush.msra.mxu1 %v822_v27 }
 0x220   : > { %v950_v32 = vld [vmem:[%s4362_s24 + $0x14a8] sm:$0xff]  ;;  %2624 = vmatpush.msra.mxu2 %v886_v31 }
 0x221   : > { %v1042_v34 = vld [vmem:[%s4362_s24 + $0x1788] sm:$0xff]  ;;  %2644 = vmatpush.msra.mxu3 %v950_v32 }
 0x222   : > { %v818_v35 = vld [vmem:[%s4362_s24 + $0x1088] sm:$0xff]  ;;  %2657 = vmatpush.msrb.mxu0 %v1042_v34 }
 0x223   : > { %v882_v36 = vld [vmem:[%s4362_s24 + $0x1288] sm:$0xff]  ;;  %2605 = vmatpush.msra.mxu1 %v818_v35 }
 0x224   : > { %v946_v37 = vld [vmem:[%s4362_s24 + $0x1488] sm:$0xff]  ;;  %2625 = vmatpush.msra.mxu2 %v882_v36 }
 0x225   : > { %v1038_v38 = vld [vmem:[%s4362_s24 + $0x1768] sm:$0xff]  ;;  %2645 = vmatpush.msra.mxu3 %v946_v37 }
 0x226   : > { %v814_v41 = vld [vmem:[%s4362_s24 + $0x1068] sm:$0xff]  ;;  %2658 = vmatpush.msrb.mxu0 %v1038_v38 }
 0x227   : > { %v878_v45 = vld [vmem:[%s4362_s24 + $0x1268] sm:$0xff]  ;;  %2606 = vmatpush.msra.mxu1 %v814_v41 }
 0x228   : > { %v942_v52 = vld [vmem:[%s4362_s24 + $0x1468] sm:$0xff]  ;;  %2626 = vmatpush.msra.mxu2 %v878_v45 }
 0x229   : > { %v1034_v53 = vld [vmem:[%s4362_s24 + $0x1748] sm:$0xff]  ;;  %2646 = vmatpush.msra.mxu3 %v942_v52 }
 0x22a   : > { %v810_v54 = vld [vmem:[%s4362_s24 + $0x1048] sm:$0xff]  ;;  %2659 = vmatpush.msrb.mxu0 %v1034_v53 }
 0x22b   : > { %v874_v55 = vld [vmem:[%s4362_s24 + $0x1248] sm:$0xff]  ;;  %2607 = vmatpush.msra.mxu1 %v810_v54 }
 0x22c   : > { %v938_v57 = vld [vmem:[%s4362_s24 + $0x1448] sm:$0xff]  ;;  %2627 = vmatpush.msra.mxu2 %v874_v55 }
 0x22d   : > { %v1030_v58 = vld [vmem:[%s4362_s24 + $0x1728] sm:$0xff]  ;;  %2647 = vmatpush.msra.mxu3 %v938_v57 }
 0x22e   : > { %v806_v59 = vld [vmem:[%s4362_s24 + $0x1028] sm:$0xff]  ;;  %2660 = vmatpush.msrb.mxu0 %v1030_v58 }
 0x22f   : > { %v870_v60 = vld [vmem:[%s4362_s24 + $0x1228] sm:$0xff]  ;;  %2608 = vmatpush.msra.mxu1 %v806_v59 }
 0x230   : > { %v934_v61 = vld [vmem:[%s4362_s24 + $0x1428] sm:$0xff]  ;;  %2628 = vmatpush.msra.mxu2 %v870_v60 }
 0x231   : > { %v1026_v63 = vld [vmem:[%s4362_s24 + $0x1708] sm:$0xff]  ;;  %2648 = vmatpush.msra.mxu3 %v934_v61 }
 0x232   : > { %v802_v1 = vld [vmem:[%s4362_s24 + $0x1008] sm:$0xff]  ;;  %2661 = vmatpush.msrb.mxu0 %v1026_v63 }
 0x233   : > { %v866_v2 = vld [vmem:[%s4362_s24 + $0x1208] sm:$0xff]  ;;  %2609 = vmatpush.msra.mxu1 %v802_v1 }
 0x234   : > { %v930_v4 = vld [vmem:[%s4362_s24 + $0x1408] sm:$0xff]  ;;  %2629 = vmatpush.msra.mxu2 %v866_v2  ;;  %2610 = vmatmul.f32.vlgmr.msra.gmra.mxu1 %v4538_v28 }
 0x235   : > { %v1022_v13 = vld [vmem:[%s4362_s24 + $0x16e8] sm:$0xff]  ;;  %2649 = vmatpush.msra.mxu3 %v930_v4  ;;  %2630 = vmatmul.f32.vlgmr.msra.gmra.mxu2 %v4542_v30 }
 0x236   : > { %v1118_v15 = vld [vmem:[%s4362_s24 + $0x19e8] sm:$0xff]  ;;  %2662 = vmatpush.msrb.mxu0 %v1022_v13  ;;  %2650 = vmatmul.f32.vlgmr.msra.gmra.mxu3 %v4540_v29 }
 0x237   : > { %v1182_v16 = vld [vmem:[%s4362_s24 + $0x1be8] sm:$0xff]  ;;  %2674 = vmatpush.msrb.mxu1 %v1118_v15 }
 0x238   : > { %v1246_v18 = vld [vmem:[%s4362_s24 + $0x1de8] sm:$0xff]  ;;  %2694 = vmatpush.msrb.mxu2 %v1182_v16 }
 0x239   : > { %v1018_v19 = vld [vmem:[%s4362_s24 + $0x16c8] sm:$0xff]  ;;  %2714 = vmatpush.msrb.mxu3 %v1246_v18 }
 0x23a   : > { %v1114_v20 = vld [vmem:[%s4362_s24 + $0x19c8] sm:$0xff]  ;;  %2663 = vmatpush.msrb.mxu0 %v1018_v19 }
 0x23b   : > { %v1178_v21 = vld [vmem:[%s4362_s24 + $0x1bc8] sm:$0xff]  ;;  %2675 = vmatpush.msrb.mxu1 %v1114_v20 }
 0x23c   : > { %v1242_v22 = vld [vmem:[%s4362_s24 + $0x1dc8] sm:$0xff]  ;;  %2695 = vmatpush.msrb.mxu2 %v1178_v21  ;;  %v2351_v21 = vpop.f32.mrf.mxu0 }
 0x23d   : > { %v1014_v23 = vld [vmem:[%s4362_s24 + $0x16a8] sm:$0xff]  ;;  %2715 = vmatpush.msrb.mxu3 %v1242_v22 }
 0x23e   : > { %v1110_v62 = vld [vmem:[%s4362_s24 + $0x19a8] sm:$0xff]  ;;  %2664 = vmatpush.msrb.mxu0 %v1014_v23 }
 0x23f   : > { %v1174_v24 = vld [vmem:[%s4362_s24 + $0x1ba8] sm:$0xff]  ;;  %2676 = vmatpush.msrb.mxu1 %v1110_v62  ;;  %v2352_v62 = vadd.f32 %v2351_v21, %v5038_v17 }
 0x240   : > { %v1238_v25 = vld [vmem:[%s4362_s24 + $0x1da8] sm:$0xff]  ;;  %2696 = vmatpush.msrb.mxu2 %v1174_v24 }
 0x241   : > { %v1010_v26 = vld [vmem:[%s4362_s24 + $0x1688] sm:$0xff]  ;;  %2716 = vmatpush.msrb.mxu3 %v1238_v25 }
 0x242   : > { %v1106_v27 = vld [vmem:[%s4362_s24 + $0x1988] sm:$0xff]  ;;  %2665 = vmatpush.msrb.mxu0 %v1010_v26 }
 0x243   : > { %v1170_v31 = vld [vmem:[%s4362_s24 + $0x1b88] sm:$0xff]  ;;  %2677 = vmatpush.msrb.mxu1 %v1106_v27 }
 0x244   : > { %v1234_v32 = vld [vmem:[%s4362_s24 + $0x1d88] sm:$0xff]  ;;  %2697 = vmatpush.msrb.mxu2 %v1170_v31  ;;  %v2371_v31 = vpop.f32.mrf.mxu1 }
 0x245   : > { %v1006_v34 = vld [vmem:[%s4362_s24 + $0x1668] sm:$0xff]  ;;  %2717 = vmatpush.msrb.mxu3 %v1234_v32  ;;  %v2372_v17 = vadd.f32 %v2371_v31, %v2352_v62 }
 0x246   : > { %v1102_v35 = vld [vmem:[%s4362_s24 + $0x1968] sm:$0xff]  ;;  %2666 = vmatpush.msrb.mxu0 %v1006_v34 }
 0x247   : > { %v1166_v36 = vld [vmem:[%s4362_s24 + $0x1b68] sm:$0xff]  ;;  %2678 = vmatpush.msrb.mxu1 %v1102_v35 }
 0x248   : > { %v1230_v37 = vld [vmem:[%s4362_s24 + $0x1d68] sm:$0xff]  ;;  %2698 = vmatpush.msrb.mxu2 %v1166_v36 }
 0x249   : > { %v1002_v38 = vld [vmem:[%s4362_s24 + $0x1648] sm:$0xff]  ;;  %2718 = vmatpush.msrb.mxu3 %v1230_v37 }
 0x24a   : > { %v1098_v40 = vld [vmem:[%s4362_s24 + $0x1948] sm:$0xff]  ;;  %2667 = vmatpush.msrb.mxu0 %v1002_v38 }
 0x24b   : > { %v1162_v41 = vld [vmem:[%s4362_s24 + $0x1b48] sm:$0xff]  ;;  %2679 = vmatpush.msrb.mxu1 %v1098_v40  ;;  %v2391_v40 = vpop.f32.mrf.mxu2 }
 0x24c   : > { %v1226_v45 = vld [vmem:[%s4362_s24 + $0x1d48] sm:$0xff]  ;;  %2699 = vmatpush.msrb.mxu2 %v1162_v41 }
 0x24d   : > { %v998_v46 = vld [vmem:[%s4362_s24 + $0x1628] sm:$0xff]  ;;  %2719 = vmatpush.msrb.mxu3 %v1226_v45 }
 0x24e   : > { %v1094_v52 = vld [vmem:[%s4362_s24 + $0x1928] sm:$0xff]  ;;  %2668 = vmatpush.msrb.mxu0 %v998_v46  ;;  %v2392_v46 = vadd.f32 %v2391_v40, %v2372_v17 }
 0x24f   : > { %v1158_v53 = vld [vmem:[%s4362_s24 + $0x1b28] sm:$0xff]  ;;  %2680 = vmatpush.msrb.mxu1 %v1094_v52 }
 0x250   : > { %v1222_v54 = vld [vmem:[%s4362_s24 + $0x1d28] sm:$0xff]  ;;  %2700 = vmatpush.msrb.mxu2 %v1158_v53 }
 0x251   : > { %v994_v55 = vld [vmem:[%s4362_s24 + $0x1608] sm:$0xff]  ;;  %2720 = vmatpush.msrb.mxu3 %v1222_v54  ;;  %v2411_v54 = vpop.f32.mrf.mxu3 }
 0x252   : > { %v1090_v56 = vld [vmem:[%s4362_s24 + $0x1908] sm:$0xff]  ;;  %2669 = vmatpush.msrb.mxu0 %v994_v55 }
 0x253   : > { %v1154_v57 = vld [vmem:[%s4362_s24 + $0x1b08] sm:$0xff]  ;;  %2681 = vmatpush.msrb.mxu1 %v1090_v56  ;;  %2670 = vmatmul.f32.vlgmr.msrb.gmra.mxu0 %v4546_v33 }
 0x254   : > { %v1218_v58 = vld [vmem:[%s4362_s24 + $0x1d08] sm:$0xff]  ;;  %2701 = vmatpush.msrb.mxu2 %v1154_v57  ;;  %v2412_v57 = vadd.f32 %v2411_v54, %v2392_v46 }
 0x255   : > { %v1086_v39 = vld [vmem:[%s4362_s24 + $0x18e8] sm:$0xff]  ;;  %2721 = vmatpush.msrb.mxu3 %v1218_v58 }
 0x256   : > { %v1310_v59 = vld [vmem:[%s4362_s24 + $0x1fe8] sm:$0xff]  ;;  %2682 = vmatpush.msrb.mxu1 %v1086_v39 }
 0x257   : > { %v1150_v60 = vld [vmem:[%s4362_s24 + $0x1ae8] sm:$0xff]  ;;  %2734 = vmatpush.msra.mxu0 %v1310_v59 }
 0x258   : > { %v1214_v61 = vld [vmem:[%s4362_s24 + $0x1ce8] sm:$0xff]  ;;  %2702 = vmatpush.msrb.mxu2 %v1150_v60 }
 0x259   : > { %v1082_v63 = vld [vmem:[%s4362_s24 + $0x18c8] sm:$0xff]  ;;  %2722 = vmatpush.msrb.mxu3 %v1214_v61 }
 0x25a   : > { %v1306_v0 = vld [vmem:[%s4362_s24 + $0x1fc8] sm:$0xff]  ;;  %2683 = vmatpush.msrb.mxu1 %v1082_v63 }
 0x25b   : > { %v1146_v1 = vld [vmem:[%s4362_s24 + $0x1ac8] sm:$0xff]  ;;  %2735 = vmatpush.msra.mxu0 %v1306_v0 }
 0x25c   : > { %v1210_v2 = vld [vmem:[%s4362_s24 + $0x1cc8] sm:$0xff]  ;;  %2703 = vmatpush.msrb.mxu2 %v1146_v1 }
 0x25d   : > { %v1078_v3 = vld [vmem:[%s4362_s24 + $0x18a8] sm:$0xff]  ;;  %2723 = vmatpush.msrb.mxu3 %v1210_v2 }
 0x25e   : > { %v1302_v4 = vld [vmem:[%s4362_s24 + $0x1fa8] sm:$0xff]  ;;  %2684 = vmatpush.msrb.mxu1 %v1078_v3 }
 0x25f   : > { %v1142_v13 = vld [vmem:[%s4362_s24 + $0x1aa8] sm:$0xff]  ;;  %2736 = vmatpush.msra.mxu0 %v1302_v4 }
 0x260   : > { %v1206_v14 = vld [vmem:[%s4362_s24 + $0x1ca8] sm:$0xff]  ;;  %2704 = vmatpush.msrb.mxu2 %v1142_v13 }
 0x261   : > { %v1074_v15 = vld [vmem:[%s4362_s24 + $0x1888] sm:$0xff]  ;;  %2724 = vmatpush.msrb.mxu3 %v1206_v14 }
 0x262   : > { %v1298_v16 = vld [vmem:[%s4362_s24 + $0x1f88] sm:$0xff]  ;;  %2685 = vmatpush.msrb.mxu1 %v1074_v15 }
 0x263   : > { %v1138_v18 = vld [vmem:[%s4362_s24 + $0x1a88] sm:$0xff]  ;;  %2737 = vmatpush.msra.mxu0 %v1298_v16 }
 0x264   : > { %v1202_v19 = vld [vmem:[%s4362_s24 + $0x1c88] sm:$0xff]  ;;  %2705 = vmatpush.msrb.mxu2 %v1138_v18  ;;  %v2431_v18 = vpop.f32.mrf.mxu0 }
 0x265   : > { %v1070_v20 = vld [vmem:[%s4362_s24 + $0x1868] sm:$0xff]  ;;  %2725 = vmatpush.msrb.mxu3 %v1202_v19  ;;  %v5129_v21 = vadd.f32 %v2431_v18, %v2412_v57 }
 0x266   : > { %v1294_v22 = vld [vmem:[%s4362_s24 + $0x1f68] sm:$0xff]  ;;  %2686 = vmatpush.msrb.mxu1 %v1070_v20 }
 0x267   : > { %v1134_v23 = vld [vmem:[%s4362_s24 + $0x1a68] sm:$0xff]  ;;  %2738 = vmatpush.msra.mxu0 %v1294_v22 }
 0x268   : > { %v1198_v24 = vld [vmem:[%s4362_s24 + $0x1c68] sm:$0xff]  ;;  %2706 = vmatpush.msrb.mxu2 %v1134_v23 }
 0x269   : > { %v1066_v25 = vld [vmem:[%s4362_s24 + $0x1848] sm:$0xff]  ;;  %2726 = vmatpush.msrb.mxu3 %v1198_v24 }
 0x26a   : > { %v1290_v26 = vld [vmem:[%s4362_s24 + $0x1f48] sm:$0xff]  ;;  %2687 = vmatpush.msrb.mxu1 %v1066_v25 }
 0x26b   : > { %v1130_v27 = vld [vmem:[%s4362_s24 + $0x1a48] sm:$0xff]  ;;  %2739 = vmatpush.msra.mxu0 %v1290_v26 }
 0x26c   : > { %v1194_v32 = vld [vmem:[%s4362_s24 + $0x1c48] sm:$0xff]  ;;  %2707 = vmatpush.msrb.mxu2 %v1130_v27 }
 0x26d   : > { %v1062_v34 = vld [vmem:[%s4362_s24 + $0x1828] sm:$0xff]  ;;  %2727 = vmatpush.msrb.mxu3 %v1194_v32 }
 0x26e   : > { %v1286_v35 = vld [vmem:[%s4362_s24 + $0x1f28] sm:$0xff]  ;;  %2688 = vmatpush.msrb.mxu1 %v1062_v34 }
 0x26f   : > { %v1126_v36 = vld [vmem:[%s4362_s24 + $0x1a28] sm:$0xff]  ;;  %2740 = vmatpush.msra.mxu0 %v1286_v35 }
 0x270   : > { %v1190_v37 = vld [vmem:[%s4362_s24 + $0x1c28] sm:$0xff]  ;;  %2708 = vmatpush.msrb.mxu2 %v1126_v36 }
 0x271   : > { %v1058_v38 = vld [vmem:[%s4362_s24 + $0x1808] sm:$0xff]  ;;  %2728 = vmatpush.msrb.mxu3 %v1190_v37 }
 0x272   : > { %v1282_v41 = vld [vmem:[%s4362_s24 + $0x1f08] sm:$0xff]  ;;  %2689 = vmatpush.msrb.mxu1 %v1058_v38 }
 0x273   : > { %v1122_v45 = vld [vmem:[%s4362_s24 + $0x1a08] sm:$0xff]  ;;  %2741 = vmatpush.msra.mxu0 %v1282_v41  ;;  %2690 = vmatmul.f32.vlgmr.msrb.gmra.mxu1 %v4616_v42 }
 0x274   : > { %v1186_v52 = vld [vmem:[%s4362_s24 + $0x1c08] sm:$0xff]  ;;  %2709 = vmatpush.msrb.mxu2 %v1122_v45 }
 0x275   : > { %v1278_v53 = vld [vmem:[%s4362_s24 + $0x1ee8] sm:$0xff]  ;;  %2729 = vmatpush.msrb.mxu3 %v1186_v52  ;;  %2710 = vmatmul.f32.vlgmr.msrb.gmra.mxu2 %v4620_v44 }
 0x276   : > { %v1374_v55 = vld [vmem:[%s4362_s24 + $0x21e8] sm:$0xff]  ;;  %2742 = vmatpush.msra.mxu0 %v1278_v53  ;;  %2730 = vmatmul.f32.vlgmr.msrb.gmra.mxu3 %v4618_v43 }
 0x277   : > { %v1438_v56 = vld [vmem:[%s4362_s24 + $0x23e8] sm:$0xff]  ;;  %2754 = vmatpush.msra.mxu1 %v1374_v55 }
 0x278   : > { %v1502_v58 = vld [vmem:[%s4362_s24 + $0x25e8] sm:$0xff]  ;;  %2774 = vmatpush.msra.mxu2 %v1438_v56 }
 0x279   : > { %v1274_v39 = vld [vmem:[%s4362_s24 + $0x1ec8] sm:$0xff]  ;;  %2794 = vmatpush.msra.mxu3 %v1502_v58 }
 0x27a   : > { %v1370_v59 = vld [vmem:[%s4362_s24 + $0x21c8] sm:$0xff]  ;;  %2743 = vmatpush.msra.mxu0 %v1274_v39 }
 0x27b   : > { %v1434_v60 = vld [vmem:[%s4362_s24 + $0x23c8] sm:$0xff]  ;;  %2755 = vmatpush.msra.mxu1 %v1370_v59 }
 0x27c   : > { %v1498_v61 = vld [vmem:[%s4362_s24 + $0x25c8] sm:$0xff]  ;;  %2775 = vmatpush.msra.mxu2 %v1434_v60 }
 0x27d   : > { %v1270_v63 = vld [vmem:[%s4362_s24 + $0x1ea8] sm:$0xff]  ;;  %2795 = vmatpush.msra.mxu3 %v1498_v61 }
 0x27e   : > { %v1366_v0 = vld [vmem:[%s4362_s24 + $0x21a8] sm:$0xff]  ;;  %2744 = vmatpush.msra.mxu0 %v1270_v63 }
 0x27f   : > { %v1430_v1 = vld [vmem:[%s4362_s24 + $0x23a8] sm:$0xff]  ;;  %2756 = vmatpush.msra.mxu1 %v1366_v0 }
 0x280   : > { %v1494_v2 = vld [vmem:[%s4362_s24 + $0x25a8] sm:$0xff]  ;;  %2776 = vmatpush.msra.mxu2 %v1430_v1 }
 0x281   : > { %v1266_v3 = vld [vmem:[%s4362_s24 + $0x1e88] sm:$0xff]  ;;  %2796 = vmatpush.msra.mxu3 %v1494_v2 }
 0x282   : > { %v1362_v4 = vld [vmem:[%s4362_s24 + $0x2188] sm:$0xff]  ;;  %2745 = vmatpush.msra.mxu0 %v1266_v3 }
 0x283   : > { %v1426_v13 = vld [vmem:[%s4362_s24 + $0x2388] sm:$0xff]  ;;  %2757 = vmatpush.msra.mxu1 %v1362_v4 }
 0x284   : > { %v1490_v14 = vld [vmem:[%s4362_s24 + $0x2588] sm:$0xff]  ;;  %2777 = vmatpush.msra.mxu2 %v1426_v13 }
 0x285   : > { %v1262_v15 = vld [vmem:[%s4362_s24 + $0x1e68] sm:$0xff]  ;;  %2797 = vmatpush.msra.mxu3 %v1490_v14 }
 0x286   : > { %v1358_v16 = vld [vmem:[%s4362_s24 + $0x2168] sm:$0xff]  ;;  %2746 = vmatpush.msra.mxu0 %v1262_v15 }
 0x287   : > { %v1422_v19 = vld [vmem:[%s4362_s24 + $0x2368] sm:$0xff]  ;;  %2758 = vmatpush.msra.mxu1 %v1358_v16 }
 0x288   : > { %v1486_v20 = vld [vmem:[%s4362_s24 + $0x2568] sm:$0xff]  ;;  %2778 = vmatpush.msra.mxu2 %v1422_v19 }
 0x289   : > { %v1258_v22 = vld [vmem:[%s4362_s24 + $0x1e48] sm:$0xff]  ;;  %2798 = vmatpush.msra.mxu3 %v1486_v20 }
 0x28a   : > { %v1354_v23 = vld [vmem:[%s4362_s24 + $0x2148] sm:$0xff]  ;;  %2747 = vmatpush.msra.mxu0 %v1258_v22 }
 0x28b   : > { %v1418_v62 = vld [vmem:[%s4362_s24 + $0x2348] sm:$0xff]  ;;  %2759 = vmatpush.msra.mxu1 %v1354_v23 }
 0x28c   : > { %v1482_v24 = vld [vmem:[%s4362_s24 + $0x2548] sm:$0xff]  ;;  %2779 = vmatpush.msra.mxu2 %v1418_v62 }
 0x28d   : > { %v1254_v25 = vld [vmem:[%s4362_s24 + $0x1e28] sm:$0xff]  ;;  %2799 = vmatpush.msra.mxu3 %v1482_v24 }
 0x28e   : > { %v1350_v26 = vld [vmem:[%s4362_s24 + $0x2128] sm:$0xff]  ;;  %2748 = vmatpush.msra.mxu0 %v1254_v25 }
 0x28f   : > { %v1414_v27 = vld [vmem:[%s4362_s24 + $0x2328] sm:$0xff]  ;;  %2760 = vmatpush.msra.mxu1 %v1350_v26 }
 0x290   : > { %v1478_v31 = vld [vmem:[%s4362_s24 + $0x2528] sm:$0xff]  ;;  %2780 = vmatpush.msra.mxu2 %v1414_v27 }
 0x291   : > { %v1250_v32 = vld [vmem:[%s4362_s24 + $0x1e08] sm:$0xff]  ;;  %2800 = vmatpush.msra.mxu3 %v1478_v31 }
 0x292   : > { %v1346_v34 = vld [vmem:[%s4362_s24 + $0x2108] sm:$0xff]  ;;  %2749 = vmatpush.msra.mxu0 %v1250_v32 }
 0x293   : > { %v1410_v17 = vld [vmem:[%s4362_s24 + $0x2308] sm:$0xff]  ;;  %2761 = vmatpush.msra.mxu1 %v1346_v34  ;;  %2750 = vmatmul.f32.vlgmr.msra.gmra.mxu0 %v4624_v51 }
 0x294   : > { %v1474_v35 = vld [vmem:[%s4362_s24 + $0x2508] sm:$0xff]  ;;  %2781 = vmatpush.msra.mxu2 %v1410_v17 }
 0x295   : > { %v1342_v36 = vld [vmem:[%s4362_s24 + $0x20e8] sm:$0xff]  ;;  %2801 = vmatpush.msra.mxu3 %v1474_v35 }
 0x296   : > { %v1566_v37 = vld [vmem:[%s4362_s24 + $0x27e8] sm:$0xff]  ;;  %2762 = vmatpush.msra.mxu1 %v1342_v36 }
 0x297   : > { %v1406_v38 = vld [vmem:[%s4362_s24 + $0x22e8] sm:$0xff]  ;;  %2814 = vmatpush.msrb.mxu0 %v1566_v37 }
 0x298   : > { %v1470_v40 = vld [vmem:[%s4362_s24 + $0x24e8] sm:$0xff]  ;;  %2782 = vmatpush.msra.mxu2 %v1406_v38 }
 0x299   : > { %v1338_v41 = vld [vmem:[%s4362_s24 + $0x20c8] sm:$0xff]  ;;  %2802 = vmatpush.msra.mxu3 %v1470_v40 }
 0x29a   : > { %v1562_v45 = vld [vmem:[%s4362_s24 + $0x27c8] sm:$0xff]  ;;  %2763 = vmatpush.msra.mxu1 %v1338_v41 }
 0x29b   : > { %v1402_v46 = vld [vmem:[%s4362_s24 + $0x22c8] sm:$0xff]  ;;  %2815 = vmatpush.msrb.mxu0 %v1562_v45 }
 0x29c   : > { %v1466_v52 = vld [vmem:[%s4362_s24 + $0x24c8] sm:$0xff]  ;;  %2783 = vmatpush.msra.mxu2 %v1402_v46 }
 0x29d   : > { %v1334_v53 = vld [vmem:[%s4362_s24 + $0x20a8] sm:$0xff]  ;;  %2803 = vmatpush.msra.mxu3 %v1466_v52 }
 0x29e   : > { %v1558_v54 = vld [vmem:[%s4362_s24 + $0x27a8] sm:$0xff]  ;;  %2764 = vmatpush.msra.mxu1 %v1334_v53 }
 0x29f   : > { %v1398_v55 = vld [vmem:[%s4362_s24 + $0x22a8] sm:$0xff]  ;;  %2816 = vmatpush.msrb.mxu0 %v1558_v54 }
 0x2a0   : > { %v1462_v56 = vld [vmem:[%s4362_s24 + $0x24a8] sm:$0xff]  ;;  %2784 = vmatpush.msra.mxu2 %v1398_v55 }
 0x2a1   : > { %v1330_v57 = vld [vmem:[%s4362_s24 + $0x2088] sm:$0xff]  ;;  %2804 = vmatpush.msra.mxu3 %v1462_v56 }
 0x2a2   : > { %v1554_v58 = vld [vmem:[%s4362_s24 + $0x2788] sm:$0xff]  ;;  %2765 = vmatpush.msra.mxu1 %v1330_v57 }
 0x2a3   : > { %v1394_v39 = vld [vmem:[%s4362_s24 + $0x2288] sm:$0xff]  ;;  %2817 = vmatpush.msrb.mxu0 %v1554_v58 }
 0x2a4   : > { %v1458_v59 = vld [vmem:[%s4362_s24 + $0x2488] sm:$0xff]  ;;  %2785 = vmatpush.msra.mxu2 %v1394_v39 }
 0x2a5   : > { %v1326_v60 = vld [vmem:[%s4362_s24 + $0x2068] sm:$0xff]  ;;  %2805 = vmatpush.msra.mxu3 %v1458_v59 }
 0x2a6   : > { %v1550_v61 = vld [vmem:[%s4362_s24 + $0x2768] sm:$0xff]  ;;  %2766 = vmatpush.msra.mxu1 %v1326_v60 }
 0x2a7   : > { %v1390_v63 = vld [vmem:[%s4362_s24 + $0x2268] sm:$0xff]  ;;  %2818 = vmatpush.msrb.mxu0 %v1550_v61 }
 0x2a8   : > { %v1454_v0 = vld [vmem:[%s4362_s24 + $0x2468] sm:$0xff]  ;;  %2786 = vmatpush.msra.mxu2 %v1390_v63 }
 0x2a9   : > { %v1322_v1 = vld [vmem:[%s4362_s24 + $0x2048] sm:$0xff]  ;;  %2806 = vmatpush.msra.mxu3 %v1454_v0 }
 0x2aa   : > { %v1546_v2 = vld [vmem:[%s4362_s24 + $0x2748] sm:$0xff]  ;;  %2767 = vmatpush.msra.mxu1 %v1322_v1 }
 0x2ab   : > { %v1386_v3 = vld [vmem:[%s4362_s24 + $0x2248] sm:$0xff]  ;;  %2819 = vmatpush.msrb.mxu0 %v1546_v2 }
 0x2ac   : > { %v1450_v4 = vld [vmem:[%s4362_s24 + $0x2448] sm:$0xff]  ;;  %2787 = vmatpush.msra.mxu2 %v1386_v3 }
 0x2ad   : > { %v1318_v13 = vld [vmem:[%s4362_s24 + $0x2028] sm:$0xff]  ;;  %2807 = vmatpush.msra.mxu3 %v1450_v4 }
 0x2ae   : > { %v1542_v14 = vld [vmem:[%s4362_s24 + $0x2728] sm:$0xff]  ;;  %2768 = vmatpush.msra.mxu1 %v1318_v13 }
 0x2af   : > { %v1382_v15 = vld [vmem:[%s4362_s24 + $0x2228] sm:$0xff]  ;;  %2820 = vmatpush.msrb.mxu0 %v1542_v14 }
 0x2b0   : > { %v1446_v16 = vld [vmem:[%s4362_s24 + $0x2428] sm:$0xff]  ;;  %2788 = vmatpush.msra.mxu2 %v1382_v15 }
 0x2b1   : > { %v1314_v18 = vld [vmem:[%s4362_s24 + $0x2008] sm:$0xff]  ;;  %2808 = vmatpush.msra.mxu3 %v1446_v16 }
 0x2b2   : > { %v1538_v19 = vld [vmem:[%s4362_s24 + $0x2708] sm:$0xff]  ;;  %2769 = vmatpush.msra.mxu1 %v1314_v18 }
 0x2b3   : > { %v1378_v20 = vld [vmem:[%s4362_s24 + $0x2208] sm:$0xff]  ;;  %2821 = vmatpush.msrb.mxu0 %v1538_v19  ;;  %2770 = vmatmul.f32.vlgmr.msra.gmra.mxu1 %v4695_v5 }
 0x2b4   : > { %v1442_v22 = vld [vmem:[%s4362_s24 + $0x2408] sm:$0xff]  ;;  %2789 = vmatpush.msra.mxu2 %v1378_v20 }
 0x2b5   : > { %v1534_v23 = vld [vmem:[%s4362_s24 + $0x26e8] sm:$0xff]  ;;  %2809 = vmatpush.msra.mxu3 %v1442_v22  ;;  %2790 = vmatmul.f32.vlgmr.msra.gmra.mxu2 %v4699_v7 }
 0x2b6   : > { %v1630_v62 = vld [vmem:[%s4362_s24 + $0x29e8] sm:$0xff]  ;;  %2822 = vmatpush.msrb.mxu0 %v1534_v23  ;;  %2810 = vmatmul.f32.vlgmr.msra.gmra.mxu3 %v4697_v6 }
 0x2b7   : > { %v1694_v24 = vld [vmem:[%s4362_s24 + $0x2be8] sm:$0xff]  ;;  %2834 = vmatpush.msrb.mxu1 %v1630_v62 }
 0x2b8   : > { %v1758_v25 = vld [vmem:[%s4362_s24 + $0x2de8] sm:$0xff]  ;;  %2854 = vmatpush.msrb.mxu2 %v1694_v24 }
 0x2b9   : > { %v1530_v26 = vld [vmem:[%s4362_s24 + $0x26c8] sm:$0xff]  ;;  %2874 = vmatpush.msrb.mxu3 %v1758_v25 }
 0x2ba   : > { %v1626_v27 = vld [vmem:[%s4362_s24 + $0x29c8] sm:$0xff]  ;;  %2823 = vmatpush.msrb.mxu0 %v1530_v26 }
 0x2bb   : > { %v1690_v31 = vld [vmem:[%s4362_s24 + $0x2bc8] sm:$0xff]  ;;  %2835 = vmatpush.msrb.mxu1 %v1626_v27 }
 0x2bc   : > { %v1754_v32 = vld [vmem:[%s4362_s24 + $0x2dc8] sm:$0xff]  ;;  %2855 = vmatpush.msrb.mxu2 %v1690_v31 }
 0x2bd   : > { %v1526_v34 = vld [vmem:[%s4362_s24 + $0x26a8] sm:$0xff]  ;;  %2875 = vmatpush.msrb.mxu3 %v1754_v32 }
 0x2be   : > { %v1622_v17 = vld [vmem:[%s4362_s24 + $0x29a8] sm:$0xff]  ;;  %2824 = vmatpush.msrb.mxu0 %v1526_v34 }
 0x2bf   : > { %v1686_v35 = vld [vmem:[%s4362_s24 + $0x2ba8] sm:$0xff]  ;;  %2836 = vmatpush.msrb.mxu1 %v1622_v17 }
 0x2c0   : > { %v1750_v36 = vld [vmem:[%s4362_s24 + $0x2da8] sm:$0xff]  ;;  %2856 = vmatpush.msrb.mxu2 %v1686_v35 }
 0x2c1   : > { %v1522_v37 = vld [vmem:[%s4362_s24 + $0x2688] sm:$0xff]  ;;  %2876 = vmatpush.msrb.mxu3 %v1750_v36 }
 0x2c2   : > { %v1618_v38 = vld [vmem:[%s4362_s24 + $0x2988] sm:$0xff]  ;;  %2825 = vmatpush.msrb.mxu0 %v1522_v37 }
 0x2c3   : > { %v1682_v40 = vld [vmem:[%s4362_s24 + $0x2b88] sm:$0xff]  ;;  %2837 = vmatpush.msrb.mxu1 %v1618_v38 }
 0x2c4   : > { %v1746_v41 = vld [vmem:[%s4362_s24 + $0x2d88] sm:$0xff]  ;;  %2857 = vmatpush.msrb.mxu2 %v1682_v40 }
 0x2c5   : > { %v1518_v45 = vld [vmem:[%s4362_s24 + $0x2668] sm:$0xff]  ;;  %2877 = vmatpush.msrb.mxu3 %v1746_v41 }
 0x2c6   : > { %v1614_v46 = vld [vmem:[%s4362_s24 + $0x2968] sm:$0xff]  ;;  %2826 = vmatpush.msrb.mxu0 %v1518_v45 }
 0x2c7   : > { %v1678_v52 = vld [vmem:[%s4362_s24 + $0x2b68] sm:$0xff]  ;;  %2838 = vmatpush.msrb.mxu1 %v1614_v46 }
 0x2c8   : > { %v1742_v53 = vld [vmem:[%s4362_s24 + $0x2d68] sm:$0xff]  ;;  %2858 = vmatpush.msrb.mxu2 %v1678_v52 }
 0x2c9   : > { %v1514_v54 = vld [vmem:[%s4362_s24 + $0x2648] sm:$0xff]  ;;  %2878 = vmatpush.msrb.mxu3 %v1742_v53 }
 0x2ca   : > { %v1610_v55 = vld [vmem:[%s4362_s24 + $0x2948] sm:$0xff]  ;;  %2827 = vmatpush.msrb.mxu0 %v1514_v54 }
 0x2cb   : > { %v1674_v56 = vld [vmem:[%s4362_s24 + $0x2b48] sm:$0xff]  ;;  %2839 = vmatpush.msrb.mxu1 %v1610_v55 }
 0x2cc   : > { %v1738_v57 = vld [vmem:[%s4362_s24 + $0x2d48] sm:$0xff]  ;;  %2859 = vmatpush.msrb.mxu2 %v1674_v56 }
 0x2cd   : > { %v1510_v58 = vld [vmem:[%s4362_s24 + $0x2628] sm:$0xff]  ;;  %2879 = vmatpush.msrb.mxu3 %v1738_v57  ;;  %v351_v57 = vld [vmem:[%s4362_s24 + $0x1f0] sm:$0xff] }
 0x2ce   : > { %v1606_v39 = vld [vmem:[%s4362_s24 + $0x2928] sm:$0xff]  ;;  %2828 = vmatpush.msrb.mxu0 %v1510_v58  ;;  %v4256_v58 = vld.sshfl [vmem:[#allocation1 + $0x20] sm:$0xff pattern:$0x73625140] }
 0x2cf   : > { %v1670_v59 = vld [vmem:[%s4362_s24 + $0x2b28] sm:$0xff]  ;;  %2840 = vmatpush.msrb.mxu1 %v1606_v39  ;;  %v415_v39 = vld [vmem:[%s4362_s24 + $0x3f0] sm:$0xff] }
 0x2d0   : > { %v1734_v60 = vld [vmem:[%s4362_s24 + $0x2d28] sm:$0xff]  ;;  %2860 = vmatpush.msrb.mxu2 %v1670_v59 }
 0x2d1   : > { %v1506_v61 = vld [vmem:[%s4362_s24 + $0x2608] sm:$0xff]  ;;  %2880 = vmatpush.msrb.mxu3 %v1734_v60 }
 0x2d2   : > { %v1602_v63 = vld [vmem:[%s4362_s24 + $0x2908] sm:$0xff]  ;;  %2829 = vmatpush.msrb.mxu0 %v1506_v61 }
 0x2d3   : > { %v1666_v0 = vld [vmem:[%s4362_s24 + $0x2b08] sm:$0xff]  ;;  %2841 = vmatpush.msrb.mxu1 %v1602_v63  ;;  %2830 = vmatmul.f32.vlgmr.msrb.gmra.mxu0 %v4701_v12  ;;  %v347_v63 = vld [vmem:[%s4362_s24 + $0x1d0] sm:$0xff] }
 0x2d4   : > { %v1730_v1 = vld [vmem:[%s4362_s24 + $0x2d08] sm:$0xff]  ;;  %2861 = vmatpush.msrb.mxu2 %v1666_v0  ;;  %v411_v0 = vld [vmem:[%s4362_s24 + $0x3d0] sm:$0xff] }
 0x2d5   : > { %v1598_v2 = vld [vmem:[%s4362_s24 + $0x28e8] sm:$0xff]  ;;  %2881 = vmatpush.msrb.mxu3 %v1730_v1 }
 0x2d6   : > { %v1822_v3 = vld [vmem:[%s4362_s24 + $0x2fe8] sm:$0xff]  ;;  %2842 = vmatpush.msrb.mxu1 %v1598_v2 }
 0x2d7   : > { %v1662_v4 = vld [vmem:[%s4362_s24 + $0x2ae8] sm:$0xff]  ;;  %2894 = vmatpush.msra.mxu0 %v1822_v3  ;;  %v4258_v3 = vld.sshfl [vmem:[#allocation1 + $0x30] sm:$0xff pattern:$0x73625140] }
 0x2d8   : > { %v1726_v13 = vld [vmem:[%s4362_s24 + $0x2ce8] sm:$0xff]  ;;  %2862 = vmatpush.msrb.mxu2 %v1662_v4  ;;  %v343_v4 = vld [vmem:[%s4362_s24 + $0x1b0] sm:$0xff] }
 0x2d9   : > { %v1594_v14 = vld [vmem:[%s4362_s24 + $0x28c8] sm:$0xff]  ;;  %2882 = vmatpush.msrb.mxu3 %v1726_v13  ;;  %v407_v13 = vld [vmem:[%s4362_s24 + $0x3b0] sm:$0xff] }
 0x2da   : > { %v1818_v15 = vld [vmem:[%s4362_s24 + $0x2fc8] sm:$0xff]  ;;  %2843 = vmatpush.msrb.mxu1 %v1594_v14 }
 0x2db   : > { %v1658_v16 = vld [vmem:[%s4362_s24 + $0x2ac8] sm:$0xff]  ;;  %2895 = vmatpush.msra.mxu0 %v1818_v15 }
 0x2dc   : > { %v1722_v18 = vld [vmem:[%s4362_s24 + $0x2cc8] sm:$0xff]  ;;  %2863 = vmatpush.msrb.mxu2 %v1658_v16  ;;  %v339_v16 = vld [vmem:[%s4362_s24 + $0x190] sm:$0xff] }
 0x2dd   : > { %v1590_v19 = vld [vmem:[%s4362_s24 + $0x28a8] sm:$0xff]  ;;  %2883 = vmatpush.msrb.mxu3 %v1722_v18  ;;  %v403_v18 = vld [vmem:[%s4362_s24 + $0x390] sm:$0xff] }
 0x2de   : > { %v1814_v20 = vld [vmem:[%s4362_s24 + $0x2fa8] sm:$0xff]  ;;  %2844 = vmatpush.msrb.mxu1 %v1590_v19 }
 0x2df   : > { %v1654_v22 = vld [vmem:[%s4362_s24 + $0x2aa8] sm:$0xff]  ;;  %2896 = vmatpush.msra.mxu0 %v1814_v20 }
 0x2e0   : > { %v1718_v23 = vld [vmem:[%s4362_s24 + $0x2ca8] sm:$0xff]  ;;  %2864 = vmatpush.msrb.mxu2 %v1654_v22  ;;  %v335_v22 = vld [vmem:[%s4362_s24 + $0x170] sm:$0xff] }
 0x2e1   : > { %v1586_v62 = vld [vmem:[%s4362_s24 + $0x2888] sm:$0xff]  ;;  %2884 = vmatpush.msrb.mxu3 %v1718_v23  ;;  %v399_v23 = vld [vmem:[%s4362_s24 + $0x370] sm:$0xff] }
 0x2e2   : > { %v1810_v24 = vld [vmem:[%s4362_s24 + $0x2f88] sm:$0xff]  ;;  %2845 = vmatpush.msrb.mxu1 %v1586_v62 }
 0x2e3   : > { %v1650_v25 = vld [vmem:[%s4362_s24 + $0x2a88] sm:$0xff]  ;;  %2897 = vmatpush.msra.mxu0 %v1810_v24 }
 0x2e4   : > { %v1714_v26 = vld [vmem:[%s4362_s24 + $0x2c88] sm:$0xff]  ;;  %2865 = vmatpush.msrb.mxu2 %v1650_v25  ;;  %v331_v25 = vld [vmem:[%s4362_s24 + $0x150] sm:$0xff] }
 0x2e5   : > { %v1582_v27 = vld [vmem:[%s4362_s24 + $0x2868] sm:$0xff]  ;;  %2885 = vmatpush.msrb.mxu3 %v1714_v26  ;;  %v395_v26 = vld [vmem:[%s4362_s24 + $0x350] sm:$0xff] }
 0x2e6   : > { %v1806_v31 = vld [vmem:[%s4362_s24 + $0x2f68] sm:$0xff]  ;;  %2846 = vmatpush.msrb.mxu1 %v1582_v27 }
 0x2e7   : > { %v1646_v32 = vld [vmem:[%s4362_s24 + $0x2a68] sm:$0xff]  ;;  %2898 = vmatpush.msra.mxu0 %v1806_v31 }
 0x2e8   : > { %v1710_v34 = vld [vmem:[%s4362_s24 + $0x2c68] sm:$0xff]  ;;  %2866 = vmatpush.msrb.mxu2 %v1646_v32  ;;  %v327_v32 = vld [vmem:[%s4362_s24 + $0x130] sm:$0xff] }
 0x2e9   : > { %v1578_v17 = vld [vmem:[%s4362_s24 + $0x2848] sm:$0xff]  ;;  %2886 = vmatpush.msrb.mxu3 %v1710_v34  ;;  %v391_v34 = vld [vmem:[%s4362_s24 + $0x330] sm:$0xff] }
 0x2ea   : > { %v1802_v35 = vld [vmem:[%s4362_s24 + $0x2f48] sm:$0xff]  ;;  %2847 = vmatpush.msrb.mxu1 %v1578_v17 }
 0x2eb   : > { %v1642_v36 = vld [vmem:[%s4362_s24 + $0x2a48] sm:$0xff]  ;;  %2899 = vmatpush.msra.mxu0 %v1802_v35 }
 0x2ec   : > { %v1706_v37 = vld [vmem:[%s4362_s24 + $0x2c48] sm:$0xff]  ;;  %2867 = vmatpush.msrb.mxu2 %v1642_v36  ;;  %v323_v36 = vld [vmem:[%s4362_s24 + $0x110] sm:$0xff] }
 0x2ed   : > { %v1574_v38 = vld [vmem:[%s4362_s24 + $0x2828] sm:$0xff]  ;;  %2887 = vmatpush.msrb.mxu3 %v1706_v37  ;;  %v387_v37 = vld [vmem:[%s4362_s24 + $0x310] sm:$0xff] }
 0x2ee   : > { %v1798_v40 = vld [vmem:[%s4362_s24 + $0x2f28] sm:$0xff]  ;;  %2848 = vmatpush.msrb.mxu1 %v1574_v38  ;;  %v543_v38 = vld [vmem:[%s4362_s24 + $0x7f0] sm:$0xff] }
 0x2ef   : > { %v1638_v41 = vld [vmem:[%s4362_s24 + $0x2a28] sm:$0xff]  ;;  %2900 = vmatpush.msra.mxu0 %v1798_v40  ;;  %v479_v40 = vld [vmem:[%s4362_s24 + $0x5f0] sm:$0xff] }
 0x2f0   : > { %v1702_v45 = vld [vmem:[%s4362_s24 + $0x2c28] sm:$0xff]  ;;  %2868 = vmatpush.msrb.mxu2 %v1638_v41  ;;  %v319_v41 = vld [vmem:[%s4362_s24 + $0xf0] sm:$0xff] }
 0x2f1   : > { %v1570_v46 = vld [vmem:[%s4362_s24 + $0x2808] sm:$0xff]  ;;  %2888 = vmatpush.msrb.mxu3 %v1702_v45  ;;  %v383_v45 = vld [vmem:[%s4362_s24 + $0x2f0] sm:$0xff] }
 0x2f2   : > { %v1794_v52 = vld [vmem:[%s4362_s24 + $0x2f08] sm:$0xff]  ;;  %2849 = vmatpush.msrb.mxu1 %v1570_v46  ;;  %v4259_v46 = vld.sshfl [vmem:[#allocation1 + $0x38] sm:$0xff pattern:$0x73625140] }
 0x2f3   : > { %v1634_v53 = vld [vmem:[%s4362_s24 + $0x2a08] sm:$0xff]  ;;  %2901 = vmatpush.msra.mxu0 %v1794_v52  ;;  %2850 = vmatmul.f32.vlgmr.msrb.gmra.mxu1 %v4256_v58  ;;  %v475_v52 = vld [vmem:[%s4362_s24 + $0x5d0] sm:$0xff] }
 0x2f4   : > { %v1698_v54 = vld [vmem:[%s4362_s24 + $0x2c08] sm:$0xff]  ;;  %2869 = vmatpush.msrb.mxu2 %v1634_v53  ;;  %v539_v53 = vld [vmem:[%s4362_s24 + $0x7d0] sm:$0xff] }
 0x2f5   : > { %v1790_v55 = vld [vmem:[%s4362_s24 + $0x2ee8] sm:$0xff]  ;;  %2889 = vmatpush.msrb.mxu3 %v1698_v54  ;;  %v315_v54 = vld [vmem:[%s4362_s24 + $0xd0] sm:$0xff] }
 0x2f6   : > { %v1854_v56 = vld [vmem:[%s4362_s24 + $0x30e8] sm:$0xff]  ;;  %2902 = vmatpush.msra.mxu0 %v1790_v55  ;;  %2934 = vmatpush.msra.mxu2 %v351_v57  ;;  %v379_v55 = vld [vmem:[%s4362_s24 + $0x2d0] sm:$0xff] }
 0x2f7   : > { %v1786_v59 = vld [vmem:[%s4362_s24 + $0x2ec8] sm:$0xff]  ;;  %2922 = vmatpush.msra.mxu1 %v1854_v56  ;;  %2954 = vmatpush.msra.mxu3 %v415_v39  ;;  %v4260_v56 = vld.sshfl [vmem:[#allocation1] sm:$0xff pattern:$0x73625140]  ;;  %v471_v57 = vld [vmem:[%s4362_s24 + $0x5b0] sm:$0xff] }
 0x2f8   : > { %v4257_v60 = vld.sshfl [vmem:[#allocation1 + $0x28] sm:$0xff pattern:$0x73625140]  ;;  %2903 = vmatpush.msra.mxu0 %v1786_v59  ;;  %2890 = vmatmul.f32.vlgmr.msrb.gmra.mxu3 %v4258_v3  ;;  %v535_v58 = vld [vmem:[%s4362_s24 + $0x7b0] sm:$0xff] }
 0x2f9   : > { %2870 = vmatmul.f32.vlgmr.msrb.gmra.mxu2 %v4257_v60  ;;  %v1850_v61 = vld [vmem:[%s4362_s24 + $0x30c8] sm:$0xff]  ;;  %2955 = vmatpush.msra.mxu3 %v411_v0  ;;  %v311_v39 = vld [vmem:[%s4362_s24 + $0xb0] sm:$0xff] }
 0x2fa   : > { %v1782_v1 = vld [vmem:[%s4362_s24 + $0x2ea8] sm:$0xff]  ;;  %2923 = vmatpush.msra.mxu1 %v1850_v61  ;;  %2935 = vmatpush.msra.mxu2 %v347_v63  ;;  %v375_v59 = vld [vmem:[%s4362_s24 + $0x2b0] sm:$0xff] }
 0x2fb   : > { %v1846_v2 = vld [vmem:[%s4362_s24 + $0x30a8] sm:$0xff]  ;;  %2904 = vmatpush.msra.mxu0 %v1782_v1  ;;  %2956 = vmatpush.msra.mxu3 %v407_v13  ;;  %v467_v60 = vld [vmem:[%s4362_s24 + $0x590] sm:$0xff] }
 0x2fc   : > { %v1778_v14 = vld [vmem:[%s4362_s24 + $0x2e88] sm:$0xff]  ;;  %2924 = vmatpush.msra.mxu1 %v1846_v2  ;;  %2936 = vmatpush.msra.mxu2 %v343_v4  ;;  %v531_v61 = vld [vmem:[%s4362_s24 + $0x790] sm:$0xff] }
 0x2fd   : > { %v1842_v15 = vld [vmem:[%s4362_s24 + $0x3088] sm:$0xff]  ;;  %2905 = vmatpush.msra.mxu0 %v1778_v14  ;;  %2957 = vmatpush.msra.mxu3 %v403_v18  ;;  %v307_v63 = vld [vmem:[%s4362_s24 + $0x90] sm:$0xff] }
 0x2fe   : > { %v1774_v19 = vld [vmem:[%s4362_s24 + $0x2e68] sm:$0xff]  ;;  %2925 = vmatpush.msra.mxu1 %v1842_v15  ;;  %2937 = vmatpush.msra.mxu2 %v339_v16  ;;  %v371_v0 = vld [vmem:[%s4362_s24 + $0x290] sm:$0xff] }
 0x2ff   : > { %v1838_v20 = vld [vmem:[%s4362_s24 + $0x3068] sm:$0xff]  ;;  %2906 = vmatpush.msra.mxu0 %v1774_v19  ;;  %2958 = vmatpush.msra.mxu3 %v399_v23  ;;  %v463_v1 = vld [vmem:[%s4362_s24 + $0x570] sm:$0xff] }
 0x300   : > { %v1770_v62 = vld [vmem:[%s4362_s24 + $0x2e48] sm:$0xff]  ;;  %2926 = vmatpush.msra.mxu1 %v1838_v20  ;;  %2938 = vmatpush.msra.mxu2 %v335_v22  ;;  %v527_v2 = vld [vmem:[%s4362_s24 + $0x770] sm:$0xff] }
 0x301   : > { %v1834_v24 = vld [vmem:[%s4362_s24 + $0x3048] sm:$0xff]  ;;  %2907 = vmatpush.msra.mxu0 %v1770_v62  ;;  %2959 = vmatpush.msra.mxu3 %v395_v26  ;;  %v303_v3 = vld [vmem:[%s4362_s24 + $0x70] sm:$0xff] }
 0x302   : > { %v1766_v27 = vld [vmem:[%s4362_s24 + $0x2e28] sm:$0xff]  ;;  %2927 = vmatpush.msra.mxu1 %v1834_v24  ;;  %2939 = vmatpush.msra.mxu2 %v331_v25  ;;  %v367_v4 = vld [vmem:[%s4362_s24 + $0x270] sm:$0xff] }
 0x303   : > { %v1830_v31 = vld [vmem:[%s4362_s24 + $0x3028] sm:$0xff]  ;;  %2908 = vmatpush.msra.mxu0 %v1766_v27  ;;  %2960 = vmatpush.msra.mxu3 %v391_v34  ;;  %v459_v13 = vld [vmem:[%s4362_s24 + $0x550] sm:$0xff] }
 0x304   : > { %v1762_v17 = vld [vmem:[%s4362_s24 + $0x2e08] sm:$0xff]  ;;  %2928 = vmatpush.msra.mxu1 %v1830_v31  ;;  %2940 = vmatpush.msra.mxu2 %v327_v32  ;;  %v523_v14 = vld [vmem:[%s4362_s24 + $0x750] sm:$0xff] }
 0x305   : > { %v1826_v35 = vld [vmem:[%s4362_s24 + $0x3008] sm:$0xff]  ;;  %2909 = vmatpush.msra.mxu0 %v1762_v17  ;;  %2961 = vmatpush.msra.mxu3 %v387_v37  ;;  %v299_v15 = vld [vmem:[%s4362_s24 + $0x50] sm:$0xff] }
 0x306   : > { %2929 = vmatpush.msra.mxu1 %v1826_v35  ;;  %2941 = vmatpush.msra.mxu2 %v323_v36  ;;  %v363_v16 = vld [vmem:[%s4362_s24 + $0x250] sm:$0xff] }
 0x307   : > { %2910 = vmatmul.f32.vlgmr.msra.gmra.mxu0 %v4259_v46  ;;  %2962 = vmatpush.msra.mxu3 %v383_v45  ;;  %v455_v18 = vld [vmem:[%s4362_s24 + $0x530] sm:$0xff] }
 0x308   : > { %2994 = vmatpush.msrb.mxu1 %v543_v38  ;;  %2974 = vmatpush.msrb.mxu0 %v479_v40  ;;  %v519_v19 = vld [vmem:[%s4362_s24 + $0x730] sm:$0xff] }
 0x309   : > { %2942 = vmatpush.msra.mxu2 %v319_v41  ;;  %4224 = vmatmul.msk.f32.vlgmr.msra.gmra.mxu1 %vm1931_vm0, %v4260_v56  ;;  %v295_v20 = vld [vmem:[%s4362_s24 + $0x30] sm:$0xff] }
 0x30a   : > { %2975 = vmatpush.msrb.mxu0 %v475_v52  ;;  %2995 = vmatpush.msrb.mxu1 %v539_v53  ;;  %v359_v22 = vld [vmem:[%s4362_s24 + $0x230] sm:$0xff] }
 0x30b   : > { %2943 = vmatpush.msra.mxu2 %v315_v54  ;;  %2963 = vmatpush.msra.mxu3 %v379_v55  ;;  %v451_v23 = vld [vmem:[%s4362_s24 + $0x510] sm:$0xff] }
 0x30c   : > { %2976 = vmatpush.msrb.mxu0 %v471_v57  ;;  %2996 = vmatpush.msrb.mxu1 %v535_v58  ;;  %v515_v62 = vld [vmem:[%s4362_s24 + $0x710] sm:$0xff] }
 0x30d   : > { %2944 = vmatpush.msra.mxu2 %v311_v39  ;;  %2964 = vmatpush.msra.mxu3 %v375_v59  ;;  %v291_v24 = vld [vmem:[%s4362_s24 + $0x10] sm:$0xff] }
 0x30e   : > { %2977 = vmatpush.msrb.mxu0 %v467_v60  ;;  %2997 = vmatpush.msrb.mxu1 %v531_v61  ;;  %v355_v25 = vld [vmem:[%s4362_s24 + $0x210] sm:$0xff] }
 0x30f   : > { %2945 = vmatpush.msra.mxu2 %v307_v63  ;;  %2965 = vmatpush.msra.mxu3 %v371_v0  ;;  %v447_v26 = vld [vmem:[%s4362_s24 + $0x4f0] sm:$0xff] }
 0x310   : > { %2978 = vmatpush.msrb.mxu0 %v463_v1  ;;  %2998 = vmatpush.msrb.mxu1 %v527_v2  ;;  %v511_v27 = vld [vmem:[%s4362_s24 + $0x6f0] sm:$0xff] }
 0x311   : > { %2946 = vmatpush.msra.mxu2 %v303_v3  ;;  %2966 = vmatpush.msra.mxu3 %v367_v4  ;;  %v607_v31 = vld [vmem:[%s4362_s24 + $0x9f0] sm:$0xff] }
 0x312   : > { %2979 = vmatpush.msrb.mxu0 %v459_v13  ;;  %2999 = vmatpush.msrb.mxu1 %v523_v14  ;;  %v671_v32 = vld [vmem:[%s4362_s24 + $0xbf0] sm:$0xff] }
 0x313   : > { %2947 = vmatpush.msra.mxu2 %v299_v15  ;;  %2967 = vmatpush.msra.mxu3 %v363_v16  ;;  %v443_v34 = vld [vmem:[%s4362_s24 + $0x4d0] sm:$0xff] }
 0x314   : > { %2980 = vmatpush.msrb.mxu0 %v455_v18  ;;  %3000 = vmatpush.msrb.mxu1 %v519_v19  ;;  %v507_v17 = vld [vmem:[%s4362_s24 + $0x6d0] sm:$0xff] }
 0x315   : > { %2948 = vmatpush.msra.mxu2 %v295_v20  ;;  %2968 = vmatpush.msra.mxu3 %v359_v22  ;;  %v603_v35 = vld [vmem:[%s4362_s24 + $0x9d0] sm:$0xff] }
 0x316   : > { %2981 = vmatpush.msrb.mxu0 %v451_v23  ;;  %3001 = vmatpush.msrb.mxu1 %v515_v62  ;;  %v667_v36 = vld [vmem:[%s4362_s24 + $0xbd0] sm:$0xff] }
 0x317   : > { %2949 = vmatpush.msra.mxu2 %v291_v24  ;;  %2969 = vmatpush.msra.mxu3 %v355_v25  ;;  %v439_v37 = vld [vmem:[%s4362_s24 + $0x4b0] sm:$0xff] }
 0x318   : > { %2982 = vmatpush.msrb.mxu0 %v447_v26  ;;  %3002 = vmatpush.msrb.mxu1 %v511_v27  ;;  %v503_v38 = vld [vmem:[%s4362_s24 + $0x6b0] sm:$0xff] }
 0x319   : > { %3014 = vmatpush.msrb.mxu2 %v607_v31  ;;  %3034 = vmatpush.msrb.mxu3 %v671_v32  ;;  %v599_v40 = vld [vmem:[%s4362_s24 + $0x9b0] sm:$0xff] }
 0x31a   : > { %2983 = vmatpush.msrb.mxu0 %v443_v34  ;;  %3003 = vmatpush.msrb.mxu1 %v507_v17  ;;  %v663_v41 = vld [vmem:[%s4362_s24 + $0xbb0] sm:$0xff] }
 0x31b   : > { %3015 = vmatpush.msrb.mxu2 %v603_v35  ;;  %3035 = vmatpush.msrb.mxu3 %v667_v36  ;;  %v435_v45 = vld [vmem:[%s4362_s24 + $0x490] sm:$0xff] }
 0x31c   : > { %v499_v46 = vld [vmem:[%s4362_s24 + $0x690] sm:$0xff]  ;;  %2984 = vmatpush.msrb.mxu0 %v439_v37  ;;  %3004 = vmatpush.msrb.mxu1 %v503_v38 }
 0x31d   : > { %v595_v52 = vld [vmem:[%s4362_s24 + $0x990] sm:$0xff]  ;;  %3016 = vmatpush.msrb.mxu2 %v599_v40  ;;  %3036 = vmatpush.msrb.mxu3 %v663_v41 }
 0x31e   : > { %v659_v53 = vld [vmem:[%s4362_s24 + $0xb90] sm:$0xff]  ;;  %2985 = vmatpush.msrb.mxu0 %v435_v45  ;;  %3005 = vmatpush.msrb.mxu1 %v499_v46 }
 0x31f   : > { %v431_v54 = vld [vmem:[%s4362_s24 + $0x470] sm:$0xff]  ;;  %3017 = vmatpush.msrb.mxu2 %v595_v52  ;;  %3037 = vmatpush.msrb.mxu3 %v659_v53 }
 0x320   : > { %v495_v55 = vld [vmem:[%s4362_s24 + $0x670] sm:$0xff]  ;;  %2986 = vmatpush.msrb.mxu0 %v431_v54  ;;  %2950 = vmatmul.f32.vlgmr.msra.gmra.mxu2 %v4481_v47 }
 0x321   : > { %v591_v56 = vld [vmem:[%s4362_s24 + $0x970] sm:$0xff]  ;;  %3006 = vmatpush.msrb.mxu1 %v495_v55  ;;  %2970 = vmatmul.f32.vlgmr.msra.gmra.mxu3 %v4483_v48 }
 0x322   : > { %v655_v57 = vld [vmem:[%s4362_s24 + $0xb70] sm:$0xff]  ;;  %3018 = vmatpush.msrb.mxu2 %v591_v56 }
 0x323   : > { %v427_v58 = vld [vmem:[%s4362_s24 + $0x450] sm:$0xff]  ;;  %3038 = vmatpush.msrb.mxu3 %v655_v57 }
 0x324   : > { %v491_v39 = vld [vmem:[%s4362_s24 + $0x650] sm:$0xff]  ;;  %2987 = vmatpush.msrb.mxu0 %v427_v58 }
 0x325   : > { %v587_v59 = vld [vmem:[%s4362_s24 + $0x950] sm:$0xff]  ;;  %3007 = vmatpush.msrb.mxu1 %v491_v39 }
 0x326   : > { %v651_v60 = vld [vmem:[%s4362_s24 + $0xb50] sm:$0xff]  ;;  %3019 = vmatpush.msrb.mxu2 %v587_v59 }
 0x327   : > { %v423_v61 = vld [vmem:[%s4362_s24 + $0x430] sm:$0xff]  ;;  %3039 = vmatpush.msrb.mxu3 %v651_v60 }
 0x328   : > { %v487_v63 = vld [vmem:[%s4362_s24 + $0x630] sm:$0xff]  ;;  %2988 = vmatpush.msrb.mxu0 %v423_v61 }
 0x329   : > { %v583_v0 = vld [vmem:[%s4362_s24 + $0x930] sm:$0xff]  ;;  %3008 = vmatpush.msrb.mxu1 %v487_v63 }
 0x32a   : > { %v647_v1 = vld [vmem:[%s4362_s24 + $0xb30] sm:$0xff]  ;;  %3020 = vmatpush.msrb.mxu2 %v583_v0 }
 0x32b   : > { %v419_v2 = vld [vmem:[%s4362_s24 + $0x410] sm:$0xff]  ;;  %3040 = vmatpush.msrb.mxu3 %v647_v1 }
 0x32c   : > { %v483_v3 = vld [vmem:[%s4362_s24 + $0x610] sm:$0xff]  ;;  %2989 = vmatpush.msrb.mxu0 %v419_v2 }
 0x32d   : > { %v579_v4 = vld [vmem:[%s4362_s24 + $0x910] sm:$0xff]  ;;  %3009 = vmatpush.msrb.mxu1 %v483_v3  ;;  %2990 = vmatmul.f32.vlgmr.msrb.gmra.mxu0 %v4485_v49 }
 0x32e   : > { %v643_v13 = vld [vmem:[%s4362_s24 + $0xb10] sm:$0xff]  ;;  %3021 = vmatpush.msrb.mxu2 %v579_v4  ;;  %3010 = vmatmul.f32.vlgmr.msrb.gmra.mxu1 %v4487_v50 }
 0x32f   : > { %v735_v14 = vld [vmem:[%s4362_s24 + $0xdf0] sm:$0xff]  ;;  %3041 = vmatpush.msrb.mxu3 %v643_v13 }
 0x330   : > { %v799_v15 = vld [vmem:[%s4362_s24 + $0xff0] sm:$0xff]  ;;  %3054 = vmatpush.msra.mxu0 %v735_v14 }
 0x331   : > { %v575_v16 = vld [vmem:[%s4362_s24 + $0x8f0] sm:$0xff]  ;;  %3074 = vmatpush.msra.mxu1 %v799_v15 }
 0x332   : > { %v639_v18 = vld [vmem:[%s4362_s24 + $0xaf0] sm:$0xff]  ;;  %3022 = vmatpush.msrb.mxu2 %v575_v16 }
 0x333   : > { %v731_v19 = vld [vmem:[%s4362_s24 + $0xdd0] sm:$0xff]  ;;  %3042 = vmatpush.msrb.mxu3 %v639_v18 }
 0x334   : > { %v795_v20 = vld [vmem:[%s4362_s24 + $0xfd0] sm:$0xff]  ;;  %3055 = vmatpush.msra.mxu0 %v731_v19 }
 0x335   : > { %v571_v22 = vld [vmem:[%s4362_s24 + $0x8d0] sm:$0xff]  ;;  %3075 = vmatpush.msra.mxu1 %v795_v20 }
 0x336   : > { %v635_v23 = vld [vmem:[%s4362_s24 + $0xad0] sm:$0xff]  ;;  %3023 = vmatpush.msrb.mxu2 %v571_v22 }
 0x337   : > { %v727_v62 = vld [vmem:[%s4362_s24 + $0xdb0] sm:$0xff]  ;;  %3043 = vmatpush.msrb.mxu3 %v635_v23 }
 0x338   : > { %v791_v24 = vld [vmem:[%s4362_s24 + $0xfb0] sm:$0xff]  ;;  %3056 = vmatpush.msra.mxu0 %v727_v62 }
 0x339   : > { %v567_v25 = vld [vmem:[%s4362_s24 + $0x8b0] sm:$0xff]  ;;  %3076 = vmatpush.msra.mxu1 %v791_v24 }
 0x33a   : > { %v631_v26 = vld [vmem:[%s4362_s24 + $0xab0] sm:$0xff]  ;;  %3024 = vmatpush.msrb.mxu2 %v567_v25 }
 0x33b   : > { %v723_v27 = vld [vmem:[%s4362_s24 + $0xd90] sm:$0xff]  ;;  %3044 = vmatpush.msrb.mxu3 %v631_v26 }
 0x33c   : > { %v787_v31 = vld [vmem:[%s4362_s24 + $0xf90] sm:$0xff]  ;;  %3057 = vmatpush.msra.mxu0 %v723_v27 }
 0x33d   : > { %v563_v32 = vld [vmem:[%s4362_s24 + $0x890] sm:$0xff]  ;;  %3077 = vmatpush.msra.mxu1 %v787_v31 }
 0x33e   : > { %v627_v34 = vld [vmem:[%s4362_s24 + $0xa90] sm:$0xff]  ;;  %3025 = vmatpush.msrb.mxu2 %v563_v32 }
 0x33f   : > { %v719_v17 = vld [vmem:[%s4362_s24 + $0xd70] sm:$0xff]  ;;  %3045 = vmatpush.msrb.mxu3 %v627_v34 }
 0x340   : > { %v783_v35 = vld [vmem:[%s4362_s24 + $0xf70] sm:$0xff]  ;;  %3058 = vmatpush.msra.mxu0 %v719_v17 }
 0x341   : > { %v559_v36 = vld [vmem:[%s4362_s24 + $0x870] sm:$0xff]  ;;  %3078 = vmatpush.msra.mxu1 %v783_v35 }
 0x342   : > { %v623_v37 = vld [vmem:[%s4362_s24 + $0xa70] sm:$0xff]  ;;  %3026 = vmatpush.msrb.mxu2 %v559_v36 }
 0x343   : > { %v715_v38 = vld [vmem:[%s4362_s24 + $0xd50] sm:$0xff]  ;;  %3046 = vmatpush.msrb.mxu3 %v623_v37 }
 0x344   : > { %v779_v40 = vld [vmem:[%s4362_s24 + $0xf50] sm:$0xff]  ;;  %3059 = vmatpush.msra.mxu0 %v715_v38 }
 0x345   : > { %v555_v41 = vld [vmem:[%s4362_s24 + $0x850] sm:$0xff]  ;;  %3079 = vmatpush.msra.mxu1 %v779_v40 }
 0x346   : > { %v619_v45 = vld [vmem:[%s4362_s24 + $0xa50] sm:$0xff]  ;;  %3027 = vmatpush.msrb.mxu2 %v555_v41 }
 0x347   : > { %v711_v46 = vld [vmem:[%s4362_s24 + $0xd30] sm:$0xff]  ;;  %3047 = vmatpush.msrb.mxu3 %v619_v45 }
 0x348   : > { %v775_v52 = vld [vmem:[%s4362_s24 + $0xf30] sm:$0xff]  ;;  %3060 = vmatpush.msra.mxu0 %v711_v46 }
 0x349   : > { %v551_v53 = vld [vmem:[%s4362_s24 + $0x830] sm:$0xff]  ;;  %3080 = vmatpush.msra.mxu1 %v775_v52 }
 0x34a   : > { %v615_v54 = vld [vmem:[%s4362_s24 + $0xa30] sm:$0xff]  ;;  %3028 = vmatpush.msrb.mxu2 %v551_v53 }
 0x34b   : > { %v707_v55 = vld [vmem:[%s4362_s24 + $0xd10] sm:$0xff]  ;;  %3048 = vmatpush.msrb.mxu3 %v615_v54 }
 0x34c   : > { %v771_v56 = vld [vmem:[%s4362_s24 + $0xf10] sm:$0xff]  ;;  %3061 = vmatpush.msra.mxu0 %v707_v55 }
 0x34d   : > { %v547_v57 = vld [vmem:[%s4362_s24 + $0x810] sm:$0xff]  ;;  %3081 = vmatpush.msra.mxu1 %v771_v56 }
 0x34e   : > { %v611_v58 = vld [vmem:[%s4362_s24 + $0xa10] sm:$0xff]  ;;  %3029 = vmatpush.msrb.mxu2 %v547_v57 }
 0x34f   : > { %v703_v39 = vld [vmem:[%s4362_s24 + $0xcf0] sm:$0xff]  ;;  %3049 = vmatpush.msrb.mxu3 %v611_v58  ;;  %3030 = vmatmul.f32.vlgmr.msrb.gmra.mxu2 %v4512_v9 }
 0x350   : > { %v767_v59 = vld [vmem:[%s4362_s24 + $0xef0] sm:$0xff]  ;;  %3062 = vmatpush.msra.mxu0 %v703_v39  ;;  %3050 = vmatmul.f32.vlgmr.msrb.gmra.mxu3 %v4516_v11 }
 0x351   : > { %v863_v60 = vld [vmem:[%s4362_s24 + $0x11f0] sm:$0xff]  ;;  %3082 = vmatpush.msra.mxu1 %v767_v59 }
 0x352   : > { %v927_v61 = vld [vmem:[%s4362_s24 + $0x13f0] sm:$0xff]  ;;  %3094 = vmatpush.msra.mxu2 %v863_v60 }
 0x353   : > { %v699_v63 = vld [vmem:[%s4362_s24 + $0xcd0] sm:$0xff]  ;;  %3114 = vmatpush.msra.mxu3 %v927_v61 }
 0x354   : > { %v763_v0 = vld [vmem:[%s4362_s24 + $0xed0] sm:$0xff]  ;;  %3063 = vmatpush.msra.mxu0 %v699_v63 }
 0x355   : > { %v859_v1 = vld [vmem:[%s4362_s24 + $0x11d0] sm:$0xff]  ;;  %3083 = vmatpush.msra.mxu1 %v763_v0 }
 0x356   : > { %v923_v2 = vld [vmem:[%s4362_s24 + $0x13d0] sm:$0xff]  ;;  %3095 = vmatpush.msra.mxu2 %v859_v1 }
 0x357   : > { %v695_v3 = vld [vmem:[%s4362_s24 + $0xcb0] sm:$0xff]  ;;  %3115 = vmatpush.msra.mxu3 %v923_v2 }
 0x358   : > { %v759_v4 = vld [vmem:[%s4362_s24 + $0xeb0] sm:$0xff]  ;;  %3064 = vmatpush.msra.mxu0 %v695_v3 }
 0x359   : > { %v855_v13 = vld [vmem:[%s4362_s24 + $0x11b0] sm:$0xff]  ;;  %3084 = vmatpush.msra.mxu1 %v759_v4 }
 0x35a   : > { %v919_v14 = vld [vmem:[%s4362_s24 + $0x13b0] sm:$0xff]  ;;  %3096 = vmatpush.msra.mxu2 %v855_v13 }
 0x35b   : > { %v691_v15 = vld [vmem:[%s4362_s24 + $0xc90] sm:$0xff]  ;;  %3116 = vmatpush.msra.mxu3 %v919_v14 }
 0x35c   : > { %v755_v16 = vld [vmem:[%s4362_s24 + $0xe90] sm:$0xff]  ;;  %3065 = vmatpush.msra.mxu0 %v691_v15 }
 0x35d   : > { %v851_v18 = vld [vmem:[%s4362_s24 + $0x1190] sm:$0xff]  ;;  %3085 = vmatpush.msra.mxu1 %v755_v16 }
 0x35e   : > { %v915_v19 = vld [vmem:[%s4362_s24 + $0x1390] sm:$0xff]  ;;  %3097 = vmatpush.msra.mxu2 %v851_v18 }
 0x35f   : > { %v687_v20 = vld [vmem:[%s4362_s24 + $0xc70] sm:$0xff]  ;;  %3117 = vmatpush.msra.mxu3 %v915_v19 }
 0x360   : > { %v751_v22 = vld [vmem:[%s4362_s24 + $0xe70] sm:$0xff]  ;;  %3066 = vmatpush.msra.mxu0 %v687_v20 }
 0x361   : > { %v847_v23 = vld [vmem:[%s4362_s24 + $0x1170] sm:$0xff]  ;;  %3086 = vmatpush.msra.mxu1 %v751_v22 }
 0x362   : > { %v911_v62 = vld [vmem:[%s4362_s24 + $0x1370] sm:$0xff]  ;;  %3098 = vmatpush.msra.mxu2 %v847_v23 }
 0x363   : > { %v683_v24 = vld [vmem:[%s4362_s24 + $0xc50] sm:$0xff]  ;;  %3118 = vmatpush.msra.mxu3 %v911_v62 }
 0x364   : > { %v747_v25 = vld [vmem:[%s4362_s24 + $0xe50] sm:$0xff]  ;;  %3067 = vmatpush.msra.mxu0 %v683_v24 }
 0x365   : > { %v843_v26 = vld [vmem:[%s4362_s24 + $0x1150] sm:$0xff]  ;;  %3087 = vmatpush.msra.mxu1 %v747_v25 }
 0x366   : > { %v907_v27 = vld [vmem:[%s4362_s24 + $0x1350] sm:$0xff]  ;;  %3099 = vmatpush.msra.mxu2 %v843_v26 }
 0x367   : > { %v679_v31 = vld [vmem:[%s4362_s24 + $0xc30] sm:$0xff]  ;;  %3119 = vmatpush.msra.mxu3 %v907_v27 }
 0x368   : > { %v743_v32 = vld [vmem:[%s4362_s24 + $0xe30] sm:$0xff]  ;;  %3068 = vmatpush.msra.mxu0 %v679_v31 }
 0x369   : > { %v839_v34 = vld [vmem:[%s4362_s24 + $0x1130] sm:$0xff]  ;;  %3088 = vmatpush.msra.mxu1 %v743_v32 }
 0x36a   : > { %v903_v17 = vld [vmem:[%s4362_s24 + $0x1330] sm:$0xff]  ;;  %3100 = vmatpush.msra.mxu2 %v839_v34 }
 0x36b   : > { %v675_v35 = vld [vmem:[%s4362_s24 + $0xc10] sm:$0xff]  ;;  %3120 = vmatpush.msra.mxu3 %v903_v17 }
 0x36c   : > { %v739_v36 = vld [vmem:[%s4362_s24 + $0xe10] sm:$0xff]  ;;  %3069 = vmatpush.msra.mxu0 %v675_v35 }
 0x36d   : > { %v835_v37 = vld [vmem:[%s4362_s24 + $0x1110] sm:$0xff]  ;;  %3089 = vmatpush.msra.mxu1 %v739_v36  ;;  %3070 = vmatmul.f32.vlgmr.msra.gmra.mxu0 %v4510_v8 }
 0x36e   : > { %v899_v38 = vld [vmem:[%s4362_s24 + $0x1310] sm:$0xff]  ;;  %3101 = vmatpush.msra.mxu2 %v835_v37  ;;  %3090 = vmatmul.f32.vlgmr.msra.gmra.mxu1 %v4514_v10 }
 0x36f   : > { %v991_v40 = vld [vmem:[%s4362_s24 + $0x15f0] sm:$0xff]  ;;  %3121 = vmatpush.msra.mxu3 %v899_v38 }
 0x370   : > { %v1055_v41 = vld [vmem:[%s4362_s24 + $0x17f0] sm:$0xff]  ;;  %3134 = vmatpush.msrb.mxu0 %v991_v40 }
 0x371   : > { %v831_v45 = vld [vmem:[%s4362_s24 + $0x10f0] sm:$0xff]  ;;  %3154 = vmatpush.msrb.mxu1 %v1055_v41 }
 0x372   : > { %v895_v46 = vld [vmem:[%s4362_s24 + $0x12f0] sm:$0xff]  ;;  %3102 = vmatpush.msra.mxu2 %v831_v45 }
 0x373   : > { %v987_v52 = vld [vmem:[%s4362_s24 + $0x15d0] sm:$0xff]  ;;  %3122 = vmatpush.msra.mxu3 %v895_v46 }
 0x374   : > { %v1051_v53 = vld [vmem:[%s4362_s24 + $0x17d0] sm:$0xff]  ;;  %3135 = vmatpush.msrb.mxu0 %v987_v52 }
 0x375   : > { %v827_v54 = vld [vmem:[%s4362_s24 + $0x10d0] sm:$0xff]  ;;  %3155 = vmatpush.msrb.mxu1 %v1051_v53 }
 0x376   : > { %v891_v55 = vld [vmem:[%s4362_s24 + $0x12d0] sm:$0xff]  ;;  %3103 = vmatpush.msra.mxu2 %v827_v54 }
 0x377   : > { %v983_v56 = vld [vmem:[%s4362_s24 + $0x15b0] sm:$0xff]  ;;  %3123 = vmatpush.msra.mxu3 %v891_v55 }
 0x378   : > { %v1047_v57 = vld [vmem:[%s4362_s24 + $0x17b0] sm:$0xff]  ;;  %3136 = vmatpush.msrb.mxu0 %v983_v56 }
 0x379   : > { %v823_v58 = vld [vmem:[%s4362_s24 + $0x10b0] sm:$0xff]  ;;  %3156 = vmatpush.msrb.mxu1 %v1047_v57 }
 0x37a   : > { %v887_v39 = vld [vmem:[%s4362_s24 + $0x12b0] sm:$0xff]  ;;  %3104 = vmatpush.msra.mxu2 %v823_v58 }
 0x37b   : > { %v979_v59 = vld [vmem:[%s4362_s24 + $0x1590] sm:$0xff]  ;;  %3124 = vmatpush.msra.mxu3 %v887_v39 }
 0x37c   : > { %v1043_v60 = vld [vmem:[%s4362_s24 + $0x1790] sm:$0xff]  ;;  %3137 = vmatpush.msrb.mxu0 %v979_v59 }
 0x37d   : > { %v819_v61 = vld [vmem:[%s4362_s24 + $0x1090] sm:$0xff]  ;;  %3157 = vmatpush.msrb.mxu1 %v1043_v60 }
 0x37e   : > { %v883_v63 = vld [vmem:[%s4362_s24 + $0x1290] sm:$0xff]  ;;  %3105 = vmatpush.msra.mxu2 %v819_v61 }
 0x37f   : > { %v975_v0 = vld [vmem:[%s4362_s24 + $0x1570] sm:$0xff]  ;;  %3125 = vmatpush.msra.mxu3 %v883_v63 }
 0x380   : > { %v1039_v1 = vld [vmem:[%s4362_s24 + $0x1770] sm:$0xff]  ;;  %3138 = vmatpush.msrb.mxu0 %v975_v0 }
 0x381   : > { %v815_v2 = vld [vmem:[%s4362_s24 + $0x1070] sm:$0xff]  ;;  %3158 = vmatpush.msrb.mxu1 %v1039_v1 }
 0x382   : > { %v879_v3 = vld [vmem:[%s4362_s24 + $0x1270] sm:$0xff]  ;;  %3106 = vmatpush.msra.mxu2 %v815_v2 }
 0x383   : > { %v971_v4 = vld [vmem:[%s4362_s24 + $0x1550] sm:$0xff]  ;;  %3126 = vmatpush.msra.mxu3 %v879_v3 }
 0x384   : > { %v1035_v13 = vld [vmem:[%s4362_s24 + $0x1750] sm:$0xff]  ;;  %3139 = vmatpush.msrb.mxu0 %v971_v4 }
 0x385   : > { %v811_v14 = vld [vmem:[%s4362_s24 + $0x1050] sm:$0xff]  ;;  %3159 = vmatpush.msrb.mxu1 %v1035_v13 }
 0x386   : > { %v875_v15 = vld [vmem:[%s4362_s24 + $0x1250] sm:$0xff]  ;;  %3107 = vmatpush.msra.mxu2 %v811_v14 }
 0x387   : > { %v967_v16 = vld [vmem:[%s4362_s24 + $0x1530] sm:$0xff]  ;;  %3127 = vmatpush.msra.mxu3 %v875_v15 }
 0x388   : > { %v1031_v18 = vld [vmem:[%s4362_s24 + $0x1730] sm:$0xff]  ;;  %3140 = vmatpush.msrb.mxu0 %v967_v16 }
 0x389   : > { %v807_v19 = vld [vmem:[%s4362_s24 + $0x1030] sm:$0xff]  ;;  %3160 = vmatpush.msrb.mxu1 %v1031_v18 }
 0x38a   : > { %v871_v20 = vld [vmem:[%s4362_s24 + $0x1230] sm:$0xff]  ;;  %3108 = vmatpush.msra.mxu2 %v807_v19 }
 0x38b   : > { %v963_v22 = vld [vmem:[%s4362_s24 + $0x1510] sm:$0xff]  ;;  %3128 = vmatpush.msra.mxu3 %v871_v20 }
 0x38c   : > { %v1027_v23 = vld [vmem:[%s4362_s24 + $0x1710] sm:$0xff]  ;;  %3141 = vmatpush.msrb.mxu0 %v963_v22 }
 0x38d   : > { %v803_v62 = vld [vmem:[%s4362_s24 + $0x1010] sm:$0xff]  ;;  %3161 = vmatpush.msrb.mxu1 %v1027_v23 }
 0x38e   : > { %v867_v24 = vld [vmem:[%s4362_s24 + $0x1210] sm:$0xff]  ;;  %3109 = vmatpush.msra.mxu2 %v803_v62 }
 0x38f   : > { %v959_v25 = vld [vmem:[%s4362_s24 + $0x14f0] sm:$0xff]  ;;  %3129 = vmatpush.msra.mxu3 %v867_v24  ;;  %3110 = vmatmul.f32.vlgmr.msra.gmra.mxu2 %v4538_v28 }
 0x390   : > { %v1023_v26 = vld [vmem:[%s4362_s24 + $0x16f0] sm:$0xff]  ;;  %3142 = vmatpush.msrb.mxu0 %v959_v25  ;;  %3130 = vmatmul.f32.vlgmr.msra.gmra.mxu3 %v4542_v30 }
 0x391   : > { %v1119_v27 = vld [vmem:[%s4362_s24 + $0x19f0] sm:$0xff]  ;;  %3162 = vmatpush.msrb.mxu1 %v1023_v26 }
 0x392   : > { %v1183_v31 = vld [vmem:[%s4362_s24 + $0x1bf0] sm:$0xff]  ;;  %3174 = vmatpush.msrb.mxu2 %v1119_v27 }
 0x393   : > { %v955_v32 = vld [vmem:[%s4362_s24 + $0x14d0] sm:$0xff]  ;;  %3194 = vmatpush.msrb.mxu3 %v1183_v31 }
 0x394   : > { %v1019_v34 = vld [vmem:[%s4362_s24 + $0x16d0] sm:$0xff]  ;;  %3143 = vmatpush.msrb.mxu0 %v955_v32 }
 0x395   : > { %v1115_v17 = vld [vmem:[%s4362_s24 + $0x19d0] sm:$0xff]  ;;  %3163 = vmatpush.msrb.mxu1 %v1019_v34 }
 0x396   : > { %v1179_v35 = vld [vmem:[%s4362_s24 + $0x1bd0] sm:$0xff]  ;;  %3175 = vmatpush.msrb.mxu2 %v1115_v17 }
 0x397   : > { %v951_v36 = vld [vmem:[%s4362_s24 + $0x14b0] sm:$0xff]  ;;  %3195 = vmatpush.msrb.mxu3 %v1179_v35 }
 0x398   : > { %v1015_v37 = vld [vmem:[%s4362_s24 + $0x16b0] sm:$0xff]  ;;  %3144 = vmatpush.msrb.mxu0 %v951_v36 }
 0x399   : > { %v1111_v38 = vld [vmem:[%s4362_s24 + $0x19b0] sm:$0xff]  ;;  %3164 = vmatpush.msrb.mxu1 %v1015_v37 }
 0x39a   : > { %v1175_v40 = vld [vmem:[%s4362_s24 + $0x1bb0] sm:$0xff]  ;;  %3176 = vmatpush.msrb.mxu2 %v1111_v38 }
 0x39b   : > { %v947_v41 = vld [vmem:[%s4362_s24 + $0x1490] sm:$0xff]  ;;  %3196 = vmatpush.msrb.mxu3 %v1175_v40 }
 0x39c   : > { %v1011_v45 = vld [vmem:[%s4362_s24 + $0x1690] sm:$0xff]  ;;  %3145 = vmatpush.msrb.mxu0 %v947_v41 }
 0x39d   : > { %v1107_v46 = vld [vmem:[%s4362_s24 + $0x1990] sm:$0xff]  ;;  %3165 = vmatpush.msrb.mxu1 %v1011_v45 }
 0x39e   : > { %v1171_v52 = vld [vmem:[%s4362_s24 + $0x1b90] sm:$0xff]  ;;  %3177 = vmatpush.msrb.mxu2 %v1107_v46 }
 0x39f   : > { %v943_v53 = vld [vmem:[%s4362_s24 + $0x1470] sm:$0xff]  ;;  %3197 = vmatpush.msrb.mxu3 %v1171_v52 }
 0x3a0   : > { %v1007_v54 = vld [vmem:[%s4362_s24 + $0x1670] sm:$0xff]  ;;  %3146 = vmatpush.msrb.mxu0 %v943_v53 }
 0x3a1   : > { %v1103_v55 = vld [vmem:[%s4362_s24 + $0x1970] sm:$0xff]  ;;  %3166 = vmatpush.msrb.mxu1 %v1007_v54 }
 0x3a2   : > { %v1167_v56 = vld [vmem:[%s4362_s24 + $0x1b70] sm:$0xff]  ;;  %3178 = vmatpush.msrb.mxu2 %v1103_v55 }
 0x3a3   : > { %v939_v57 = vld [vmem:[%s4362_s24 + $0x1450] sm:$0xff]  ;;  %3198 = vmatpush.msrb.mxu3 %v1167_v56 }
 0x3a4   : > { %v1003_v58 = vld [vmem:[%s4362_s24 + $0x1650] sm:$0xff]  ;;  %3147 = vmatpush.msrb.mxu0 %v939_v57 }
 0x3a5   : > { %v1099_v39 = vld [vmem:[%s4362_s24 + $0x1950] sm:$0xff]  ;;  %3167 = vmatpush.msrb.mxu1 %v1003_v58 }
 0x3a6   : > { %v1163_v59 = vld [vmem:[%s4362_s24 + $0x1b50] sm:$0xff]  ;;  %3179 = vmatpush.msrb.mxu2 %v1099_v39 }
 0x3a7   : > { %v935_v60 = vld [vmem:[%s4362_s24 + $0x1430] sm:$0xff]  ;;  %3199 = vmatpush.msrb.mxu3 %v1163_v59 }
 0x3a8   : > { %v999_v61 = vld [vmem:[%s4362_s24 + $0x1630] sm:$0xff]  ;;  %3148 = vmatpush.msrb.mxu0 %v935_v60 }
 0x3a9   : > { %v1095_v63 = vld [vmem:[%s4362_s24 + $0x1930] sm:$0xff]  ;;  %3168 = vmatpush.msrb.mxu1 %v999_v61 }
 0x3aa   : > { %v1159_v0 = vld [vmem:[%s4362_s24 + $0x1b30] sm:$0xff]  ;;  %3180 = vmatpush.msrb.mxu2 %v1095_v63 }
 0x3ab   : > { %v931_v1 = vld [vmem:[%s4362_s24 + $0x1410] sm:$0xff]  ;;  %3200 = vmatpush.msrb.mxu3 %v1159_v0 }
 0x3ac   : > { %v995_v2 = vld [vmem:[%s4362_s24 + $0x1610] sm:$0xff]  ;;  %3149 = vmatpush.msrb.mxu0 %v931_v1 }
 0x3ad   : > { %v1091_v3 = vld [vmem:[%s4362_s24 + $0x1910] sm:$0xff]  ;;  %3169 = vmatpush.msrb.mxu1 %v995_v2  ;;  %3150 = vmatmul.f32.vlgmr.msrb.gmra.mxu0 %v4540_v29 }
 0x3ae   : > { %v1155_v4 = vld [vmem:[%s4362_s24 + $0x1b10] sm:$0xff]  ;;  %3181 = vmatpush.msrb.mxu2 %v1091_v3  ;;  %3170 = vmatmul.f32.vlgmr.msrb.gmra.mxu1 %v4546_v33 }
 0x3af   : > { %v1311_v13 = vld [vmem:[%s4362_s24 + $0x1ff0] sm:$0xff]  ;;  %3201 = vmatpush.msrb.mxu3 %v1155_v4 }
 0x3b0   : > { %v1247_v14 = vld [vmem:[%s4362_s24 + $0x1df0] sm:$0xff]  ;;  %3234 = vmatpush.msra.mxu1 %v1311_v13 }
 0x3b1   : > { %v1087_v15 = vld [vmem:[%s4362_s24 + $0x18f0] sm:$0xff]  ;;  %3214 = vmatpush.msra.mxu0 %v1247_v14 }
 0x3b2   : > { %v1151_v16 = vld [vmem:[%s4362_s24 + $0x1af0] sm:$0xff]  ;;  %3182 = vmatpush.msrb.mxu2 %v1087_v15 }
 0x3b3   : > { %v1243_v18 = vld [vmem:[%s4362_s24 + $0x1dd0] sm:$0xff]  ;;  %3202 = vmatpush.msrb.mxu3 %v1151_v16 }
 0x3b4   : > { %v1307_v19 = vld [vmem:[%s4362_s24 + $0x1fd0] sm:$0xff]  ;;  %3215 = vmatpush.msra.mxu0 %v1243_v18 }
 0x3b5   : > { %v1083_v20 = vld [vmem:[%s4362_s24 + $0x18d0] sm:$0xff]  ;;  %3235 = vmatpush.msra.mxu1 %v1307_v19 }
 0x3b6   : > { %v1147_v22 = vld [vmem:[%s4362_s24 + $0x1ad0] sm:$0xff]  ;;  %3183 = vmatpush.msrb.mxu2 %v1083_v20 }
 0x3b7   : > { %v1239_v23 = vld [vmem:[%s4362_s24 + $0x1db0] sm:$0xff]  ;;  %3203 = vmatpush.msrb.mxu3 %v1147_v22 }
 0x3b8   : > { %v1303_v62 = vld [vmem:[%s4362_s24 + $0x1fb0] sm:$0xff]  ;;  %3216 = vmatpush.msra.mxu0 %v1239_v23 }
 0x3b9   : > { %v1079_v24 = vld [vmem:[%s4362_s24 + $0x18b0] sm:$0xff]  ;;  %3236 = vmatpush.msra.mxu1 %v1303_v62 }
 0x3ba   : > { %v1143_v25 = vld [vmem:[%s4362_s24 + $0x1ab0] sm:$0xff]  ;;  %3184 = vmatpush.msrb.mxu2 %v1079_v24 }
 0x3bb   : > { %v1235_v26 = vld [vmem:[%s4362_s24 + $0x1d90] sm:$0xff]  ;;  %3204 = vmatpush.msrb.mxu3 %v1143_v25 }
 0x3bc   : > { %v1299_v27 = vld [vmem:[%s4362_s24 + $0x1f90] sm:$0xff]  ;;  %3217 = vmatpush.msra.mxu0 %v1235_v26 }
 0x3bd   : > { %v1075_v31 = vld [vmem:[%s4362_s24 + $0x1890] sm:$0xff]  ;;  %3237 = vmatpush.msra.mxu1 %v1299_v27 }
 0x3be   : > { %v1139_v32 = vld [vmem:[%s4362_s24 + $0x1a90] sm:$0xff]  ;;  %3185 = vmatpush.msrb.mxu2 %v1075_v31 }
 0x3bf   : > { %v1231_v34 = vld [vmem:[%s4362_s24 + $0x1d70] sm:$0xff]  ;;  %3205 = vmatpush.msrb.mxu3 %v1139_v32 }
 0x3c0   : > { %v1295_v17 = vld [vmem:[%s4362_s24 + $0x1f70] sm:$0xff]  ;;  %3218 = vmatpush.msra.mxu0 %v1231_v34 }
 0x3c1   : > { %v1071_v35 = vld [vmem:[%s4362_s24 + $0x1870] sm:$0xff]  ;;  %3238 = vmatpush.msra.mxu1 %v1295_v17 }
 0x3c2   : > { %v1135_v36 = vld [vmem:[%s4362_s24 + $0x1a70] sm:$0xff]  ;;  %3186 = vmatpush.msrb.mxu2 %v1071_v35 }
 0x3c3   : > { %v1227_v37 = vld [vmem:[%s4362_s24 + $0x1d50] sm:$0xff]  ;;  %3206 = vmatpush.msrb.mxu3 %v1135_v36 }
 0x3c4   : > { %v1291_v38 = vld [vmem:[%s4362_s24 + $0x1f50] sm:$0xff]  ;;  %3219 = vmatpush.msra.mxu0 %v1227_v37 }
 0x3c5   : > { %v1067_v40 = vld [vmem:[%s4362_s24 + $0x1850] sm:$0xff]  ;;  %3239 = vmatpush.msra.mxu1 %v1291_v38 }
 0x3c6   : > { %v1131_v41 = vld [vmem:[%s4362_s24 + $0x1a50] sm:$0xff]  ;;  %3187 = vmatpush.msrb.mxu2 %v1067_v40 }
 0x3c7   : > { %v1223_v45 = vld [vmem:[%s4362_s24 + $0x1d30] sm:$0xff]  ;;  %3207 = vmatpush.msrb.mxu3 %v1131_v41 }
 0x3c8   : > { %v1287_v46 = vld [vmem:[%s4362_s24 + $0x1f30] sm:$0xff]  ;;  %3220 = vmatpush.msra.mxu0 %v1223_v45 }
 0x3c9   : > { %v1063_v52 = vld [vmem:[%s4362_s24 + $0x1830] sm:$0xff]  ;;  %3240 = vmatpush.msra.mxu1 %v1287_v46 }
 0x3ca   : > { %v1127_v53 = vld [vmem:[%s4362_s24 + $0x1a30] sm:$0xff]  ;;  %3188 = vmatpush.msrb.mxu2 %v1063_v52 }
 0x3cb   : > { %v1219_v54 = vld [vmem:[%s4362_s24 + $0x1d10] sm:$0xff]  ;;  %3208 = vmatpush.msrb.mxu3 %v1127_v53 }
 0x3cc   : > { %v1283_v55 = vld [vmem:[%s4362_s24 + $0x1f10] sm:$0xff]  ;;  %3221 = vmatpush.msra.mxu0 %v1219_v54 }
 0x3cd   : > { %v1059_v56 = vld [vmem:[%s4362_s24 + $0x1810] sm:$0xff]  ;;  %3241 = vmatpush.msra.mxu1 %v1283_v55 }
 0x3ce   : > { %v1123_v57 = vld [vmem:[%s4362_s24 + $0x1a10] sm:$0xff]  ;;  %3189 = vmatpush.msrb.mxu2 %v1059_v56 }
 0x3cf   : > { %v1215_v58 = vld [vmem:[%s4362_s24 + $0x1cf0] sm:$0xff]  ;;  %3209 = vmatpush.msrb.mxu3 %v1123_v57  ;;  %3190 = vmatmul.f32.vlgmr.msrb.gmra.mxu2 %v4616_v42 }
 0x3d0   : > { %v1279_v39 = vld [vmem:[%s4362_s24 + $0x1ef0] sm:$0xff]  ;;  %3222 = vmatpush.msra.mxu0 %v1215_v58  ;;  %3210 = vmatmul.f32.vlgmr.msrb.gmra.mxu3 %v4620_v44 }
 0x3d1   : > { %v1375_v59 = vld [vmem:[%s4362_s24 + $0x21f0] sm:$0xff]  ;;  %3242 = vmatpush.msra.mxu1 %v1279_v39 }
 0x3d2   : > { %v1439_v60 = vld [vmem:[%s4362_s24 + $0x23f0] sm:$0xff]  ;;  %3254 = vmatpush.msra.mxu2 %v1375_v59 }
 0x3d3   : > { %v1211_v61 = vld [vmem:[%s4362_s24 + $0x1cd0] sm:$0xff]  ;;  %3274 = vmatpush.msra.mxu3 %v1439_v60 }
 0x3d4   : > { %v1275_v63 = vld [vmem:[%s4362_s24 + $0x1ed0] sm:$0xff]  ;;  %3223 = vmatpush.msra.mxu0 %v1211_v61 }
 0x3d5   : > { %v1371_v0 = vld [vmem:[%s4362_s24 + $0x21d0] sm:$0xff]  ;;  %3243 = vmatpush.msra.mxu1 %v1275_v63 }
 0x3d6   : > { %v1435_v1 = vld [vmem:[%s4362_s24 + $0x23d0] sm:$0xff]  ;;  %3255 = vmatpush.msra.mxu2 %v1371_v0 }
 0x3d7   : > { %v1207_v2 = vld [vmem:[%s4362_s24 + $0x1cb0] sm:$0xff]  ;;  %3275 = vmatpush.msra.mxu3 %v1435_v1 }
 0x3d8   : > { %v1271_v3 = vld [vmem:[%s4362_s24 + $0x1eb0] sm:$0xff]  ;;  %3224 = vmatpush.msra.mxu0 %v1207_v2 }
 0x3d9   : > { %v1367_v4 = vld [vmem:[%s4362_s24 + $0x21b0] sm:$0xff]  ;;  %3244 = vmatpush.msra.mxu1 %v1271_v3 }
 0x3da   : > { %v1431_v13 = vld [vmem:[%s4362_s24 + $0x23b0] sm:$0xff]  ;;  %3256 = vmatpush.msra.mxu2 %v1367_v4 }
 0x3db   : > { %v1203_v14 = vld [vmem:[%s4362_s24 + $0x1c90] sm:$0xff]  ;;  %3276 = vmatpush.msra.mxu3 %v1431_v13 }
 0x3dc   : > { %v1267_v15 = vld [vmem:[%s4362_s24 + $0x1e90] sm:$0xff]  ;;  %3225 = vmatpush.msra.mxu0 %v1203_v14 }
 0x3dd   : > { %v1363_v16 = vld [vmem:[%s4362_s24 + $0x2190] sm:$0xff]  ;;  %3245 = vmatpush.msra.mxu1 %v1267_v15 }
 0x3de   : > { %v1427_v18 = vld [vmem:[%s4362_s24 + $0x2390] sm:$0xff]  ;;  %3257 = vmatpush.msra.mxu2 %v1363_v16 }
 0x3df   : > { %v1199_v19 = vld [vmem:[%s4362_s24 + $0x1c70] sm:$0xff]  ;;  %3277 = vmatpush.msra.mxu3 %v1427_v18 }
 0x3e0   : > { %v1263_v20 = vld [vmem:[%s4362_s24 + $0x1e70] sm:$0xff]  ;;  %3226 = vmatpush.msra.mxu0 %v1199_v19 }
 0x3e1   : > { %v1359_v22 = vld [vmem:[%s4362_s24 + $0x2170] sm:$0xff]  ;;  %3246 = vmatpush.msra.mxu1 %v1263_v20 }
 0x3e2   : > { %v1423_v23 = vld [vmem:[%s4362_s24 + $0x2370] sm:$0xff]  ;;  %3258 = vmatpush.msra.mxu2 %v1359_v22 }
 0x3e3   : > { %v1195_v62 = vld [vmem:[%s4362_s24 + $0x1c50] sm:$0xff]  ;;  %3278 = vmatpush.msra.mxu3 %v1423_v23 }
 0x3e4   : > { %v1259_v24 = vld [vmem:[%s4362_s24 + $0x1e50] sm:$0xff]  ;;  %3227 = vmatpush.msra.mxu0 %v1195_v62 }
 0x3e5   : > { %v1355_v25 = vld [vmem:[%s4362_s24 + $0x2150] sm:$0xff]  ;;  %3247 = vmatpush.msra.mxu1 %v1259_v24 }
 0x3e6   : > { %v1419_v26 = vld [vmem:[%s4362_s24 + $0x2350] sm:$0xff]  ;;  %3259 = vmatpush.msra.mxu2 %v1355_v25 }
 0x3e7   : > { %v1191_v27 = vld [vmem:[%s4362_s24 + $0x1c30] sm:$0xff]  ;;  %3279 = vmatpush.msra.mxu3 %v1419_v26 }
 0x3e8   : > { %v1255_v31 = vld [vmem:[%s4362_s24 + $0x1e30] sm:$0xff]  ;;  %3228 = vmatpush.msra.mxu0 %v1191_v27 }
 0x3e9   : > { %v1351_v32 = vld [vmem:[%s4362_s24 + $0x2130] sm:$0xff]  ;;  %3248 = vmatpush.msra.mxu1 %v1255_v31 }
 0x3ea   : > { %v1415_v34 = vld [vmem:[%s4362_s24 + $0x2330] sm:$0xff]  ;;  %3260 = vmatpush.msra.mxu2 %v1351_v32 }
 0x3eb   : > { %v1187_v17 = vld [vmem:[%s4362_s24 + $0x1c10] sm:$0xff]  ;;  %3280 = vmatpush.msra.mxu3 %v1415_v34 }
 0x3ec   : > { %v1251_v35 = vld [vmem:[%s4362_s24 + $0x1e10] sm:$0xff]  ;;  %3229 = vmatpush.msra.mxu0 %v1187_v17 }
 0x3ed   : > { %v1347_v36 = vld [vmem:[%s4362_s24 + $0x2110] sm:$0xff]  ;;  %3249 = vmatpush.msra.mxu1 %v1251_v35  ;;  %3230 = vmatmul.f32.vlgmr.msra.gmra.mxu0 %v4618_v43 }
 0x3ee   : > { %v1411_v37 = vld [vmem:[%s4362_s24 + $0x2310] sm:$0xff]  ;;  %3261 = vmatpush.msra.mxu2 %v1347_v36  ;;  %3250 = vmatmul.f32.vlgmr.msra.gmra.mxu1 %v4624_v51 }
 0x3ef   : > { %v1567_v38 = vld [vmem:[%s4362_s24 + $0x27f0] sm:$0xff]  ;;  %3281 = vmatpush.msra.mxu3 %v1411_v37 }
 0x3f0   : > { %v1503_v40 = vld [vmem:[%s4362_s24 + $0x25f0] sm:$0xff]  ;;  %3314 = vmatpush.msrb.mxu1 %v1567_v38 }
 0x3f1   : > { %v1343_v41 = vld [vmem:[%s4362_s24 + $0x20f0] sm:$0xff]  ;;  %3294 = vmatpush.msrb.mxu0 %v1503_v40 }
 0x3f2   : > { %v1407_v45 = vld [vmem:[%s4362_s24 + $0x22f0] sm:$0xff]  ;;  %3262 = vmatpush.msra.mxu2 %v1343_v41 }
 0x3f3   : > { %v1499_v46 = vld [vmem:[%s4362_s24 + $0x25d0] sm:$0xff]  ;;  %3282 = vmatpush.msra.mxu3 %v1407_v45 }
 0x3f4   : > { %v1563_v52 = vld [vmem:[%s4362_s24 + $0x27d0] sm:$0xff]  ;;  %3295 = vmatpush.msrb.mxu0 %v1499_v46 }
 0x3f5   : > { %v1339_v53 = vld [vmem:[%s4362_s24 + $0x20d0] sm:$0xff]  ;;  %3315 = vmatpush.msrb.mxu1 %v1563_v52 }
 0x3f6   : > { %v1403_v54 = vld [vmem:[%s4362_s24 + $0x22d0] sm:$0xff]  ;;  %3263 = vmatpush.msra.mxu2 %v1339_v53 }
 0x3f7   : > { %v1495_v55 = vld [vmem:[%s4362_s24 + $0x25b0] sm:$0xff]  ;;  %3283 = vmatpush.msra.mxu3 %v1403_v54 }
 0x3f8   : > { %v1559_v56 = vld [vmem:[%s4362_s24 + $0x27b0] sm:$0xff]  ;;  %3296 = vmatpush.msrb.mxu0 %v1495_v55 }
 0x3f9   : > { %v1335_v57 = vld [vmem:[%s4362_s24 + $0x20b0] sm:$0xff]  ;;  %3316 = vmatpush.msrb.mxu1 %v1559_v56 }
 0x3fa   : > { %v1399_v58 = vld [vmem:[%s4362_s24 + $0x22b0] sm:$0xff]  ;;  %3264 = vmatpush.msra.mxu2 %v1335_v57 }
 0x3fb   : > { %v1491_v39 = vld [vmem:[%s4362_s24 + $0x2590] sm:$0xff]  ;;  %3284 = vmatpush.msra.mxu3 %v1399_v58 }
 0x3fc   : > { %v1555_v59 = vld [vmem:[%s4362_s24 + $0x2790] sm:$0xff]  ;;  %3297 = vmatpush.msrb.mxu0 %v1491_v39 }
 0x3fd   : > { %v1331_v60 = vld [vmem:[%s4362_s24 + $0x2090] sm:$0xff]  ;;  %3317 = vmatpush.msrb.mxu1 %v1555_v59 }
 0x3fe   : > { %v1395_v61 = vld [vmem:[%s4362_s24 + $0x2290] sm:$0xff]  ;;  %3265 = vmatpush.msra.mxu2 %v1331_v60 }
 0x3ff   : > { %v1487_v63 = vld [vmem:[%s4362_s24 + $0x2570] sm:$0xff]  ;;  %3285 = vmatpush.msra.mxu3 %v1395_v61 }
 0x400   : > { %v1551_v0 = vld [vmem:[%s4362_s24 + $0x2770] sm:$0xff]  ;;  %3298 = vmatpush.msrb.mxu0 %v1487_v63 }
 0x401   : > { %v1327_v1 = vld [vmem:[%s4362_s24 + $0x2070] sm:$0xff]  ;;  %3318 = vmatpush.msrb.mxu1 %v1551_v0 }
 0x402   : > { %v1391_v2 = vld [vmem:[%s4362_s24 + $0x2270] sm:$0xff]  ;;  %3266 = vmatpush.msra.mxu2 %v1327_v1 }
 0x403   : > { %v1483_v3 = vld [vmem:[%s4362_s24 + $0x2550] sm:$0xff]  ;;  %3286 = vmatpush.msra.mxu3 %v1391_v2 }
 0x404   : > { %v1547_v4 = vld [vmem:[%s4362_s24 + $0x2750] sm:$0xff]  ;;  %3299 = vmatpush.msrb.mxu0 %v1483_v3 }
 0x405   : > { %v1323_v13 = vld [vmem:[%s4362_s24 + $0x2050] sm:$0xff]  ;;  %3319 = vmatpush.msrb.mxu1 %v1547_v4 }
 0x406   : > { %v1387_v14 = vld [vmem:[%s4362_s24 + $0x2250] sm:$0xff]  ;;  %3267 = vmatpush.msra.mxu2 %v1323_v13 }
 0x407   : > { %v1479_v15 = vld [vmem:[%s4362_s24 + $0x2530] sm:$0xff]  ;;  %3287 = vmatpush.msra.mxu3 %v1387_v14 }
 0x408   : > { %v1543_v16 = vld [vmem:[%s4362_s24 + $0x2730] sm:$0xff]  ;;  %3300 = vmatpush.msrb.mxu0 %v1479_v15 }
 0x409   : > { %v1319_v18 = vld [vmem:[%s4362_s24 + $0x2030] sm:$0xff]  ;;  %3320 = vmatpush.msrb.mxu1 %v1543_v16 }
 0x40a   : > { %v1383_v19 = vld [vmem:[%s4362_s24 + $0x2230] sm:$0xff]  ;;  %3268 = vmatpush.msra.mxu2 %v1319_v18 }
 0x40b   : > { %v1475_v20 = vld [vmem:[%s4362_s24 + $0x2510] sm:$0xff]  ;;  %3288 = vmatpush.msra.mxu3 %v1383_v19 }
 0x40c   : > { %v1539_v22 = vld [vmem:[%s4362_s24 + $0x2710] sm:$0xff]  ;;  %3301 = vmatpush.msrb.mxu0 %v1475_v20 }
 0x40d   : > { %v1315_v23 = vld [vmem:[%s4362_s24 + $0x2010] sm:$0xff]  ;;  %3321 = vmatpush.msrb.mxu1 %v1539_v22 }
 0x40e   : > { %v1379_v62 = vld [vmem:[%s4362_s24 + $0x2210] sm:$0xff]  ;;  %3269 = vmatpush.msra.mxu2 %v1315_v23 }
 0x40f   : > { %v1471_v24 = vld [vmem:[%s4362_s24 + $0x24f0] sm:$0xff]  ;;  %3289 = vmatpush.msra.mxu3 %v1379_v62  ;;  %3270 = vmatmul.f32.vlgmr.msra.gmra.mxu2 %v4695_v5 }
 0x410   : > { %v1535_v25 = vld [vmem:[%s4362_s24 + $0x26f0] sm:$0xff]  ;;  %3302 = vmatpush.msrb.mxu0 %v1471_v24  ;;  %3290 = vmatmul.f32.vlgmr.msra.gmra.mxu3 %v4699_v7 }
 0x411   : > { %v1631_v26 = vld [vmem:[%s4362_s24 + $0x29f0] sm:$0xff]  ;;  %3322 = vmatpush.msrb.mxu1 %v1535_v25 }
 0x412   : > { %v1695_v27 = vld [vmem:[%s4362_s24 + $0x2bf0] sm:$0xff]  ;;  %3334 = vmatpush.msrb.mxu2 %v1631_v26 }
 0x413   : > { %v1467_v31 = vld [vmem:[%s4362_s24 + $0x24d0] sm:$0xff]  ;;  %3354 = vmatpush.msrb.mxu3 %v1695_v27 }
 0x414   : > { %v1531_v32 = vld [vmem:[%s4362_s24 + $0x26d0] sm:$0xff]  ;;  %3303 = vmatpush.msrb.mxu0 %v1467_v31 }
 0x415   : > { %v1627_v34 = vld [vmem:[%s4362_s24 + $0x29d0] sm:$0xff]  ;;  %3323 = vmatpush.msrb.mxu1 %v1531_v32 }
 0x416   : > { %v1691_v17 = vld [vmem:[%s4362_s24 + $0x2bd0] sm:$0xff]  ;;  %3335 = vmatpush.msrb.mxu2 %v1627_v34 }
 0x417   : > { %v1463_v35 = vld [vmem:[%s4362_s24 + $0x24b0] sm:$0xff]  ;;  %3355 = vmatpush.msrb.mxu3 %v1691_v17 }
 0x418   : > { %v1527_v36 = vld [vmem:[%s4362_s24 + $0x26b0] sm:$0xff]  ;;  %3304 = vmatpush.msrb.mxu0 %v1463_v35 }
 0x419   : > { %v1623_v37 = vld [vmem:[%s4362_s24 + $0x29b0] sm:$0xff]  ;;  %3324 = vmatpush.msrb.mxu1 %v1527_v36 }
 0x41a   : > { %v1687_v38 = vld [vmem:[%s4362_s24 + $0x2bb0] sm:$0xff]  ;;  %3336 = vmatpush.msrb.mxu2 %v1623_v37 }
 0x41b   : > { %v1459_v40 = vld [vmem:[%s4362_s24 + $0x2490] sm:$0xff]  ;;  %3356 = vmatpush.msrb.mxu3 %v1687_v38 }
 0x41c   : > { %v1523_v41 = vld [vmem:[%s4362_s24 + $0x2690] sm:$0xff]  ;;  %3305 = vmatpush.msrb.mxu0 %v1459_v40 }
 0x41d   : > { %v1619_v45 = vld [vmem:[%s4362_s24 + $0x2990] sm:$0xff]  ;;  %3325 = vmatpush.msrb.mxu1 %v1523_v41 }
 0x41e   : > { %v1683_v46 = vld [vmem:[%s4362_s24 + $0x2b90] sm:$0xff]  ;;  %3337 = vmatpush.msrb.mxu2 %v1619_v45 }
 0x41f   : > { %v1455_v52 = vld [vmem:[%s4362_s24 + $0x2470] sm:$0xff]  ;;  %3357 = vmatpush.msrb.mxu3 %v1683_v46 }
 0x420   : > { %v1519_v53 = vld [vmem:[%s4362_s24 + $0x2670] sm:$0xff]  ;;  %3306 = vmatpush.msrb.mxu0 %v1455_v52 }
 0x421   : > { %v1615_v54 = vld [vmem:[%s4362_s24 + $0x2970] sm:$0xff]  ;;  %3326 = vmatpush.msrb.mxu1 %v1519_v53 }
 0x422   : > { %v1679_v55 = vld [vmem:[%s4362_s24 + $0x2b70] sm:$0xff]  ;;  %3338 = vmatpush.msrb.mxu2 %v1615_v54 }
 0x423   : > { %v1451_v56 = vld [vmem:[%s4362_s24 + $0x2450] sm:$0xff]  ;;  %3358 = vmatpush.msrb.mxu3 %v1679_v55 }
 0x424   : > { %v1515_v57 = vld [vmem:[%s4362_s24 + $0x2650] sm:$0xff]  ;;  %3307 = vmatpush.msrb.mxu0 %v1451_v56 }
 0x425   : > { %v1611_v58 = vld [vmem:[%s4362_s24 + $0x2950] sm:$0xff]  ;;  %3327 = vmatpush.msrb.mxu1 %v1515_v57 }
 0x426   : > { %v1675_v39 = vld [vmem:[%s4362_s24 + $0x2b50] sm:$0xff]  ;;  %3339 = vmatpush.msrb.mxu2 %v1611_v58 }
 0x427   : > { %v1447_v59 = vld [vmem:[%s4362_s24 + $0x2430] sm:$0xff]  ;;  %3359 = vmatpush.msrb.mxu3 %v1675_v39 }
 0x428   : > { %v1511_v60 = vld [vmem:[%s4362_s24 + $0x2630] sm:$0xff]  ;;  %3308 = vmatpush.msrb.mxu0 %v1447_v59  ;;  %v352_v59 = vld [vmem:[%s4362_s24 + $0x1f8] sm:$0xff] }
 0x429   : > { %v1607_v61 = vld [vmem:[%s4362_s24 + $0x2930] sm:$0xff]  ;;  %3328 = vmatpush.msrb.mxu1 %v1511_v60 }
 0x42a   : > { %v1671_v63 = vld [vmem:[%s4362_s24 + $0x2b30] sm:$0xff]  ;;  %3340 = vmatpush.msrb.mxu2 %v1607_v61  ;;  %v4261_v61 = vld.sshfl [vmem:[#allocation1 + $0x20] sm:$0xff pattern:$0x73625140] }
 0x42b   : > { %v1443_v0 = vld [vmem:[%s4362_s24 + $0x2410] sm:$0xff]  ;;  %3360 = vmatpush.msrb.mxu3 %v1671_v63 }
 0x42c   : > { %v1507_v1 = vld [vmem:[%s4362_s24 + $0x2610] sm:$0xff]  ;;  %3309 = vmatpush.msrb.mxu0 %v1443_v0 }
 0x42d   : > { %v1603_v2 = vld [vmem:[%s4362_s24 + $0x2910] sm:$0xff]  ;;  %3329 = vmatpush.msrb.mxu1 %v1507_v1  ;;  %3310 = vmatmul.f32.vlgmr.msrb.gmra.mxu0 %v4697_v6  ;;  %v348_v1 = vld [vmem:[%s4362_s24 + $0x1d8] sm:$0xff] }
 0x42e   : > { %v1667_v3 = vld [vmem:[%s4362_s24 + $0x2b10] sm:$0xff]  ;;  %3341 = vmatpush.msrb.mxu2 %v1603_v2  ;;  %3330 = vmatmul.f32.vlgmr.msrb.gmra.mxu1 %v4701_v12 }
 0x42f   : > { %v1823_v4 = vld [vmem:[%s4362_s24 + $0x2ff0] sm:$0xff]  ;;  %3361 = vmatpush.msrb.mxu3 %v1667_v3 }
 0x430   : > { %v1759_v13 = vld [vmem:[%s4362_s24 + $0x2df0] sm:$0xff]  ;;  %3394 = vmatpush.msra.mxu1 %v1823_v4  ;;  %v4262_v4 = vld.sshfl [vmem:[#allocation1 + $0x28] sm:$0xff pattern:$0x73625140] }
 0x431   : > { %v1599_v14 = vld [vmem:[%s4362_s24 + $0x28f0] sm:$0xff]  ;;  %3374 = vmatpush.msra.mxu0 %v1759_v13 }
 0x432   : > { %v1663_v15 = vld [vmem:[%s4362_s24 + $0x2af0] sm:$0xff]  ;;  %3342 = vmatpush.msrb.mxu2 %v1599_v14  ;;  %v344_v14 = vld [vmem:[%s4362_s24 + $0x1b8] sm:$0xff] }
 0x433   : > { %v1755_v16 = vld [vmem:[%s4362_s24 + $0x2dd0] sm:$0xff]  ;;  %3362 = vmatpush.msrb.mxu3 %v1663_v15 }
 0x434   : > { %v1819_v18 = vld [vmem:[%s4362_s24 + $0x2fd0] sm:$0xff]  ;;  %3375 = vmatpush.msra.mxu0 %v1755_v16 }
 0x435   : > { %v1595_v19 = vld [vmem:[%s4362_s24 + $0x28d0] sm:$0xff]  ;;  %3395 = vmatpush.msra.mxu1 %v1819_v18 }
 0x436   : > { %v1659_v20 = vld [vmem:[%s4362_s24 + $0x2ad0] sm:$0xff]  ;;  %3343 = vmatpush.msrb.mxu2 %v1595_v19  ;;  %v340_v19 = vld [vmem:[%s4362_s24 + $0x198] sm:$0xff] }
 0x437   : > { %v1751_v22 = vld [vmem:[%s4362_s24 + $0x2db0] sm:$0xff]  ;;  %3363 = vmatpush.msrb.mxu3 %v1659_v20 }
 0x438   : > { %v1815_v23 = vld [vmem:[%s4362_s24 + $0x2fb0] sm:$0xff]  ;;  %3376 = vmatpush.msra.mxu0 %v1751_v22 }
 0x439   : > { %v1591_v62 = vld [vmem:[%s4362_s24 + $0x28b0] sm:$0xff]  ;;  %3396 = vmatpush.msra.mxu1 %v1815_v23 }
 0x43a   : > { %v1655_v24 = vld [vmem:[%s4362_s24 + $0x2ab0] sm:$0xff]  ;;  %3344 = vmatpush.msrb.mxu2 %v1591_v62  ;;  %v336_v62 = vld [vmem:[%s4362_s24 + $0x178] sm:$0xff] }
 0x43b   : > { %v1747_v25 = vld [vmem:[%s4362_s24 + $0x2d90] sm:$0xff]  ;;  %3364 = vmatpush.msrb.mxu3 %v1655_v24 }
 0x43c   : > { %v1811_v26 = vld [vmem:[%s4362_s24 + $0x2f90] sm:$0xff]  ;;  %3377 = vmatpush.msra.mxu0 %v1747_v25 }
 0x43d   : > { %v1587_v27 = vld [vmem:[%s4362_s24 + $0x2890] sm:$0xff]  ;;  %3397 = vmatpush.msra.mxu1 %v1811_v26 }
 0x43e   : > { %v1651_v31 = vld [vmem:[%s4362_s24 + $0x2a90] sm:$0xff]  ;;  %3345 = vmatpush.msrb.mxu2 %v1587_v27  ;;  %v332_v27 = vld [vmem:[%s4362_s24 + $0x158] sm:$0xff] }
 0x43f   : > { %v1743_v32 = vld [vmem:[%s4362_s24 + $0x2d70] sm:$0xff]  ;;  %3365 = vmatpush.msrb.mxu3 %v1651_v31 }
 0x440   : > { %v1807_v34 = vld [vmem:[%s4362_s24 + $0x2f70] sm:$0xff]  ;;  %3378 = vmatpush.msra.mxu0 %v1743_v32 }
 0x441   : > { %v1583_v17 = vld [vmem:[%s4362_s24 + $0x2870] sm:$0xff]  ;;  %3398 = vmatpush.msra.mxu1 %v1807_v34 }
 0x442   : > { %v1647_v35 = vld [vmem:[%s4362_s24 + $0x2a70] sm:$0xff]  ;;  %3346 = vmatpush.msrb.mxu2 %v1583_v17  ;;  %v328_v17 = vld [vmem:[%s4362_s24 + $0x138] sm:$0xff] }
 0x443   : > { %v1739_v36 = vld [vmem:[%s4362_s24 + $0x2d50] sm:$0xff]  ;;  %3366 = vmatpush.msrb.mxu3 %v1647_v35 }
 0x444   : > { %v1803_v37 = vld [vmem:[%s4362_s24 + $0x2f50] sm:$0xff]  ;;  %3379 = vmatpush.msra.mxu0 %v1739_v36 }
 0x445   : > { %v1579_v38 = vld [vmem:[%s4362_s24 + $0x2850] sm:$0xff]  ;;  %3399 = vmatpush.msra.mxu1 %v1803_v37 }
 0x446   : > { %v1643_v40 = vld [vmem:[%s4362_s24 + $0x2a50] sm:$0xff]  ;;  %3347 = vmatpush.msrb.mxu2 %v1579_v38  ;;  %v324_v38 = vld [vmem:[%s4362_s24 + $0x118] sm:$0xff] }
 0x447   : > { %v1735_v41 = vld [vmem:[%s4362_s24 + $0x2d30] sm:$0xff]  ;;  %3367 = vmatpush.msrb.mxu3 %v1643_v40  ;;  %v416_v40 = vld [vmem:[%s4362_s24 + $0x3f8] sm:$0xff] }
 0x448   : > { %v1799_v45 = vld [vmem:[%s4362_s24 + $0x2f30] sm:$0xff]  ;;  %3380 = vmatpush.msra.mxu0 %v1735_v41  ;;  %v480_v41 = vld [vmem:[%s4362_s24 + $0x5f8] sm:$0xff] }
 0x449   : > { %v1575_v46 = vld [vmem:[%s4362_s24 + $0x2830] sm:$0xff]  ;;  %3400 = vmatpush.msra.mxu1 %v1799_v45  ;;  %v544_v45 = vld [vmem:[%s4362_s24 + $0x7f8] sm:$0xff] }
 0x44a   : > { %v1639_v52 = vld [vmem:[%s4362_s24 + $0x2a30] sm:$0xff]  ;;  %3348 = vmatpush.msrb.mxu2 %v1575_v46  ;;  %v320_v46 = vld [vmem:[%s4362_s24 + $0xf8] sm:$0xff] }
 0x44b   : > { %v1731_v53 = vld [vmem:[%s4362_s24 + $0x2d10] sm:$0xff]  ;;  %3368 = vmatpush.msrb.mxu3 %v1639_v52 }
 0x44c   : > { %v1795_v54 = vld [vmem:[%s4362_s24 + $0x2f10] sm:$0xff]  ;;  %3381 = vmatpush.msra.mxu0 %v1731_v53  ;;  %v4264_v53 = vld.sshfl [vmem:[#allocation1] sm:$0xff pattern:$0x73625140] }
 0x44d   : > { %v1571_v55 = vld [vmem:[%s4362_s24 + $0x2810] sm:$0xff]  ;;  %3401 = vmatpush.msra.mxu1 %v1795_v54  ;;  %v412_v54 = vld [vmem:[%s4362_s24 + $0x3d8] sm:$0xff] }
 0x44e   : > { %v1635_v56 = vld [vmem:[%s4362_s24 + $0x2a10] sm:$0xff]  ;;  %3349 = vmatpush.msrb.mxu2 %v1571_v55  ;;  %v476_v55 = vld [vmem:[%s4362_s24 + $0x5d8] sm:$0xff] }
 0x44f   : > { %v1727_v57 = vld [vmem:[%s4362_s24 + $0x2cf0] sm:$0xff]  ;;  %3369 = vmatpush.msrb.mxu3 %v1635_v56  ;;  %3350 = vmatmul.f32.vlgmr.msrb.gmra.mxu2 %v4261_v61  ;;  %v540_v56 = vld [vmem:[%s4362_s24 + $0x7d8] sm:$0xff] }
 0x450   : > { %v1791_v58 = vld [vmem:[%s4362_s24 + $0x2ef0] sm:$0xff]  ;;  %3382 = vmatpush.msra.mxu0 %v1727_v57  ;;  %3370 = vmatmul.f32.vlgmr.msrb.gmra.mxu3 %v4262_v4  ;;  %v316_v57 = vld [vmem:[%s4362_s24 + $0xd8] sm:$0xff] }
 0x451   : > { %v1855_v39 = vld [vmem:[%s4362_s24 + $0x30f0] sm:$0xff]  ;;  %3402 = vmatpush.msra.mxu1 %v1791_v58  ;;  %3434 = vmatpush.msra.mxu3 %v352_v59  ;;  %v408_v58 = vld [vmem:[%s4362_s24 + $0x3b8] sm:$0xff] }
 0x452   : > { %v1723_v60 = vld [vmem:[%s4362_s24 + $0x2cd0] sm:$0xff]  ;;  %3422 = vmatpush.msra.mxu2 %v1855_v39  ;;  %v4265_v39 = vld.sshfl [vmem:[#allocation1 + $0x38] sm:$0xff pattern:$0x73625140] }
 0x453   : > { %v1787_v63 = vld [vmem:[%s4362_s24 + $0x2ed0] sm:$0xff]  ;;  %3383 = vmatpush.msra.mxu0 %v1723_v60  ;;  %3435 = vmatpush.msra.mxu3 %v348_v1  ;;  %v472_v59 = vld [vmem:[%s4362_s24 + $0x5b8] sm:$0xff] }
 0x454   : > { %v1851_v0 = vld [vmem:[%s4362_s24 + $0x30d0] sm:$0xff]  ;;  %3403 = vmatpush.msra.mxu1 %v1787_v63  ;;  %v536_v60 = vld [vmem:[%s4362_s24 + $0x7b8] sm:$0xff] }
 0x455   : > { %v1719_v2 = vld [vmem:[%s4362_s24 + $0x2cb0] sm:$0xff]  ;;  %3423 = vmatpush.msra.mxu2 %v1851_v0  ;;  %3436 = vmatpush.msra.mxu3 %v344_v14  ;;  %v312_v61 = vld [vmem:[%s4362_s24 + $0xb8] sm:$0xff] }
 0x456   : > { %v1783_v3 = vld [vmem:[%s4362_s24 + $0x2eb0] sm:$0xff]  ;;  %3384 = vmatpush.msra.mxu0 %v1719_v2  ;;  %v404_v63 = vld [vmem:[%s4362_s24 + $0x398] sm:$0xff] }
 0x457   : > { %v1847_v13 = vld [vmem:[%s4362_s24 + $0x30b0] sm:$0xff]  ;;  %3404 = vmatpush.msra.mxu1 %v1783_v3  ;;  %3437 = vmatpush.msra.mxu3 %v340_v19  ;;  %v468_v0 = vld [vmem:[%s4362_s24 + $0x598] sm:$0xff] }
 0x458   : > { %v1715_v15 = vld [vmem:[%s4362_s24 + $0x2c90] sm:$0xff]  ;;  %3424 = vmatpush.msra.mxu2 %v1847_v13  ;;  %v532_v1 = vld [vmem:[%s4362_s24 + $0x798] sm:$0xff] }
 0x459   : > { %v1779_v16 = vld [vmem:[%s4362_s24 + $0x2e90] sm:$0xff]  ;;  %3385 = vmatpush.msra.mxu0 %v1715_v15  ;;  %3438 = vmatpush.msra.mxu3 %v336_v62  ;;  %v308_v2 = vld [vmem:[%s4362_s24 + $0x98] sm:$0xff] }
 0x45a   : > { %v1843_v18 = vld [vmem:[%s4362_s24 + $0x3090] sm:$0xff]  ;;  %3405 = vmatpush.msra.mxu1 %v1779_v16  ;;  %v400_v3 = vld [vmem:[%s4362_s24 + $0x378] sm:$0xff] }
 0x45b   : > { %v1711_v20 = vld [vmem:[%s4362_s24 + $0x2c70] sm:$0xff]  ;;  %3425 = vmatpush.msra.mxu2 %v1843_v18  ;;  %3439 = vmatpush.msra.mxu3 %v332_v27  ;;  %v464_v4 = vld [vmem:[%s4362_s24 + $0x578] sm:$0xff] }
 0x45c   : > { %v1775_v22 = vld [vmem:[%s4362_s24 + $0x2e70] sm:$0xff]  ;;  %3386 = vmatpush.msra.mxu0 %v1711_v20  ;;  %v528_v13 = vld [vmem:[%s4362_s24 + $0x778] sm:$0xff] }
 0x45d   : > { %v1839_v23 = vld [vmem:[%s4362_s24 + $0x3070] sm:$0xff]  ;;  %3406 = vmatpush.msra.mxu1 %v1775_v22  ;;  %3440 = vmatpush.msra.mxu3 %v328_v17  ;;  %v304_v14 = vld [vmem:[%s4362_s24 + $0x78] sm:$0xff] }
 0x45e   : > { %v1707_v24 = vld [vmem:[%s4362_s24 + $0x2c50] sm:$0xff]  ;;  %3426 = vmatpush.msra.mxu2 %v1839_v23  ;;  %v396_v15 = vld [vmem:[%s4362_s24 + $0x358] sm:$0xff] }
 0x45f   : > { %v1771_v25 = vld [vmem:[%s4362_s24 + $0x2e50] sm:$0xff]  ;;  %3387 = vmatpush.msra.mxu0 %v1707_v24  ;;  %3441 = vmatpush.msra.mxu3 %v324_v38  ;;  %v460_v16 = vld [vmem:[%s4362_s24 + $0x558] sm:$0xff] }
 0x460   : > { %v1835_v26 = vld [vmem:[%s4362_s24 + $0x3050] sm:$0xff]  ;;  %3407 = vmatpush.msra.mxu1 %v1771_v25  ;;  %v524_v18 = vld [vmem:[%s4362_s24 + $0x758] sm:$0xff] }
 0x461   : > { %v1703_v31 = vld [vmem:[%s4362_s24 + $0x2c30] sm:$0xff]  ;;  %3427 = vmatpush.msra.mxu2 %v1835_v26  ;;  %3442 = vmatpush.msra.mxu3 %v320_v46  ;;  %v300_v19 = vld [vmem:[%s4362_s24 + $0x58] sm:$0xff] }
 0x462   : > { %v1767_v32 = vld [vmem:[%s4362_s24 + $0x2e30] sm:$0xff]  ;;  %3388 = vmatpush.msra.mxu0 %v1703_v31  ;;  %v392_v20 = vld [vmem:[%s4362_s24 + $0x338] sm:$0xff] }
 0x463   : > { %v1831_v34 = vld [vmem:[%s4362_s24 + $0x3030] sm:$0xff]  ;;  %3408 = vmatpush.msra.mxu1 %v1767_v32  ;;  %3443 = vmatpush.msra.mxu3 %v316_v57  ;;  %v456_v22 = vld [vmem:[%s4362_s24 + $0x538] sm:$0xff] }
 0x464   : > { %v1699_v35 = vld [vmem:[%s4362_s24 + $0x2c10] sm:$0xff]  ;;  %3428 = vmatpush.msra.mxu2 %v1831_v34  ;;  %v520_v23 = vld [vmem:[%s4362_s24 + $0x738] sm:$0xff] }
 0x465   : > { %v1763_v36 = vld [vmem:[%s4362_s24 + $0x2e10] sm:$0xff]  ;;  %3389 = vmatpush.msra.mxu0 %v1699_v35  ;;  %3444 = vmatpush.msra.mxu3 %v312_v61  ;;  %v296_v62 = vld [vmem:[%s4362_s24 + $0x38] sm:$0xff] }
 0x466   : > { %v1827_v37 = vld [vmem:[%s4362_s24 + $0x3010] sm:$0xff]  ;;  %3409 = vmatpush.msra.mxu1 %v1763_v36  ;;  %v388_v24 = vld [vmem:[%s4362_s24 + $0x318] sm:$0xff] }
 0x467   : > { %3429 = vmatpush.msra.mxu2 %v1827_v37  ;;  %v4263_v52 = vld.sshfl [vmem:[#allocation1 + $0x30] sm:$0xff pattern:$0x73625140]  ;;  %3454 = vmatpush.msrb.mxu0 %v416_v40  ;;  %v452_v25 = vld [vmem:[%s4362_s24 + $0x518] sm:$0xff] }
 0x468   : > { %3390 = vmatmul.f32.vlgmr.msra.gmra.mxu0 %v4263_v52  ;;  %4225 = vmatmul.msk.f32.vlgmr.msra.gmra.mxu2 %vm1931_vm0, %v4264_v53  ;;  %v516_v26 = vld [vmem:[%s4362_s24 + $0x718] sm:$0xff] }
 0x469   : > { %3474 = vmatpush.msrb.mxu1 %v480_v41  ;;  %3494 = vmatpush.msrb.mxu2 %v544_v45  ;;  %v292_v27 = vld [vmem:[%s4362_s24 + $0x18] sm:$0xff] }
 0x46a   : > { %3410 = vmatmul.f32.vlgmr.msra.gmra.mxu1 %v4265_v39  ;;  %3455 = vmatpush.msrb.mxu0 %v412_v54  ;;  %v384_v31 = vld [vmem:[%s4362_s24 + $0x2f8] sm:$0xff] }
 0x46b   : > { %3475 = vmatpush.msrb.mxu1 %v476_v55  ;;  %3495 = vmatpush.msrb.mxu2 %v540_v56  ;;  %v448_v32 = vld [vmem:[%s4362_s24 + $0x4f8] sm:$0xff] }
 0x46c   : > { %3456 = vmatpush.msrb.mxu0 %v408_v58  ;;  %3445 = vmatpush.msra.mxu3 %v308_v2  ;;  %v512_v34 = vld [vmem:[%s4362_s24 + $0x6f8] sm:$0xff] }
 0x46d   : > { %3476 = vmatpush.msrb.mxu1 %v472_v59  ;;  %3496 = vmatpush.msrb.mxu2 %v536_v60  ;;  %v608_v17 = vld [vmem:[%s4362_s24 + $0x9f8] sm:$0xff] }
 0x46e   : > { %3457 = vmatpush.msrb.mxu0 %v404_v63  ;;  %3446 = vmatpush.msra.mxu3 %v304_v14  ;;  %v380_v35 = vld [vmem:[%s4362_s24 + $0x2d8] sm:$0xff] }
 0x46f   : > { %3477 = vmatpush.msrb.mxu1 %v468_v0  ;;  %3497 = vmatpush.msrb.mxu2 %v532_v1  ;;  %v444_v36 = vld [vmem:[%s4362_s24 + $0x4d8] sm:$0xff] }
 0x470   : > { %3458 = vmatpush.msrb.mxu0 %v400_v3  ;;  %3447 = vmatpush.msra.mxu3 %v300_v19  ;;  %v508_v37 = vld [vmem:[%s4362_s24 + $0x6d8] sm:$0xff] }
 0x471   : > { %3478 = vmatpush.msrb.mxu1 %v464_v4  ;;  %3498 = vmatpush.msrb.mxu2 %v528_v13  ;;  %v604_v38 = vld [vmem:[%s4362_s24 + $0x9d8] sm:$0xff] }
 0x472   : > { %3459 = vmatpush.msrb.mxu0 %v396_v15  ;;  %3448 = vmatpush.msra.mxu3 %v296_v62  ;;  %v376_v40 = vld [vmem:[%s4362_s24 + $0x2b8] sm:$0xff] }
 0x473   : > { %3479 = vmatpush.msrb.mxu1 %v460_v16  ;;  %3499 = vmatpush.msrb.mxu2 %v524_v18  ;;  %v440_v41 = vld [vmem:[%s4362_s24 + $0x4b8] sm:$0xff] }
 0x474   : > { %3460 = vmatpush.msrb.mxu0 %v392_v20  ;;  %3449 = vmatpush.msra.mxu3 %v292_v27  ;;  %v504_v45 = vld [vmem:[%s4362_s24 + $0x6b8] sm:$0xff] }
 0x475   : > { %3480 = vmatpush.msrb.mxu1 %v456_v22  ;;  %3500 = vmatpush.msrb.mxu2 %v520_v23  ;;  %v600_v46 = vld [vmem:[%s4362_s24 + $0x9b8] sm:$0xff] }
 0x476   : > { %3461 = vmatpush.msrb.mxu0 %v388_v24  ;;  %3514 = vmatpush.msrb.mxu3 %v608_v17  ;;  %v372_v52 = vld [vmem:[%s4362_s24 + $0x298] sm:$0xff] }
 0x477   : > { %3481 = vmatpush.msrb.mxu1 %v452_v25  ;;  %3501 = vmatpush.msrb.mxu2 %v516_v26  ;;  %v436_v53 = vld [vmem:[%s4362_s24 + $0x498] sm:$0xff] }
 0x478   : > { %3462 = vmatpush.msrb.mxu0 %v384_v31  ;;  %3515 = vmatpush.msrb.mxu3 %v604_v38  ;;  %v500_v54 = vld [vmem:[%s4362_s24 + $0x698] sm:$0xff] }
 0x479   : > { %3482 = vmatpush.msrb.mxu1 %v448_v32  ;;  %3502 = vmatpush.msrb.mxu2 %v512_v34  ;;  %v596_v55 = vld [vmem:[%s4362_s24 + $0x998] sm:$0xff] }
 0x47a   : > { %3463 = vmatpush.msrb.mxu0 %v380_v35  ;;  %v368_v56 = vld [vmem:[%s4362_s24 + $0x278] sm:$0xff]  ;;  %3516 = vmatpush.msrb.mxu3 %v600_v46 }
 0x47b   : > { %3483 = vmatpush.msrb.mxu1 %v444_v36  ;;  %3503 = vmatpush.msrb.mxu2 %v508_v37  ;;  %v432_v57 = vld [vmem:[%s4362_s24 + $0x478] sm:$0xff] }
 0x47c   : > { %3464 = vmatpush.msrb.mxu0 %v376_v40  ;;  %v496_v58 = vld [vmem:[%s4362_s24 + $0x678] sm:$0xff]  ;;  %3517 = vmatpush.msrb.mxu3 %v596_v55 }
 0x47d   : > { %3484 = vmatpush.msrb.mxu1 %v440_v41  ;;  %3504 = vmatpush.msrb.mxu2 %v504_v45  ;;  %v592_v39 = vld [vmem:[%s4362_s24 + $0x978] sm:$0xff] }
 0x47e   : > { %3465 = vmatpush.msrb.mxu0 %v372_v52  ;;  %v364_v59 = vld [vmem:[%s4362_s24 + $0x258] sm:$0xff]  ;;  %3518 = vmatpush.msrb.mxu3 %v592_v39 }
 0x47f   : > { %3485 = vmatpush.msrb.mxu1 %v436_v53  ;;  %3505 = vmatpush.msrb.mxu2 %v500_v54  ;;  %v428_v60 = vld [vmem:[%s4362_s24 + $0x458] sm:$0xff] }
 0x480   : > { %3466 = vmatpush.msrb.mxu0 %v368_v56  ;;  %v492_v61 = vld [vmem:[%s4362_s24 + $0x658] sm:$0xff]  ;;  %3450 = vmatmul.f32.vlgmr.msra.gmra.mxu3 %v4481_v47 }
 0x481   : > { %3486 = vmatpush.msrb.mxu1 %v432_v57  ;;  %3506 = vmatpush.msrb.mxu2 %v496_v58  ;;  %v588_v63 = vld [vmem:[%s4362_s24 + $0x958] sm:$0xff] }
 0x482   : > { %v360_v0 = vld [vmem:[%s4362_s24 + $0x238] sm:$0xff]  ;;  %3467 = vmatpush.msrb.mxu0 %v364_v59  ;;  %3519 = vmatpush.msrb.mxu3 %v588_v63 }
 0x483   : > { %v424_v1 = vld [vmem:[%s4362_s24 + $0x438] sm:$0xff]  ;;  %3487 = vmatpush.msrb.mxu1 %v428_v60  ;;  %3507 = vmatpush.msrb.mxu2 %v492_v61 }
 0x484   : > { %v488_v2 = vld [vmem:[%s4362_s24 + $0x638] sm:$0xff]  ;;  %3468 = vmatpush.msrb.mxu0 %v360_v0 }
 0x485   : > { %v584_v3 = vld [vmem:[%s4362_s24 + $0x938] sm:$0xff]  ;;  %3488 = vmatpush.msrb.mxu1 %v424_v1  ;;  %3508 = vmatpush.msrb.mxu2 %v488_v2 }
 0x486   : > { %v356_v4 = vld [vmem:[%s4362_s24 + $0x218] sm:$0xff]  ;;  %3520 = vmatpush.msrb.mxu3 %v584_v3 }
 0x487   : > { %v420_v13 = vld [vmem:[%s4362_s24 + $0x418] sm:$0xff]  ;;  %3469 = vmatpush.msrb.mxu0 %v356_v4 }
 0x488   : > { %v484_v14 = vld [vmem:[%s4362_s24 + $0x618] sm:$0xff]  ;;  %3489 = vmatpush.msrb.mxu1 %v420_v13  ;;  %3470 = vmatmul.f32.vlgmr.msrb.gmra.mxu0 %v4483_v48 }
 0x489   : > { %v580_v15 = vld [vmem:[%s4362_s24 + $0x918] sm:$0xff]  ;;  %3509 = vmatpush.msrb.mxu2 %v484_v14  ;;  %3490 = vmatmul.f32.vlgmr.msrb.gmra.mxu1 %v4485_v49 }
 0x48a   : > { %v672_v16 = vld [vmem:[%s4362_s24 + $0xbf8] sm:$0xff]  ;;  %3521 = vmatpush.msrb.mxu3 %v580_v15  ;;  %3510 = vmatmul.f32.vlgmr.msrb.gmra.mxu2 %v4487_v50 }
 0x48b   : > { %v736_v18 = vld [vmem:[%s4362_s24 + $0xdf8] sm:$0xff]  ;;  %3534 = vmatpush.msra.mxu0 %v672_v16 }
 0x48c   : > { %v800_v19 = vld [vmem:[%s4362_s24 + $0xff8] sm:$0xff]  ;;  %3554 = vmatpush.msra.mxu1 %v736_v18 }
 0x48d   : > { %v576_v20 = vld [vmem:[%s4362_s24 + $0x8f8] sm:$0xff]  ;;  %3574 = vmatpush.msra.mxu2 %v800_v19 }
 0x48e   : > { %v668_v22 = vld [vmem:[%s4362_s24 + $0xbd8] sm:$0xff]  ;;  %3522 = vmatpush.msrb.mxu3 %v576_v20 }
 0x48f   : > { %v732_v23 = vld [vmem:[%s4362_s24 + $0xdd8] sm:$0xff]  ;;  %3535 = vmatpush.msra.mxu0 %v668_v22 }
 0x490   : > { %v796_v62 = vld [vmem:[%s4362_s24 + $0xfd8] sm:$0xff]  ;;  %3555 = vmatpush.msra.mxu1 %v732_v23 }
 0x491   : > { %v572_v24 = vld [vmem:[%s4362_s24 + $0x8d8] sm:$0xff]  ;;  %3575 = vmatpush.msra.mxu2 %v796_v62 }
 0x492   : > { %v664_v25 = vld [vmem:[%s4362_s24 + $0xbb8] sm:$0xff]  ;;  %3523 = vmatpush.msrb.mxu3 %v572_v24 }
 0x493   : > { %v728_v26 = vld [vmem:[%s4362_s24 + $0xdb8] sm:$0xff]  ;;  %3536 = vmatpush.msra.mxu0 %v664_v25 }
 0x494   : > { %v792_v27 = vld [vmem:[%s4362_s24 + $0xfb8] sm:$0xff]  ;;  %3556 = vmatpush.msra.mxu1 %v728_v26 }
 0x495   : > { %v568_v31 = vld [vmem:[%s4362_s24 + $0x8b8] sm:$0xff]  ;;  %3576 = vmatpush.msra.mxu2 %v792_v27 }
 0x496   : > { %v660_v32 = vld [vmem:[%s4362_s24 + $0xb98] sm:$0xff]  ;;  %3524 = vmatpush.msrb.mxu3 %v568_v31 }
 0x497   : > { %v724_v34 = vld [vmem:[%s4362_s24 + $0xd98] sm:$0xff]  ;;  %3537 = vmatpush.msra.mxu0 %v660_v32 }
 0x498   : > { %v788_v17 = vld [vmem:[%s4362_s24 + $0xf98] sm:$0xff]  ;;  %3557 = vmatpush.msra.mxu1 %v724_v34 }
 0x499   : > { %v564_v35 = vld [vmem:[%s4362_s24 + $0x898] sm:$0xff]  ;;  %3577 = vmatpush.msra.mxu2 %v788_v17 }
 0x49a   : > { %v656_v36 = vld [vmem:[%s4362_s24 + $0xb78] sm:$0xff]  ;;  %3525 = vmatpush.msrb.mxu3 %v564_v35 }
 0x49b   : > { %v720_v37 = vld [vmem:[%s4362_s24 + $0xd78] sm:$0xff]  ;;  %3538 = vmatpush.msra.mxu0 %v656_v36 }
 0x49c   : > { %v784_v38 = vld [vmem:[%s4362_s24 + $0xf78] sm:$0xff]  ;;  %3558 = vmatpush.msra.mxu1 %v720_v37 }
 0x49d   : > { %v560_v40 = vld [vmem:[%s4362_s24 + $0x878] sm:$0xff]  ;;  %3578 = vmatpush.msra.mxu2 %v784_v38 }
 0x49e   : > { %v652_v41 = vld [vmem:[%s4362_s24 + $0xb58] sm:$0xff]  ;;  %3526 = vmatpush.msrb.mxu3 %v560_v40 }
 0x49f   : > { %v716_v45 = vld [vmem:[%s4362_s24 + $0xd58] sm:$0xff]  ;;  %3539 = vmatpush.msra.mxu0 %v652_v41 }
 0x4a0   : > { %v780_v46 = vld [vmem:[%s4362_s24 + $0xf58] sm:$0xff]  ;;  %3559 = vmatpush.msra.mxu1 %v716_v45 }
 0x4a1   : > { %v556_v52 = vld [vmem:[%s4362_s24 + $0x858] sm:$0xff]  ;;  %3579 = vmatpush.msra.mxu2 %v780_v46 }
 0x4a2   : > { %v648_v53 = vld [vmem:[%s4362_s24 + $0xb38] sm:$0xff]  ;;  %3527 = vmatpush.msrb.mxu3 %v556_v52 }
 0x4a3   : > { %v712_v54 = vld [vmem:[%s4362_s24 + $0xd38] sm:$0xff]  ;;  %3540 = vmatpush.msra.mxu0 %v648_v53 }
 0x4a4   : > { %v776_v55 = vld [vmem:[%s4362_s24 + $0xf38] sm:$0xff]  ;;  %3560 = vmatpush.msra.mxu1 %v712_v54 }
 0x4a5   : > { %v552_v56 = vld [vmem:[%s4362_s24 + $0x838] sm:$0xff]  ;;  %3580 = vmatpush.msra.mxu2 %v776_v55 }
 0x4a6   : > { %v644_v57 = vld [vmem:[%s4362_s24 + $0xb18] sm:$0xff]  ;;  %3528 = vmatpush.msrb.mxu3 %v552_v56 }
 0x4a7   : > { %v708_v58 = vld [vmem:[%s4362_s24 + $0xd18] sm:$0xff]  ;;  %3541 = vmatpush.msra.mxu0 %v644_v57 }
 0x4a8   : > { %v772_v39 = vld [vmem:[%s4362_s24 + $0xf18] sm:$0xff]  ;;  %3561 = vmatpush.msra.mxu1 %v708_v58 }
 0x4a9   : > { %v548_v59 = vld [vmem:[%s4362_s24 + $0x818] sm:$0xff]  ;;  %3581 = vmatpush.msra.mxu2 %v772_v39 }
 0x4aa   : > { %v640_v60 = vld [vmem:[%s4362_s24 + $0xaf8] sm:$0xff]  ;;  %3529 = vmatpush.msrb.mxu3 %v548_v59 }
 0x4ab   : > { %v704_v61 = vld [vmem:[%s4362_s24 + $0xcf8] sm:$0xff]  ;;  %3542 = vmatpush.msra.mxu0 %v640_v60  ;;  %3530 = vmatmul.f32.vlgmr.msrb.gmra.mxu3 %v4512_v9 }
 0x4ac   : > { %v768_v63 = vld [vmem:[%s4362_s24 + $0xef8] sm:$0xff]  ;;  %3562 = vmatpush.msra.mxu1 %v704_v61 }
 0x4ad   : > { %v864_v0 = vld [vmem:[%s4362_s24 + $0x11f8] sm:$0xff]  ;;  %3582 = vmatpush.msra.mxu2 %v768_v63 }
 0x4ae   : > { %v636_v1 = vld [vmem:[%s4362_s24 + $0xad8] sm:$0xff]  ;;  %3594 = vmatpush.msra.mxu3 %v864_v0 }
 0x4af   : > { %v700_v2 = vld [vmem:[%s4362_s24 + $0xcd8] sm:$0xff]  ;;  %3543 = vmatpush.msra.mxu0 %v636_v1 }
 0x4b0   : > { %v764_v3 = vld [vmem:[%s4362_s24 + $0xed8] sm:$0xff]  ;;  %3563 = vmatpush.msra.mxu1 %v700_v2 }
 0x4b1   : > { %v860_v4 = vld [vmem:[%s4362_s24 + $0x11d8] sm:$0xff]  ;;  %3583 = vmatpush.msra.mxu2 %v764_v3 }
 0x4b2   : > { %v632_v13 = vld [vmem:[%s4362_s24 + $0xab8] sm:$0xff]  ;;  %3595 = vmatpush.msra.mxu3 %v860_v4 }
 0x4b3   : > { %v696_v14 = vld [vmem:[%s4362_s24 + $0xcb8] sm:$0xff]  ;;  %3544 = vmatpush.msra.mxu0 %v632_v13 }
 0x4b4   : > { %v760_v15 = vld [vmem:[%s4362_s24 + $0xeb8] sm:$0xff]  ;;  %3564 = vmatpush.msra.mxu1 %v696_v14 }
 0x4b5   : > { %v856_v16 = vld [vmem:[%s4362_s24 + $0x11b8] sm:$0xff]  ;;  %3584 = vmatpush.msra.mxu2 %v760_v15 }
 0x4b6   : > { %v628_v47 = vld [vmem:[%s4362_s24 + $0xa98] sm:$0xff]  ;;  %3596 = vmatpush.msra.mxu3 %v856_v16 }
 0x4b7   : > { %v692_v18 = vld [vmem:[%s4362_s24 + $0xc98] sm:$0xff]  ;;  %3545 = vmatpush.msra.mxu0 %v628_v47 }
 0x4b8   : > { %v756_v19 = vld [vmem:[%s4362_s24 + $0xe98] sm:$0xff]  ;;  %3565 = vmatpush.msra.mxu1 %v692_v18 }
 0x4b9   : > { %v852_v20 = vld [vmem:[%s4362_s24 + $0x1198] sm:$0xff]  ;;  %3585 = vmatpush.msra.mxu2 %v756_v19 }
 0x4ba   : > { %v624_v22 = vld [vmem:[%s4362_s24 + $0xa78] sm:$0xff]  ;;  %3597 = vmatpush.msra.mxu3 %v852_v20 }
 0x4bb   : > { %v688_v23 = vld [vmem:[%s4362_s24 + $0xc78] sm:$0xff]  ;;  %3546 = vmatpush.msra.mxu0 %v624_v22 }
 0x4bc   : > { %v752_v62 = vld [vmem:[%s4362_s24 + $0xe78] sm:$0xff]  ;;  %3566 = vmatpush.msra.mxu1 %v688_v23 }
 0x4bd   : > { %v848_v24 = vld [vmem:[%s4362_s24 + $0x1178] sm:$0xff]  ;;  %3586 = vmatpush.msra.mxu2 %v752_v62 }
 0x4be   : > { %v620_v25 = vld [vmem:[%s4362_s24 + $0xa58] sm:$0xff]  ;;  %3598 = vmatpush.msra.mxu3 %v848_v24 }
 0x4bf   : > { %v684_v26 = vld [vmem:[%s4362_s24 + $0xc58] sm:$0xff]  ;;  %3547 = vmatpush.msra.mxu0 %v620_v25 }
 0x4c0   : > { %v748_v27 = vld [vmem:[%s4362_s24 + $0xe58] sm:$0xff]  ;;  %3567 = vmatpush.msra.mxu1 %v684_v26 }
 0x4c1   : > { %v844_v31 = vld [vmem:[%s4362_s24 + $0x1158] sm:$0xff]  ;;  %3587 = vmatpush.msra.mxu2 %v748_v27 }
 0x4c2   : > { %v616_v50 = vld [vmem:[%s4362_s24 + $0xa38] sm:$0xff]  ;;  %3599 = vmatpush.msra.mxu3 %v844_v31 }
 0x4c3   : > { %v680_v32 = vld [vmem:[%s4362_s24 + $0xc38] sm:$0xff]  ;;  %3548 = vmatpush.msra.mxu0 %v616_v50 }
 0x4c4   : > { %v744_v34 = vld [vmem:[%s4362_s24 + $0xe38] sm:$0xff]  ;;  %3568 = vmatpush.msra.mxu1 %v680_v32 }
 0x4c5   : > { %v840_v17 = vld [vmem:[%s4362_s24 + $0x1138] sm:$0xff]  ;;  %3588 = vmatpush.msra.mxu2 %v744_v34 }
 0x4c6   : > { %v612_v48 = vld [vmem:[%s4362_s24 + $0xa18] sm:$0xff]  ;;  %3600 = vmatpush.msra.mxu3 %v840_v17 }
 0x4c7   : > { %v676_v35 = vld [vmem:[%s4362_s24 + $0xc18] sm:$0xff]  ;;  %3549 = vmatpush.msra.mxu0 %v612_v48 }
 0x4c8   : > { %v740_v9 = vld [vmem:[%s4362_s24 + $0xe18] sm:$0xff]  ;;  %3569 = vmatpush.msra.mxu1 %v676_v35  ;;  %3550 = vmatmul.f32.vlgmr.msra.gmra.mxu0 %v4516_v11 }
 0x4c9   : > { %v836_v36 = vld [vmem:[%s4362_s24 + $0x1118] sm:$0xff]  ;;  %3589 = vmatpush.msra.mxu2 %v740_v9  ;;  %3570 = vmatmul.f32.vlgmr.msra.gmra.mxu1 %v4510_v8 }
 0x4ca   : > { %v928_v37 = vld [vmem:[%s4362_s24 + $0x13f8] sm:$0xff]  ;;  %3601 = vmatpush.msra.mxu3 %v836_v36  ;;  %3590 = vmatmul.f32.vlgmr.msra.gmra.mxu2 %v4514_v10 }
 0x4cb   : > { %v992_v38 = vld [vmem:[%s4362_s24 + $0x15f8] sm:$0xff]  ;;  %3614 = vmatpush.msrb.mxu0 %v928_v37 }
 0x4cc   : > { %v1056_v40 = vld [vmem:[%s4362_s24 + $0x17f8] sm:$0xff]  ;;  %3634 = vmatpush.msrb.mxu1 %v992_v38 }
 0x4cd   : > { %v832_v49 = vld [vmem:[%s4362_s24 + $0x10f8] sm:$0xff]  ;;  %3654 = vmatpush.msrb.mxu2 %v1056_v40 }
 0x4ce   : > { %v924_v41 = vld [vmem:[%s4362_s24 + $0x13d8] sm:$0xff]  ;;  %3602 = vmatpush.msra.mxu3 %v832_v49 }
 0x4cf   : > { %v988_v45 = vld [vmem:[%s4362_s24 + $0x15d8] sm:$0xff]  ;;  %3615 = vmatpush.msrb.mxu0 %v924_v41 }
 0x4d0   : > { %v1052_v46 = vld [vmem:[%s4362_s24 + $0x17d8] sm:$0xff]  ;;  %3635 = vmatpush.msrb.mxu1 %v988_v45 }
 0x4d1   : > { %v828_v52 = vld [vmem:[%s4362_s24 + $0x10d8] sm:$0xff]  ;;  %3655 = vmatpush.msrb.mxu2 %v1052_v46 }
 0x4d2   : > { %v920_v53 = vld [vmem:[%s4362_s24 + $0x13b8] sm:$0xff]  ;;  %3603 = vmatpush.msra.mxu3 %v828_v52 }
 0x4d3   : > { %v984_v54 = vld [vmem:[%s4362_s24 + $0x15b8] sm:$0xff]  ;;  %3616 = vmatpush.msrb.mxu0 %v920_v53 }
 0x4d4   : > { %v1048_v55 = vld [vmem:[%s4362_s24 + $0x17b8] sm:$0xff]  ;;  %3636 = vmatpush.msrb.mxu1 %v984_v54 }
 0x4d5   : > { %v824_v56 = vld [vmem:[%s4362_s24 + $0x10b8] sm:$0xff]  ;;  %3656 = vmatpush.msrb.mxu2 %v1048_v55 }
 0x4d6   : > { %v916_v57 = vld [vmem:[%s4362_s24 + $0x1398] sm:$0xff]  ;;  %3604 = vmatpush.msra.mxu3 %v824_v56 }
 0x4d7   : > { %v980_v10 = vld [vmem:[%s4362_s24 + $0x1598] sm:$0xff]  ;;  %3617 = vmatpush.msrb.mxu0 %v916_v57 }
 0x4d8   : > { %v1044_v58 = vld [vmem:[%s4362_s24 + $0x1798] sm:$0xff]  ;;  %3637 = vmatpush.msrb.mxu1 %v980_v10 }
 0x4d9   : > { %v820_v39 = vld [vmem:[%s4362_s24 + $0x1098] sm:$0xff]  ;;  %3657 = vmatpush.msrb.mxu2 %v1044_v58  ;;  %v5885_v58 = vpop.f32.mrf.mxu2 }
 0x4da   : > { %v912_v59 = vld [vmem:[%s4362_s24 + $0x1378] sm:$0xff]  ;;  %3605 = vmatpush.msra.mxu3 %v820_v39 }
 0x4db   : > { %v976_v11 = vld [vmem:[%s4362_s24 + $0x1578] sm:$0xff]  ;;  %3618 = vmatpush.msrb.mxu0 %v912_v59 }
 0x4dc   : > { %v1040_v60 = vld [vmem:[%s4362_s24 + $0x1778] sm:$0xff]  ;;  %3638 = vmatpush.msrb.mxu1 %v976_v11 }
 0x4dd   : > { %v816_v61 = vld [vmem:[%s4362_s24 + $0x1078] sm:$0xff]  ;;  %3658 = vmatpush.msrb.mxu2 %v1040_v60 }
 0x4de   : > { %v908_v63 = vld [vmem:[%s4362_s24 + $0x1358] sm:$0xff]  ;;  %3606 = vmatpush.msra.mxu3 %v816_v61 }
 0x4df   : > { %v972_v0 = vld [vmem:[%s4362_s24 + $0x1558] sm:$0xff]  ;;  %3619 = vmatpush.msrb.mxu0 %v908_v63 }
 0x4e0   : > { %v1036_v8 = vld [vmem:[%s4362_s24 + $0x1758] sm:$0xff]  ;;  %3639 = vmatpush.msrb.mxu1 %v972_v0 }
 0x4e1   : > { %v812_v1 = vld [vmem:[%s4362_s24 + $0x1058] sm:$0xff]  ;;  %3659 = vmatpush.msrb.mxu2 %v1036_v8  ;;  %v5896_v8 = vpop.f32.mrf.mxu1 }
 0x4e2   : > { %v904_v2 = vld [vmem:[%s4362_s24 + $0x1338] sm:$0xff]  ;;  %3607 = vmatpush.msra.mxu3 %v812_v1 }
 0x4e3   : > { %v968_v3 = vld [vmem:[%s4362_s24 + $0x1538] sm:$0xff]  ;;  %3620 = vmatpush.msrb.mxu0 %v904_v2 }
 0x4e4   : > { %v1032_v4 = vld [vmem:[%s4362_s24 + $0x1738] sm:$0xff]  ;;  %3640 = vmatpush.msrb.mxu1 %v968_v3 }
 0x4e5   : > { %v808_v13 = vld [vmem:[%s4362_s24 + $0x1038] sm:$0xff]  ;;  %3660 = vmatpush.msrb.mxu2 %v1032_v4 }
 0x4e6   : > { %v900_v14 = vld [vmem:[%s4362_s24 + $0x1318] sm:$0xff]  ;;  %3608 = vmatpush.msra.mxu3 %v808_v13 }
 0x4e7   : > { %v964_v15 = vld [vmem:[%s4362_s24 + $0x1518] sm:$0xff]  ;;  %3621 = vmatpush.msrb.mxu0 %v900_v14 }
 0x4e8   : > { %v1028_v16 = vld [vmem:[%s4362_s24 + $0x1718] sm:$0xff]  ;;  %3641 = vmatpush.msrb.mxu1 %v964_v15  ;;  %v5909_v15 = vpop.f32.mrf.mxu0 }
 0x4e9   : > { %v804_v47 = vld [vmem:[%s4362_s24 + $0x1018] sm:$0xff]  ;;  %3661 = vmatpush.msrb.mxu2 %v1028_v16 }
 0x4ea   : > { %v896_v18 = vld [vmem:[%s4362_s24 + $0x12f8] sm:$0xff]  ;;  %3609 = vmatpush.msra.mxu3 %v804_v47 }
 0x4eb   : > { %v960_v19 = vld [vmem:[%s4362_s24 + $0x14f8] sm:$0xff]  ;;  %3622 = vmatpush.msrb.mxu0 %v896_v18  ;;  %3610 = vmatmul.f32.vlgmr.msra.gmra.mxu3 %v4538_v28 }
 0x4ec   : > { %v1024_v20 = vld [vmem:[%s4362_s24 + $0x16f8] sm:$0xff]  ;;  %3642 = vmatpush.msrb.mxu1 %v960_v19 }
 0x4ed   : > { %v1120_v22 = vld [vmem:[%s4362_s24 + $0x19f8] sm:$0xff]  ;;  %3662 = vmatpush.msrb.mxu2 %v1024_v20  ;;  %v5915_v20 = vpop.f32.mrf.mxu2 }
 0x4ee   : > { %v892_v23 = vld [vmem:[%s4362_s24 + $0x12d8] sm:$0xff]  ;;  %3674 = vmatpush.msrb.mxu3 %v1120_v22 }
 0x4ef   : > { %v956_v62 = vld [vmem:[%s4362_s24 + $0x14d8] sm:$0xff]  ;;  %3623 = vmatpush.msrb.mxu0 %v892_v23 }
 0x4f0   : > { %v1020_v24 = vld [vmem:[%s4362_s24 + $0x16d8] sm:$0xff]  ;;  %3643 = vmatpush.msrb.mxu1 %v956_v62 }
 0x4f1   : > { %v1116_v25 = vld [vmem:[%s4362_s24 + $0x19d8] sm:$0xff]  ;;  %3663 = vmatpush.msrb.mxu2 %v1020_v24 }
 0x4f2   : > { %v888_v26 = vld [vmem:[%s4362_s24 + $0x12b8] sm:$0xff]  ;;  %3675 = vmatpush.msrb.mxu3 %v1116_v25 }
 0x4f3   : > { %v952_v27 = vld [vmem:[%s4362_s24 + $0x14b8] sm:$0xff]  ;;  %3624 = vmatpush.msrb.mxu0 %v888_v26 }
 0x4f4   : > { %v1016_v31 = vld [vmem:[%s4362_s24 + $0x16b8] sm:$0xff]  ;;  %3644 = vmatpush.msrb.mxu1 %v952_v27 }
 0x4f5   : > { %v1112_v50 = vld [vmem:[%s4362_s24 + $0x19b8] sm:$0xff]  ;;  %3664 = vmatpush.msrb.mxu2 %v1016_v31 }
 0x4f6   : > { %v884_v28 = vld [vmem:[%s4362_s24 + $0x1298] sm:$0xff]  ;;  %3676 = vmatpush.msrb.mxu3 %v1112_v50  ;;  %v5925_v50 = vpop.f32.mrf.mxu1 }
 0x4f7   : > { %v948_v32 = vld [vmem:[%s4362_s24 + $0x1498] sm:$0xff]  ;;  %3625 = vmatpush.msrb.mxu0 %v884_v28 }
 0x4f8   : > { %v1012_v34 = vld [vmem:[%s4362_s24 + $0x1698] sm:$0xff]  ;;  %3645 = vmatpush.msrb.mxu1 %v948_v32 }
 0x4f9   : > { %v1108_v17 = vld [vmem:[%s4362_s24 + $0x1998] sm:$0xff]  ;;  %3665 = vmatpush.msrb.mxu2 %v1012_v34 }
 0x4fa   : > { %v880_v48 = vld [vmem:[%s4362_s24 + $0x1278] sm:$0xff]  ;;  %3677 = vmatpush.msrb.mxu3 %v1108_v17 }
 0x4fb   : > { %v944_v35 = vld [vmem:[%s4362_s24 + $0x1478] sm:$0xff]  ;;  %3626 = vmatpush.msrb.mxu0 %v880_v48 }
 0x4fc   : > { %v1008_v9 = vld [vmem:[%s4362_s24 + $0x1678] sm:$0xff]  ;;  %3646 = vmatpush.msrb.mxu1 %v944_v35 }
 0x4fd   : > { %v1104_v36 = vld [vmem:[%s4362_s24 + $0x1978] sm:$0xff]  ;;  %3666 = vmatpush.msrb.mxu2 %v1008_v9 }
 0x4fe   : > { %v876_v37 = vld [vmem:[%s4362_s24 + $0x1258] sm:$0xff]  ;;  %3678 = vmatpush.msrb.mxu3 %v1104_v36 }
 0x4ff   : > { %v940_v38 = vld [vmem:[%s4362_s24 + $0x1458] sm:$0xff]  ;;  %3627 = vmatpush.msrb.mxu0 %v876_v37  ;;  %v5936_v37 = vpop.f32.mrf.mxu0 }
 0x500   : > { %v1004_v40 = vld [vmem:[%s4362_s24 + $0x1658] sm:$0xff]  ;;  %3647 = vmatpush.msrb.mxu1 %v940_v38  ;;  %v5938_v38 = vpop.f32.mrf.mxu2 }
 0x501   : > { %v1100_v49 = vld [vmem:[%s4362_s24 + $0x1958] sm:$0xff]  ;;  %3667 = vmatpush.msrb.mxu2 %v1004_v40 }
 0x502   : > { %v872_v41 = vld [vmem:[%s4362_s24 + $0x1238] sm:$0xff]  ;;  %3679 = vmatpush.msrb.mxu3 %v1100_v49 }
 0x503   : > { %v936_v45 = vld [vmem:[%s4362_s24 + $0x1438] sm:$0xff]  ;;  %3628 = vmatpush.msrb.mxu0 %v872_v41 }
 0x504   : > { %v1000_v46 = vld [vmem:[%s4362_s24 + $0x1638] sm:$0xff]  ;;  %3648 = vmatpush.msrb.mxu1 %v936_v45 }
 0x505   : > { %v1096_v52 = vld [vmem:[%s4362_s24 + $0x1938] sm:$0xff]  ;;  %3668 = vmatpush.msrb.mxu2 %v1000_v46 }
 0x506   : > { %v868_v53 = vld [vmem:[%s4362_s24 + $0x1218] sm:$0xff]  ;;  %3680 = vmatpush.msrb.mxu3 %v1096_v52 }
 0x507   : > { %v932_v54 = vld [vmem:[%s4362_s24 + $0x1418] sm:$0xff]  ;;  %3629 = vmatpush.msrb.mxu0 %v868_v53 }
 0x508   : > { %v996_v55 = vld [vmem:[%s4362_s24 + $0x1618] sm:$0xff]  ;;  %3649 = vmatpush.msrb.mxu1 %v932_v54  ;;  %3630 = vmatmul.f32.vlgmr.msrb.gmra.mxu0 %v4542_v30  ;;  %v5898_v30 = vpop.f32.mrf.mxu3 }
 0x509   : > { %v1092_v56 = vld [vmem:[%s4362_s24 + $0x1918] sm:$0xff]  ;;  %3669 = vmatpush.msrb.mxu2 %v996_v55  ;;  %3650 = vmatmul.f32.vlgmr.msrb.gmra.mxu1 %v4540_v29  ;;  %v5949_v55 = vpop.f32.mrf.mxu1 }
 0x50a   : > { %v1184_v57 = vld [vmem:[%s4362_s24 + $0x1bf8] sm:$0xff]  ;;  %3681 = vmatpush.msrb.mxu3 %v1092_v56  ;;  %3670 = vmatmul.f32.vlgmr.msrb.gmra.mxu2 %v4546_v33 }
 0x50b   : > { %v1248_v10 = vld [vmem:[%s4362_s24 + $0x1df8] sm:$0xff]  ;;  %3694 = vmatpush.msra.mxu0 %v1184_v57 }
 0x50c   : > { %v1312_v39 = vld [vmem:[%s4362_s24 + $0x1ff8] sm:$0xff]  ;;  %3714 = vmatpush.msra.mxu1 %v1248_v10 }
 0x50d   : > { %v1088_v59 = vld [vmem:[%s4362_s24 + $0x18f8] sm:$0xff]  ;;  %3734 = vmatpush.msra.mxu2 %v1312_v39 }
 0x50e   : > { %v1180_v11 = vld [vmem:[%s4362_s24 + $0x1bd8] sm:$0xff]  ;;  %3682 = vmatpush.msrb.mxu3 %v1088_v59 }
 0x50f   : > { %v1244_v60 = vld [vmem:[%s4362_s24 + $0x1dd8] sm:$0xff]  ;;  %3695 = vmatpush.msra.mxu0 %v1180_v11 }
 0x510   : > { %v1308_v61 = vld [vmem:[%s4362_s24 + $0x1fd8] sm:$0xff]  ;;  %3715 = vmatpush.msra.mxu1 %v1244_v60  ;;  %v5927_v28 = vpop.f32.mrf.mxu3 }
 0x511   : > { %v1084_v63 = vld [vmem:[%s4362_s24 + $0x18d8] sm:$0xff]  ;;  %3735 = vmatpush.msra.mxu2 %v1308_v61 }
 0x512   : > { %v1176_v0 = vld [vmem:[%s4362_s24 + $0x1bb8] sm:$0xff]  ;;  %3683 = vmatpush.msrb.mxu3 %v1084_v63  ;;  %v5961_v63 = vpop.f32.mrf.mxu0 }
 0x513   : > { %v1240_v33 = vld [vmem:[%s4362_s24 + $0x1db8] sm:$0xff]  ;;  %3696 = vmatpush.msra.mxu0 %v1176_v0  ;;  %v5963_v0 = vpop.f32.mrf.mxu2 }
 0x514   : > { %v1304_v1 = vld [vmem:[%s4362_s24 + $0x1fb8] sm:$0xff]  ;;  %3716 = vmatpush.msra.mxu1 %v1240_v33 }
 0x515   : > { %v1080_v2 = vld [vmem:[%s4362_s24 + $0x18b8] sm:$0xff]  ;;  %3736 = vmatpush.msra.mxu2 %v1304_v1 }
 0x516   : > { %v1172_v3 = vld [vmem:[%s4362_s24 + $0x1b98] sm:$0xff]  ;;  %3684 = vmatpush.msrb.mxu3 %v1080_v2 }
 0x517   : > { %v1236_v4 = vld [vmem:[%s4362_s24 + $0x1d98] sm:$0xff]  ;;  %3697 = vmatpush.msra.mxu0 %v1172_v3 }
 0x518   : > { %v1300_v13 = vld [vmem:[%s4362_s24 + $0x1f98] sm:$0xff]  ;;  %3717 = vmatpush.msra.mxu1 %v1236_v4 }
 0x519   : > { %v1076_v29 = vld [vmem:[%s4362_s24 + $0x1898] sm:$0xff]  ;;  %3737 = vmatpush.msra.mxu2 %v1300_v13 }
 0x51a   : > { %v1168_v14 = vld [vmem:[%s4362_s24 + $0x1b78] sm:$0xff]  ;;  %3685 = vmatpush.msrb.mxu3 %v1076_v29 }
 0x51b   : > { %v1232_v16 = vld [vmem:[%s4362_s24 + $0x1d78] sm:$0xff]  ;;  %3698 = vmatpush.msra.mxu0 %v1168_v14 }
 0x51c   : > { %v1296_v47 = vld [vmem:[%s4362_s24 + $0x1f78] sm:$0xff]  ;;  %3718 = vmatpush.msra.mxu1 %v1232_v16  ;;  %v5973_v16 = vpop.f32.mrf.mxu1 }
 0x51d   : > { %v1072_v18 = vld [vmem:[%s4362_s24 + $0x1878] sm:$0xff]  ;;  %3738 = vmatpush.msra.mxu2 %v1296_v47 }
 0x51e   : > { %v1164_v19 = vld [vmem:[%s4362_s24 + $0x1b58] sm:$0xff]  ;;  %3686 = vmatpush.msrb.mxu3 %v1072_v18 }
 0x51f   : > { %v1228_v22 = vld [vmem:[%s4362_s24 + $0x1d58] sm:$0xff]  ;;  %3699 = vmatpush.msra.mxu0 %v1164_v19 }
 0x520   : > { %v1292_v23 = vld [vmem:[%s4362_s24 + $0x1f58] sm:$0xff]  ;;  %3719 = vmatpush.msra.mxu1 %v1228_v22 }
 0x521   : > { %v1068_v62 = vld [vmem:[%s4362_s24 + $0x1858] sm:$0xff]  ;;  %3739 = vmatpush.msra.mxu2 %v1292_v23 }
 0x522   : > { %v1160_v24 = vld [vmem:[%s4362_s24 + $0x1b38] sm:$0xff]  ;;  %3687 = vmatpush.msrb.mxu3 %v1068_v62 }
 0x523   : > { %v1224_v25 = vld [vmem:[%s4362_s24 + $0x1d38] sm:$0xff]  ;;  %3700 = vmatpush.msra.mxu0 %v1160_v24 }
 0x524   : > { %v1288_v26 = vld [vmem:[%s4362_s24 + $0x1f38] sm:$0xff]  ;;  %3720 = vmatpush.msra.mxu1 %v1224_v25  ;;  %v5983_v25 = vpop.f32.mrf.mxu0 }
 0x525   : > { %v1064_v27 = vld [vmem:[%s4362_s24 + $0x1838] sm:$0xff]  ;;  %3740 = vmatpush.msra.mxu2 %v1288_v26  ;;  %v5985_v26 = vpop.f32.mrf.mxu2 }
 0x526   : > { %v1156_v31 = vld [vmem:[%s4362_s24 + $0x1b18] sm:$0xff]  ;;  %3688 = vmatpush.msrb.mxu3 %v1064_v27 }
 0x527   : > { %v1220_v32 = vld [vmem:[%s4362_s24 + $0x1d18] sm:$0xff]  ;;  %3701 = vmatpush.msra.mxu0 %v1156_v31 }
 0x528   : > { %v1284_v34 = vld [vmem:[%s4362_s24 + $0x1f18] sm:$0xff]  ;;  %3721 = vmatpush.msra.mxu1 %v1220_v32 }
 0x529   : > { %v1060_v17 = vld [vmem:[%s4362_s24 + $0x1818] sm:$0xff]  ;;  %3741 = vmatpush.msra.mxu2 %v1284_v34 }
 0x52a   : > { %v1152_v48 = vld [vmem:[%s4362_s24 + $0x1af8] sm:$0xff]  ;;  %3689 = vmatpush.msrb.mxu3 %v1060_v17 }
 0x52b   : > { %v1216_v35 = vld [vmem:[%s4362_s24 + $0x1cf8] sm:$0xff]  ;;  %3702 = vmatpush.msra.mxu0 %v1152_v48  ;;  %3690 = vmatmul.f32.vlgmr.msrb.gmra.mxu3 %v4616_v42  ;;  %v5951_v42 = vpop.f32.mrf.mxu3 }
 0x52c   : > { %v1280_v9 = vld [vmem:[%s4362_s24 + $0x1ef8] sm:$0xff]  ;;  %3722 = vmatpush.msra.mxu1 %v1216_v35 }
 0x52d   : > { %v1376_v36 = vld [vmem:[%s4362_s24 + $0x21f8] sm:$0xff]  ;;  %3742 = vmatpush.msra.mxu2 %v1280_v9  ;;  %v5996_v9 = vpop.f32.mrf.mxu1 }
 0x52e   : > { %v1148_v40 = vld [vmem:[%s4362_s24 + $0x1ad8] sm:$0xff]  ;;  %3754 = vmatpush.msra.mxu3 %v1376_v36 }
 0x52f   : > { %v1212_v49 = vld [vmem:[%s4362_s24 + $0x1cd8] sm:$0xff]  ;;  %3703 = vmatpush.msra.mxu0 %v1148_v40 }
 0x530   : > { %v1276_v41 = vld [vmem:[%s4362_s24 + $0x1ed8] sm:$0xff]  ;;  %3723 = vmatpush.msra.mxu1 %v1212_v49 }
 0x531   : > { %v1372_v45 = vld [vmem:[%s4362_s24 + $0x21d8] sm:$0xff]  ;;  %3743 = vmatpush.msra.mxu2 %v1276_v41 }
 0x532   : > { %v1144_v46 = vld [vmem:[%s4362_s24 + $0x1ab8] sm:$0xff]  ;;  %3755 = vmatpush.msra.mxu3 %v1372_v45 }
 0x533   : > { %v1208_v52 = vld [vmem:[%s4362_s24 + $0x1cb8] sm:$0xff]  ;;  %3704 = vmatpush.msra.mxu0 %v1144_v46  ;;  %v5975_v47 = vpop.f32.mrf.mxu3 }
 0x534   : > { %v1272_v53 = vld [vmem:[%s4362_s24 + $0x1eb8] sm:$0xff]  ;;  %3724 = vmatpush.msra.mxu1 %v1208_v52  ;;  %v6009_v52 = vpop.f32.mrf.mxu0 }
 0x535   : > { %v1368_v54 = vld [vmem:[%s4362_s24 + $0x21b8] sm:$0xff]  ;;  %3744 = vmatpush.msra.mxu2 %v1272_v53  ;;  %v6011_v53 = vpop.f32.mrf.mxu2 }
 0x536   : > { %v1140_v56 = vld [vmem:[%s4362_s24 + $0x1a98] sm:$0xff]  ;;  %3756 = vmatpush.msra.mxu3 %v1368_v54 }
 0x537   : > { %v1204_v57 = vld [vmem:[%s4362_s24 + $0x1c98] sm:$0xff]  ;;  %3705 = vmatpush.msra.mxu0 %v1140_v56 }
 0x538   : > { %v1268_v10 = vld [vmem:[%s4362_s24 + $0x1e98] sm:$0xff]  ;;  %3725 = vmatpush.msra.mxu1 %v1204_v57 }
 0x539   : > { %v1364_v39 = vld [vmem:[%s4362_s24 + $0x2198] sm:$0xff]  ;;  %3745 = vmatpush.msra.mxu2 %v1268_v10 }
 0x53a   : > { %v1136_v59 = vld [vmem:[%s4362_s24 + $0x1a78] sm:$0xff]  ;;  %3757 = vmatpush.msra.mxu3 %v1364_v39 }
 0x53b   : > { %v1200_v11 = vld [vmem:[%s4362_s24 + $0x1c78] sm:$0xff]  ;;  %3706 = vmatpush.msra.mxu0 %v1136_v59 }
 0x53c   : > { %v1264_v60 = vld [vmem:[%s4362_s24 + $0x1e78] sm:$0xff]  ;;  %3726 = vmatpush.msra.mxu1 %v1200_v11 }
 0x53d   : > { %v1360_v61 = vld [vmem:[%s4362_s24 + $0x2178] sm:$0xff]  ;;  %3746 = vmatpush.msra.mxu2 %v1264_v60 }
 0x53e   : > { %v1132_v33 = vld [vmem:[%s4362_s24 + $0x1a58] sm:$0xff]  ;;  %3758 = vmatpush.msra.mxu3 %v1360_v61  ;;  %v6021_v61 = vpop.f32.mrf.mxu1 }
 0x53f   : > { %v1196_v1 = vld [vmem:[%s4362_s24 + $0x1c58] sm:$0xff]  ;;  %3707 = vmatpush.msra.mxu0 %v1132_v33 }
 0x540   : > { %v1260_v2 = vld [vmem:[%s4362_s24 + $0x1e58] sm:$0xff]  ;;  %3727 = vmatpush.msra.mxu1 %v1196_v1 }
 0x541   : > { %v1356_v3 = vld [vmem:[%s4362_s24 + $0x2158] sm:$0xff]  ;;  %3747 = vmatpush.msra.mxu2 %v1260_v2 }
 0x542   : > { %v1128_v4 = vld [vmem:[%s4362_s24 + $0x1a38] sm:$0xff]  ;;  %3759 = vmatpush.msra.mxu3 %v1356_v3 }
 0x543   : > { %v1192_v13 = vld [vmem:[%s4362_s24 + $0x1c38] sm:$0xff]  ;;  %3708 = vmatpush.msra.mxu0 %v1128_v4 }
 0x544   : > { %v1256_v29 = vld [vmem:[%s4362_s24 + $0x1e38] sm:$0xff]  ;;  %3728 = vmatpush.msra.mxu1 %v1192_v13 }
 0x545   : > { %v1352_v14 = vld [vmem:[%s4362_s24 + $0x2138] sm:$0xff]  ;;  %3748 = vmatpush.msra.mxu2 %v1256_v29 }
 0x546   : > { %v1124_v18 = vld [vmem:[%s4362_s24 + $0x1a18] sm:$0xff]  ;;  %3760 = vmatpush.msra.mxu3 %v1352_v14  ;;  %v6032_v14 = vld [vmem:[%s4801_s7] sm:$0xf] }
 0x547   : > { %v1188_v19 = vld [vmem:[%s4362_s24 + $0x1c18] sm:$0xff]  ;;  %3709 = vmatpush.msra.mxu0 %v1124_v18  ;;  %v1861_v18 = vperm.slane %v6032_v14, 2 }
 0x548   : > { %v1252_v22 = vld [vmem:[%s4362_s24 + $0x1e18] sm:$0xff]  ;;  %3729 = vmatpush.msra.mxu1 %v1188_v19  ;;  %3710 = vmatmul.f32.vlgmr.msra.gmra.mxu0 %v4620_v44  ;;  %v5998_v44 = vpop.f32.mrf.mxu3 }
 0x549   : > { %v1348_v23 = vld [vmem:[%s4362_s24 + $0x2118] sm:$0xff]  ;;  %3749 = vmatpush.msra.mxu2 %v1252_v22  ;;  %3730 = vmatmul.f32.vlgmr.msra.gmra.mxu1 %v4618_v43 }
 0x54a   : > { %v1440_v62 = vld [vmem:[%s4362_s24 + $0x23f8] sm:$0xff]  ;;  %3761 = vmatpush.msra.mxu3 %v1348_v23  ;;  %3750 = vmatmul.f32.vlgmr.msra.gmra.mxu2 %v4624_v51  ;;  %v6037_v23 = vpop.f32.mrf.mxu0 }
 0x54b   : > { %v1504_v24 = vld [vmem:[%s4362_s24 + $0x25f8] sm:$0xff]  ;;  %3774 = vmatpush.msrb.mxu0 %v1440_v62  ;;  %v2951_v62 = vpop.f32.mrf.mxu2 }
 0x54c   : > { %v1568_v27 = vld [vmem:[%s4362_s24 + $0x27f8] sm:$0xff]  ;;  %3794 = vmatpush.msrb.mxu1 %v1504_v24 }
 0x54d   : > { %v1344_v31 = vld [vmem:[%s4362_s24 + $0x20f8] sm:$0xff]  ;;  %3814 = vmatpush.msrb.mxu2 %v1568_v27 }
 0x54e   : > { %v1436_v32 = vld [vmem:[%s4362_s24 + $0x23d8] sm:$0xff]  ;;  %3762 = vmatpush.msra.mxu3 %v1344_v31 }
 0x54f   : > { %v1500_v34 = vld [vmem:[%s4362_s24 + $0x25d8] sm:$0xff]  ;;  %3775 = vmatpush.msrb.mxu0 %v1436_v32 }
 0x550   : > { %v1564_v17 = vld [vmem:[%s4362_s24 + $0x27d8] sm:$0xff]  ;;  %3795 = vmatpush.msrb.mxu1 %v1500_v34  ;;  %v6023_v33 = vpop.f32.mrf.mxu3 }
 0x551   : > { %v1340_v48 = vld [vmem:[%s4362_s24 + $0x20d8] sm:$0xff]  ;;  %3815 = vmatpush.msrb.mxu2 %v1564_v17  ;;  %v2952_v17 = vadd.f32 %v2951_v62, %v1861_v18 }
 0x552   : > { %v1432_v35 = vld [vmem:[%s4362_s24 + $0x23b8] sm:$0xff]  ;;  %3763 = vmatpush.msra.mxu3 %v1340_v48 }
 0x553   : > { %v1496_v51 = vld [vmem:[%s4362_s24 + $0x25b8] sm:$0xff]  ;;  %3776 = vmatpush.msrb.mxu0 %v1432_v35 }
 0x554   : > { %v1560_v36 = vld [vmem:[%s4362_s24 + $0x27b8] sm:$0xff]  ;;  %3796 = vmatpush.msrb.mxu1 %v1496_v51  ;;  %v1860_v51 = vperm.slane %v6032_v14, 1 }
 0x555   : > { %v1336_v40 = vld [vmem:[%s4362_s24 + $0x20b8] sm:$0xff]  ;;  %3816 = vmatpush.msrb.mxu2 %v1560_v36  ;;  %v6048_v36 = vpop.f32.mrf.mxu1 }
 0x556   : > { %v1428_v49 = vld [vmem:[%s4362_s24 + $0x2398] sm:$0xff]  ;;  %3764 = vmatpush.msra.mxu3 %v1336_v40 }
 0x557   : > { %v1492_v41 = vld [vmem:[%s4362_s24 + $0x2598] sm:$0xff]  ;;  %3777 = vmatpush.msrb.mxu0 %v1428_v49 }
 0x558   : > { %v1556_v45 = vld [vmem:[%s4362_s24 + $0x2798] sm:$0xff]  ;;  %3797 = vmatpush.msrb.mxu1 %v1492_v41  ;;  %v2971_v40 = vpop.f32.mrf.mxu3 }
 0x559   : > { %v1332_v43 = vld [vmem:[%s4362_s24 + $0x2098] sm:$0xff]  ;;  %3817 = vmatpush.msrb.mxu2 %v1556_v45 }
 0x55a   : > { %v1424_v46 = vld [vmem:[%s4362_s24 + $0x2378] sm:$0xff]  ;;  %3765 = vmatpush.msra.mxu3 %v1332_v43 }
 0x55b   : > { %v1488_v54 = vld [vmem:[%s4362_s24 + $0x2578] sm:$0xff]  ;;  %3778 = vmatpush.msrb.mxu0 %v1424_v46 }
 0x55c   : > { %v1552_v56 = vld [vmem:[%s4362_s24 + $0x2778] sm:$0xff]  ;;  %3798 = vmatpush.msrb.mxu1 %v1488_v54  ;;  %v2972_v54 = vadd.f32 %v2971_v40, %v2952_v17 }
 0x55d   : > { %v1328_v57 = vld [vmem:[%s4362_s24 + $0x2078] sm:$0xff]  ;;  %3818 = vmatpush.msrb.mxu2 %v1552_v56  ;;  %v3011_v18 = vpop.f32.mrf.mxu1 }
 0x55e   : > { %v1420_v10 = vld [vmem:[%s4362_s24 + $0x2358] sm:$0xff]  ;;  %3766 = vmatpush.msra.mxu3 %v1328_v57 }
 0x55f   : > { %v1484_v39 = vld [vmem:[%s4362_s24 + $0x2558] sm:$0xff]  ;;  %3779 = vmatpush.msrb.mxu0 %v1420_v10  ;;  %v2452_v10 = vadd.f32 %v5896_v8, %v1860_v51 }
 0x560   : > { %v1548_v59 = vld [vmem:[%s4362_s24 + $0x2758] sm:$0xff]  ;;  %3799 = vmatpush.msrb.mxu1 %v1484_v39  ;;  %v2991_v39 = vpop.f32.mrf.mxu0 }
 0x561   : > { %v1324_v11 = vld [vmem:[%s4362_s24 + $0x2058] sm:$0xff]  ;;  %3819 = vmatpush.msrb.mxu2 %v1548_v59  ;;  %v2992_v8 = vadd.f32 %v2991_v39, %v2972_v54 }
 0x562   : > { %v1416_v60 = vld [vmem:[%s4362_s24 + $0x2338] sm:$0xff]  ;;  %3767 = vmatpush.msra.mxu3 %v1324_v11 }
 0x563   : > { %v1480_v1 = vld [vmem:[%s4362_s24 + $0x2538] sm:$0xff]  ;;  %3780 = vmatpush.msrb.mxu0 %v1416_v60 }
 0x564   : > { %v1544_v2 = vld [vmem:[%s4362_s24 + $0x2738] sm:$0xff]  ;;  %3800 = vmatpush.msrb.mxu1 %v1480_v1 }
 0x565   : > { %v1320_v3 = vld [vmem:[%s4362_s24 + $0x2038] sm:$0xff]  ;;  %3820 = vmatpush.msrb.mxu2 %v1544_v2 }
 0x566   : > { %v1412_v4 = vld [vmem:[%s4362_s24 + $0x2318] sm:$0xff]  ;;  %3768 = vmatpush.msra.mxu3 %v1320_v3 }
 0x567   : > { %v1476_v13 = vld [vmem:[%s4362_s24 + $0x2518] sm:$0xff]  ;;  %3781 = vmatpush.msrb.mxu0 %v1412_v4 }
 0x568   : > { %v1540_v29 = vld [vmem:[%s4362_s24 + $0x2718] sm:$0xff]  ;;  %3801 = vmatpush.msrb.mxu1 %v1476_v13 }
 0x569   : > { %v1316_v19 = vld [vmem:[%s4362_s24 + $0x2018] sm:$0xff]  ;;  %3821 = vmatpush.msrb.mxu2 %v1540_v29  ;;  %v2472_v29 = vadd.f32 %v5885_v58, %v2452_v10 }
 0x56a   : > { %v1408_v22 = vld [vmem:[%s4362_s24 + $0x22f8] sm:$0xff]  ;;  %3769 = vmatpush.msra.mxu3 %v1316_v19 }
 0x56b   : > { %v1472_v24 = vld [vmem:[%s4362_s24 + $0x24f8] sm:$0xff]  ;;  %3782 = vmatpush.msrb.mxu0 %v1408_v22  ;;  %3770 = vmatmul.f32.vlgmr.msra.gmra.mxu3 %v4695_v5  ;;  %v2492_v17 = vadd.f32 %v5898_v30, %v2472_v29  ;;  %v3091_v29 = vpop.f32.mrf.mxu1 }
 0x56c   : > { %v1536_v27 = vld [vmem:[%s4362_s24 + $0x26f8] sm:$0xff]  ;;  %3802 = vmatpush.msrb.mxu1 %v1472_v24 }
 0x56d   : > { %v1632_v31 = vld [vmem:[%s4362_s24 + $0x29f8] sm:$0xff]  ;;  %3822 = vmatpush.msrb.mxu2 %v1536_v27 }
 0x56e   : > { %v1404_v32 = vld [vmem:[%s4362_s24 + $0x22d8] sm:$0xff]  ;;  %3834 = vmatpush.msrb.mxu3 %v1632_v31 }
 0x56f   : > { %v1468_v34 = vld [vmem:[%s4362_s24 + $0x24d8] sm:$0xff]  ;;  %3783 = vmatpush.msrb.mxu0 %v1404_v32  ;;  %v3012_v32 = vadd.f32 %v3011_v18, %v2992_v8 }
 0x570   : > { %v1532_v48 = vld [vmem:[%s4362_s24 + $0x26d8] sm:$0xff]  ;;  %3803 = vmatpush.msrb.mxu1 %v1468_v34 }
 0x571   : > { %v1628_v35 = vld [vmem:[%s4362_s24 + $0x29d8] sm:$0xff]  ;;  %3823 = vmatpush.msrb.mxu2 %v1532_v48  ;;  %v3031_v48 = vpop.f32.mrf.mxu2 }
 0x572   : > { %v1400_v49 = vld [vmem:[%s4362_s24 + $0x22b8] sm:$0xff]  ;;  %3835 = vmatpush.msrb.mxu3 %v1628_v35 }
 0x573   : > { %v1464_v41 = vld [vmem:[%s4362_s24 + $0x24b8] sm:$0xff]  ;;  %3784 = vmatpush.msrb.mxu0 %v1400_v49 }
 0x574   : > { %v1528_v5 = vld [vmem:[%s4362_s24 + $0x26b8] sm:$0xff]  ;;  %3804 = vmatpush.msrb.mxu1 %v1464_v41  ;;  %v3032_v41 = vadd.f32 %v3031_v48, %v3012_v32 }
 0x575   : > { %v1624_v45 = vld [vmem:[%s4362_s24 + $0x29b8] sm:$0xff]  ;;  %3824 = vmatpush.msrb.mxu2 %v1528_v5  ;;  %v2512_v5 = vadd.f32 %v5909_v15, %v2492_v17 }
 0x576   : > { %v1396_v43 = vld [vmem:[%s4362_s24 + $0x2298] sm:$0xff]  ;;  %3836 = vmatpush.msrb.mxu3 %v1624_v45  ;;  %v3051_v45 = vpop.f32.mrf.mxu3 }
 0x577   : > { %v1460_v46 = vld [vmem:[%s4362_s24 + $0x2498] sm:$0xff]  ;;  %3785 = vmatpush.msrb.mxu0 %v1396_v43  ;;  %v3052_v15 = vadd.f32 %v3051_v45, %v3032_v41  ;;  %v2532_v39 = vadd.f32 %v5925_v50, %v2512_v5 }
 0x578   : > { %v1524_v56 = vld [vmem:[%s4362_s24 + $0x2698] sm:$0xff]  ;;  %3805 = vmatpush.msrb.mxu1 %v1460_v46 }
 0x579   : > { %v1620_v57 = vld [vmem:[%s4362_s24 + $0x2998] sm:$0xff]  ;;  %3825 = vmatpush.msrb.mxu2 %v1524_v56 }
 0x57a   : > { %v1392_v59 = vld [vmem:[%s4362_s24 + $0x2278] sm:$0xff]  ;;  %3837 = vmatpush.msrb.mxu3 %v1620_v57 }
 0x57b   : > { %v1456_v11 = vld [vmem:[%s4362_s24 + $0x2478] sm:$0xff]  ;;  %3786 = vmatpush.msrb.mxu0 %v1392_v59  ;;  %v3071_v59 = vpop.f32.mrf.mxu0 }
 0x57c   : > { %v1520_v60 = vld [vmem:[%s4362_s24 + $0x2678] sm:$0xff]  ;;  %3806 = vmatpush.msrb.mxu1 %v1456_v11  ;;  %v3072_v50 = vadd.f32 %v3071_v59, %v3052_v15 }
 0x57d   : > { %v1616_v1 = vld [vmem:[%s4362_s24 + $0x2978] sm:$0xff]  ;;  %3826 = vmatpush.msrb.mxu2 %v1520_v60 }
 0x57e   : > { %v1388_v2 = vld [vmem:[%s4362_s24 + $0x2258] sm:$0xff]  ;;  %3838 = vmatpush.msrb.mxu3 %v1616_v1 }
 0x57f   : > { %v1452_v3 = vld [vmem:[%s4362_s24 + $0x2458] sm:$0xff]  ;;  %3787 = vmatpush.msrb.mxu0 %v1388_v2 }
 0x580   : > { %v1516_v4 = vld [vmem:[%s4362_s24 + $0x2658] sm:$0xff]  ;;  %3807 = vmatpush.msrb.mxu1 %v1452_v3 }
 0x581   : > { %v1612_v13 = vld [vmem:[%s4362_s24 + $0x2958] sm:$0xff]  ;;  %3827 = vmatpush.msrb.mxu2 %v1516_v4 }
 0x582   : > { %v1384_v19 = vld [vmem:[%s4362_s24 + $0x2238] sm:$0xff]  ;;  %3839 = vmatpush.msrb.mxu3 %v1612_v13  ;;  %v2552_v13 = vadd.f32 %v5915_v20, %v2532_v39 }
 0x583   : > { %v1448_v22 = vld [vmem:[%s4362_s24 + $0x2438] sm:$0xff]  ;;  %3788 = vmatpush.msrb.mxu0 %v1384_v19  ;;  %v3151_v45 = vpop.f32.mrf.mxu0 }
 0x584   : > { %v1512_v62 = vld [vmem:[%s4362_s24 + $0x2638] sm:$0xff]  ;;  %3808 = vmatpush.msrb.mxu1 %v1448_v22 }
 0x585   : > { %v1608_v24 = vld [vmem:[%s4362_s24 + $0x2938] sm:$0xff]  ;;  %3828 = vmatpush.msrb.mxu2 %v1512_v62 }
 0x586   : > { %v1380_v27 = vld [vmem:[%s4362_s24 + $0x2218] sm:$0xff]  ;;  %3840 = vmatpush.msrb.mxu3 %v1608_v24  ;;  %v3111_v24 = vpop.f32.mrf.mxu2 }
 0x587   : > { %v1444_v31 = vld [vmem:[%s4362_s24 + $0x2418] sm:$0xff]  ;;  %3789 = vmatpush.msrb.mxu0 %v1380_v27 }
 0x588   : > { %v1508_v58 = vld [vmem:[%s4362_s24 + $0x2618] sm:$0xff]  ;;  %3809 = vmatpush.msrb.mxu1 %v1444_v31  ;;  %3790 = vmatmul.f32.vlgmr.msrb.gmra.mxu0 %v4699_v7  ;;  %v3092_v31 = vadd.f32 %v3091_v29, %v3072_v50 }
 0x589   : > { %v1604_v34 = vld [vmem:[%s4362_s24 + $0x2918] sm:$0xff]  ;;  %3829 = vmatpush.msrb.mxu2 %v1508_v58  ;;  %3810 = vmatmul.f32.vlgmr.msrb.gmra.mxu1 %v4697_v6 }
 0x58a   : > { %v1696_v35 = vld [vmem:[%s4362_s24 + $0x2bf8] sm:$0xff]  ;;  %3841 = vmatpush.msrb.mxu3 %v1604_v34  ;;  %3830 = vmatmul.f32.vlgmr.msrb.gmra.mxu2 %v4701_v12  ;;  %v2572_v34 = vadd.f32 %v5927_v28, %v2552_v13 }
 0x58b   : > { %v1760_v51 = vld [vmem:[%s4362_s24 + $0x2df8] sm:$0xff]  ;;  %3854 = vmatpush.msra.mxu0 %v1696_v35  ;;  %v3112_v35 = vadd.f32 %v3111_v24, %v3092_v31 }
 0x58c   : > { %v1824_v40 = vld [vmem:[%s4362_s24 + $0x2ff8] sm:$0xff]  ;;  %3874 = vmatpush.msra.mxu1 %v1760_v51  ;;  %v2592_v5 = vadd.f32 %v5936_v37, %v2572_v34 }
 0x58d   : > { %v1600_v49 = vld [vmem:[%s4362_s24 + $0x28f8] sm:$0xff]  ;;  %3894 = vmatpush.msra.mxu2 %v1824_v40 }
 0x58e   : > { %v1692_v30 = vld [vmem:[%s4362_s24 + $0x2bd8] sm:$0xff]  ;;  %3842 = vmatpush.msrb.mxu3 %v1600_v49  ;;  %v3131_v49 = vpop.f32.mrf.mxu3  ;;  %v2612_v15 = vadd.f32 %v5949_v55, %v2592_v5  ;;  %v4268_v5 = vld.sshfl [vmem:[#allocation1 + $0x28] sm:$0xff pattern:$0x73625140] }
 0x58f   : > { %v1756_v43 = vld [vmem:[%s4362_s24 + $0x2dd8] sm:$0xff]  ;;  %3855 = vmatpush.msra.mxu0 %v1692_v30 }
 0x590   : > { %v1820_v46 = vld [vmem:[%s4362_s24 + $0x2fd8] sm:$0xff]  ;;  %3875 = vmatpush.msra.mxu1 %v1756_v43 }
 0x591   : > { %v1596_v54 = vld [vmem:[%s4362_s24 + $0x28d8] sm:$0xff]  ;;  %3895 = vmatpush.msra.mxu2 %v1820_v46 }
 0x592   : > { %v1688_v56 = vld [vmem:[%s4362_s24 + $0x2bb8] sm:$0xff]  ;;  %3843 = vmatpush.msrb.mxu3 %v1596_v54  ;;  %v3132_v54 = vadd.f32 %v3131_v49, %v3112_v35 }
 0x593   : > { %v1752_v7 = vld [vmem:[%s4362_s24 + $0x2db8] sm:$0xff]  ;;  %3856 = vmatpush.msra.mxu0 %v1688_v56  ;;  %v4267_v56 = vld.sshfl [vmem:[#allocation1 + $0x20] sm:$0xff pattern:$0x73625140] }
 0x594   : > { %v1816_v12 = vld [vmem:[%s4362_s24 + $0x2fb8] sm:$0xff]  ;;  %3876 = vmatpush.msra.mxu1 %v1752_v7 }
 0x595   : > { %v1592_v57 = vld [vmem:[%s4362_s24 + $0x28b8] sm:$0xff]  ;;  %3896 = vmatpush.msra.mxu2 %v1816_v12 }
 0x596   : > { %v1684_v10 = vld [vmem:[%s4362_s24 + $0x2b98] sm:$0xff]  ;;  %3844 = vmatpush.msrb.mxu3 %v1592_v57 }
 0x597   : > { %v1748_v6 = vld [vmem:[%s4362_s24 + $0x2d98] sm:$0xff]  ;;  %3857 = vmatpush.msra.mxu0 %v1684_v10  ;;  %v3152_v10 = vadd.f32 %v3151_v45, %v3132_v54 }
 0x598   : > { %v1812_v11 = vld [vmem:[%s4362_s24 + $0x2f98] sm:$0xff]  ;;  %3877 = vmatpush.msra.mxu1 %v1748_v6  ;;  %v2632_v6 = vadd.f32 %v5938_v38, %v2612_v15  ;;  %v4270_v15 = vld.sshfl [vmem:[#allocation1 + $0x30] sm:$0xff pattern:$0x73625140] }
 0x599   : > { %v1588_v60 = vld [vmem:[%s4362_s24 + $0x2898] sm:$0xff]  ;;  %3897 = vmatpush.msra.mxu2 %v1812_v11  ;;  %v3171_v11 = vpop.f32.mrf.mxu1 }
 0x59a   : > { %v1680_v1 = vld [vmem:[%s4362_s24 + $0x2b78] sm:$0xff]  ;;  %3845 = vmatpush.msrb.mxu3 %v1588_v60  ;;  %v2652_v29 = vadd.f32 %v5951_v42, %v2632_v6  ;;  %v3950_v6 = vld [vmem:[%s6153_s11 + $0x60] sm:$0xff] }
 0x59b   : > { %v1744_v2 = vld [vmem:[%s4362_s24 + $0x2d78] sm:$0xff]  ;;  %3858 = vmatpush.msra.mxu0 %v1680_v1 }
 0x59c   : > { %v1808_v3 = vld [vmem:[%s4362_s24 + $0x2f78] sm:$0xff]  ;;  %3878 = vmatpush.msra.mxu1 %v1744_v2 }
 0x59d   : > { %v1584_v8 = vld [vmem:[%s4362_s24 + $0x2878] sm:$0xff]  ;;  %3898 = vmatpush.msra.mxu2 %v1808_v3  ;;  %v3191_v3 = vpop.f32.mrf.mxu2 }
 0x59e   : > { %v1676_v4 = vld [vmem:[%s4362_s24 + $0x2b58] sm:$0xff]  ;;  %3846 = vmatpush.msrb.mxu3 %v1584_v8  ;;  %v3172_v8 = vadd.f32 %v3171_v11, %v3152_v10  ;;  %v4271_v10 = vld.sshfl [vmem:[#allocation1] sm:$0xff pattern:$0x73625140] }
 0x59f   : > { %v1740_v18 = vld [vmem:[%s4362_s24 + $0x2d58] sm:$0xff]  ;;  %3859 = vmatpush.msra.mxu0 %v1676_v4 }
 0x5a0   : > { %v1804_v19 = vld [vmem:[%s4362_s24 + $0x2f58] sm:$0xff]  ;;  %3879 = vmatpush.msra.mxu1 %v1740_v18 }
 0x5a1   : > { %v1580_v22 = vld [vmem:[%s4362_s24 + $0x2858] sm:$0xff]  ;;  %3899 = vmatpush.msra.mxu2 %v1804_v19 }
 0x5a2   : > { %v1672_v62 = vld [vmem:[%s4362_s24 + $0x2b38] sm:$0xff]  ;;  %3847 = vmatpush.msrb.mxu3 %v1580_v22  ;;  %v3192_v22 = vadd.f32 %v3191_v3, %v3172_v8  ;;  %v3948_v8 = vld [vmem:[%s6153_s11 + $0x50] sm:$0xff] }
 0x5a3   : > { %v1736_v27 = vld [vmem:[%s4362_s24 + $0x2d38] sm:$0xff]  ;;  %3860 = vmatpush.msra.mxu0 %v1672_v62 }
 0x5a4   : > { %v1800_v20 = vld [vmem:[%s4362_s24 + $0x2f38] sm:$0xff]  ;;  %3880 = vmatpush.msra.mxu1 %v1736_v27  ;;  %v2672_v27 = vadd.f32 %v5961_v63, %v2652_v29  ;;  %v3231_v63 = vpop.f32.mrf.mxu0 }
 0x5a5   : > { %v1576_v32 = vld [vmem:[%s4362_s24 + $0x2838] sm:$0xff]  ;;  %3900 = vmatpush.msra.mxu2 %v1800_v20  ;;  %v3211_v20 = vpop.f32.mrf.mxu3  ;;  %v3271_v54 = vpop.f32.mrf.mxu2 }
 0x5a6   : > { %v1668_v58 = vld [vmem:[%s4362_s24 + $0x2b18] sm:$0xff]  ;;  %3848 = vmatpush.msrb.mxu3 %v1576_v32  ;;  %v2692_v34 = vadd.f32 %v5973_v16, %v2672_v27  ;;  %v3212_v35 = vadd.f32 %v3211_v20, %v3192_v22  ;;  %v3963_v22 = vld [vmem:[%s6153_s11 + $0xc8] sm:$0xff] }
 0x5a7   : > { %v1732_v17 = vld [vmem:[%s4362_s24 + $0x2d18] sm:$0xff]  ;;  %3861 = vmatpush.msra.mxu0 %v1668_v58 }
 0x5a8   : > { %v1796_v48 = vld [vmem:[%s4362_s24 + $0x2f18] sm:$0xff]  ;;  %3881 = vmatpush.msra.mxu1 %v1732_v17 }
 0x5a9   : > { %v1572_v51 = vld [vmem:[%s4362_s24 + $0x2818] sm:$0xff]  ;;  %3901 = vmatpush.msra.mxu2 %v1796_v48 }
 0x5aa   : > { %v1664_v40 = vld [vmem:[%s4362_s24 + $0x2af8] sm:$0xff]  ;;  %3849 = vmatpush.msrb.mxu3 %v1572_v51 }
 0x5ab   : > { %v1728_v41 = vld [vmem:[%s4362_s24 + $0x2cf8] sm:$0xff]  ;;  %3862 = vmatpush.msra.mxu0 %v1664_v40  ;;  %3850 = vmatmul.f32.vlgmr.msrb.gmra.mxu3 %v4267_v56  ;;  %v2712_v40 = vadd.f32 %v5963_v0, %v2692_v34  ;;  %v3952_v0 = vld [vmem:[%s6153_s11 + $0x70] sm:$0xff] }
 0x5ac   : > { %v1792_v28 = vld [vmem:[%s4362_s24 + $0x2ef8] sm:$0xff]  ;;  %3882 = vmatpush.msra.mxu1 %v1728_v41  ;;  %v3232_v41 = vadd.f32 %v3231_v63, %v3212_v35  ;;  %v3968_v56 = vld [vmem:[%s6153_s11 + $0xf0] sm:$0xff]  ;;  %v3311_v3 = vpop.f32.mrf.mxu0 }
 0x5ad   : > { %v1660_v30 = vld [vmem:[%s4362_s24 + $0x2ad8] sm:$0xff]  ;;  %3902 = vmatpush.msra.mxu2 %v1792_v28  ;;  %v3351_v20 = vpop.f32.mrf.mxu2 }
 0x5ae   : > { %v1724_v43 = vld [vmem:[%s4362_s24 + $0x2cd8] sm:$0xff]  ;;  %3863 = vmatpush.msra.mxu0 %v1660_v30  ;;  %v3251_v30 = vpop.f32.mrf.mxu1 }
 0x5af   : > { %v1856_v46 = vld [vmem:[%s4362_s24 + $0x30f8] sm:$0xff]  ;;  %3883 = vmatpush.msra.mxu1 %v1724_v43 }
 0x5b0   : > { %v1788_v7 = vld [vmem:[%s4362_s24 + $0x2ed8] sm:$0xff]  ;;  %3922 = vmatpush.msra.mxu3 %v1856_v46  ;;  %v2732_v46 = vadd.f32 %v5975_v47, %v2712_v40  ;;  %v3967_v47 = vld [vmem:[%s6153_s11 + $0xe8] sm:$0xff]  ;;  %v3976_v40 = vld [vmem:[%s6153_s11 + $0x130] sm:$0xff] }
 0x5b1   : > { %v1656_v12 = vld [vmem:[%s4362_s24 + $0x2ab8] sm:$0xff]  ;;  %3903 = vmatpush.msra.mxu2 %v1788_v7  ;;  %v3984_v7 = vld [vmem:[%s6153_s11 + $0x170] sm:$0xff] }
 0x5b2   : > { %v1720_v37 = vld [vmem:[%s4362_s24 + $0x2cb8] sm:$0xff]  ;;  %3864 = vmatpush.msra.mxu0 %v1656_v12  ;;  %v3252_v12 = vadd.f32 %v3251_v30, %v3232_v41  ;;  %v3959_v41 = vld [vmem:[%s6153_s11 + $0xa8] sm:$0xff] }
 0x5b3   : > { %v1852_v57 = vld [vmem:[%s4362_s24 + $0x30d8] sm:$0xff]  ;;  %3884 = vmatpush.msra.mxu1 %v1720_v37  ;;  %v3951_v37 = vld [vmem:[%s6153_s11 + $0x68] sm:$0xff] }
 0x5b4   : > { %v1784_v39 = vld [vmem:[%s4362_s24 + $0x2eb8] sm:$0xff]  ;;  %3923 = vmatpush.msra.mxu3 %v1852_v57  ;;  %v2752_v57 = vadd.f32 %v5983_v25, %v2732_v46  ;;  %v3966_v25 = vld [vmem:[%s6153_s11 + $0xe0] sm:$0xff] }
 0x5b5   : > { %v1652_v59 = vld [vmem:[%s4362_s24 + $0x2a98] sm:$0xff]  ;;  %3904 = vmatpush.msra.mxu2 %v1784_v39  ;;  %v3983_v39 = vld [vmem:[%s6153_s11 + $0x168] sm:$0xff] }
 0x5b6   : > { %v1716_v55 = vld [vmem:[%s4362_s24 + $0x2c98] sm:$0xff]  ;;  %3865 = vmatpush.msra.mxu0 %v1652_v59  ;;  %v3272_v59 = vadd.f32 %v3271_v54, %v3252_v12  ;;  %v2772_v11 = vadd.f32 %v5996_v9, %v2752_v57  ;;  %v3431_v12 = vpop.f32.mrf.mxu2 }
 0x5b7   : > { %v1848_v60 = vld [vmem:[%s4362_s24 + $0x30b8] sm:$0xff]  ;;  %3885 = vmatpush.msra.mxu1 %v1716_v55  ;;  %v3291_v55 = vpop.f32.mrf.mxu3 }
 0x5b8   : > { %v1780_v1 = vld [vmem:[%s4362_s24 + $0x2e98] sm:$0xff]  ;;  %3924 = vmatpush.msra.mxu3 %v1848_v60  ;;  %v3982_v60 = vld [vmem:[%s6153_s11 + $0x160] sm:$0xff]  ;;  %v3292_v9 = vadd.f32 %v3291_v55, %v3272_v59 }
 0x5b9   : > { %v1648_v2 = vld [vmem:[%s4362_s24 + $0x2a78] sm:$0xff]  ;;  %3905 = vmatpush.msra.mxu2 %v1780_v1  ;;  %v3970_v55 = vld [vmem:[%s6153_s11 + $0x100] sm:$0xff] }
 0x5ba   : > { %v1712_v50 = vld [vmem:[%s4362_s24 + $0x2c78] sm:$0xff]  ;;  %3866 = vmatpush.msra.mxu0 %v1648_v2  ;;  %v2792_v2 = vadd.f32 %v5985_v26, %v2772_v11  ;;  %v3312_v29 = vadd.f32 %v3311_v3, %v3292_v9  ;;  %v3947_v26 = vld [vmem:[%s6153_s11 + $0x48] sm:$0xff]  ;;  %v3954_v11 = vld [vmem:[%s6153_s11 + $0x80] sm:$0xff] }
 0x5bb   : > { %v1844_v38 = vld [vmem:[%s4362_s24 + $0x3098] sm:$0xff]  ;;  %3886 = vmatpush.msra.mxu1 %v1712_v50  ;;  %v4000_v9 = vld [vmem:[%s6153_s11 + $0x1f0] sm:$0xff] }
 0x5bc   : > { %v1776_v4 = vld [vmem:[%s4362_s24 + $0x2e78] sm:$0xff]  ;;  %3925 = vmatpush.msra.mxu3 %v1844_v38 }
 0x5bd   : > { %v1644_v13 = vld [vmem:[%s4362_s24 + $0x2a58] sm:$0xff]  ;;  %3906 = vmatpush.msra.mxu2 %v1776_v4  ;;  %v3964_v4 = vld [vmem:[%s6153_s11 + $0xd0] sm:$0xff] }
 0x5be   : > { %v1708_v18 = vld [vmem:[%s4362_s24 + $0x2c58] sm:$0xff]  ;;  %3867 = vmatpush.msra.mxu0 %v1644_v13  ;;  %v3980_v13 = vld [vmem:[%s6153_s11 + $0x150] sm:$0xff] }
 0x5bf   : > { %v1840_v19 = vld [vmem:[%s4362_s24 + $0x3078] sm:$0xff]  ;;  %3887 = vmatpush.msra.mxu1 %v1708_v18  ;;  %v2812_v18 = vadd.f32 %v5998_v44, %v2792_v2  ;;  %v3962_v44 = vld [vmem:[%s6153_s11 + $0xc0] sm:$0xff]  ;;  %v3371_v35 = vpop.f32.mrf.mxu3 }
 0x5c0   : > { %v1772_v62 = vld [vmem:[%s4362_s24 + $0x2e58] sm:$0xff]  ;;  %3926 = vmatpush.msra.mxu3 %v1840_v19  ;;  %v3331_v19 = vpop.f32.mrf.mxu1 }
 0x5c1   : > { %v1640_v24 = vld [vmem:[%s4362_s24 + $0x2a38] sm:$0xff]  ;;  %3907 = vmatpush.msra.mxu2 %v1772_v62  ;;  %v3979_v62 = vld [vmem:[%s6153_s11 + $0x148] sm:$0xff]  ;;  %v2832_v27 = vadd.f32 %v6009_v52, %v2812_v18  ;;  %v3511_v18 = vpop.f32.mrf.mxu2 }
 0x5c2   : > { %v1704_v42 = vld [vmem:[%s4362_s24 + $0x2c38] sm:$0xff]  ;;  %3868 = vmatpush.msra.mxu0 %v1640_v24  ;;  %v3946_v24 = vld [vmem:[%s6153_s11 + $0x40] sm:$0xff] }
 0x5c3   : > { %v1836_v31 = vld [vmem:[%s4362_s24 + $0x3058] sm:$0xff]  ;;  %3888 = vmatpush.msra.mxu1 %v1704_v42  ;;  %v3978_v42 = vld [vmem:[%s6153_s11 + $0x140] sm:$0xff] }
 0x5c4   : > { %v1768_v32 = vld [vmem:[%s4362_s24 + $0x2e38] sm:$0xff]  ;;  %3927 = vmatpush.msra.mxu3 %v1836_v31  ;;  %v3332_v31 = vadd.f32 %v3331_v19, %v3312_v29 }
 0x5c5   : > { %v1636_v58 = vld [vmem:[%s4362_s24 + $0x2a18] sm:$0xff]  ;;  %3908 = vmatpush.msra.mxu2 %v1768_v32 }
 0x5c6   : > { %v1700_v17 = vld [vmem:[%s4362_s24 + $0x2c18] sm:$0xff]  ;;  %3869 = vmatpush.msra.mxu0 %v1636_v58  ;;  %v2852_v58 = vadd.f32 %v6021_v61, %v2832_v27  ;;  %v3352_v52 = vadd.f32 %v3351_v20, %v3332_v31  ;;  %v3943_v61 = vld [vmem:[%s6153_s11 + $0x28] sm:$0xff]  ;;  %v3996_v27 = vld [vmem:[%s6153_s11 + $0x1d0] sm:$0xff] }
 0x5c7   : > { %v1832_v48 = vld [vmem:[%s4362_s24 + $0x3038] sm:$0xff]  ;;  %3889 = vmatpush.msra.mxu1 %v1700_v17  ;;  %3870 = vmatmul.f32.vlgmr.msra.gmra.mxu0 %v4268_v5  ;;  %v3944_v17 = vld [vmem:[%s6153_s11 + $0x30] sm:$0xff]  ;;  %v3958_v5 = vld [vmem:[%s6153_s11 + $0xa0] sm:$0xff]  ;;  %v3451_v2 = vpop.f32.mrf.mxu3 }
 0x5c8   : > { %v1764_v51 = vld [vmem:[%s4362_s24 + $0x2e18] sm:$0xff]  ;;  %3928 = vmatpush.msra.mxu3 %v1832_v48  ;;  %3890 = vmatmul.f32.vlgmr.msra.gmra.mxu1 %v4270_v15  ;;  %v2872_v48 = vadd.f32 %v6011_v53, %v2852_v58  ;;  %v3942_v53 = vld [vmem:[%s6153_s11 + $0x20] sm:$0xff]  ;;  %v3411_v54 = vpop.f32.mrf.mxu1  ;;  %v3956_v15 = vld [vmem:[%s6153_s11 + $0x90] sm:$0xff] }
 0x5c9   : > { %v3953_v49 = vld [vmem:[%s6153_s11 + $0x78] sm:$0xff]  ;;  %3909 = vmatpush.msra.mxu2 %v1764_v51  ;;  %v3960_v51 = vld [vmem:[%s6153_s11 + $0xb0] sm:$0xff]  ;;  %v3995_v20 = vld [vmem:[%s6153_s11 + $0x1c8] sm:$0xff]  ;;  %v3591_v58 = vpop.f32.mrf.mxu2 }
 0x5ca   : > { %v3969_v16 = vld [vmem:[%s6153_s11 + $0xf8] sm:$0xff]  ;;  %4006 = vmatpush.msrb.mxu0 %v3953_v49  ;;  %v3391_v49 = vpop.f32.mrf.mxu0  ;;  %v2892_v30 = vadd.f32 %v6023_v33, %v2872_v48  ;;  %v3940_v33 = vld [vmem:[%s6153_s11 + $0x10] sm:$0xff] }
 0x5cb   : > { %v3985_v28 = vld [vmem:[%s6153_s11 + $0x178] sm:$0xff]  ;;  %4026 = vmatpush.msrb.mxu1 %v3969_v16  ;;  %v3975_v16 = vld [vmem:[%s6153_s11 + $0x128] sm:$0xff] }
 0x5cc   : > { %v1828_v45 = vld [vmem:[%s4362_s24 + $0x3018] sm:$0xff]  ;;  %4046 = vmatpush.msrb.mxu2 %v3985_v28  ;;  %4007 = vmatpush.msrb.mxu0 %v3952_v0  ;;  %v3372_v28 = vadd.f32 %v3371_v35, %v3352_v52  ;;  %v2912_v46 = vadd.f32 %v6037_v23, %v2892_v30  ;;  %v3939_v23 = vld [vmem:[%s6153_s11 + $0x8] sm:$0xff] }
 0x5cd   : > { %v4269_v43 = vld.sshfl [vmem:[#allocation1 + $0x38] sm:$0xff pattern:$0x73625140]  ;;  %3929 = vmatpush.msra.mxu3 %v1828_v45  ;;  %4027 = vmatpush.msrb.mxu1 %v3968_v56  ;;  %v3974_v45 = vld [vmem:[%s6153_s11 + $0x120] sm:$0xff] }
 0x5ce   : > { %3910 = vmatmul.f32.vlgmr.msra.gmra.mxu2 %v4269_v43  ;;  %4226 = vmatmul.msk.f32.vlgmr.msra.gmra.mxu3 %vm1931_vm0, %v4271_v10  ;;  %v3949_v1 = vld [vmem:[%s6153_s11 + $0x58] sm:$0xff]  ;;  %v3392_v43 = vadd.f32 %v3391_v49, %v3372_v28  ;;  %v2932_v10 = vadd.f32 %v6048_v36, %v2912_v46 }
 0x5cf   : > { %4047 = vmatpush.msrb.mxu2 %v3984_v7  ;;  %4008 = vmatpush.msrb.mxu0 %v3951_v37  ;;  %v3965_v50 = vld [vmem:[%s6153_s11 + $0xd8] sm:$0xff]  ;;  %v3972_v37 = vld [vmem:[%s6153_s11 + $0x110] sm:$0xff]  ;;  %v3531_v19 = vpop.f32.mrf.mxu3 }
 0x5d0   : > { %4028 = vmatpush.msrb.mxu1 %v3967_v47  ;;  %v3981_v38 = vld [vmem:[%s6153_s11 + $0x158] sm:$0xff]  ;;  %v3412_v57 = vadd.f32 %v3411_v54, %v3392_v43  ;;  %v3955_v47 = vld [vmem:[%s6153_s11 + $0x88] sm:$0xff] }
 0x5d1   : > { %4048 = vmatpush.msrb.mxu2 %v3983_v39  ;;  %4009 = vmatpush.msrb.mxu0 %v3950_v6  ;;  %v3945_v32 = vld [vmem:[%s6153_s11 + $0x38] sm:$0xff]  ;;  %v3971_v39 = vld [vmem:[%s6153_s11 + $0x108] sm:$0xff]  ;;  %v3938_v6 = vld [vmem:[%s6153_s11] sm:$0xff]  ;;  %v3671_v49 = vpop.f32.mrf.mxu2 }
 0x5d2   : > { %4029 = vmatpush.msrb.mxu1 %v3966_v25  ;;  %v3961_v34 = vld [vmem:[%s6153_s11 + $0xb8] sm:$0xff]  ;;  %v3432_v59 = vadd.f32 %v3431_v12, %v3412_v57  ;;  %v3934_v25 = vmax.f32 %v5129_v21, 0.0  ;;  %v3987_v43 = vld [vmem:[%s6153_s11 + $0x188] sm:$0xff] }
 0x5d3   : > { %4049 = vmatpush.msrb.mxu2 %v3982_v60  ;;  %4010 = vmatpush.msrb.mxu0 %v3949_v1  ;;  %v3977_v63 = vld [vmem:[%s6153_s11 + $0x138] sm:$0xff]  ;;  %v3935_v60 = vmax.f32 %v2932_v10, 0.0  ;;  %v1862_v1 = vperm.slane %v6032_v14, 3 }
 0x5d4   : > { %4030 = vmatpush.msrb.mxu1 %v3965_v50  ;;  %v3941_v0 = vld [vmem:[%s6153_s11 + $0x18] sm:$0xff]  ;;  %v3936_v36 = vmax.f32 %v3432_v59, 0.0  ;;  %v3471_v50 = vpop.f32.mrf.mxu0 }
 0x5d5   : > { %4050 = vmatpush.msrb.mxu2 %v3981_v38  ;;  %4011 = vmatpush.msrb.mxu0 %v3948_v8  ;;  %v3957_v56 = vld [vmem:[%s6153_s11 + $0x98] sm:$0xff]  ;;  %v3452_v3 = vadd.f32 %v3451_v2, %v1862_v1  ;;  %v3999_v8 = vld [vmem:[%s6153_s11 + $0x1e8] sm:$0xff] }
 0x5d6   : > { %4031 = vmatpush.msrb.mxu1 %v3964_v4  ;;  %v3973_v7 = vld [vmem:[%s6153_s11 + $0x118] sm:$0xff]  ;;  %v3491_v4 = vpop.f32.mrf.mxu1 }
 0x5d7   : > { %4051 = vmatpush.msrb.mxu2 %v3980_v13  ;;  %4012 = vmatpush.msrb.mxu0 %v3947_v26  ;;  %v4001_v38 = vld [vmem:[%s6153_s11 + $0x1f8] sm:$0xff]  ;;  %v3472_v21 = vadd.f32 %v3471_v50, %v3452_v3  ;;  %v3998_v13 = vld [vmem:[%s6153_s11 + $0x1e0] sm:$0xff] }
 0x5d8   : > { %4032 = vmatpush.msrb.mxu1 %v3963_v22  ;;  %4066 = vmatpush.msrb.mxu3 %v4001_v38  ;;  %v3997_v26 = vld [vmem:[%s6153_s11 + $0x1d8] sm:$0xff]  ;;  %v4251_v38 = vld [vmem:[%s281_s14] ss:$0 sm:$0xff] }
 0x5d9   : > { %4052 = vmatpush.msrb.mxu2 %v3979_v62  ;;  %4013 = vmatpush.msrb.mxu0 %v3946_v24  ;;  %v3492_v29 = vadd.f32 %v3491_v4, %v3472_v21 }
 0x5da   : > { %4033 = vmatpush.msrb.mxu1 %v3962_v44  ;;  %4067 = vmatpush.msrb.mxu3 %v4000_v9 }
 0x5db   : > { %4053 = vmatpush.msrb.mxu2 %v3978_v42  ;;  %4014 = vmatpush.msrb.mxu0 %v3945_v32  ;;  %v3512_v14 = vadd.f32 %v3511_v18, %v3492_v29  ;;  %v3994_v42 = vld [vmem:[%s6153_s11 + $0x1c0] sm:$0xff]  ;;  %v3993_v32 = vld [vmem:[%s6153_s11 + $0x1b8] sm:$0xff] }
 0x5dc   : > { %4034 = vmatpush.msrb.mxu1 %v3961_v34  ;;  %4068 = vmatpush.msrb.mxu3 %v3999_v8  ;;  %v3551_v62 = vpop.f32.mrf.mxu0  ;;  %v3611_v34 = vpop.f32.mrf.mxu3 }
 0x5dd   : > { %4054 = vmatpush.msrb.mxu2 %v3977_v63  ;;  %4015 = vmatpush.msrb.mxu0 %v3944_v17  ;;  %v3532_v22 = vadd.f32 %v3531_v19, %v3512_v14  ;;  %v3992_v17 = vld [vmem:[%s6153_s11 + $0x1b0] sm:$0xff] }
 0x5de   : > { %4035 = vmatpush.msrb.mxu1 %v3960_v51  ;;  %4069 = vmatpush.msrb.mxu3 %v3998_v13  ;;  %v3571_v44 = vpop.f32.mrf.mxu1  ;;  %v3991_v51 = vld [vmem:[%s6153_s11 + $0x1a8] sm:$0xff] }
 0x5df   : > { %4055 = vmatpush.msrb.mxu2 %v3976_v40  ;;  %4016 = vmatpush.msrb.mxu0 %v3943_v61  ;;  %v3552_v24 = vadd.f32 %v3551_v62, %v3532_v22  ;;  %v3990_v40 = vld [vmem:[%s6153_s11 + $0x1a0] sm:$0xff] }
 0x5e0   : > { %4036 = vmatpush.msrb.mxu1 %v3959_v41  ;;  %4070 = vmatpush.msrb.mxu3 %v3997_v26 }
 0x5e1   : > { %4056 = vmatpush.msrb.mxu2 %v3975_v16  ;;  %4017 = vmatpush.msrb.mxu0 %v3942_v53  ;;  %v3572_v31 = vadd.f32 %v3571_v44, %v3552_v24  ;;  %v3989_v16 = vld [vmem:[%s6153_s11 + $0x198] sm:$0xff] }
 0x5e2   : > { %4037 = vmatpush.msrb.mxu1 %v3958_v5  ;;  %4071 = vmatpush.msrb.mxu3 %v3996_v27  ;;  %v3988_v5 = vld [vmem:[%s6153_s11 + $0x190] sm:$0xff] }
 0x5e3   : > { %4057 = vmatpush.msrb.mxu2 %v3974_v45  ;;  %4018 = vmatpush.msrb.mxu0 %v3941_v0  ;;  %v3592_v63 = vadd.f32 %v3591_v58, %v3572_v31  ;;  %v3986_v0 = vld [vmem:[%s6153_s11 + $0x180] sm:$0xff] }
 0x5e4   : > { %4038 = vmatpush.msrb.mxu1 %v3957_v56  ;;  %4072 = vmatpush.msrb.mxu3 %v3995_v20  ;;  %v3631_v52 = vpop.f32.mrf.mxu0  ;;  %v3691_v28 = vpop.f32.mrf.mxu3 }
 0x5e5   : > { %4058 = vmatpush.msrb.mxu2 %v3973_v7  ;;  %4019 = vmatpush.msrb.mxu0 %v3940_v33  ;;  %v3612_v48 = vadd.f32 %v3611_v34, %v3592_v63  ;;  %v3751_v56 = vpop.f32.mrf.mxu2 }
 0x5e6   : > { %4039 = vmatpush.msrb.mxu1 %v3956_v15  ;;  %4073 = vmatpush.msrb.mxu3 %v3994_v42  ;;  %v3651_v61 = vpop.f32.mrf.mxu1 }
 0x5e7   : > { %4059 = vmatpush.msrb.mxu2 %v3972_v37  ;;  %4020 = vmatpush.msrb.mxu0 %v3939_v23  ;;  %v3632_v35 = vadd.f32 %v3631_v52, %v3612_v48 }
 0x5e8   : > { %4040 = vmatpush.msrb.mxu1 %v3955_v47  ;;  %4074 = vmatpush.msrb.mxu3 %v3993_v32 }
 0x5e9   : > { %4060 = vmatpush.msrb.mxu2 %v3971_v39  ;;  %4021 = vmatpush.msrb.mxu0 %v3938_v6  ;;  %v3652_v41 = vadd.f32 %v3651_v61, %v3632_v35 }
 0x5ea   : > { %4041 = vmatpush.msrb.mxu1 %v3954_v11  ;;  %4022 = vmatmul.f32.vlgmr.msrb.gmra.mxu0 %v3934_v25 }
 0x5eb   : > { %4061 = vmatpush.msrb.mxu2 %v3970_v55  ;;  %4042 = vmatmul.f32.vlgmr.msrb.gmra.mxu1 %v3935_v60  ;;  %v3672_v53 = vadd.f32 %v3671_v49, %v3652_v41 }
 0x5ec   : > { %4062 = vmatmul.f32.vlgmr.msrb.gmra.mxu2 %v3936_v36  ;;  %4075 = vmatpush.msrb.mxu3 %v3992_v17  ;;  %v3711_v30 = vpop.f32.mrf.mxu0 }
 0x5ed   : > { %v3692_v45 = vadd.f32 %v3691_v28, %v3672_v53 }
 0x5ee   : > { %4076 = vmatpush.msrb.mxu3 %v3991_v51  ;;  %v3731_v54 = vpop.f32.mrf.mxu1  ;;  %v3771_v33 = vpop.f32.mrf.mxu3 }
 0x5ef   : > { %v3712_v46 = vadd.f32 %v3711_v30, %v3692_v45 }
 0x5f0   : > { %4077 = vmatpush.msrb.mxu3 %v3990_v40 }
 0x5f1   : > { %v3732_v7 = vadd.f32 %v3731_v54, %v3712_v46 }
 0x5f2   : > { %4078 = vmatpush.msrb.mxu3 %v3989_v16 }
 0x5f3   : > { %v3752_v12 = vadd.f32 %v3751_v56, %v3732_v7 }
 0x5f4   : > { %4079 = vmatpush.msrb.mxu3 %v3988_v5 }
 0x5f5   : > { %v3772_v37 = vadd.f32 %v3771_v33, %v3752_v12 }
 0x5f6   : > { %4080 = vmatpush.msrb.mxu3 %v3987_v43 }
 0x5f8   : > { %4081 = vmatpush.msrb.mxu3 %v3986_v0 }
 0x605   : > { %v3791_v15 = vpop.f32.mrf.mxu0 }
 0x606   : > { %v3792_v57 = vadd.f32 %v3791_v15, %v3772_v37  ;;  %v3811_v23 = vpop.f32.mrf.mxu1 }
 0x608   : > { %v3812_v47 = vadd.f32 %v3811_v23, %v3792_v57 }
 0x60d   : > { %v3831_v10 = vpop.f32.mrf.mxu2 }
 0x60e   : > { %v3832_v59 = vadd.f32 %v3831_v10, %v3812_v47 }
 0x62e   : > { %v3851_v39 = vpop.f32.mrf.mxu3 }
 0x62f   : > { %v3852_v6 = vadd.f32 %v3851_v39, %v3832_v59 }
 0x644   : > { %v3871_v11 = vpop.f32.mrf.mxu0 }
 0x645   : > { %v3872_v55 = vadd.f32 %v3871_v11, %v3852_v6  ;;  %v3891_v25 = vpop.f32.mrf.mxu1 }
 0x647   : > { %v3892_v60 = vadd.f32 %v3891_v25, %v3872_v55 }
 0x651   : > { %v3911_v36 = vpop.f32.mrf.mxu2  ;;  %v3931_v2 = vpop.f32.mrf.mxu3 }
 0x652   : > { %v3912_v1 = vadd.f32 %v3911_v36, %v3892_v60 }
 0x654   : > { %v3932_v3 = vadd.f32 %v3931_v2, %v3912_v1 }
 0x656   : > { %v3937_v50 = vmax.f32 %v3932_v3, 0.0 }
 0x658   : > { %4082 = vmatmul.f32.vlgmr.msrb.gmra.mxu3 %v3937_v50 }
 0x667   : > { %v4023_v9 = vpop.f32.mrf.mxu0 }
 0x668   : > { %v4024_v21 = vadd.f32 %v4251_v38, %v4023_v9  ;;  %v4043_v8 = vpop.f32.mrf.mxu1 }
 0x66a   : > { %v4044_v13 = vadd.f32 %v4043_v8, %v4024_v21 }
 0x66f   : > { %v4063_v4 = vpop.f32.mrf.mxu2 }
 0x670   : > { %v4064_v29 = vadd.f32 %v4063_v4, %v4044_v13 }
 0x6db   : > { %v4083_v26 = vpop.f32.mrf.mxu3 }
 0x6dc   : > { %v4084_v18 = vadd.f32 %v4083_v26, %v4064_v29 }
 0x6de   : > { %v4086_v14 = vmul.f32 10.0, %v4084_v18 }
 0x6e0   : > { %v4088_v19 = vsel %vm4087_vm1, %v4086_v14, -inf }
 0x6e1   : > { %4089 = vmax.xlane.f32.xlu0 %v4088_v19 }
 0x754   : > { %v4090_v22 = vpop.xlane.xlu0 %4089 }
 0x755   : > { %v4091_v62 = vsub.f32 %v4086_v14, %v4090_v22 }
 0x757   : > { %v4092_v24 = vmul.f32 1.442695, %v4091_v62 }
 0x759   : > { %4252 = vpow2.f32 %v4092_v24 }
 0x75f   : > { %v4253_v27 = vpop.eup %4252 }
 0x760   : > { %v4094_v20 = vsel %vm4087_vm1, %v4253_v27, 0.0 }
 0x761   : > { %4095 = vadd.xlane.f32.xlu0 %v4094_v20 }
 0x7d4   : > { %v4096_v44 = vpop.xlane.xlu0 %4095 }
 0x7d5   : > { %4254 = vrcp.f32 %v4096_v44  ;;  %v4108_v58 = vand.u32 2147483648, %v4096_v44  ;;  %v4106_v63 = vand.u32 2147483647, %v4096_v44  ;;  %vm4102_vm3 = vweird.f32 %v4096_v44 }
 0x7d7   : > { %v4109_v17 = vor.u32 1.1754944e-38, %v4108_v58  ;;  %vm4107_vm5 = vcmp.eq.f32.partialorder %v4106_v63, 8.507059e+37 }
 0x7db   : > { %v4255_v42 = vpop.eup %4254 }
 0x7dc   : > { %v4098_v31 = vmul.f32 %v4255_v42, %v4096_v44  ;;  %vm4103_vm2 = vweird.f32 %v4255_v42 }
 0x7dd   : > { %vm4104_vm4 = vmor %vm4102_vm3, %vm4103_vm2 }
 0x7de   : > { %v4099_v32 = vsub.f32 1.0, %v4098_v31 }
 0x7e0   : > { %v4100_v34 = vmul.f32 %v4255_v42, %v4099_v32 }
 0x7e2   : > { %v4101_v52 = vadd.f32 %v4255_v42, %v4100_v34  ;;  %4115 = sbr.rel (%p4227_p4) target bundleno = 2025 (0x7e9), region = 44 }
 0x7e4   : > { %v4105_v48 = vsel %vm4104_vm4, %v4255_v42, %v4101_v52 }
 0x7e5   : > { %v4110_v35 = vsel %vm4107_vm5, %v4109_v17, %v4105_v48 }
 0x7e6   : > { %v4111_v51 = vmul.f32 %v4253_v27, %v4110_v35 }
 0x7e7   : > { %v4312_v40 = vmov 0.0  }
 0x7e8   : > { %4116 = vst.msk [vmem:[#allocation2] sm:$0x3] %vm4087_vm1, %v4312_v40 }
 0x7e9 PF: > { %v4118_v49 = vmul.f32 0.2, %v4111_v51  ;;  %p4239_p5 = scmp.eq.s32.totalorder %s4350_s19, 4  ;;  %s4129_s21 = sshll.u32 %s6265_s5, 4  ;;  %s4130_s21 = int_to_ptr.hbm [resolvable:$true] %s4129_s21 }
 0x7ea   : > { %s4313_s22 = smov [#allocation2]  }
 0x7eb   : > { %s4127_s23 = sshll.u32 %s4313_s22, 4  ;;  %s4128_s23 = int_to_ptr.vmem [resolvable:$true] %s4127_s23 }
 0x7ef   : > { %v4117_v61 = vld [vmem:[#allocation2] sm:$0x3] }
 0x7f0   : > { %v4119_v41 = vadd.f32 %v4118_v49, %v4117_v61 }
 0x7f2   : > { %4120 = vst.msk [vmem:[#allocation2] sm:$0x3] %vm4087_vm1, %v4119_v41 }
 0x7f3   : > { %4236 = dma.vmem_to_hbm [thread:$0]  (%p4239_p5), %s4128_s23, 32, %s4130_s21, [#allocation3]  }
 0x7f4   : > { %4305 = dma.done.wait (%p4239_p5), [#allocation3], 32  }
 0x7f5   : > { %4307 = vsyncadd (%p4239_p5), [#allocation3], 4294967264 }
 0x7f6 PF: > { %s16_s18 = sadd.s32 1, %s4310_s18  }
 0x7f7   : > { %p13_p6 = scmp.ge.s32.totalorder %s16_s18, 7  }
 0x7f9   :  { %15 = sbr.rel (!%p13_p6) target bundleno = 1 (0x1), region = 84 }
 0x7fe   :  { %4143 = vsyncpa [#allocation3], 1 }
 0x7ff   :  { %4145 = vsyncpa [#allocation3 + $0x1], 1 }

</bundles_post_ra>
